<compile_context>
chip_gen: v5e
topology: v5e:2x2
jax: 0.10.0
libtpu: 0.0.40
codegen_flags: <defaults>
</compile_context>

<pallas_src>
import functools

import jax
import jax.numpy as jnp
from jax.experimental import pallas as pl
from jax.experimental.pallas import tpu as pltpu


CONV_CHANNELS = (8, 8, 16, 16, 16, 16, 32, 32)   # scaled-down HomographyNet widths
POOL_AFTER = (1, 3, 5)                           # 2x2 max-pool after conv2/4/6
FC_HIDDEN = 64
NUM_OUT = 8
ACT_DTYPE = jnp.bfloat16


# ---------------------------------------------------------------------------
# Fused conv3x3 + bias + ReLU [+ 2x2 max-pool] kernel (one grid step per image)
# ---------------------------------------------------------------------------
def _conv3x3_kernel(x_ref, w_ref, b_ref, o_ref, *, H, W, cin, cout, pool):
    x = x_ref[0]                       # (H+2, W+2, cin) bf16, zero-padded halo
    w = w_ref[...]                     # (9*cin, cout) bf16, rows ordered (ky, kx, cin)
    acc = jnp.zeros((H * W, cout), jnp.float32)
    # Fused im2col: 9 statically-unrolled shifted slices, accumulated on the MXU.
    for k in range(9):
        dy, dx = k // 3, k % 3
        xs = x[dy:dy + H, dx:dx + W, :].reshape(H * W, cin)
        acc = acc + jnp.dot(xs, w[k * cin:(k + 1) * cin, :],
                            preferred_element_type=jnp.float32)
    acc = jnp.maximum(acc + b_ref[...], 0.0)      # bias + ReLU in f32

    if pool:
        # Fused 2x2/stride-2 max pool (reshape-split + pairwise max, last dim kept).
        y = acc.reshape(H // 2, 2, W, cout)
        y = jnp.maximum(y[:, 0], y[:, 1])                 # max over row pairs
        y = y.reshape(H // 2, W // 2, 2, cout)
        y = jnp.maximum(y[:, :, 0, :], y[:, :, 1, :])     # max over column pairs
    else:
        y = acc.reshape(H, W, cout)
    o_ref[0] = y.astype(o_ref.dtype)


def conv3x3_relu_pool(x, w, b, *, pool):
    """x: (N,H,W,Cin) bf16, w: (9*Cin,Cout) bf16, b: (1,Cout) f32 -> NHWC bf16."""
    n, h, wd, cin = x.shape
    cout = w.shape[1]
    assert w.shape[0] == 9 * cin
    if pool:
        assert h % 2 == 0 and wd % 2 == 0
    ho, wo = (h // 2, wd // 2) if pool else (h, wd)
    # Zero 'same' padding once in HBM (tiny copy compared to fused-away im2col).
    xp = jnp.pad(x, ((0, 0), (1, 1), (1, 1), (0, 0)))

    kern = functools.partial(_conv3x3_kernel, H=h, W=wd, cin=cin, cout=cout, pool=pool)
    return pl.pallas_call(
        kern,
        out_shape=jax.ShapeDtypeStruct((n, ho, wo, cout), ACT_DTYPE),
        grid_spec=pltpu.PrefetchScalarGridSpec(
            num_scalar_prefetch=0,
            grid=(n,),
            in_specs=[
                pl.BlockSpec((1, h + 2, wd + 2, cin), lambda i: (i, 0, 0, 0)),
                pl.BlockSpec((9 * cin, cout), lambda i: (0, 0)),
                pl.BlockSpec((1, cout), lambda i: (0, 0)),
            ],
            out_specs=pl.BlockSpec((1, ho, wo, cout), lambda i: (i, 0, 0, 0)),
        ),
        compiler_params=pltpu.CompilerParams(dimension_semantics=("parallel",)),
    )(xp, w, b)


# ---------------------------------------------------------------------------
# Fused MLP head: fc1 + ReLU + fc2 in a single kernel, tiled over rows
# ---------------------------------------------------------------------------
def _mlp_head_kernel(x_ref, w1_ref, b1_ref, w2_ref, b2_ref, o_ref):
    h = jnp.dot(x_ref[...], w1_ref[...], preferred_element_type=jnp.float32)
    h = jnp.maximum(h + b1_ref[...], 0.0)
    o = jnp.dot(h.astype(w2_ref.dtype), w2_ref[...],
                preferred_element_type=jnp.float32)
    o_ref[...] = (o + b2_ref[...]).astype(o_ref.dtype)


def mlp_head(x, w1, b1, w2, b2, *, tm=128):
    m, feat = x.shape
    hidden = w1.shape[1]
    nout = w2.shape[1]
    tm = min(tm, max(8, ((m + 7) // 8) * 8))      # don't pad tiny batches to 128
    mp = ((m + tm - 1) // tm) * tm
    if mp != m:
        x = jnp.pad(x, ((0, mp - m), (0, 0)))

    out = pl.pallas_call(
        _mlp_head_kernel,
        out_shape=jax.ShapeDtypeStruct((mp, nout), jnp.float32),
        grid_spec=pltpu.PrefetchScalarGridSpec(
            num_scalar_prefetch=0,
            grid=(mp // tm,),
            in_specs=[
                pl.BlockSpec((tm, feat), lambda i: (i, 0)),
                pl.BlockSpec((feat, hidden), lambda i: (0, 0)),
                pl.BlockSpec((1, hidden), lambda i: (0, 0)),
                pl.BlockSpec((hidden, nout), lambda i: (0, 0)),
                pl.BlockSpec((1, nout), lambda i: (0, 0)),
            ],
            out_specs=pl.BlockSpec((tm, nout), lambda i: (i, 0)),
        ),
        compiler_params=pltpu.CompilerParams(dimension_semantics=("parallel",)),
    )(x, w1, b1, w2, b2)
    return out[:m]


# ---------------------------------------------------------------------------
# Parameters + forward
# ---------------------------------------------------------------------------
def init_params(key, patch_size):
    cins = (2,) + CONV_CHANNELS[:-1]
    keys = jax.random.split(key, 2 * len(CONV_CHANNELS) + 4)
    params = {}
    ki = 0
    for i, (ci, co) in enumerate(zip(cins, CONV_CHANNELS)):
        fan_in = 9 * ci
        # weight rows ordered (ky, kx, cin) to match the kernel's slice layout
        params[f"conv{i}_w"] = (jax.random.normal(keys[ki], (9 * ci, co), jnp.float32)
                                * (2.0 / fan_in) ** 0.5).astype(ACT_DTYPE)
        ki += 1
        params[f"conv{i}_b"] = (jax.random.normal(keys[ki], (1, co), jnp.float32) * 0.01)
        ki += 1
    feat = CONV_CHANNELS[-1] * (patch_size // 8) ** 2
    # fc1 rows are in NHWC flatten order (no per-forward transpose needed).
    params["fc1_w"] = ((jax.random.normal(keys[ki], (feat, FC_HIDDEN), jnp.float32)
                        * (2.0 / feat) ** 0.5).astype(ACT_DTYPE)); ki += 1
    params["fc1_b"] = jax.random.normal(keys[ki], (1, FC_HIDDEN), jnp.float32) * 0.01; ki += 1
    params["fc2_w"] = ((jax.random.normal(keys[ki], (FC_HIDDEN, NUM_OUT), jnp.float32)
                        * (2.0 / FC_HIDDEN) ** 0.5).astype(ACT_DTYPE)); ki += 1
    params["fc2_b"] = jax.random.normal(keys[ki], (1, NUM_OUT), jnp.float32) * 0.01
    return params


def homography_model_forward(params, a, b):
    """a, b: NCHW (N, 1, P, P) float32 patches (PyTorch convention). Returns (N, 8)."""
    x = jnp.concatenate([a, b], axis=1)                      # (N, 2, P, P) NCHW
    x = jnp.transpose(x, (0, 2, 3, 1)).astype(ACT_DTYPE)     # -> NHWC bf16
    for i in range(len(CONV_CHANNELS)):
        x = conv3x3_relu_pool(x, params[f"conv{i}_w"], params[f"conv{i}_b"],
                              pool=(i in POOL_AFTER))
    n = x.shape[0]
    x = x.reshape(n, -1)                                     # NHWC flatten (fc1_w matches)
    return mlp_head(x, params["fc1_w"], params["fc1_b"],
                    params["fc2_w"], params["fc2_b"])        # (N, 8) f32


# ---------------------------------------------------------------------------
if __name__ == "__main__":
    PATCH = 16          # small demo patch size (the module's default is 128)
    BATCH = 2

    key = jax.random.PRNGKey(0)
    kp, ka, kb = jax.random.split(key, 3)
    params = init_params(kp, PATCH)
    a = jax.random.normal(ka, (BATCH, 1, PATCH, PATCH), jnp.float32)
    b = jax.random.normal(kb, (BATCH, 1, PATCH, PATCH), jnp.float32)

    fwd = jax.jit(functools.partial(homography_model_forward, params))
    out = fwd(a, b)
    jax.block_until_ready(out)
    assert out.shape == (BATCH, NUM_OUT) and out.dtype == jnp.float32
    print("KERNEL_OK")
</pallas_src>

<mosaic_0001>
module attributes {stable_mosaic.version = 11 : i64} {
  func.func @_conv3x3_kernel(%arg0: i32, %arg1: memref<1x18x18x8xbf16, #tpu.memory_space<vmem>>, %arg2: memref<72x8xbf16, #tpu.memory_space<vmem>>, %arg3: memref<1x8xf32, #tpu.memory_space<vmem>>, %arg4: memref<1x8x8x8xbf16, #tpu.memory_space<vmem>>) attributes {dimension_semantics = [#tpu.dimension_semantics<parallel>], iteration_bounds = array<i64: 2>, scalar_prefetch = 0 : i64, scratch_operands = 0 : i64, tpu.core_type = #tpu.core_type<tc>, window_params = [{transform_indices = @transform_0, window_bounds = array<i64: 1, 18, 18, 8>}, {pipeline_mode = #tpu.pipeline_mode<synchronous>, transform_indices = @transform_1, window_bounds = array<i64: 72, 8>}, {pipeline_mode = #tpu.pipeline_mode<synchronous>, transform_indices = @transform_2, window_bounds = array<i64: 1, 8>}, {transform_indices = @transform_3, window_bounds = array<i64: 1, 8, 8, 8>}]} {
    %c0 = arith.constant 0 : index
    %c0_0 = arith.constant 0 : index
    %c0_1 = arith.constant 0 : index
    %c0_2 = arith.constant 0 : index
    %0 = vector.load %arg1[%c0, %c0_0, %c0_1, %c0_2] : memref<1x18x18x8xbf16, #tpu.memory_space<vmem>>, vector<1x18x18x8xbf16>
    %1 = vector.shape_cast %0 : vector<1x18x18x8xbf16> to vector<18x18x8xbf16>
    %c0_3 = arith.constant 0 : index
    %c0_4 = arith.constant 0 : index
    %2 = vector.load %arg2[%c0_3, %c0_4] : memref<72x8xbf16, #tpu.memory_space<vmem>>, vector<72x8xbf16>
    %cst = arith.constant 0.000000e+00 : f32
    %3 = vector.broadcast %cst : f32 to vector<256x8xf32>
    %4 = vector.extract_strided_slice %1 {offsets = [0, 0, 0], sizes = [16, 16, 8], strides = [1, 1, 1]} : vector<18x18x8xbf16> to vector<16x16x8xbf16>
    %5 = vector.shape_cast %4 : vector<16x16x8xbf16> to vector<256x8xbf16>
    %6 = vector.extract_strided_slice %2 {offsets = [0, 0], sizes = [8, 8], strides = [1, 1]} : vector<72x8xbf16> to vector<8x8xbf16>
    %cst_5 = arith.constant dense<0.000000e+00> : vector<256x8xf32>
    %7 = tpu.matmul %5, %6, %cst_5 {dimension_numbers = #tpu.dot_dimension_numbers<[1], [0], [0], [1], [0, 0, 1, 1], [], []>} : vector<256x8xbf16>, vector<8x8xbf16>, vector<256x8xf32> -> vector<256x8xf32>
    %8 = arith.addf %3, %7 : vector<256x8xf32>
    %9 = vector.extract_strided_slice %1 {offsets = [0, 1, 0], sizes = [16, 16, 8], strides = [1, 1, 1]} : vector<18x18x8xbf16> to vector<16x16x8xbf16>
    %10 = vector.shape_cast %9 : vector<16x16x8xbf16> to vector<256x8xbf16>
    %11 = vector.extract_strided_slice %2 {offsets = [8, 0], sizes = [8, 8], strides = [1, 1]} : vector<72x8xbf16> to vector<8x8xbf16>
    %cst_6 = arith.constant dense<0.000000e+00> : vector<256x8xf32>
    %12 = tpu.matmul %10, %11, %cst_6 {dimension_numbers = #tpu.dot_dimension_numbers<[1], [0], [0], [1], [0, 0, 1, 1], [], []>} : vector<256x8xbf16>, vector<8x8xbf16>, vector<256x8xf32> -> vector<256x8xf32>
    %13 = arith.addf %8, %12 : vector<256x8xf32>
    %14 = vector.extract_strided_slice %1 {offsets = [0, 2, 0], sizes = [16, 16, 8], strides = [1, 1, 1]} : vector<18x18x8xbf16> to vector<16x16x8xbf16>
    %15 = vector.shape_cast %14 : vector<16x16x8xbf16> to vector<256x8xbf16>
    %16 = vector.extract_strided_slice %2 {offsets = [16, 0], sizes = [8, 8], strides = [1, 1]} : vector<72x8xbf16> to vector<8x8xbf16>
    %cst_7 = arith.constant dense<0.000000e+00> : vector<256x8xf32>
    %17 = tpu.matmul %15, %16, %cst_7 {dimension_numbers = #tpu.dot_dimension_numbers<[1], [0], [0], [1], [0, 0, 1, 1], [], []>} : vector<256x8xbf16>, vector<8x8xbf16>, vector<256x8xf32> -> vector<256x8xf32>
    %18 = arith.addf %13, %17 : vector<256x8xf32>
    %19 = vector.extract_strided_slice %1 {offsets = [1, 0, 0], sizes = [16, 16, 8], strides = [1, 1, 1]} : vector<18x18x8xbf16> to vector<16x16x8xbf16>
    %20 = vector.shape_cast %19 : vector<16x16x8xbf16> to vector<256x8xbf16>
    %21 = vector.extract_strided_slice %2 {offsets = [24, 0], sizes = [8, 8], strides = [1, 1]} : vector<72x8xbf16> to vector<8x8xbf16>
    %cst_8 = arith.constant dense<0.000000e+00> : vector<256x8xf32>
    %22 = tpu.matmul %20, %21, %cst_8 {dimension_numbers = #tpu.dot_dimension_numbers<[1], [0], [0], [1], [0, 0, 1, 1], [], []>} : vector<256x8xbf16>, vector<8x8xbf16>, vector<256x8xf32> -> vector<256x8xf32>
    %23 = arith.addf %18, %22 : vector<256x8xf32>
    %24 = vector.extract_strided_slice %1 {offsets = [1, 1, 0], sizes = [16, 16, 8], strides = [1, 1, 1]} : vector<18x18x8xbf16> to vector<16x16x8xbf16>
    %25 = vector.shape_cast %24 : vector<16x16x8xbf16> to vector<256x8xbf16>
    %26 = vector.extract_strided_slice %2 {offsets = [32, 0], sizes = [8, 8], strides = [1, 1]} : vector<72x8xbf16> to vector<8x8xbf16>
    %cst_9 = arith.constant dense<0.000000e+00> : vector<256x8xf32>
    %27 = tpu.matmul %25, %26, %cst_9 {dimension_numbers = #tpu.dot_dimension_numbers<[1], [0], [0], [1], [0, 0, 1, 1], [], []>} : vector<256x8xbf16>, vector<8x8xbf16>, vector<256x8xf32> -> vector<256x8xf32>
    %28 = arith.addf %23, %27 : vector<256x8xf32>
    %29 = vector.extract_strided_slice %1 {offsets = [1, 2, 0], sizes = [16, 16, 8], strides = [1, 1, 1]} : vector<18x18x8xbf16> to vector<16x16x8xbf16>
    %30 = vector.shape_cast %29 : vector<16x16x8xbf16> to vector<256x8xbf16>
    %31 = vector.extract_strided_slice %2 {offsets = [40, 0], sizes = [8, 8], strides = [1, 1]} : vector<72x8xbf16> to vector<8x8xbf16>
    %cst_10 = arith.constant dense<0.000000e+00> : vector<256x8xf32>
    %32 = tpu.matmul %30, %31, %cst_10 {dimension_numbers = #tpu.dot_dimension_numbers<[1], [0], [0], [1], [0, 0, 1, 1], [], []>} : vector<256x8xbf16>, vector<8x8xbf16>, vector<256x8xf32> -> vector<256x8xf32>
    %33 = arith.addf %28, %32 : vector<256x8xf32>
    %34 = vector.extract_strided_slice %1 {offsets = [2, 0, 0], sizes = [16, 16, 8], strides = [1, 1, 1]} : vector<18x18x8xbf16> to vector<16x16x8xbf16>
    %35 = vector.shape_cast %34 : vector<16x16x8xbf16> to vector<256x8xbf16>
    %36 = vector.extract_strided_slice %2 {offsets = [48, 0], sizes = [8, 8], strides = [1, 1]} : vector<72x8xbf16> to vector<8x8xbf16>
    %cst_11 = arith.constant dense<0.000000e+00> : vector<256x8xf32>
    %37 = tpu.matmul %35, %36, %cst_11 {dimension_numbers = #tpu.dot_dimension_numbers<[1], [0], [0], [1], [0, 0, 1, 1], [], []>} : vector<256x8xbf16>, vector<8x8xbf16>, vector<256x8xf32> -> vector<256x8xf32>
    %38 = arith.addf %33, %37 : vector<256x8xf32>
    %39 = vector.extract_strided_slice %1 {offsets = [2, 1, 0], sizes = [16, 16, 8], strides = [1, 1, 1]} : vector<18x18x8xbf16> to vector<16x16x8xbf16>
    %40 = vector.shape_cast %39 : vector<16x16x8xbf16> to vector<256x8xbf16>
    %41 = vector.extract_strided_slice %2 {offsets = [56, 0], sizes = [8, 8], strides = [1, 1]} : vector<72x8xbf16> to vector<8x8xbf16>
    %cst_12 = arith.constant dense<0.000000e+00> : vector<256x8xf32>
    %42 = tpu.matmul %40, %41, %cst_12 {dimension_numbers = #tpu.dot_dimension_numbers<[1], [0], [0], [1], [0, 0, 1, 1], [], []>} : vector<256x8xbf16>, vector<8x8xbf16>, vector<256x8xf32> -> vector<256x8xf32>
    %43 = arith.addf %38, %42 : vector<256x8xf32>
    %44 = vector.extract_strided_slice %1 {offsets = [2, 2, 0], sizes = [16, 16, 8], strides = [1, 1, 1]} : vector<18x18x8xbf16> to vector<16x16x8xbf16>
    %45 = vector.shape_cast %44 : vector<16x16x8xbf16> to vector<256x8xbf16>
    %46 = vector.extract_strided_slice %2 {offsets = [64, 0], sizes = [8, 8], strides = [1, 1]} : vector<72x8xbf16> to vector<8x8xbf16>
    %cst_13 = arith.constant dense<0.000000e+00> : vector<256x8xf32>
    %47 = tpu.matmul %45, %46, %cst_13 {dimension_numbers = #tpu.dot_dimension_numbers<[1], [0], [0], [1], [0, 0, 1, 1], [], []>} : vector<256x8xbf16>, vector<8x8xbf16>, vector<256x8xf32> -> vector<256x8xf32>
    %48 = arith.addf %43, %47 : vector<256x8xf32>
    %c0_14 = arith.constant 0 : index
    %c0_15 = arith.constant 0 : index
    %49 = vector.load %arg3[%c0_14, %c0_15] : memref<1x8xf32, #tpu.memory_space<vmem>>, vector<1x8xf32>
    %50 = vector.broadcast %49 : vector<1x8xf32> to vector<256x8xf32>
    %51 = arith.addf %48, %50 : vector<256x8xf32>
    %cst_16 = arith.constant 0.000000e+00 : f32
    %52 = vector.broadcast %cst_16 : f32 to vector<256x8xf32>
    %53 = arith.maximumf %51, %52 : vector<256x8xf32>
    %54 = vector.shape_cast %53 : vector<256x8xf32> to vector<8x2x16x8xf32>
    %55 = vector.extract_strided_slice %54 {offsets = [0, 0, 0, 0], sizes = [8, 1, 16, 8], strides = [1, 1, 1, 1]} : vector<8x2x16x8xf32> to vector<8x1x16x8xf32>
    %56 = vector.shape_cast %55 : vector<8x1x16x8xf32> to vector<8x16x8xf32>
    %57 = vector.extract_strided_slice %54 {offsets = [0, 1, 0, 0], sizes = [8, 1, 16, 8], strides = [1, 1, 1, 1]} : vector<8x2x16x8xf32> to vector<8x1x16x8xf32>
    %58 = vector.shape_cast %57 : vector<8x1x16x8xf32> to vector<8x16x8xf32>
    %59 = arith.maximumf %56, %58 : vector<8x16x8xf32>
    %60 = vector.shape_cast %59 : vector<8x16x8xf32> to vector<8x8x2x8xf32>
    %61 = vector.extract_strided_slice %60 {offsets = [0, 0, 0, 0], sizes = [8, 8, 1, 8], strides = [1, 1, 1, 1]} : vector<8x8x2x8xf32> to vector<8x8x1x8xf32>
    %62 = vector.shape_cast %61 : vector<8x8x1x8xf32> to vector<8x8x8xf32>
    %63 = vector.extract_strided_slice %60 {offsets = [0, 0, 1, 0], sizes = [8, 8, 1, 8], strides = [1, 1, 1, 1]} : vector<8x8x2x8xf32> to vector<8x8x1x8xf32>
    %64 = vector.shape_cast %63 : vector<8x8x1x8xf32> to vector<8x8x8xf32>
    %65 = arith.maximumf %62, %64 : vector<8x8x8xf32>
    %66 = arith.truncf %65 : vector<8x8x8xf32> to vector<8x8x8xbf16>
    %c0_17 = arith.constant 0 : index
    %c0_18 = arith.constant 0 : index
    %c0_19 = arith.constant 0 : index
    %c0_20 = arith.constant 0 : index
    %67 = vector.load %arg4[%c0_17, %c0_18, %c0_19, %c0_20] : memref<1x8x8x8xbf16, #tpu.memory_space<vmem>>, vector<1x8x8x8xbf16>
    %68 = vector.shape_cast %67 : vector<1x8x8x8xbf16> to vector<8x8x8xbf16>
    %69 = vector.shape_cast %66 : vector<8x8x8xbf16> to vector<1x8x8x8xbf16>
    tpu.vector_store %arg4[%c0_17, %c0_18, %c0_19, %c0_20], %69 {strides = array<i32>} : memref<1x8x8x8xbf16, #tpu.memory_space<vmem>>, vector<1x8x8x8xbf16>,
    return
  }
  func.func @transform_0(%arg0: i32) -> (i32, i32, i32, i32) {
    %c0_i32 = arith.constant 0 : i32
    %c0_i32_0 = arith.constant 0 : i32
    %c0_i32_1 = arith.constant 0 : i32
    %c0_i32_2 = arith.constant 0 : i32
    return %arg0, %c0_i32, %c0_i32_0, %c0_i32_1 : i32, i32, i32, i32
  }
  func.func @transform_1(%arg0: i32) -> (i32, i32) {
    %c0_i32 = arith.constant 0 : i32
    %c0_i32_0 = arith.constant 0 : i32
    %c0_i32_1 = arith.constant 0 : i32
    return %c0_i32, %c0_i32_0 : i32, i32
  }
  func.func @transform_2(%arg0: i32) -> (i32, i32) {
    %c0_i32 = arith.constant 0 : i32
    %c0_i32_0 = arith.constant 0 : i32
    %c0_i32_1 = arith.constant 0 : i32
    return %c0_i32, %c0_i32_0 : i32, i32
  }
  func.func @transform_3(%arg0: i32) -> (i32, i32, i32, i32) {
    %c0_i32 = arith.constant 0 : i32
    %c0_i32_0 = arith.constant 0 : i32
    %c0_i32_1 = arith.constant 0 : i32
    %c0_i32_2 = arith.constant 0 : i32
    return %arg0, %c0_i32, %c0_i32_0, %c0_i32_1 : i32, i32, i32, i32
  }
}

module attributes {stable_mosaic.version = 11 : i64} {
  func.func @_conv3x3_kernel(%arg0: i32, %arg1: memref<1x18x18x2xbf16, #tpu.memory_space<vmem>>, %arg2: memref<18x8xbf16, #tpu.memory_space<vmem>>, %arg3: memref<1x8xf32, #tpu.memory_space<vmem>>, %arg4: memref<1x16x16x8xbf16, #tpu.memory_space<vmem>>) attributes {dimension_semantics = [#tpu.dimension_semantics<parallel>], iteration_bounds = array<i64: 2>, scalar_prefetch = 0 : i64, scratch_operands = 0 : i64, tpu.core_type = #tpu.core_type<tc>, window_params = [{transform_indices = @transform_0, window_bounds = array<i64: 1, 18, 18, 2>}, {pipeline_mode = #tpu.pipeline_mode<synchronous>, transform_indices = @transform_1, window_bounds = array<i64: 18, 8>}, {pipeline_mode = #tpu.pipeline_mode<synchronous>, transform_indices = @transform_2, window_bounds = array<i64: 1, 8>}, {transform_indices = @transform_3, window_bounds = array<i64: 1, 16, 16, 8>}]} {
    %c0 = arith.constant 0 : index
    %c0_0 = arith.constant 0 : index
    %c0_1 = arith.constant 0 : index
    %c0_2 = arith.constant 0 : index
    %0 = vector.load %arg1[%c0, %c0_0, %c0_1, %c0_2] : memref<1x18x18x2xbf16, #tpu.memory_space<vmem>>, vector<1x18x18x2xbf16>
    %1 = vector.shape_cast %0 : vector<1x18x18x2xbf16> to vector<18x18x2xbf16>
    %c0_3 = arith.constant 0 : index
    %c0_4 = arith.constant 0 : index
    %2 = vector.load %arg2[%c0_3, %c0_4] : memref<18x8xbf16, #tpu.memory_space<vmem>>, vector<18x8xbf16>
    %cst = arith.constant 0.000000e+00 : f32
    %3 = vector.broadcast %cst : f32 to vector<256x8xf32>
    %4 = vector.extract_strided_slice %1 {offsets = [0, 0, 0], sizes = [16, 16, 2], strides = [1, 1, 1]} : vector<18x18x2xbf16> to vector<16x16x2xbf16>
    %5 = vector.shape_cast %4 : vector<16x16x2xbf16> to vector<256x2xbf16>
    %6 = vector.extract_strided_slice %2 {offsets = [0, 0], sizes = [2, 8], strides = [1, 1]} : vector<18x8xbf16> to vector<2x8xbf16>
    %cst_5 = arith.constant dense<0.000000e+00> : vector<256x8xf32>
    %7 = tpu.matmul %5, %6, %cst_5 {dimension_numbers = #tpu.dot_dimension_numbers<[1], [0], [0], [1], [0, 0, 1, 1], [], []>} : vector<256x2xbf16>, vector<2x8xbf16>, vector<256x8xf32> -> vector<256x8xf32>
    %8 = arith.addf %3, %7 : vector<256x8xf32>
    %9 = vector.extract_strided_slice %1 {offsets = [0, 1, 0], sizes = [16, 16, 2], strides = [1, 1, 1]} : vector<18x18x2xbf16> to vector<16x16x2xbf16>
    %10 = vector.shape_cast %9 : vector<16x16x2xbf16> to vector<256x2xbf16>
    %11 = vector.extract_strided_slice %2 {offsets = [2, 0], sizes = [2, 8], strides = [1, 1]} : vector<18x8xbf16> to vector<2x8xbf16>
    %cst_6 = arith.constant dense<0.000000e+00> : vector<256x8xf32>
    %12 = tpu.matmul %10, %11, %cst_6 {dimension_numbers = #tpu.dot_dimension_numbers<[1], [0], [0], [1], [0, 0, 1, 1], [], []>} : vector<256x2xbf16>, vector<2x8xbf16>, vector<256x8xf32> -> vector<256x8xf32>
    %13 = arith.addf %8, %12 : vector<256x8xf32>
    %14 = vector.extract_strided_slice %1 {offsets = [0, 2, 0], sizes = [16, 16, 2], strides = [1, 1, 1]} : vector<18x18x2xbf16> to vector<16x16x2xbf16>
    %15 = vector.shape_cast %14 : vector<16x16x2xbf16> to vector<256x2xbf16>
    %16 = vector.extract_strided_slice %2 {offsets = [4, 0], sizes = [2, 8], strides = [1, 1]} : vector<18x8xbf16> to vector<2x8xbf16>
    %cst_7 = arith.constant dense<0.000000e+00> : vector<256x8xf32>
    %17 = tpu.matmul %15, %16, %cst_7 {dimension_numbers = #tpu.dot_dimension_numbers<[1], [0], [0], [1], [0, 0, 1, 1], [], []>} : vector<256x2xbf16>, vector<2x8xbf16>, vector<256x8xf32> -> vector<256x8xf32>
    %18 = arith.addf %13, %17 : vector<256x8xf32>
    %19 = vector.extract_strided_slice %1 {offsets = [1, 0, 0], sizes = [16, 16, 2], strides = [1, 1, 1]} : vector<18x18x2xbf16> to vector<16x16x2xbf16>
    %20 = vector.shape_cast %19 : vector<16x16x2xbf16> to vector<256x2xbf16>
    %21 = vector.extract_strided_slice %2 {offsets = [6, 0], sizes = [2, 8], strides = [1, 1]} : vector<18x8xbf16> to vector<2x8xbf16>
    %cst_8 = arith.constant dense<0.000000e+00> : vector<256x8xf32>
    %22 = tpu.matmul %20, %21, %cst_8 {dimension_numbers = #tpu.dot_dimension_numbers<[1], [0], [0], [1], [0, 0, 1, 1], [], []>} : vector<256x2xbf16>, vector<2x8xbf16>, vector<256x8xf32> -> vector<256x8xf32>
    %23 = arith.addf %18, %22 : vector<256x8xf32>
    %24 = vector.extract_strided_slice %1 {offsets = [1, 1, 0], sizes = [16, 16, 2], strides = [1, 1, 1]} : vector<18x18x2xbf16> to vector<16x16x2xbf16>
    %25 = vector.shape_cast %24 : vector<16x16x2xbf16> to vector<256x2xbf16>
    %26 = vector.extract_strided_slice %2 {offsets = [8, 0], sizes = [2, 8], strides = [1, 1]} : vector<18x8xbf16> to vector<2x8xbf16>
    %cst_9 = arith.constant dense<0.000000e+00> : vector<256x8xf32>
    %27 = tpu.matmul %25, %26, %cst_9 {dimension_numbers = #tpu.dot_dimension_numbers<[1], [0], [0], [1], [0, 0, 1, 1], [], []>} : vector<256x2xbf16>, vector<2x8xbf16>, vector<256x8xf32> -> vector<256x8xf32>
    %28 = arith.addf %23, %27 : vector<256x8xf32>
    %29 = vector.extract_strided_slice %1 {offsets = [1, 2, 0], sizes = [16, 16, 2], strides = [1, 1, 1]} : vector<18x18x2xbf16> to vector<16x16x2xbf16>
    %30 = vector.shape_cast %29 : vector<16x16x2xbf16> to vector<256x2xbf16>
    %31 = vector.extract_strided_slice %2 {offsets = [10, 0], sizes = [2, 8], strides = [1, 1]} : vector<18x8xbf16> to vector<2x8xbf16>
    %cst_10 = arith.constant dense<0.000000e+00> : vector<256x8xf32>
    %32 = tpu.matmul %30, %31, %cst_10 {dimension_numbers = #tpu.dot_dimension_numbers<[1], [0], [0], [1], [0, 0, 1, 1], [], []>} : vector<256x2xbf16>, vector<2x8xbf16>, vector<256x8xf32> -> vector<256x8xf32>
    %33 = arith.addf %28, %32 : vector<256x8xf32>
    %34 = vector.extract_strided_slice %1 {offsets = [2, 0, 0], sizes = [16, 16, 2], strides = [1, 1, 1]} : vector<18x18x2xbf16> to vector<16x16x2xbf16>
    %35 = vector.shape_cast %34 : vector<16x16x2xbf16> to vector<256x2xbf16>
    %36 = vector.extract_strided_slice %2 {offsets = [12, 0], sizes = [2, 8], strides = [1, 1]} : vector<18x8xbf16> to vector<2x8xbf16>
    %cst_11 = arith.constant dense<0.000000e+00> : vector<256x8xf32>
    %37 = tpu.matmul %35, %36, %cst_11 {dimension_numbers = #tpu.dot_dimension_numbers<[1], [0], [0], [1], [0, 0, 1, 1], [], []>} : vector<256x2xbf16>, vector<2x8xbf16>, vector<256x8xf32> -> vector<256x8xf32>
    %38 = arith.addf %33, %37 : vector<256x8xf32>
    %39 = vector.extract_strided_slice %1 {offsets = [2, 1, 0], sizes = [16, 16, 2], strides = [1, 1, 1]} : vector<18x18x2xbf16> to vector<16x16x2xbf16>
    %40 = vector.shape_cast %39 : vector<16x16x2xbf16> to vector<256x2xbf16>
    %41 = vector.extract_strided_slice %2 {offsets = [14, 0], sizes = [2, 8], strides = [1, 1]} : vector<18x8xbf16> to vector<2x8xbf16>
    %cst_12 = arith.constant dense<0.000000e+00> : vector<256x8xf32>
    %42 = tpu.matmul %40, %41, %cst_12 {dimension_numbers = #tpu.dot_dimension_numbers<[1], [0], [0], [1], [0, 0, 1, 1], [], []>} : vector<256x2xbf16>, vector<2x8xbf16>, vector<256x8xf32> -> vector<256x8xf32>
    %43 = arith.addf %38, %42 : vector<256x8xf32>
    %44 = vector.extract_strided_slice %1 {offsets = [2, 2, 0], sizes = [16, 16, 2], strides = [1, 1, 1]} : vector<18x18x2xbf16> to vector<16x16x2xbf16>
    %45 = vector.shape_cast %44 : vector<16x16x2xbf16> to vector<256x2xbf16>
    %46 = vector.extract_strided_slice %2 {offsets = [16, 0], sizes = [2, 8], strides = [1, 1]} : vector<18x8xbf16> to vector<2x8xbf16>
    %cst_13 = arith.constant dense<0.000000e+00> : vector<256x8xf32>
    %47 = tpu.matmul %45, %46, %cst_13 {dimension_numbers = #tpu.dot_dimension_numbers<[1], [0], [0], [1], [0, 0, 1, 1], [], []>} : vector<256x2xbf16>, vector<2x8xbf16>, vector<256x8xf32> -> vector<256x8xf32>
    %48 = arith.addf %43, %47 : vector<256x8xf32>
    %c0_14 = arith.constant 0 : index
    %c0_15 = arith.constant 0 : index
    %49 = vector.load %arg3[%c0_14, %c0_15] : memref<1x8xf32, #tpu.memory_space<vmem>>, vector<1x8xf32>
    %50 = vector.broadcast %49 : vector<1x8xf32> to vector<256x8xf32>
    %51 = arith.addf %48, %50 : vector<256x8xf32>
    %cst_16 = arith.constant 0.000000e+00 : f32
    %52 = vector.broadcast %cst_16 : f32 to vector<256x8xf32>
    %53 = arith.maximumf %51, %52 : vector<256x8xf32>
    %54 = vector.shape_cast %53 : vector<256x8xf32> to vector<16x16x8xf32>
    %55 = arith.truncf %54 : vector<16x16x8xf32> to vector<16x16x8xbf16>
    %c0_17 = arith.constant 0 : index
    %c0_18 = arith.constant 0 : index
    %c0_19 = arith.constant 0 : index
    %c0_20 = arith.constant 0 : index
    %56 = vector.load %arg4[%c0_17, %c0_18, %c0_19, %c0_20] : memref<1x16x16x8xbf16, #tpu.memory_space<vmem>>, vector<1x16x16x8xbf16>
    %57 = vector.shape_cast %56 : vector<1x16x16x8xbf16> to vector<16x16x8xbf16>
    %58 = vector.shape_cast %55 : vector<16x16x8xbf16> to vector<1x16x16x8xbf16>
    tpu.vector_store %arg4[%c0_17, %c0_18, %c0_19, %c0_20], %58 {strides = array<i32>} : memref<1x16x16x8xbf16, #tpu.memory_space<vmem>>, vector<1x16x16x8xbf16>,
    return
  }
  func.func @transform_0(%arg0: i32) -> (i32, i32, i32, i32) {
    %c0_i32 = arith.constant 0 : i32
    %c0_i32_0 = arith.constant 0 : i32
    %c0_i32_1 = arith.constant 0 : i32
    %c0_i32_2 = arith.constant 0 : i32
    return %arg0, %c0_i32, %c0_i32_0, %c0_i32_1 : i32, i32, i32, i32
  }
  func.func @transform_1(%arg0: i32) -> (i32, i32) {
    %c0_i32 = arith.constant 0 : i32
    %c0_i32_0 = arith.constant 0 : i32
    %c0_i32_1 = arith.constant 0 : i32
    return %c0_i32, %c0_i32_0 : i32, i32
  }
  func.func @transform_2(%arg0: i32) -> (i32, i32) {
    %c0_i32 = arith.constant 0 : i32
    %c0_i32_0 = arith.constant 0 : i32
    %c0_i32_1 = arith.constant 0 : i32
    return %c0_i32, %c0_i32_0 : i32, i32
  }
  func.func @transform_3(%arg0: i32) -> (i32, i32, i32, i32) {
    %c0_i32 = arith.constant 0 : i32
    %c0_i32_0 = arith.constant 0 : i32
    %c0_i32_1 = arith.constant 0 : i32
    %c0_i32_2 = arith.constant 0 : i32
    return %arg0, %c0_i32, %c0_i32_0, %c0_i32_1 : i32, i32, i32, i32
  }
}

module attributes {stable_mosaic.version = 11 : i64} {
  func.func @_conv3x3_kernel(%arg0: i32, %arg1: memref<1x10x10x8xbf16, #tpu.memory_space<vmem>>, %arg2: memref<72x16xbf16, #tpu.memory_space<vmem>>, %arg3: memref<1x16xf32, #tpu.memory_space<vmem>>, %arg4: memref<1x8x8x16xbf16, #tpu.memory_space<vmem>>) attributes {dimension_semantics = [#tpu.dimension_semantics<parallel>], iteration_bounds = array<i64: 2>, scalar_prefetch = 0 : i64, scratch_operands = 0 : i64, tpu.core_type = #tpu.core_type<tc>, window_params = [{transform_indices = @transform_0, window_bounds = array<i64: 1, 10, 10, 8>}, {pipeline_mode = #tpu.pipeline_mode<synchronous>, transform_indices = @transform_1, window_bounds = array<i64: 72, 16>}, {pipeline_mode = #tpu.pipeline_mode<synchronous>, transform_indices = @transform_2, window_bounds = array<i64: 1, 16>}, {transform_indices = @transform_3, window_bounds = array<i64: 1, 8, 8, 16>}]} {
    %c0 = arith.constant 0 : index
    %c0_0 = arith.constant 0 : index
    %c0_1 = arith.constant 0 : index
    %c0_2 = arith.constant 0 : index
    %0 = vector.load %arg1[%c0, %c0_0, %c0_1, %c0_2] : memref<1x10x10x8xbf16, #tpu.memory_space<vmem>>, vector<1x10x10x8xbf16>
    %1 = vector.shape_cast %0 : vector<1x10x10x8xbf16> to vector<10x10x8xbf16>
    %c0_3 = arith.constant 0 : index
    %c0_4 = arith.constant 0 : index
    %2 = vector.load %arg2[%c0_3, %c0_4] : memref<72x16xbf16, #tpu.memory_space<vmem>>, vector<72x16xbf16>
    %cst = arith.constant 0.000000e+00 : f32
    %3 = vector.broadcast %cst : f32 to vector<64x16xf32>
    %4 = vector.extract_strided_slice %1 {offsets = [0, 0, 0], sizes = [8, 8, 8], strides = [1, 1, 1]} : vector<10x10x8xbf16> to vector<8x8x8xbf16>
    %5 = vector.shape_cast %4 : vector<8x8x8xbf16> to vector<64x8xbf16>
    %6 = vector.extract_strided_slice %2 {offsets = [0, 0], sizes = [8, 16], strides = [1, 1]} : vector<72x16xbf16> to vector<8x16xbf16>
    %cst_5 = arith.constant dense<0.000000e+00> : vector<64x16xf32>
    %7 = tpu.matmul %5, %6, %cst_5 {dimension_numbers = #tpu.dot_dimension_numbers<[1], [0], [0], [1], [0, 0, 1, 1], [], []>} : vector<64x8xbf16>, vector<8x16xbf16>, vector<64x16xf32> -> vector<64x16xf32>
    %8 = arith.addf %3, %7 : vector<64x16xf32>
    %9 = vector.extract_strided_slice %1 {offsets = [0, 1, 0], sizes = [8, 8, 8], strides = [1, 1, 1]} : vector<10x10x8xbf16> to vector<8x8x8xbf16>
    %10 = vector.shape_cast %9 : vector<8x8x8xbf16> to vector<64x8xbf16>
    %11 = vector.extract_strided_slice %2 {offsets = [8, 0], sizes = [8, 16], strides = [1, 1]} : vector<72x16xbf16> to vector<8x16xbf16>
    %cst_6 = arith.constant dense<0.000000e+00> : vector<64x16xf32>
    %12 = tpu.matmul %10, %11, %cst_6 {dimension_numbers = #tpu.dot_dimension_numbers<[1], [0], [0], [1], [0, 0, 1, 1], [], []>} : vector<64x8xbf16>, vector<8x16xbf16>, vector<64x16xf32> -> vector<64x16xf32>
    %13 = arith.addf %8, %12 : vector<64x16xf32>
    %14 = vector.extract_strided_slice %1 {offsets = [0, 2, 0], sizes = [8, 8, 8], strides = [1, 1, 1]} : vector<10x10x8xbf16> to vector<8x8x8xbf16>
    %15 = vector.shape_cast %14 : vector<8x8x8xbf16> to vector<64x8xbf16>
    %16 = vector.extract_strided_slice %2 {offsets = [16, 0], sizes = [8, 16], strides = [1, 1]} : vector<72x16xbf16> to vector<8x16xbf16>
    %cst_7 = arith.constant dense<0.000000e+00> : vector<64x16xf32>
    %17 = tpu.matmul %15, %16, %cst_7 {dimension_numbers = #tpu.dot_dimension_numbers<[1], [0], [0], [1], [0, 0, 1, 1], [], []>} : vector<64x8xbf16>, vector<8x16xbf16>, vector<64x16xf32> -> vector<64x16xf32>
    %18 = arith.addf %13, %17 : vector<64x16xf32>
    %19 = vector.extract_strided_slice %1 {offsets = [1, 0, 0], sizes = [8, 8, 8], strides = [1, 1, 1]} : vector<10x10x8xbf16> to vector<8x8x8xbf16>
    %20 = vector.shape_cast %19 : vector<8x8x8xbf16> to vector<64x8xbf16>
    %21 = vector.extract_strided_slice %2 {offsets = [24, 0], sizes = [8, 16], strides = [1, 1]} : vector<72x16xbf16> to vector<8x16xbf16>
    %cst_8 = arith.constant dense<0.000000e+00> : vector<64x16xf32>
    %22 = tpu.matmul %20, %21, %cst_8 {dimension_numbers = #tpu.dot_dimension_numbers<[1], [0], [0], [1], [0, 0, 1, 1], [], []>} : vector<64x8xbf16>, vector<8x16xbf16>, vector<64x16xf32> -> vector<64x16xf32>
    %23 = arith.addf %18, %22 : vector<64x16xf32>
    %24 = vector.extract_strided_slice %1 {offsets = [1, 1, 0], sizes = [8, 8, 8], strides = [1, 1, 1]} : vector<10x10x8xbf16> to vector<8x8x8xbf16>
    %25 = vector.shape_cast %24 : vector<8x8x8xbf16> to vector<64x8xbf16>
    %26 = vector.extract_strided_slice %2 {offsets = [32, 0], sizes = [8, 16], strides = [1, 1]} : vector<72x16xbf16> to vector<8x16xbf16>
    %cst_9 = arith.constant dense<0.000000e+00> : vector<64x16xf32>
    %27 = tpu.matmul %25, %26, %cst_9 {dimension_numbers = #tpu.dot_dimension_numbers<[1], [0], [0], [1], [0, 0, 1, 1], [], []>} : vector<64x8xbf16>, vector<8x16xbf16>, vector<64x16xf32> -> vector<64x16xf32>
    %28 = arith.addf %23, %27 : vector<64x16xf32>
    %29 = vector.extract_strided_slice %1 {offsets = [1, 2, 0], sizes = [8, 8, 8], strides = [1, 1, 1]} : vector<10x10x8xbf16> to vector<8x8x8xbf16>
    %30 = vector.shape_cast %29 : vector<8x8x8xbf16> to vector<64x8xbf16>
    %31 = vector.extract_strided_slice %2 {offsets = [40, 0], sizes = [8, 16], strides = [1, 1]} : vector<72x16xbf16> to vector<8x16xbf16>
    %cst_10 = arith.constant dense<0.000000e+00> : vector<64x16xf32>
    %32 = tpu.matmul %30, %31, %cst_10 {dimension_numbers = #tpu.dot_dimension_numbers<[1], [0], [0], [1], [0, 0, 1, 1], [], []>} : vector<64x8xbf16>, vector<8x16xbf16>, vector<64x16xf32> -> vector<64x16xf32>
    %33 = arith.addf %28, %32 : vector<64x16xf32>
    %34 = vector.extract_strided_slice %1 {offsets = [2, 0, 0], sizes = [8, 8, 8], strides = [1, 1, 1]} : vector<10x10x8xbf16> to vector<8x8x8xbf16>
    %35 = vector.shape_cast %34 : vector<8x8x8xbf16> to vector<64x8xbf16>
    %36 = vector.extract_strided_slice %2 {offsets = [48, 0], sizes = [8, 16], strides = [1, 1]} : vector<72x16xbf16> to vector<8x16xbf16>
    %cst_11 = arith.constant dense<0.000000e+00> : vector<64x16xf32>
    %37 = tpu.matmul %35, %36, %cst_11 {dimension_numbers = #tpu.dot_dimension_numbers<[1], [0], [0], [1], [0, 0, 1, 1], [], []>} : vector<64x8xbf16>, vector<8x16xbf16>, vector<64x16xf32> -> vector<64x16xf32>
    %38 = arith.addf %33, %37 : vector<64x16xf32>
    %39 = vector.extract_strided_slice %1 {offsets = [2, 1, 0], sizes = [8, 8, 8], strides = [1, 1, 1]} : vector<10x10x8xbf16> to vector<8x8x8xbf16>
    %40 = vector.shape_cast %39 : vector<8x8x8xbf16> to vector<64x8xbf16>
    %41 = vector.extract_strided_slice %2 {offsets = [56, 0], sizes = [8, 16], strides = [1, 1]} : vector<72x16xbf16> to vector<8x16xbf16>
    %cst_12 = arith.constant dense<0.000000e+00> : vector<64x16xf32>
    %42 = tpu.matmul %40, %41, %cst_12 {dimension_numbers = #tpu.dot_dimension_numbers<[1], [0], [0], [1], [0, 0, 1, 1], [], []>} : vector<64x8xbf16>, vector<8x16xbf16>, vector<64x16xf32> -> vector<64x16xf32>
    %43 = arith.addf %38, %42 : vector<64x16xf32>
    %44 = vector.extract_strided_slice %1 {offsets = [2, 2, 0], sizes = [8, 8, 8], strides = [1, 1, 1]} : vector<10x10x8xbf16> to vector<8x8x8xbf16>
    %45 = vector.shape_cast %44 : vector<8x8x8xbf16> to vector<64x8xbf16>
    %46 = vector.extract_strided_slice %2 {offsets = [64, 0], sizes = [8, 16], strides = [1, 1]} : vector<72x16xbf16> to vector<8x16xbf16>
    %cst_13 = arith.constant dense<0.000000e+00> : vector<64x16xf32>
    %47 = tpu.matmul %45, %46, %cst_13 {dimension_numbers = #tpu.dot_dimension_numbers<[1], [0], [0], [1], [0, 0, 1, 1], [], []>} : vector<64x8xbf16>, vector<8x16xbf16>, vector<64x16xf32> -> vector<64x16xf32>
    %48 = arith.addf %43, %47 : vector<64x16xf32>
    %c0_14 = arith.constant 0 : index
    %c0_15 = arith.constant 0 : index
    %49 = vector.load %arg3[%c0_14, %c0_15] : memref<1x16xf32, #tpu.memory_space<vmem>>, vector<1x16xf32>
    %50 = vector.broadcast %49 : vector<1x16xf32> to vector<64x16xf32>
    %51 = arith.addf %48, %50 : vector<64x16xf32>
    %cst_16 = arith.constant 0.000000e+00 : f32
    %52 = vector.broadcast %cst_16 : f32 to vector<64x16xf32>
    %53 = arith.maximumf %51, %52 : vector<64x16xf32>
    %54 = vector.shape_cast %53 : vector<64x16xf32> to vector<8x8x16xf32>
    %55 = arith.truncf %54 : vector<8x8x16xf32> to vector<8x8x16xbf16>
    %c0_17 = arith.constant 0 : index
    %c0_18 = arith.constant 0 : index
    %c0_19 = arith.constant 0 : index
    %c0_20 = arith.constant 0 : index
    %56 = vector.load %arg4[%c0_17, %c0_18, %c0_19, %c0_20] : memref<1x8x8x16xbf16, #tpu.memory_space<vmem>>, vector<1x8x8x16xbf16>
    %57 = vector.shape_cast %56 : vector<1x8x8x16xbf16> to vector<8x8x16xbf16>
    %58 = vector.shape_cast %55 : vector<8x8x16xbf16> to vector<1x8x8x16xbf16>
    tpu.vector_store %arg4[%c0_17, %c0_18, %c0_19, %c0_20], %58 {strides = array<i32>} : memref<1x8x8x16xbf16, #tpu.memory_space<vmem>>, vector<1x8x8x16xbf16>,
    return
  }
  func.func @transform_0(%arg0: i32) -> (i32, i32, i32, i32) {
    %c0_i32 = arith.constant 0 : i32
    %c0_i32_0 = arith.constant 0 : i32
    %c0_i32_1 = arith.constant 0 : i32
    %c0_i32_2 = arith.constant 0 : i32
    return %arg0, %c0_i32, %c0_i32_0, %c0_i32_1 : i32, i32, i32, i32
  }
  func.func @transform_1(%arg0: i32) -> (i32, i32) {
    %c0_i32 = arith.constant 0 : i32
    %c0_i32_0 = arith.constant 0 : i32
    %c0_i32_1 = arith.constant 0 : i32
    return %c0_i32, %c0_i32_0 : i32, i32
  }
  func.func @transform_2(%arg0: i32) -> (i32, i32) {
    %c0_i32 = arith.constant 0 : i32
    %c0_i32_0 = arith.constant 0 : i32
    %c0_i32_1 = arith.constant 0 : i32
    return %c0_i32, %c0_i32_0 : i32, i32
  }
  func.func @transform_3(%arg0: i32) -> (i32, i32, i32, i32) {
    %c0_i32 = arith.constant 0 : i32
    %c0_i32_0 = arith.constant 0 : i32
    %c0_i32_1 = arith.constant 0 : i32
    %c0_i32_2 = arith.constant 0 : i32
    return %arg0, %c0_i32, %c0_i32_0, %c0_i32_1 : i32, i32, i32, i32
  }
}

module attributes {stable_mosaic.version = 11 : i64} {
  func.func @_conv3x3_kernel(%arg0: i32, %arg1: memref<1x10x10x16xbf16, #tpu.memory_space<vmem>>, %arg2: memref<144x16xbf16, #tpu.memory_space<vmem>>, %arg3: memref<1x16xf32, #tpu.memory_space<vmem>>, %arg4: memref<1x4x4x16xbf16, #tpu.memory_space<vmem>>) attributes {dimension_semantics = [#tpu.dimension_semantics<parallel>], iteration_bounds = array<i64: 2>, scalar_prefetch = 0 : i64, scratch_operands = 0 : i64, tpu.core_type = #tpu.core_type<tc>, window_params = [{transform_indices = @transform_0, window_bounds = array<i64: 1, 10, 10, 16>}, {pipeline_mode = #tpu.pipeline_mode<synchronous>, transform_indices = @transform_1, window_bounds = array<i64: 144, 16>}, {pipeline_mode = #tpu.pipeline_mode<synchronous>, transform_indices = @transform_2, window_bounds = array<i64: 1, 16>}, {transform_indices = @transform_3, window_bounds = array<i64: 1, 4, 4, 16>}]} {
    %c0 = arith.constant 0 : index
    %c0_0 = arith.constant 0 : index
    %c0_1 = arith.constant 0 : index
    %c0_2 = arith.constant 0 : index
    %0 = vector.load %arg1[%c0, %c0_0, %c0_1, %c0_2] : memref<1x10x10x16xbf16, #tpu.memory_space<vmem>>, vector<1x10x10x16xbf16>
    %1 = vector.shape_cast %0 : vector<1x10x10x16xbf16> to vector<10x10x16xbf16>
    %c0_3 = arith.constant 0 : index
    %c0_4 = arith.constant 0 : index
    %2 = vector.load %arg2[%c0_3, %c0_4] : memref<144x16xbf16, #tpu.memory_space<vmem>>, vector<144x16xbf16>
    %cst = arith.constant 0.000000e+00 : f32
    %3 = vector.broadcast %cst : f32 to vector<64x16xf32>
    %4 = vector.extract_strided_slice %1 {offsets = [0, 0, 0], sizes = [8, 8, 16], strides = [1, 1, 1]} : vector<10x10x16xbf16> to vector<8x8x16xbf16>
    %5 = vector.shape_cast %4 : vector<8x8x16xbf16> to vector<64x16xbf16>
    %6 = vector.extract_strided_slice %2 {offsets = [0, 0], sizes = [16, 16], strides = [1, 1]} : vector<144x16xbf16> to vector<16x16xbf16>
    %cst_5 = arith.constant dense<0.000000e+00> : vector<64x16xf32>
    %7 = tpu.matmul %5, %6, %cst_5 {dimension_numbers = #tpu.dot_dimension_numbers<[1], [0], [0], [1], [0, 0, 1, 1], [], []>} : vector<64x16xbf16>, vector<16x16xbf16>, vector<64x16xf32> -> vector<64x16xf32>
    %8 = arith.addf %3, %7 : vector<64x16xf32>
    %9 = vector.extract_strided_slice %1 {offsets = [0, 1, 0], sizes = [8, 8, 16], strides = [1, 1, 1]} : vector<10x10x16xbf16> to vector<8x8x16xbf16>
    %10 = vector.shape_cast %9 : vector<8x8x16xbf16> to vector<64x16xbf16>
    %11 = vector.extract_strided_slice %2 {offsets = [16, 0], sizes = [16, 16], strides = [1, 1]} : vector<144x16xbf16> to vector<16x16xbf16>
    %cst_6 = arith.constant dense<0.000000e+00> : vector<64x16xf32>
    %12 = tpu.matmul %10, %11, %cst_6 {dimension_numbers = #tpu.dot_dimension_numbers<[1], [0], [0], [1], [0, 0, 1, 1], [], []>} : vector<64x16xbf16>, vector<16x16xbf16>, vector<64x16xf32> -> vector<64x16xf32>
    %13 = arith.addf %8, %12 : vector<64x16xf32>
    %14 = vector.extract_strided_slice %1 {offsets = [0, 2, 0], sizes = [8, 8, 16], strides = [1, 1, 1]} : vector<10x10x16xbf16> to vector<8x8x16xbf16>
    %15 = vector.shape_cast %14 : vector<8x8x16xbf16> to vector<64x16xbf16>
    %16 = vector.extract_strided_slice %2 {offsets = [32, 0], sizes = [16, 16], strides = [1, 1]} : vector<144x16xbf16> to vector<16x16xbf16>
    %cst_7 = arith.constant dense<0.000000e+00> : vector<64x16xf32>
    %17 = tpu.matmul %15, %16, %cst_7 {dimension_numbers = #tpu.dot_dimension_numbers<[1], [0], [0], [1], [0, 0, 1, 1], [], []>} : vector<64x16xbf16>, vector<16x16xbf16>, vector<64x16xf32> -> vector<64x16xf32>
    %18 = arith.addf %13, %17 : vector<64x16xf32>
    %19 = vector.extract_strided_slice %1 {offsets = [1, 0, 0], sizes = [8, 8, 16], strides = [1, 1, 1]} : vector<10x10x16xbf16> to vector<8x8x16xbf16>
    %20 = vector.shape_cast %19 : vector<8x8x16xbf16> to vector<64x16xbf16>
    %21 = vector.extract_strided_slice %2 {offsets = [48, 0], sizes = [16, 16], strides = [1, 1]} : vector<144x16xbf16> to vector<16x16xbf16>
    %cst_8 = arith.constant dense<0.000000e+00> : vector<64x16xf32>
    %22 = tpu.matmul %20, %21, %cst_8 {dimension_numbers = #tpu.dot_dimension_numbers<[1], [0], [0], [1], [0, 0, 1, 1], [], []>} : vector<64x16xbf16>, vector<16x16xbf16>, vector<64x16xf32> -> vector<64x16xf32>
    %23 = arith.addf %18, %22 : vector<64x16xf32>
    %24 = vector.extract_strided_slice %1 {offsets = [1, 1, 0], sizes = [8, 8, 16], strides = [1, 1, 1]} : vector<10x10x16xbf16> to vector<8x8x16xbf16>
    %25 = vector.shape_cast %24 : vector<8x8x16xbf16> to vector<64x16xbf16>
    %26 = vector.extract_strided_slice %2 {offsets = [64, 0], sizes = [16, 16], strides = [1, 1]} : vector<144x16xbf16> to vector<16x16xbf16>
    %cst_9 = arith.constant dense<0.000000e+00> : vector<64x16xf32>
    %27 = tpu.matmul %25, %26, %cst_9 {dimension_numbers = #tpu.dot_dimension_numbers<[1], [0], [0], [1], [0, 0, 1, 1], [], []>} : vector<64x16xbf16>, vector<16x16xbf16>, vector<64x16xf32> -> vector<64x16xf32>
    %28 = arith.addf %23, %27 : vector<64x16xf32>
    %29 = vector.extract_strided_slice %1 {offsets = [1, 2, 0], sizes = [8, 8, 16], strides = [1, 1, 1]} : vector<10x10x16xbf16> to vector<8x8x16xbf16>
    %30 = vector.shape_cast %29 : vector<8x8x16xbf16> to vector<64x16xbf16>
    %31 = vector.extract_strided_slice %2 {offsets = [80, 0], sizes = [16, 16], strides = [1, 1]} : vector<144x16xbf16> to vector<16x16xbf16>
    %cst_10 = arith.constant dense<0.000000e+00> : vector<64x16xf32>
    %32 = tpu.matmul %30, %31, %cst_10 {dimension_numbers = #tpu.dot_dimension_numbers<[1], [0], [0], [1], [0, 0, 1, 1], [], []>} : vector<64x16xbf16>, vector<16x16xbf16>, vector<64x16xf32> -> vector<64x16xf32>
    %33 = arith.addf %28, %32 : vector<64x16xf32>
    %34 = vector.extract_strided_slice %1 {offsets = [2, 0, 0], sizes = [8, 8, 16], strides = [1, 1, 1]} : vector<10x10x16xbf16> to vector<8x8x16xbf16>
    %35 = vector.shape_cast %34 : vector<8x8x16xbf16> to vector<64x16xbf16>
    %36 = vector.extract_strided_slice %2 {offsets = [96, 0], sizes = [16, 16], strides = [1, 1]} : vector<144x16xbf16> to vector<16x16xbf16>
    %cst_11 = arith.constant dense<0.000000e+00> : vector<64x16xf32>
    %37 = tpu.matmul %35, %36, %cst_11 {dimension_numbers = #tpu.dot_dimension_numbers<[1], [0], [0], [1], [0, 0, 1, 1], [], []>} : vector<64x16xbf16>, vector<16x16xbf16>, vector<64x16xf32> -> vector<64x16xf32>
    %38 = arith.addf %33, %37 : vector<64x16xf32>
    %39 = vector.extract_strided_slice %1 {offsets = [2, 1, 0], sizes = [8, 8, 16], strides = [1, 1, 1]} : vector<10x10x16xbf16> to vector<8x8x16xbf16>
    %40 = vector.shape_cast %39 : vector<8x8x16xbf16> to vector<64x16xbf16>
    %41 = vector.extract_strided_slice %2 {offsets = [112, 0], sizes = [16, 16], strides = [1, 1]} : vector<144x16xbf16> to vector<16x16xbf16>
    %cst_12 = arith.constant dense<0.000000e+00> : vector<64x16xf32>
    %42 = tpu.matmul %40, %41, %cst_12 {dimension_numbers = #tpu.dot_dimension_numbers<[1], [0], [0], [1], [0, 0, 1, 1], [], []>} : vector<64x16xbf16>, vector<16x16xbf16>, vector<64x16xf32> -> vector<64x16xf32>
    %43 = arith.addf %38, %42 : vector<64x16xf32>
    %44 = vector.extract_strided_slice %1 {offsets = [2, 2, 0], sizes = [8, 8, 16], strides = [1, 1, 1]} : vector<10x10x16xbf16> to vector<8x8x16xbf16>
    %45 = vector.shape_cast %44 : vector<8x8x16xbf16> to vector<64x16xbf16>
    %46 = vector.extract_strided_slice %2 {offsets = [128, 0], sizes = [16, 16], strides = [1, 1]} : vector<144x16xbf16> to vector<16x16xbf16>
    %cst_13 = arith.constant dense<0.000000e+00> : vector<64x16xf32>
    %47 = tpu.matmul %45, %46, %cst_13 {dimension_numbers = #tpu.dot_dimension_numbers<[1], [0], [0], [1], [0, 0, 1, 1], [], []>} : vector<64x16xbf16>, vector<16x16xbf16>, vector<64x16xf32> -> vector<64x16xf32>
    %48 = arith.addf %43, %47 : vector<64x16xf32>
    %c0_14 = arith.constant 0 : index
    %c0_15 = arith.constant 0 : index
    %49 = vector.load %arg3[%c0_14, %c0_15] : memref<1x16xf32, #tpu.memory_space<vmem>>, vector<1x16xf32>
    %50 = vector.broadcast %49 : vector<1x16xf32> to vector<64x16xf32>
    %51 = arith.addf %48, %50 : vector<64x16xf32>
    %cst_16 = arith.constant 0.000000e+00 : f32
    %52 = vector.broadcast %cst_16 : f32 to vector<64x16xf32>
    %53 = arith.maximumf %51, %52 : vector<64x16xf32>
    %54 = vector.shape_cast %53 : vector<64x16xf32> to vector<4x2x8x16xf32>
    %55 = vector.extract_strided_slice %54 {offsets = [0, 0, 0, 0], sizes = [4, 1, 8, 16], strides = [1, 1, 1, 1]} : vector<4x2x8x16xf32> to vector<4x1x8x16xf32>
    %56 = vector.shape_cast %55 : vector<4x1x8x16xf32> to vector<4x8x16xf32>
    %57 = vector.extract_strided_slice %54 {offsets = [0, 1, 0, 0], sizes = [4, 1, 8, 16], strides = [1, 1, 1, 1]} : vector<4x2x8x16xf32> to vector<4x1x8x16xf32>
    %58 = vector.shape_cast %57 : vector<4x1x8x16xf32> to vector<4x8x16xf32>
    %59 = arith.maximumf %56, %58 : vector<4x8x16xf32>
    %60 = vector.shape_cast %59 : vector<4x8x16xf32> to vector<4x4x2x16xf32>
    %61 = vector.extract_strided_slice %60 {offsets = [0, 0, 0, 0], sizes = [4, 4, 1, 16], strides = [1, 1, 1, 1]} : vector<4x4x2x16xf32> to vector<4x4x1x16xf32>
    %62 = vector.shape_cast %61 : vector<4x4x1x16xf32> to vector<4x4x16xf32>
    %63 = vector.extract_strided_slice %60 {offsets = [0, 0, 1, 0], sizes = [4, 4, 1, 16], strides = [1, 1, 1, 1]} : vector<4x4x2x16xf32> to vector<4x4x1x16xf32>
    %64 = vector.shape_cast %63 : vector<4x4x1x16xf32> to vector<4x4x16xf32>
    %65 = arith.maximumf %62, %64 : vector<4x4x16xf32>
    %66 = arith.truncf %65 : vector<4x4x16xf32> to vector<4x4x16xbf16>
    %c0_17 = arith.constant 0 : index
    %c0_18 = arith.constant 0 : index
    %c0_19 = arith.constant 0 : index
    %c0_20 = arith.constant 0 : index
    %67 = vector.load %arg4[%c0_17, %c0_18, %c0_19, %c0_20] : memref<1x4x4x16xbf16, #tpu.memory_space<vmem>>, vector<1x4x4x16xbf16>
    %68 = vector.shape_cast %67 : vector<1x4x4x16xbf16> to vector<4x4x16xbf16>
    %69 = vector.shape_cast %66 : vector<4x4x16xbf16> to vector<1x4x4x16xbf16>
    tpu.vector_store %arg4[%c0_17, %c0_18, %c0_19, %c0_20], %69 {strides = array<i32>} : memref<1x4x4x16xbf16, #tpu.memory_space<vmem>>, vector<1x4x4x16xbf16>,
    return
  }
  func.func @transform_0(%arg0: i32) -> (i32, i32, i32, i32) {
    %c0_i32 = arith.constant 0 : i32
    %c0_i32_0 = arith.constant 0 : i32
    %c0_i32_1 = arith.constant 0 : i32
    %c0_i32_2 = arith.constant 0 : i32
    return %arg0, %c0_i32, %c0_i32_0, %c0_i32_1 : i32, i32, i32, i32
  }
  func.func @transform_1(%arg0: i32) -> (i32, i32) {
    %c0_i32 = arith.constant 0 : i32
    %c0_i32_0 = arith.constant 0 : i32
    %c0_i32_1 = arith.constant 0 : i32
    return %c0_i32, %c0_i32_0 : i32, i32
  }
  func.func @transform_2(%arg0: i32) -> (i32, i32) {
    %c0_i32 = arith.constant 0 : i32
    %c0_i32_0 = arith.constant 0 : i32
    %c0_i32_1 = arith.constant 0 : i32
    return %c0_i32, %c0_i32_0 : i32, i32
  }
  func.func @transform_3(%arg0: i32) -> (i32, i32, i32, i32) {
    %c0_i32 = arith.constant 0 : i32
    %c0_i32_0 = arith.constant 0 : i32
    %c0_i32_1 = arith.constant 0 : i32
    %c0_i32_2 = arith.constant 0 : i32
    return %arg0, %c0_i32, %c0_i32_0, %c0_i32_1 : i32, i32, i32, i32
  }
}

module attributes {stable_mosaic.version = 11 : i64} {
  func.func @_conv3x3_kernel(%arg0: i32, %arg1: memref<1x6x6x16xbf16, #tpu.memory_space<vmem>>, %arg2: memref<144x16xbf16, #tpu.memory_space<vmem>>, %arg3: memref<1x16xf32, #tpu.memory_space<vmem>>, %arg4: memref<1x4x4x16xbf16, #tpu.memory_space<vmem>>) attributes {dimension_semantics = [#tpu.dimension_semantics<parallel>], iteration_bounds = array<i64: 2>, scalar_prefetch = 0 : i64, scratch_operands = 0 : i64, tpu.core_type = #tpu.core_type<tc>, window_params = [{transform_indices = @transform_0, window_bounds = array<i64: 1, 6, 6, 16>}, {pipeline_mode = #tpu.pipeline_mode<synchronous>, transform_indices = @transform_1, window_bounds = array<i64: 144, 16>}, {pipeline_mode = #tpu.pipeline_mode<synchronous>, transform_indices = @transform_2, window_bounds = array<i64: 1, 16>}, {transform_indices = @transform_3, window_bounds = array<i64: 1, 4, 4, 16>}]} {
    %c0 = arith.constant 0 : index
    %c0_0 = arith.constant 0 : index
    %c0_1 = arith.constant 0 : index
    %c0_2 = arith.constant 0 : index
    %0 = vector.load %arg1[%c0, %c0_0, %c0_1, %c0_2] : memref<1x6x6x16xbf16, #tpu.memory_space<vmem>>, vector<1x6x6x16xbf16>
    %1 = vector.shape_cast %0 : vector<1x6x6x16xbf16> to vector<6x6x16xbf16>
    %c0_3 = arith.constant 0 : index
    %c0_4 = arith.constant 0 : index
    %2 = vector.load %arg2[%c0_3, %c0_4] : memref<144x16xbf16, #tpu.memory_space<vmem>>, vector<144x16xbf16>
    %cst = arith.constant 0.000000e+00 : f32
    %3 = vector.broadcast %cst : f32 to vector<16x16xf32>
    %4 = vector.extract_strided_slice %1 {offsets = [0, 0, 0], sizes = [4, 4, 16], strides = [1, 1, 1]} : vector<6x6x16xbf16> to vector<4x4x16xbf16>
    %5 = vector.shape_cast %4 : vector<4x4x16xbf16> to vector<16x16xbf16>
    %6 = vector.extract_strided_slice %2 {offsets = [0, 0], sizes = [16, 16], strides = [1, 1]} : vector<144x16xbf16> to vector<16x16xbf16>
    %cst_5 = arith.constant dense<0.000000e+00> : vector<16x16xf32>
    %7 = tpu.matmul %5, %6, %cst_5 {dimension_numbers = #tpu.dot_dimension_numbers<[1], [0], [0], [1], [0, 0, 1, 1], [], []>} : vector<16x16xbf16>, vector<16x16xbf16>, vector<16x16xf32> -> vector<16x16xf32>
    %8 = arith.addf %3, %7 : vector<16x16xf32>
    %9 = vector.extract_strided_slice %1 {offsets = [0, 1, 0], sizes = [4, 4, 16], strides = [1, 1, 1]} : vector<6x6x16xbf16> to vector<4x4x16xbf16>
    %10 = vector.shape_cast %9 : vector<4x4x16xbf16> to vector<16x16xbf16>
    %11 = vector.extract_strided_slice %2 {offsets = [16, 0], sizes = [16, 16], strides = [1, 1]} : vector<144x16xbf16> to vector<16x16xbf16>
    %cst_6 = arith.constant dense<0.000000e+00> : vector<16x16xf32>
    %12 = tpu.matmul %10, %11, %cst_6 {dimension_numbers = #tpu.dot_dimension_numbers<[1], [0], [0], [1], [0, 0, 1, 1], [], []>} : vector<16x16xbf16>, vector<16x16xbf16>, vector<16x16xf32> -> vector<16x16xf32>
    %13 = arith.addf %8, %12 : vector<16x16xf32>
    %14 = vector.extract_strided_slice %1 {offsets = [0, 2, 0], sizes = [4, 4, 16], strides = [1, 1, 1]} : vector<6x6x16xbf16> to vector<4x4x16xbf16>
    %15 = vector.shape_cast %14 : vector<4x4x16xbf16> to vector<16x16xbf16>
    %16 = vector.extract_strided_slice %2 {offsets = [32, 0], sizes = [16, 16], strides = [1, 1]} : vector<144x16xbf16> to vector<16x16xbf16>
    %cst_7 = arith.constant dense<0.000000e+00> : vector<16x16xf32>
    %17 = tpu.matmul %15, %16, %cst_7 {dimension_numbers = #tpu.dot_dimension_numbers<[1], [0], [0], [1], [0, 0, 1, 1], [], []>} : vector<16x16xbf16>, vector<16x16xbf16>, vector<16x16xf32> -> vector<16x16xf32>
    %18 = arith.addf %13, %17 : vector<16x16xf32>
    %19 = vector.extract_strided_slice %1 {offsets = [1, 0, 0], sizes = [4, 4, 16], strides = [1, 1, 1]} : vector<6x6x16xbf16> to vector<4x4x16xbf16>
    %20 = vector.shape_cast %19 : vector<4x4x16xbf16> to vector<16x16xbf16>
    %21 = vector.extract_strided_slice %2 {offsets = [48, 0], sizes = [16, 16], strides = [1, 1]} : vector<144x16xbf16> to vector<16x16xbf16>
    %cst_8 = arith.constant dense<0.000000e+00> : vector<16x16xf32>
    %22 = tpu.matmul %20, %21, %cst_8 {dimension_numbers = #tpu.dot_dimension_numbers<[1], [0], [0], [1], [0, 0, 1, 1], [], []>} : vector<16x16xbf16>, vector<16x16xbf16>, vector<16x16xf32> -> vector<16x16xf32>
    %23 = arith.addf %18, %22 : vector<16x16xf32>
    %24 = vector.extract_strided_slice %1 {offsets = [1, 1, 0], sizes = [4, 4, 16], strides = [1, 1, 1]} : vector<6x6x16xbf16> to vector<4x4x16xbf16>
    %25 = vector.shape_cast %24 : vector<4x4x16xbf16> to vector<16x16xbf16>
    %26 = vector.extract_strided_slice %2 {offsets = [64, 0], sizes = [16, 16], strides = [1, 1]} : vector<144x16xbf16> to vector<16x16xbf16>
    %cst_9 = arith.constant dense<0.000000e+00> : vector<16x16xf32>
    %27 = tpu.matmul %25, %26, %cst_9 {dimension_numbers = #tpu.dot_dimension_numbers<[1], [0], [0], [1], [0, 0, 1, 1], [], []>} : vector<16x16xbf16>, vector<16x16xbf16>, vector<16x16xf32> -> vector<16x16xf32>
    %28 = arith.addf %23, %27 : vector<16x16xf32>
    %29 = vector.extract_strided_slice %1 {offsets = [1, 2, 0], sizes = [4, 4, 16], strides = [1, 1, 1]} : vector<6x6x16xbf16> to vector<4x4x16xbf16>
    %30 = vector.shape_cast %29 : vector<4x4x16xbf16> to vector<16x16xbf16>
    %31 = vector.extract_strided_slice %2 {offsets = [80, 0], sizes = [16, 16], strides = [1, 1]} : vector<144x16xbf16> to vector<16x16xbf16>
    %cst_10 = arith.constant dense<0.000000e+00> : vector<16x16xf32>
    %32 = tpu.matmul %30, %31, %cst_10 {dimension_numbers = #tpu.dot_dimension_numbers<[1], [0], [0], [1], [0, 0, 1, 1], [], []>} : vector<16x16xbf16>, vector<16x16xbf16>, vector<16x16xf32> -> vector<16x16xf32>
    %33 = arith.addf %28, %32 : vector<16x16xf32>
    %34 = vector.extract_strided_slice %1 {offsets = [2, 0, 0], sizes = [4, 4, 16], strides = [1, 1, 1]} : vector<6x6x16xbf16> to vector<4x4x16xbf16>
    %35 = vector.shape_cast %34 : vector<4x4x16xbf16> to vector<16x16xbf16>
    %36 = vector.extract_strided_slice %2 {offsets = [96, 0], sizes = [16, 16], strides = [1, 1]} : vector<144x16xbf16> to vector<16x16xbf16>
    %cst_11 = arith.constant dense<0.000000e+00> : vector<16x16xf32>
    %37 = tpu.matmul %35, %36, %cst_11 {dimension_numbers = #tpu.dot_dimension_numbers<[1], [0], [0], [1], [0, 0, 1, 1], [], []>} : vector<16x16xbf16>, vector<16x16xbf16>, vector<16x16xf32> -> vector<16x16xf32>
    %38 = arith.addf %33, %37 : vector<16x16xf32>
    %39 = vector.extract_strided_slice %1 {offsets = [2, 1, 0], sizes = [4, 4, 16], strides = [1, 1, 1]} : vector<6x6x16xbf16> to vector<4x4x16xbf16>
    %40 = vector.shape_cast %39 : vector<4x4x16xbf16> to vector<16x16xbf16>
    %41 = vector.extract_strided_slice %2 {offsets = [112, 0], sizes = [16, 16], strides = [1, 1]} : vector<144x16xbf16> to vector<16x16xbf16>
    %cst_12 = arith.constant dense<0.000000e+00> : vector<16x16xf32>
    %42 = tpu.matmul %40, %41, %cst_12 {dimension_numbers = #tpu.dot_dimension_numbers<[1], [0], [0], [1], [0, 0, 1, 1], [], []>} : vector<16x16xbf16>, vector<16x16xbf16>, vector<16x16xf32> -> vector<16x16xf32>
    %43 = arith.addf %38, %42 : vector<16x16xf32>
    %44 = vector.extract_strided_slice %1 {offsets = [2, 2, 0], sizes = [4, 4, 16], strides = [1, 1, 1]} : vector<6x6x16xbf16> to vector<4x4x16xbf16>
    %45 = vector.shape_cast %44 : vector<4x4x16xbf16> to vector<16x16xbf16>
    %46 = vector.extract_strided_slice %2 {offsets = [128, 0], sizes = [16, 16], strides = [1, 1]} : vector<144x16xbf16> to vector<16x16xbf16>
    %cst_13 = arith.constant dense<0.000000e+00> : vector<16x16xf32>
    %47 = tpu.matmul %45, %46, %cst_13 {dimension_numbers = #tpu.dot_dimension_numbers<[1], [0], [0], [1], [0, 0, 1, 1], [], []>} : vector<16x16xbf16>, vector<16x16xbf16>, vector<16x16xf32> -> vector<16x16xf32>
    %48 = arith.addf %43, %47 : vector<16x16xf32>
    %c0_14 = arith.constant 0 : index
    %c0_15 = arith.constant 0 : index
    %49 = vector.load %arg3[%c0_14, %c0_15] : memref<1x16xf32, #tpu.memory_space<vmem>>, vector<1x16xf32>
    %50 = vector.broadcast %49 : vector<1x16xf32> to vector<16x16xf32>
    %51 = arith.addf %48, %50 : vector<16x16xf32>
    %cst_16 = arith.constant 0.000000e+00 : f32
    %52 = vector.broadcast %cst_16 : f32 to vector<16x16xf32>
    %53 = arith.maximumf %51, %52 : vector<16x16xf32>
    %54 = vector.shape_cast %53 : vector<16x16xf32> to vector<4x4x16xf32>
    %55 = arith.truncf %54 : vector<4x4x16xf32> to vector<4x4x16xbf16>
    %c0_17 = arith.constant 0 : index
    %c0_18 = arith.constant 0 : index
    %c0_19 = arith.constant 0 : index
    %c0_20 = arith.constant 0 : index
    %56 = vector.load %arg4[%c0_17, %c0_18, %c0_19, %c0_20] : memref<1x4x4x16xbf16, #tpu.memory_space<vmem>>, vector<1x4x4x16xbf16>
    %57 = vector.shape_cast %56 : vector<1x4x4x16xbf16> to vector<4x4x16xbf16>
    %58 = vector.shape_cast %55 : vector<4x4x16xbf16> to vector<1x4x4x16xbf16>
    tpu.vector_store %arg4[%c0_17, %c0_18, %c0_19, %c0_20], %58 {strides = array<i32>} : memref<1x4x4x16xbf16, #tpu.memory_space<vmem>>, vector<1x4x4x16xbf16>,
    return
  }
  func.func @transform_0(%arg0: i32) -> (i32, i32, i32, i32) {
    %c0_i32 = arith.constant 0 : i32
    %c0_i32_0 = arith.constant 0 : i32
    %c0_i32_1 = arith.constant 0 : i32
    %c0_i32_2 = arith.constant 0 : i32
    return %arg0, %c0_i32, %c0_i32_0, %c0_i32_1 : i32, i32, i32, i32
  }
  func.func @transform_1(%arg0: i32) -> (i32, i32) {
    %c0_i32 = arith.constant 0 : i32
    %c0_i32_0 = arith.constant 0 : i32
    %c0_i32_1 = arith.constant 0 : i32
    return %c0_i32, %c0_i32_0 : i32, i32
  }
  func.func @transform_2(%arg0: i32) -> (i32, i32) {
    %c0_i32 = arith.constant 0 : i32
    %c0_i32_0 = arith.constant 0 : i32
    %c0_i32_1 = arith.constant 0 : i32
    return %c0_i32, %c0_i32_0 : i32, i32
  }
  func.func @transform_3(%arg0: i32) -> (i32, i32, i32, i32) {
    %c0_i32 = arith.constant 0 : i32
    %c0_i32_0 = arith.constant 0 : i32
    %c0_i32_1 = arith.constant 0 : i32
    %c0_i32_2 = arith.constant 0 : i32
    return %arg0, %c0_i32, %c0_i32_0, %c0_i32_1 : i32, i32, i32, i32
  }
}

module attributes {stable_mosaic.version = 11 : i64} {
  func.func @_conv3x3_kernel(%arg0: i32, %arg1: memref<1x6x6x16xbf16, #tpu.memory_space<vmem>>, %arg2: memref<144x16xbf16, #tpu.memory_space<vmem>>, %arg3: memref<1x16xf32, #tpu.memory_space<vmem>>, %arg4: memref<1x2x2x16xbf16, #tpu.memory_space<vmem>>) attributes {dimension_semantics = [#tpu.dimension_semantics<parallel>], iteration_bounds = array<i64: 2>, scalar_prefetch = 0 : i64, scratch_operands = 0 : i64, tpu.core_type = #tpu.core_type<tc>, window_params = [{transform_indices = @transform_0, window_bounds = array<i64: 1, 6, 6, 16>}, {pipeline_mode = #tpu.pipeline_mode<synchronous>, transform_indices = @transform_1, window_bounds = array<i64: 144, 16>}, {pipeline_mode = #tpu.pipeline_mode<synchronous>, transform_indices = @transform_2, window_bounds = array<i64: 1, 16>}, {transform_indices = @transform_3, window_bounds = array<i64: 1, 2, 2, 16>}]} {
    %c0 = arith.constant 0 : index
    %c0_0 = arith.constant 0 : index
    %c0_1 = arith.constant 0 : index
    %c0_2 = arith.constant 0 : index
    %0 = vector.load %arg1[%c0, %c0_0, %c0_1, %c0_2] : memref<1x6x6x16xbf16, #tpu.memory_space<vmem>>, vector<1x6x6x16xbf16>
    %1 = vector.shape_cast %0 : vector<1x6x6x16xbf16> to vector<6x6x16xbf16>
    %c0_3 = arith.constant 0 : index
    %c0_4 = arith.constant 0 : index
    %2 = vector.load %arg2[%c0_3, %c0_4] : memref<144x16xbf16, #tpu.memory_space<vmem>>, vector<144x16xbf16>
    %cst = arith.constant 0.000000e+00 : f32
    %3 = vector.broadcast %cst : f32 to vector<16x16xf32>
    %4 = vector.extract_strided_slice %1 {offsets = [0, 0, 0], sizes = [4, 4, 16], strides = [1, 1, 1]} : vector<6x6x16xbf16> to vector<4x4x16xbf16>
    %5 = vector.shape_cast %4 : vector<4x4x16xbf16> to vector<16x16xbf16>
    %6 = vector.extract_strided_slice %2 {offsets = [0, 0], sizes = [16, 16], strides = [1, 1]} : vector<144x16xbf16> to vector<16x16xbf16>
    %cst_5 = arith.constant dense<0.000000e+00> : vector<16x16xf32>
    %7 = tpu.matmul %5, %6, %cst_5 {dimension_numbers = #tpu.dot_dimension_numbers<[1], [0], [0], [1], [0, 0, 1, 1], [], []>} : vector<16x16xbf16>, vector<16x16xbf16>, vector<16x16xf32> -> vector<16x16xf32>
    %8 = arith.addf %3, %7 : vector<16x16xf32>
    %9 = vector.extract_strided_slice %1 {offsets = [0, 1, 0], sizes = [4, 4, 16], strides = [1, 1, 1]} : vector<6x6x16xbf16> to vector<4x4x16xbf16>
    %10 = vector.shape_cast %9 : vector<4x4x16xbf16> to vector<16x16xbf16>
    %11 = vector.extract_strided_slice %2 {offsets = [16, 0], sizes = [16, 16], strides = [1, 1]} : vector<144x16xbf16> to vector<16x16xbf16>
    %cst_6 = arith.constant dense<0.000000e+00> : vector<16x16xf32>
    %12 = tpu.matmul %10, %11, %cst_6 {dimension_numbers = #tpu.dot_dimension_numbers<[1], [0], [0], [1], [0, 0, 1, 1], [], []>} : vector<16x16xbf16>, vector<16x16xbf16>, vector<16x16xf32> -> vector<16x16xf32>
    %13 = arith.addf %8, %12 : vector<16x16xf32>
    %14 = vector.extract_strided_slice %1 {offsets = [0, 2, 0], sizes = [4, 4, 16], strides = [1, 1, 1]} : vector<6x6x16xbf16> to vector<4x4x16xbf16>
    %15 = vector.shape_cast %14 : vector<4x4x16xbf16> to vector<16x16xbf16>
    %16 = vector.extract_strided_slice %2 {offsets = [32, 0], sizes = [16, 16], strides = [1, 1]} : vector<144x16xbf16> to vector<16x16xbf16>
    %cst_7 = arith.constant dense<0.000000e+00> : vector<16x16xf32>
    %17 = tpu.matmul %15, %16, %cst_7 {dimension_numbers = #tpu.dot_dimension_numbers<[1], [0], [0], [1], [0, 0, 1, 1], [], []>} : vector<16x16xbf16>, vector<16x16xbf16>, vector<16x16xf32> -> vector<16x16xf32>
    %18 = arith.addf %13, %17 : vector<16x16xf32>
    %19 = vector.extract_strided_slice %1 {offsets = [1, 0, 0], sizes = [4, 4, 16], strides = [1, 1, 1]} : vector<6x6x16xbf16> to vector<4x4x16xbf16>
    %20 = vector.shape_cast %19 : vector<4x4x16xbf16> to vector<16x16xbf16>
    %21 = vector.extract_strided_slice %2 {offsets = [48, 0], sizes = [16, 16], strides = [1, 1]} : vector<144x16xbf16> to vector<16x16xbf16>
    %cst_8 = arith.constant dense<0.000000e+00> : vector<16x16xf32>
    %22 = tpu.matmul %20, %21, %cst_8 {dimension_numbers = #tpu.dot_dimension_numbers<[1], [0], [0], [1], [0, 0, 1, 1], [], []>} : vector<16x16xbf16>, vector<16x16xbf16>, vector<16x16xf32> -> vector<16x16xf32>
    %23 = arith.addf %18, %22 : vector<16x16xf32>
    %24 = vector.extract_strided_slice %1 {offsets = [1, 1, 0], sizes = [4, 4, 16], strides = [1, 1, 1]} : vector<6x6x16xbf16> to vector<4x4x16xbf16>
    %25 = vector.shape_cast %24 : vector<4x4x16xbf16> to vector<16x16xbf16>
    %26 = vector.extract_strided_slice %2 {offsets = [64, 0], sizes = [16, 16], strides = [1, 1]} : vector<144x16xbf16> to vector<16x16xbf16>
    %cst_9 = arith.constant dense<0.000000e+00> : vector<16x16xf32>
    %27 = tpu.matmul %25, %26, %cst_9 {dimension_numbers = #tpu.dot_dimension_numbers<[1], [0], [0], [1], [0, 0, 1, 1], [], []>} : vector<16x16xbf16>, vector<16x16xbf16>, vector<16x16xf32> -> vector<16x16xf32>
    %28 = arith.addf %23, %27 : vector<16x16xf32>
    %29 = vector.extract_strided_slice %1 {offsets = [1, 2, 0], sizes = [4, 4, 16], strides = [1, 1, 1]} : vector<6x6x16xbf16> to vector<4x4x16xbf16>
    %30 = vector.shape_cast %29 : vector<4x4x16xbf16> to vector<16x16xbf16>
    %31 = vector.extract_strided_slice %2 {offsets = [80, 0], sizes = [16, 16], strides = [1, 1]} : vector<144x16xbf16> to vector<16x16xbf16>
    %cst_10 = arith.constant dense<0.000000e+00> : vector<16x16xf32>
    %32 = tpu.matmul %30, %31, %cst_10 {dimension_numbers = #tpu.dot_dimension_numbers<[1], [0], [0], [1], [0, 0, 1, 1], [], []>} : vector<16x16xbf16>, vector<16x16xbf16>, vector<16x16xf32> -> vector<16x16xf32>
    %33 = arith.addf %28, %32 : vector<16x16xf32>
    %34 = vector.extract_strided_slice %1 {offsets = [2, 0, 0], sizes = [4, 4, 16], strides = [1, 1, 1]} : vector<6x6x16xbf16> to vector<4x4x16xbf16>
    %35 = vector.shape_cast %34 : vector<4x4x16xbf16> to vector<16x16xbf16>
    %36 = vector.extract_strided_slice %2 {offsets = [96, 0], sizes = [16, 16], strides = [1, 1]} : vector<144x16xbf16> to vector<16x16xbf16>
    %cst_11 = arith.constant dense<0.000000e+00> : vector<16x16xf32>
    %37 = tpu.matmul %35, %36, %cst_11 {dimension_numbers = #tpu.dot_dimension_numbers<[1], [0], [0], [1], [0, 0, 1, 1], [], []>} : vector<16x16xbf16>, vector<16x16xbf16>, vector<16x16xf32> -> vector<16x16xf32>
    %38 = arith.addf %33, %37 : vector<16x16xf32>
    %39 = vector.extract_strided_slice %1 {offsets = [2, 1, 0], sizes = [4, 4, 16], strides = [1, 1, 1]} : vector<6x6x16xbf16> to vector<4x4x16xbf16>
    %40 = vector.shape_cast %39 : vector<4x4x16xbf16> to vector<16x16xbf16>
    %41 = vector.extract_strided_slice %2 {offsets = [112, 0], sizes = [16, 16], strides = [1, 1]} : vector<144x16xbf16> to vector<16x16xbf16>
    %cst_12 = arith.constant dense<0.000000e+00> : vector<16x16xf32>
    %42 = tpu.matmul %40, %41, %cst_12 {dimension_numbers = #tpu.dot_dimension_numbers<[1], [0], [0], [1], [0, 0, 1, 1], [], []>} : vector<16x16xbf16>, vector<16x16xbf16>, vector<16x16xf32> -> vector<16x16xf32>
    %43 = arith.addf %38, %42 : vector<16x16xf32>
    %44 = vector.extract_strided_slice %1 {offsets = [2, 2, 0], sizes = [4, 4, 16], strides = [1, 1, 1]} : vector<6x6x16xbf16> to vector<4x4x16xbf16>
    %45 = vector.shape_cast %44 : vector<4x4x16xbf16> to vector<16x16xbf16>
    %46 = vector.extract_strided_slice %2 {offsets = [128, 0], sizes = [16, 16], strides = [1, 1]} : vector<144x16xbf16> to vector<16x16xbf16>
    %cst_13 = arith.constant dense<0.000000e+00> : vector<16x16xf32>
    %47 = tpu.matmul %45, %46, %cst_13 {dimension_numbers = #tpu.dot_dimension_numbers<[1], [0], [0], [1], [0, 0, 1, 1], [], []>} : vector<16x16xbf16>, vector<16x16xbf16>, vector<16x16xf32> -> vector<16x16xf32>
    %48 = arith.addf %43, %47 : vector<16x16xf32>
    %c0_14 = arith.constant 0 : index
    %c0_15 = arith.constant 0 : index
    %49 = vector.load %arg3[%c0_14, %c0_15] : memref<1x16xf32, #tpu.memory_space<vmem>>, vector<1x16xf32>
    %50 = vector.broadcast %49 : vector<1x16xf32> to vector<16x16xf32>
    %51 = arith.addf %48, %50 : vector<16x16xf32>
    %cst_16 = arith.constant 0.000000e+00 : f32
    %52 = vector.broadcast %cst_16 : f32 to vector<16x16xf32>
    %53 = arith.maximumf %51, %52 : vector<16x16xf32>
    %54 = vector.shape_cast %53 : vector<16x16xf32> to vector<2x2x4x16xf32>
    %55 = vector.extract_strided_slice %54 {offsets = [0, 0, 0, 0], sizes = [2, 1, 4, 16], strides = [1, 1, 1, 1]} : vector<2x2x4x16xf32> to vector<2x1x4x16xf32>
    %56 = vector.shape_cast %55 : vector<2x1x4x16xf32> to vector<2x4x16xf32>
    %57 = vector.extract_strided_slice %54 {offsets = [0, 1, 0, 0], sizes = [2, 1, 4, 16], strides = [1, 1, 1, 1]} : vector<2x2x4x16xf32> to vector<2x1x4x16xf32>
    %58 = vector.shape_cast %57 : vector<2x1x4x16xf32> to vector<2x4x16xf32>
    %59 = arith.maximumf %56, %58 : vector<2x4x16xf32>
    %60 = vector.shape_cast %59 : vector<2x4x16xf32> to vector<2x2x2x16xf32>
    %61 = vector.extract_strided_slice %60 {offsets = [0, 0, 0, 0], sizes = [2, 2, 1, 16], strides = [1, 1, 1, 1]} : vector<2x2x2x16xf32> to vector<2x2x1x16xf32>
    %62 = vector.shape_cast %61 : vector<2x2x1x16xf32> to vector<2x2x16xf32>
    %63 = vector.extract_strided_slice %60 {offsets = [0, 0, 1, 0], sizes = [2, 2, 1, 16], strides = [1, 1, 1, 1]} : vector<2x2x2x16xf32> to vector<2x2x1x16xf32>
    %64 = vector.shape_cast %63 : vector<2x2x1x16xf32> to vector<2x2x16xf32>
    %65 = arith.maximumf %62, %64 : vector<2x2x16xf32>
    %66 = arith.truncf %65 : vector<2x2x16xf32> to vector<2x2x16xbf16>
    %c0_17 = arith.constant 0 : index
    %c0_18 = arith.constant 0 : index
    %c0_19 = arith.constant 0 : index
    %c0_20 = arith.constant 0 : index
    %67 = vector.load %arg4[%c0_17, %c0_18, %c0_19, %c0_20] : memref<1x2x2x16xbf16, #tpu.memory_space<vmem>>, vector<1x2x2x16xbf16>
    %68 = vector.shape_cast %67 : vector<1x2x2x16xbf16> to vector<2x2x16xbf16>
    %69 = vector.shape_cast %66 : vector<2x2x16xbf16> to vector<1x2x2x16xbf16>
    tpu.vector_store %arg4[%c0_17, %c0_18, %c0_19, %c0_20], %69 {strides = array<i32>} : memref<1x2x2x16xbf16, #tpu.memory_space<vmem>>, vector<1x2x2x16xbf16>,
    return
  }
  func.func @transform_0(%arg0: i32) -> (i32, i32, i32, i32) {
    %c0_i32 = arith.constant 0 : i32
    %c0_i32_0 = arith.constant 0 : i32
    %c0_i32_1 = arith.constant 0 : i32
    %c0_i32_2 = arith.constant 0 : i32
    return %arg0, %c0_i32, %c0_i32_0, %c0_i32_1 : i32, i32, i32, i32
  }
  func.func @transform_1(%arg0: i32) -> (i32, i32) {
    %c0_i32 = arith.constant 0 : i32
    %c0_i32_0 = arith.constant 0 : i32
    %c0_i32_1 = arith.constant 0 : i32
    return %c0_i32, %c0_i32_0 : i32, i32
  }
  func.func @transform_2(%arg0: i32) -> (i32, i32) {
    %c0_i32 = arith.constant 0 : i32
    %c0_i32_0 = arith.constant 0 : i32
    %c0_i32_1 = arith.constant 0 : i32
    return %c0_i32, %c0_i32_0 : i32, i32
  }
  func.func @transform_3(%arg0: i32) -> (i32, i32, i32, i32) {
    %c0_i32 = arith.constant 0 : i32
    %c0_i32_0 = arith.constant 0 : i32
    %c0_i32_1 = arith.constant 0 : i32
    %c0_i32_2 = arith.constant 0 : i32
    return %arg0, %c0_i32, %c0_i32_0, %c0_i32_1 : i32, i32, i32, i32
  }
}

module attributes {stable_mosaic.version = 11 : i64} {
  func.func @_conv3x3_kernel(%arg0: i32, %arg1: memref<1x4x4x32xbf16, #tpu.memory_space<vmem>>, %arg2: memref<288x32xbf16, #tpu.memory_space<vmem>>, %arg3: memref<1x32xf32, #tpu.memory_space<vmem>>, %arg4: memref<1x2x2x32xbf16, #tpu.memory_space<vmem>>) attributes {dimension_semantics = [#tpu.dimension_semantics<parallel>], iteration_bounds = array<i64: 2>, scalar_prefetch = 0 : i64, scratch_operands = 0 : i64, tpu.core_type = #tpu.core_type<tc>, window_params = [{transform_indices = @transform_0, window_bounds = array<i64: 1, 4, 4, 32>}, {pipeline_mode = #tpu.pipeline_mode<synchronous>, transform_indices = @transform_1, window_bounds = array<i64: 288, 32>}, {pipeline_mode = #tpu.pipeline_mode<synchronous>, transform_indices = @transform_2, window_bounds = array<i64: 1, 32>}, {transform_indices = @transform_3, window_bounds = array<i64: 1, 2, 2, 32>}]} {
    %c0 = arith.constant 0 : index
    %c0_0 = arith.constant 0 : index
    %c0_1 = arith.constant 0 : index
    %c0_2 = arith.constant 0 : index
    %0 = vector.load %arg1[%c0, %c0_0, %c0_1, %c0_2] : memref<1x4x4x32xbf16, #tpu.memory_space<vmem>>, vector<1x4x4x32xbf16>
    %1 = vector.shape_cast %0 : vector<1x4x4x32xbf16> to vector<4x4x32xbf16>
    %c0_3 = arith.constant 0 : index
    %c0_4 = arith.constant 0 : index
    %2 = vector.load %arg2[%c0_3, %c0_4] : memref<288x32xbf16, #tpu.memory_space<vmem>>, vector<288x32xbf16>
    %cst = arith.constant 0.000000e+00 : f32
    %3 = vector.broadcast %cst : f32 to vector<4x32xf32>
    %4 = vector.extract_strided_slice %1 {offsets = [0, 0, 0], sizes = [2, 2, 32], strides = [1, 1, 1]} : vector<4x4x32xbf16> to vector<2x2x32xbf16>
    %5 = vector.shape_cast %4 : vector<2x2x32xbf16> to vector<4x32xbf16>
    %6 = vector.extract_strided_slice %2 {offsets = [0, 0], sizes = [32, 32], strides = [1, 1]} : vector<288x32xbf16> to vector<32x32xbf16>
    %cst_5 = arith.constant dense<0.000000e+00> : vector<4x32xf32>
    %7 = tpu.matmul %5, %6, %cst_5 {dimension_numbers = #tpu.dot_dimension_numbers<[1], [0], [0], [1], [0, 0, 1, 1], [], []>} : vector<4x32xbf16>, vector<32x32xbf16>, vector<4x32xf32> -> vector<4x32xf32>
    %8 = arith.addf %3, %7 : vector<4x32xf32>
    %9 = vector.extract_strided_slice %1 {offsets = [0, 1, 0], sizes = [2, 2, 32], strides = [1, 1, 1]} : vector<4x4x32xbf16> to vector<2x2x32xbf16>
    %10 = vector.shape_cast %9 : vector<2x2x32xbf16> to vector<4x32xbf16>
    %11 = vector.extract_strided_slice %2 {offsets = [32, 0], sizes = [32, 32], strides = [1, 1]} : vector<288x32xbf16> to vector<32x32xbf16>
    %cst_6 = arith.constant dense<0.000000e+00> : vector<4x32xf32>
    %12 = tpu.matmul %10, %11, %cst_6 {dimension_numbers = #tpu.dot_dimension_numbers<[1], [0], [0], [1], [0, 0, 1, 1], [], []>} : vector<4x32xbf16>, vector<32x32xbf16>, vector<4x32xf32> -> vector<4x32xf32>
    %13 = arith.addf %8, %12 : vector<4x32xf32>
    %14 = vector.extract_strided_slice %1 {offsets = [0, 2, 0], sizes = [2, 2, 32], strides = [1, 1, 1]} : vector<4x4x32xbf16> to vector<2x2x32xbf16>
    %15 = vector.shape_cast %14 : vector<2x2x32xbf16> to vector<4x32xbf16>
    %16 = vector.extract_strided_slice %2 {offsets = [64, 0], sizes = [32, 32], strides = [1, 1]} : vector<288x32xbf16> to vector<32x32xbf16>
    %cst_7 = arith.constant dense<0.000000e+00> : vector<4x32xf32>
    %17 = tpu.matmul %15, %16, %cst_7 {dimension_numbers = #tpu.dot_dimension_numbers<[1], [0], [0], [1], [0, 0, 1, 1], [], []>} : vector<4x32xbf16>, vector<32x32xbf16>, vector<4x32xf32> -> vector<4x32xf32>
    %18 = arith.addf %13, %17 : vector<4x32xf32>
    %19 = vector.extract_strided_slice %1 {offsets = [1, 0, 0], sizes = [2, 2, 32], strides = [1, 1, 1]} : vector<4x4x32xbf16> to vector<2x2x32xbf16>
    %20 = vector.shape_cast %19 : vector<2x2x32xbf16> to vector<4x32xbf16>
    %21 = vector.extract_strided_slice %2 {offsets = [96, 0], sizes = [32, 32], strides = [1, 1]} : vector<288x32xbf16> to vector<32x32xbf16>
    %cst_8 = arith.constant dense<0.000000e+00> : vector<4x32xf32>
    %22 = tpu.matmul %20, %21, %cst_8 {dimension_numbers = #tpu.dot_dimension_numbers<[1], [0], [0], [1], [0, 0, 1, 1], [], []>} : vector<4x32xbf16>, vector<32x32xbf16>, vector<4x32xf32> -> vector<4x32xf32>
    %23 = arith.addf %18, %22 : vector<4x32xf32>
    %24 = vector.extract_strided_slice %1 {offsets = [1, 1, 0], sizes = [2, 2, 32], strides = [1, 1, 1]} : vector<4x4x32xbf16> to vector<2x2x32xbf16>
    %25 = vector.shape_cast %24 : vector<2x2x32xbf16> to vector<4x32xbf16>
    %26 = vector.extract_strided_slice %2 {offsets = [128, 0], sizes = [32, 32], strides = [1, 1]} : vector<288x32xbf16> to vector<32x32xbf16>
    %cst_9 = arith.constant dense<0.000000e+00> : vector<4x32xf32>
    %27 = tpu.matmul %25, %26, %cst_9 {dimension_numbers = #tpu.dot_dimension_numbers<[1], [0], [0], [1], [0, 0, 1, 1], [], []>} : vector<4x32xbf16>, vector<32x32xbf16>, vector<4x32xf32> -> vector<4x32xf32>
    %28 = arith.addf %23, %27 : vector<4x32xf32>
    %29 = vector.extract_strided_slice %1 {offsets = [1, 2, 0], sizes = [2, 2, 32], strides = [1, 1, 1]} : vector<4x4x32xbf16> to vector<2x2x32xbf16>
    %30 = vector.shape_cast %29 : vector<2x2x32xbf16> to vector<4x32xbf16>
    %31 = vector.extract_strided_slice %2 {offsets = [160, 0], sizes = [32, 32], strides = [1, 1]} : vector<288x32xbf16> to vector<32x32xbf16>
    %cst_10 = arith.constant dense<0.000000e+00> : vector<4x32xf32>
    %32 = tpu.matmul %30, %31, %cst_10 {dimension_numbers = #tpu.dot_dimension_numbers<[1], [0], [0], [1], [0, 0, 1, 1], [], []>} : vector<4x32xbf16>, vector<32x32xbf16>, vector<4x32xf32> -> vector<4x32xf32>
    %33 = arith.addf %28, %32 : vector<4x32xf32>
    %34 = vector.extract_strided_slice %1 {offsets = [2, 0, 0], sizes = [2, 2, 32], strides = [1, 1, 1]} : vector<4x4x32xbf16> to vector<2x2x32xbf16>
    %35 = vector.shape_cast %34 : vector<2x2x32xbf16> to vector<4x32xbf16>
    %36 = vector.extract_strided_slice %2 {offsets = [192, 0], sizes = [32, 32], strides = [1, 1]} : vector<288x32xbf16> to vector<32x32xbf16>
    %cst_11 = arith.constant dense<0.000000e+00> : vector<4x32xf32>
    %37 = tpu.matmul %35, %36, %cst_11 {dimension_numbers = #tpu.dot_dimension_numbers<[1], [0], [0], [1], [0, 0, 1, 1], [], []>} : vector<4x32xbf16>, vector<32x32xbf16>, vector<4x32xf32> -> vector<4x32xf32>
    %38 = arith.addf %33, %37 : vector<4x32xf32>
    %39 = vector.extract_strided_slice %1 {offsets = [2, 1, 0], sizes = [2, 2, 32], strides = [1, 1, 1]} : vector<4x4x32xbf16> to vector<2x2x32xbf16>
    %40 = vector.shape_cast %39 : vector<2x2x32xbf16> to vector<4x32xbf16>
    %41 = vector.extract_strided_slice %2 {offsets = [224, 0], sizes = [32, 32], strides = [1, 1]} : vector<288x32xbf16> to vector<32x32xbf16>
    %cst_12 = arith.constant dense<0.000000e+00> : vector<4x32xf32>
    %42 = tpu.matmul %40, %41, %cst_12 {dimension_numbers = #tpu.dot_dimension_numbers<[1], [0], [0], [1], [0, 0, 1, 1], [], []>} : vector<4x32xbf16>, vector<32x32xbf16>, vector<4x32xf32> -> vector<4x32xf32>
    %43 = arith.addf %38, %42 : vector<4x32xf32>
    %44 = vector.extract_strided_slice %1 {offsets = [2, 2, 0], sizes = [2, 2, 32], strides = [1, 1, 1]} : vector<4x4x32xbf16> to vector<2x2x32xbf16>
    %45 = vector.shape_cast %44 : vector<2x2x32xbf16> to vector<4x32xbf16>
    %46 = vector.extract_strided_slice %2 {offsets = [256, 0], sizes = [32, 32], strides = [1, 1]} : vector<288x32xbf16> to vector<32x32xbf16>
    %cst_13 = arith.constant dense<0.000000e+00> : vector<4x32xf32>
    %47 = tpu.matmul %45, %46, %cst_13 {dimension_numbers = #tpu.dot_dimension_numbers<[1], [0], [0], [1], [0, 0, 1, 1], [], []>} : vector<4x32xbf16>, vector<32x32xbf16>, vector<4x32xf32> -> vector<4x32xf32>
    %48 = arith.addf %43, %47 : vector<4x32xf32>
    %c0_14 = arith.constant 0 : index
    %c0_15 = arith.constant 0 : index
    %49 = vector.load %arg3[%c0_14, %c0_15] : memref<1x32xf32, #tpu.memory_space<vmem>>, vector<1x32xf32>
    %50 = vector.broadcast %49 : vector<1x32xf32> to vector<4x32xf32>
    %51 = arith.addf %48, %50 : vector<4x32xf32>
    %cst_16 = arith.constant 0.000000e+00 : f32
    %52 = vector.broadcast %cst_16 : f32 to vector<4x32xf32>
    %53 = arith.maximumf %51, %52 : vector<4x32xf32>
    %54 = vector.shape_cast %53 : vector<4x32xf32> to vector<2x2x32xf32>
    %55 = arith.truncf %54 : vector<2x2x32xf32> to vector<2x2x32xbf16>
    %c0_17 = arith.constant 0 : index
    %c0_18 = arith.constant 0 : index
    %c0_19 = arith.constant 0 : index
    %c0_20 = arith.constant 0 : index
    %56 = vector.load %arg4[%c0_17, %c0_18, %c0_19, %c0_20] : memref<1x2x2x32xbf16, #tpu.memory_space<vmem>>, vector<1x2x2x32xbf16>
    %57 = vector.shape_cast %56 : vector<1x2x2x32xbf16> to vector<2x2x32xbf16>
    %58 = vector.shape_cast %55 : vector<2x2x32xbf16> to vector<1x2x2x32xbf16>
    tpu.vector_store %arg4[%c0_17, %c0_18, %c0_19, %c0_20], %58 {strides = array<i32>} : memref<1x2x2x32xbf16, #tpu.memory_space<vmem>>, vector<1x2x2x32xbf16>,
    return
  }
  func.func @transform_0(%arg0: i32) -> (i32, i32, i32, i32) {
    %c0_i32 = arith.constant 0 : i32
    %c0_i32_0 = arith.constant 0 : i32
    %c0_i32_1 = arith.constant 0 : i32
    %c0_i32_2 = arith.constant 0 : i32
    return %arg0, %c0_i32, %c0_i32_0, %c0_i32_1 : i32, i32, i32, i32
  }
  func.func @transform_1(%arg0: i32) -> (i32, i32) {
    %c0_i32 = arith.constant 0 : i32
    %c0_i32_0 = arith.constant 0 : i32
    %c0_i32_1 = arith.constant 0 : i32
    return %c0_i32, %c0_i32_0 : i32, i32
  }
  func.func @transform_2(%arg0: i32) -> (i32, i32) {
    %c0_i32 = arith.constant 0 : i32
    %c0_i32_0 = arith.constant 0 : i32
    %c0_i32_1 = arith.constant 0 : i32
    return %c0_i32, %c0_i32_0 : i32, i32
  }
  func.func @transform_3(%arg0: i32) -> (i32, i32, i32, i32) {
    %c0_i32 = arith.constant 0 : i32
    %c0_i32_0 = arith.constant 0 : i32
    %c0_i32_1 = arith.constant 0 : i32
    %c0_i32_2 = arith.constant 0 : i32
    return %arg0, %c0_i32, %c0_i32_0, %c0_i32_1 : i32, i32, i32, i32
  }
}

module attributes {stable_mosaic.version = 11 : i64} {
  func.func @_conv3x3_kernel(%arg0: i32, %arg1: memref<1x4x4x16xbf16, #tpu.memory_space<vmem>>, %arg2: memref<144x32xbf16, #tpu.memory_space<vmem>>, %arg3: memref<1x32xf32, #tpu.memory_space<vmem>>, %arg4: memref<1x2x2x32xbf16, #tpu.memory_space<vmem>>) attributes {dimension_semantics = [#tpu.dimension_semantics<parallel>], iteration_bounds = array<i64: 2>, scalar_prefetch = 0 : i64, scratch_operands = 0 : i64, tpu.core_type = #tpu.core_type<tc>, window_params = [{transform_indices = @transform_0, window_bounds = array<i64: 1, 4, 4, 16>}, {pipeline_mode = #tpu.pipeline_mode<synchronous>, transform_indices = @transform_1, window_bounds = array<i64: 144, 32>}, {pipeline_mode = #tpu.pipeline_mode<synchronous>, transform_indices = @transform_2, window_bounds = array<i64: 1, 32>}, {transform_indices = @transform_3, window_bounds = array<i64: 1, 2, 2, 32>}]} {
    %c0 = arith.constant 0 : index
    %c0_0 = arith.constant 0 : index
    %c0_1 = arith.constant 0 : index
    %c0_2 = arith.constant 0 : index
    %0 = vector.load %arg1[%c0, %c0_0, %c0_1, %c0_2] : memref<1x4x4x16xbf16, #tpu.memory_space<vmem>>, vector<1x4x4x16xbf16>
    %1 = vector.shape_cast %0 : vector<1x4x4x16xbf16> to vector<4x4x16xbf16>
    %c0_3 = arith.constant 0 : index
    %c0_4 = arith.constant 0 : index
    %2 = vector.load %arg2[%c0_3, %c0_4] : memref<144x32xbf16, #tpu.memory_space<vmem>>, vector<144x32xbf16>
    %cst = arith.constant 0.000000e+00 : f32
    %3 = vector.broadcast %cst : f32 to vector<4x32xf32>
    %4 = vector.extract_strided_slice %1 {offsets = [0, 0, 0], sizes = [2, 2, 16], strides = [1, 1, 1]} : vector<4x4x16xbf16> to vector<2x2x16xbf16>
    %5 = vector.shape_cast %4 : vector<2x2x16xbf16> to vector<4x16xbf16>
    %6 = vector.extract_strided_slice %2 {offsets = [0, 0], sizes = [16, 32], strides = [1, 1]} : vector<144x32xbf16> to vector<16x32xbf16>
    %cst_5 = arith.constant dense<0.000000e+00> : vector<4x32xf32>
    %7 = tpu.matmul %5, %6, %cst_5 {dimension_numbers = #tpu.dot_dimension_numbers<[1], [0], [0], [1], [0, 0, 1, 1], [], []>} : vector<4x16xbf16>, vector<16x32xbf16>, vector<4x32xf32> -> vector<4x32xf32>
    %8 = arith.addf %3, %7 : vector<4x32xf32>
    %9 = vector.extract_strided_slice %1 {offsets = [0, 1, 0], sizes = [2, 2, 16], strides = [1, 1, 1]} : vector<4x4x16xbf16> to vector<2x2x16xbf16>
    %10 = vector.shape_cast %9 : vector<2x2x16xbf16> to vector<4x16xbf16>
    %11 = vector.extract_strided_slice %2 {offsets = [16, 0], sizes = [16, 32], strides = [1, 1]} : vector<144x32xbf16> to vector<16x32xbf16>
    %cst_6 = arith.constant dense<0.000000e+00> : vector<4x32xf32>
    %12 = tpu.matmul %10, %11, %cst_6 {dimension_numbers = #tpu.dot_dimension_numbers<[1], [0], [0], [1], [0, 0, 1, 1], [], []>} : vector<4x16xbf16>, vector<16x32xbf16>, vector<4x32xf32> -> vector<4x32xf32>
    %13 = arith.addf %8, %12 : vector<4x32xf32>
    %14 = vector.extract_strided_slice %1 {offsets = [0, 2, 0], sizes = [2, 2, 16], strides = [1, 1, 1]} : vector<4x4x16xbf16> to vector<2x2x16xbf16>
    %15 = vector.shape_cast %14 : vector<2x2x16xbf16> to vector<4x16xbf16>
    %16 = vector.extract_strided_slice %2 {offsets = [32, 0], sizes = [16, 32], strides = [1, 1]} : vector<144x32xbf16> to vector<16x32xbf16>
    %cst_7 = arith.constant dense<0.000000e+00> : vector<4x32xf32>
    %17 = tpu.matmul %15, %16, %cst_7 {dimension_numbers = #tpu.dot_dimension_numbers<[1], [0], [0], [1], [0, 0, 1, 1], [], []>} : vector<4x16xbf16>, vector<16x32xbf16>, vector<4x32xf32> -> vector<4x32xf32>
    %18 = arith.addf %13, %17 : vector<4x32xf32>
    %19 = vector.extract_strided_slice %1 {offsets = [1, 0, 0], sizes = [2, 2, 16], strides = [1, 1, 1]} : vector<4x4x16xbf16> to vector<2x2x16xbf16>
    %20 = vector.shape_cast %19 : vector<2x2x16xbf16> to vector<4x16xbf16>
    %21 = vector.extract_strided_slice %2 {offsets = [48, 0], sizes = [16, 32], strides = [1, 1]} : vector<144x32xbf16> to vector<16x32xbf16>
    %cst_8 = arith.constant dense<0.000000e+00> : vector<4x32xf32>
    %22 = tpu.matmul %20, %21, %cst_8 {dimension_numbers = #tpu.dot_dimension_numbers<[1], [0], [0], [1], [0, 0, 1, 1], [], []>} : vector<4x16xbf16>, vector<16x32xbf16>, vector<4x32xf32> -> vector<4x32xf32>
    %23 = arith.addf %18, %22 : vector<4x32xf32>
    %24 = vector.extract_strided_slice %1 {offsets = [1, 1, 0], sizes = [2, 2, 16], strides = [1, 1, 1]} : vector<4x4x16xbf16> to vector<2x2x16xbf16>
    %25 = vector.shape_cast %24 : vector<2x2x16xbf16> to vector<4x16xbf16>
    %26 = vector.extract_strided_slice %2 {offsets = [64, 0], sizes = [16, 32], strides = [1, 1]} : vector<144x32xbf16> to vector<16x32xbf16>
    %cst_9 = arith.constant dense<0.000000e+00> : vector<4x32xf32>
    %27 = tpu.matmul %25, %26, %cst_9 {dimension_numbers = #tpu.dot_dimension_numbers<[1], [0], [0], [1], [0, 0, 1, 1], [], []>} : vector<4x16xbf16>, vector<16x32xbf16>, vector<4x32xf32> -> vector<4x32xf32>
    %28 = arith.addf %23, %27 : vector<4x32xf32>
    %29 = vector.extract_strided_slice %1 {offsets = [1, 2, 0], sizes = [2, 2, 16], strides = [1, 1, 1]} : vector<4x4x16xbf16> to vector<2x2x16xbf16>
    %30 = vector.shape_cast %29 : vector<2x2x16xbf16> to vector<4x16xbf16>
    %31 = vector.extract_strided_slice %2 {offsets = [80, 0], sizes = [16, 32], strides = [1, 1]} : vector<144x32xbf16> to vector<16x32xbf16>
    %cst_10 = arith.constant dense<0.000000e+00> : vector<4x32xf32>
    %32 = tpu.matmul %30, %31, %cst_10 {dimension_numbers = #tpu.dot_dimension_numbers<[1], [0], [0], [1], [0, 0, 1, 1], [], []>} : vector<4x16xbf16>, vector<16x32xbf16>, vector<4x32xf32> -> vector<4x32xf32>
    %33 = arith.addf %28, %32 : vector<4x32xf32>
    %34 = vector.extract_strided_slice %1 {offsets = [2, 0, 0], sizes = [2, 2, 16], strides = [1, 1, 1]} : vector<4x4x16xbf16> to vector<2x2x16xbf16>
    %35 = vector.shape_cast %34 : vector<2x2x16xbf16> to vector<4x16xbf16>
    %36 = vector.extract_strided_slice %2 {offsets = [96, 0], sizes = [16, 32], strides = [1, 1]} : vector<144x32xbf16> to vector<16x32xbf16>
    %cst_11 = arith.constant dense<0.000000e+00> : vector<4x32xf32>
    %37 = tpu.matmul %35, %36, %cst_11 {dimension_numbers = #tpu.dot_dimension_numbers<[1], [0], [0], [1], [0, 0, 1, 1], [], []>} : vector<4x16xbf16>, vector<16x32xbf16>, vector<4x32xf32> -> vector<4x32xf32>
    %38 = arith.addf %33, %37 : vector<4x32xf32>
    %39 = vector.extract_strided_slice %1 {offsets = [2, 1, 0], sizes = [2, 2, 16], strides = [1, 1, 1]} : vector<4x4x16xbf16> to vector<2x2x16xbf16>
    %40 = vector.shape_cast %39 : vector<2x2x16xbf16> to vector<4x16xbf16>
    %41 = vector.extract_strided_slice %2 {offsets = [112, 0], sizes = [16, 32], strides = [1, 1]} : vector<144x32xbf16> to vector<16x32xbf16>
    %cst_12 = arith.constant dense<0.000000e+00> : vector<4x32xf32>
    %42 = tpu.matmul %40, %41, %cst_12 {dimension_numbers = #tpu.dot_dimension_numbers<[1], [0], [0], [1], [0, 0, 1, 1], [], []>} : vector<4x16xbf16>, vector<16x32xbf16>, vector<4x32xf32> -> vector<4x32xf32>
    %43 = arith.addf %38, %42 : vector<4x32xf32>
    %44 = vector.extract_strided_slice %1 {offsets = [2, 2, 0], sizes = [2, 2, 16], strides = [1, 1, 1]} : vector<4x4x16xbf16> to vector<2x2x16xbf16>
    %45 = vector.shape_cast %44 : vector<2x2x16xbf16> to vector<4x16xbf16>
    %46 = vector.extract_strided_slice %2 {offsets = [128, 0], sizes = [16, 32], strides = [1, 1]} : vector<144x32xbf16> to vector<16x32xbf16>
    %cst_13 = arith.constant dense<0.000000e+00> : vector<4x32xf32>
    %47 = tpu.matmul %45, %46, %cst_13 {dimension_numbers = #tpu.dot_dimension_numbers<[1], [0], [0], [1], [0, 0, 1, 1], [], []>} : vector<4x16xbf16>, vector<16x32xbf16>, vector<4x32xf32> -> vector<4x32xf32>
    %48 = arith.addf %43, %47 : vector<4x32xf32>
    %c0_14 = arith.constant 0 : index
    %c0_15 = arith.constant 0 : index
    %49 = vector.load %arg3[%c0_14, %c0_15] : memref<1x32xf32, #tpu.memory_space<vmem>>, vector<1x32xf32>
    %50 = vector.broadcast %49 : vector<1x32xf32> to vector<4x32xf32>
    %51 = arith.addf %48, %50 : vector<4x32xf32>
    %cst_16 = arith.constant 0.000000e+00 : f32
    %52 = vector.broadcast %cst_16 : f32 to vector<4x32xf32>
    %53 = arith.maximumf %51, %52 : vector<4x32xf32>
    %54 = vector.shape_cast %53 : vector<4x32xf32> to vector<2x2x32xf32>
    %55 = arith.truncf %54 : vector<2x2x32xf32> to vector<2x2x32xbf16>
    %c0_17 = arith.constant 0 : index
    %c0_18 = arith.constant 0 : index
    %c0_19 = arith.constant 0 : index
    %c0_20 = arith.constant 0 : index
    %56 = vector.load %arg4[%c0_17, %c0_18, %c0_19, %c0_20] : memref<1x2x2x32xbf16, #tpu.memory_space<vmem>>, vector<1x2x2x32xbf16>
    %57 = vector.shape_cast %56 : vector<1x2x2x32xbf16> to vector<2x2x32xbf16>
    %58 = vector.shape_cast %55 : vector<2x2x32xbf16> to vector<1x2x2x32xbf16>
    tpu.vector_store %arg4[%c0_17, %c0_18, %c0_19, %c0_20], %58 {strides = array<i32>} : memref<1x2x2x32xbf16, #tpu.memory_space<vmem>>, vector<1x2x2x32xbf16>,
    return
  }
  func.func @transform_0(%arg0: i32) -> (i32, i32, i32, i32) {
    %c0_i32 = arith.constant 0 : i32
    %c0_i32_0 = arith.constant 0 : i32
    %c0_i32_1 = arith.constant 0 : i32
    %c0_i32_2 = arith.constant 0 : i32
    return %arg0, %c0_i32, %c0_i32_0, %c0_i32_1 : i32, i32, i32, i32
  }
  func.func @transform_1(%arg0: i32) -> (i32, i32) {
    %c0_i32 = arith.constant 0 : i32
    %c0_i32_0 = arith.constant 0 : i32
    %c0_i32_1 = arith.constant 0 : i32
    return %c0_i32, %c0_i32_0 : i32, i32
  }
  func.func @transform_2(%arg0: i32) -> (i32, i32) {
    %c0_i32 = arith.constant 0 : i32
    %c0_i32_0 = arith.constant 0 : i32
    %c0_i32_1 = arith.constant 0 : i32
    return %c0_i32, %c0_i32_0 : i32, i32
  }
  func.func @transform_3(%arg0: i32) -> (i32, i32, i32, i32) {
    %c0_i32 = arith.constant 0 : i32
    %c0_i32_0 = arith.constant 0 : i32
    %c0_i32_1 = arith.constant 0 : i32
    %c0_i32_2 = arith.constant 0 : i32
    return %arg0, %c0_i32, %c0_i32_0, %c0_i32_1 : i32, i32, i32, i32
  }
}

module attributes {stable_mosaic.version = 11 : i64} {
  func.func @_mlp_head_kernel(%arg0: i32, %arg1: memref<8x128xbf16, #tpu.memory_space<vmem>>, %arg2: memref<128x64xbf16, #tpu.memory_space<vmem>>, %arg3: memref<1x64xf32, #tpu.memory_space<vmem>>, %arg4: memref<64x8xbf16, #tpu.memory_space<vmem>>, %arg5: memref<1x8xf32, #tpu.memory_space<vmem>>, %arg6: memref<8x8xf32, #tpu.memory_space<vmem>>) attributes {dimension_semantics = [#tpu.dimension_semantics<parallel>], iteration_bounds = array<i64: 1>, scalar_prefetch = 0 : i64, scratch_operands = 0 : i64, tpu.core_type = #tpu.core_type<tc>, window_params = [{transform_indices = @transform_0, window_bounds = array<i64: 8, 128>}, {pipeline_mode = #tpu.pipeline_mode<synchronous>, transform_indices = @transform_1, window_bounds = array<i64: 128, 64>}, {pipeline_mode = #tpu.pipeline_mode<synchronous>, transform_indices = @transform_2, window_bounds = array<i64: 1, 64>}, {pipeline_mode = #tpu.pipeline_mode<synchronous>, transform_indices = @transform_3, window_bounds = array<i64: 64, 8>}, {pipeline_mode = #tpu.pipeline_mode<synchronous>, transform_indices = @transform_4, window_bounds = array<i64: 1, 8>}, {transform_indices = @transform_5, window_bounds = array<i64: 8, 8>}]} {
    %c0 = arith.constant 0 : index
    %c0_0 = arith.constant 0 : index
    %0 = vector.load %arg1[%c0, %c0_0] : memref<8x128xbf16, #tpu.memory_space<vmem>>, vector<8x128xbf16>
    %c0_1 = arith.constant 0 : index
    %c0_2 = arith.constant 0 : index
    %1 = vector.load %arg2[%c0_1, %c0_2] : memref<128x64xbf16, #tpu.memory_space<vmem>>, vector<128x64xbf16>
    %cst = arith.constant dense<0.000000e+00> : vector<8x64xf32>
    %2 = tpu.matmul %0, %1, %cst {dimension_numbers = #tpu.dot_dimension_numbers<[1], [0], [0], [1], [0, 0, 1, 1], [], []>} : vector<8x128xbf16>, vector<128x64xbf16>, vector<8x64xf32> -> vector<8x64xf32>
    %c0_3 = arith.constant 0 : index
    %c0_4 = arith.constant 0 : index
    %3 = vector.load %arg3[%c0_3, %c0_4] : memref<1x64xf32, #tpu.memory_space<vmem>>, vector<1x64xf32>
    %4 = vector.broadcast %3 : vector<1x64xf32> to vector<8x64xf32>
    %5 = arith.addf %2, %4 : vector<8x64xf32>
    %cst_5 = arith.constant 0.000000e+00 : f32
    %6 = vector.broadcast %cst_5 : f32 to vector<8x64xf32>
    %7 = arith.maximumf %5, %6 : vector<8x64xf32>
    %8 = arith.truncf %7 : vector<8x64xf32> to vector<8x64xbf16>
    %c0_6 = arith.constant 0 : index
    %c0_7 = arith.constant 0 : index
    %9 = vector.load %arg4[%c0_6, %c0_7] : memref<64x8xbf16, #tpu.memory_space<vmem>>, vector<64x8xbf16>
    %cst_8 = arith.constant dense<0.000000e+00> : vector<8x8xf32>
    %10 = tpu.matmul %8, %9, %cst_8 {dimension_numbers = #tpu.dot_dimension_numbers<[1], [0], [0], [1], [0, 0, 1, 1], [], []>} : vector<8x64xbf16>, vector<64x8xbf16>, vector<8x8xf32> -> vector<8x8xf32>
    %c0_9 = arith.constant 0 : index
    %c0_10 = arith.constant 0 : index
    %11 = vector.load %arg5[%c0_9, %c0_10] : memref<1x8xf32, #tpu.memory_space<vmem>>, vector<1x8xf32>
    %12 = vector.broadcast %11 : vector<1x8xf32> to vector<8x8xf32>
    %13 = arith.addf %10, %12 : vector<8x8xf32>
    %c0_11 = arith.constant 0 : index
    %c0_12 = arith.constant 0 : index
    %14 = vector.load %arg6[%c0_11, %c0_12] : memref<8x8xf32, #tpu.memory_space<vmem>>, vector<8x8xf32>
    tpu.vector_store %arg6[%c0_11, %c0_12], %13 {strides = array<i32>} : memref<8x8xf32, #tpu.memory_space<vmem>>, vector<8x8xf32>,
    return
  }
  func.func @transform_0(%arg0: i32) -> (i32, i32) {
    %c0_i32 = arith.constant 0 : i32
    %c0_i32_0 = arith.constant 0 : i32
    return %arg0, %c0_i32 : i32, i32
  }
  func.func @transform_1(%arg0: i32) -> (i32, i32) {
    %c0_i32 = arith.constant 0 : i32
    %c0_i32_0 = arith.constant 0 : i32
    %c0_i32_1 = arith.constant 0 : i32
    return %c0_i32, %c0_i32_0 : i32, i32
  }
  func.func @transform_2(%arg0: i32) -> (i32, i32) {
    %c0_i32 = arith.constant 0 : i32
    %c0_i32_0 = arith.constant 0 : i32
    %c0_i32_1 = arith.constant 0 : i32
    return %c0_i32, %c0_i32_0 : i32, i32
  }
  func.func @transform_3(%arg0: i32) -> (i32, i32) {
    %c0_i32 = arith.constant 0 : i32
    %c0_i32_0 = arith.constant 0 : i32
    %c0_i32_1 = arith.constant 0 : i32
    return %c0_i32, %c0_i32_0 : i32, i32
  }
  func.func @transform_4(%arg0: i32) -> (i32, i32) {
    %c0_i32 = arith.constant 0 : i32
    %c0_i32_0 = arith.constant 0 : i32
    %c0_i32_1 = arith.constant 0 : i32
    return %c0_i32, %c0_i32_0 : i32, i32
  }
  func.func @transform_5(%arg0: i32) -> (i32, i32) {
    %c0_i32 = arith.constant 0 : i32
    %c0_i32_0 = arith.constant 0 : i32
    return %arg0, %c0_i32 : i32, i32
  }
}

</mosaic_0001>

<bundles_post_ra>
// kernel: homography_model_forward.11
= control target key start
LH: loop header
LB: loop body
LE: loop exit
PB: predicated region body
PF: predicated region fallthrough
CT: control target
= control target key end

     0   :  { %s1081_s12 = smov 0   ;;  %s1478_s0 = inlined_call_operand.vmem [shape: bf16[2,10,10,8], index: 0, kind: input, shape index: {}]   ;;  %s1479_s1 = inlined_call_operand.vmem [shape: bf16[72,16], index: 1, kind: input, shape index: {}]   ;;  %s1480_s2 = inlined_call_operand.vmem [shape: f32[1,16], index: 2, kind: input, shape index: {}]   ;;  %s1481_s3 = inlined_call_operand.vmem [shape: bf16[2,8,8,16], index: 3, kind: output, shape index: {}]  }
   0x1 LB: > { %s983_s13 = sadd.s32 4294967295, %s1059_s12   ;;  %p987_p0 = scmp.ge.s32.totalorder %s1059_s12, 1  ;;  %s1059_s12 = sphi %s1081_s12, %s13_s12  }
   0x2   : > { %p137_p1 = scmp.lt.s32.totalorder %s1059_s12, 3 }
   0x4   : > { %p138_p2 = pnand %p987_p0, %p137_p1 }
   0x5   : > { %p161_p3 = scmp.lt.s32.totalorder (!%p138_p2), %s983_s13, 1 }
   0x6   : > { %141 = sbr.rel (%p138_p2) target bundleno = 319 (0x13f), region = 32 }
   0xb   : > { %v193_v0 = vld [vmem:[%s1479_s1 + $0x4] sm:$0xf]  ;;  %vm341_vm0 = vcmask 1043456   ;;  %v194_v2 = vld [vmem:[%s1479_s1 + $0x8] sm:$0xf]  ;;  %s1487_s13 = smov (!%p161_p3, %s983_s13), 1 }
   0xc   : > { %v343_v1 = vsel %vm341_vm0, %v193_v0, 0  ;;  %v506_v3 = vsel %vm341_vm0, %v194_v2, 0  ;;  %s1043_s18 = smul.u32 80, %s1487_s13  ;;  %v195_v4 = vld [vmem:[%s1479_s1 + $0xc] sm:$0xf]  ;;  %vm328_vm3 = vcmask 64512  }
   0xd   : > { %1040 = vmatpush.bf16.msra.mxu1 %v343_v1  ;;  %1041 = vmatpush.bf16.msra.mxu2 %v343_v1  ;;  %v192_v5 = vld [vmem:[%s1479_s1] sm:$0xf]  ;;  %v564_v6 = vsel %vm341_vm0, %v195_v4, 0  ;;  %v196_v8 = vld [vmem:[%s1479_s1 + $0x10] sm:$0xf]  ;;  %vm446_vm5 = vcmask 1042432  }
   0xe   : > { %1042 = vmatpush.bf16.msra.mxu3 %v343_v1  ;;  %352 = vmatpush.bf16.msra.mxu0 %v343_v1  ;;  %v407_v7 = vsel %vm341_vm0, %v192_v5, 0  ;;  %s1114_s27 = scalar_lea.vmem %s1478_s0, %s1043_s18  ;;  %vm201_vm1 = vsmask.f32 3328  ;;  %vm202_vm2 = vsmask.f32 7440  ;;  %v635_v9 = vsel %vm341_vm0, %v196_v8, 0 }
   0xf   : > { %v1118_v10 = vld [vmem:[%s1114_s27 + $0x10] sm:$0xf]  ;;  %v1121_v11 = vld [vmem:[%s1114_s27 + $0x14] sm:$0x1]  ;;  %v1124_v12 = vld [vmem:[%s1114_s27 + $0x18] sm:$0xf] }
  0x10   : > { %v1127_v13 = vld [vmem:[%s1114_s27 + $0x1c] sm:$0x1]  ;;  %v233_v14 = vshrl.u32 %v1118_v10, 16  ;;  %v236_v15 = vshll.u32 %v1118_v10, 16  ;;  %v242_v16 = vshll.u32 %v1121_v11, 16  ;;  %v247_v17 = vshrl.u32 %v1124_v12, 16  ;;  %vm1157_vm4 = vmor %vm201_vm1, %vm202_vm2 }
  0x11   : > { %515 = vmatpush.bf16.msrb.mxu2 %v506_v3  ;;  %416 = vmatpush.bf16.msrb.mxu1 %v407_v7  ;;  %v250_v18 = vshll.u32 %v1124_v12, 16  ;;  %v256_v19 = vshll.u32 %v1127_v13, 16  ;;  %v1136_v20 = vld [vmem:[%s1114_s27 + $0x20] sm:$0xf]  ;;  %v1139_v21 = vld [vmem:[%s1114_s27 + $0x24] sm:$0x1] }
  0x12   : > { %573 = vmatpush.bf16.msrb.mxu3 %v564_v6  ;;  %644 = vmatpush.bf16.msrb.mxu0 %v635_v9  ;;  %v235_v22 = vrot.slane %v233_v14, 4  ;;  %v238_v23 = vrot.slane %v236_v15, 5  ;;  %v244_v24 = vrot.slane %v242_v16, 5  ;;  %v249_v25 = vrot.slane %v247_v17, 4  ;;  %v1142_v26 = vld [vmem:[%s1114_s27 + $0x28] sm:$0xf] }
  0x13   : > { %v252_v27 = vrot.slane %v250_v18, 5  ;;  %v258_v28 = vrot.slane %v256_v19, 5  ;;  %v1145_v29 = vld [vmem:[%s1114_s27 + $0x2c] sm:$0x1]  ;;  %v261_v30 = vshrl.u32 %v1136_v20, 16  ;;  %v264_v31 = vshll.u32 %v1136_v20, 16 }
  0x14   : > { %v239_v32 = vor.u32 %v238_v23, %v235_v22  ;;  %v270_v33 = vshll.u32 %v1139_v21, 16  ;;  %v275_v34 = vshrl.u32 %v1142_v26, 16  ;;  %v278_v35 = vshll.u32 %v1142_v26, 16  ;;  %v1153_v36 = vld [vmem:[%s1114_s27 + $0x30] sm:$0xf]  ;;  %s1039_s11 = sshll.u32 %s1487_s13, 5 }
  0x15   : > { %v253_v38 = vor.u32 %v252_v27, %v249_v25  ;;  %v263_v39 = vrot.slane %v261_v30, 4  ;;  %v266_v40 = vrot.slane %v264_v31, 5  ;;  %v284_v41 = vshll.u32 %v1145_v29, 16  ;;  %v1163_v42 = vld [vmem:[%s1114_s27 + $0x34] sm:$0x1]  ;;  %s1429_s16 = scalar_lea.vmem %s1481_s3, %s1039_s11 }
  0x16   : > { %v240_v43 = vrot.slane %v239_v32, 4  ;;  %v272_v44 = vrot.slane %v270_v33, 5  ;;  %v277_v45 = vrot.slane %v275_v34, 4  ;;  %v280_v46 = vrot.slane %v278_v35, 5  ;;  %v1169_v53 = vld [vmem:[%s1114_s27 + $0x38] sm:$0xf] }
  0x17   : > { %v254_v47 = vrot.slane %v253_v38, 4  ;;  %v267_v48 = vor.u32 %v266_v40, %v263_v39  ;;  %v286_v49 = vrot.slane %v284_v41, 5  ;;  %v289_v50 = vshrl.u32 %v1153_v36, 16  ;;  %v1172_v54 = vld [vmem:[%s1114_s27 + $0x3c] sm:$0x1] }
  0x18   : > { %v245_v51 = vsel %vm1157_vm4, %v240_v43, %v244_v24  ;;  %v281_v52 = vor.u32 %v280_v46, %v277_v45  ;;  %v292_v55 = vshll.u32 %v1153_v36, 16  ;;  %v298_v56 = vshll.u32 %v1163_v42, 16  ;;  %v1183_v1 = vld [vmem:[%s1114_s27] sm:$0xf]  ;;  %v173_v6 = vld [vmem:[%s1114_s27 + $0x4] sm:$0x1] }
  0x19   : > { %v259_v57 = vsel %vm1157_vm4, %v254_v47, %v258_v28  ;;  %v1178_v58 = vunpack.c.l.b16 %v245_v51  ;;  %v268_v59 = vrot.slane %v267_v48, 4  ;;  %v291_v60 = vrot.slane %v289_v50, 4  ;;  %v1200_v15 = vld [vmem:[%s1114_s27 + $0x8] sm:$0xf]  ;;  %v175_v30 = vld [vmem:[%s1114_s27 + $0xc] sm:$0x1] }
  0x1a   : > { %v1180_v61 = vunpack.c.l.b16 %v259_v57  ;;  %v282_v62 = vrot.slane %v281_v52, 4  ;;  %v294_v63 = vrot.slane %v292_v55, 5  ;;  %v300_v0 = vrot.slane %v298_v56, 5  ;;  %v198_v51 = vld [vmem:[%s1479_s1 + $0x18] sm:$0xf] }
  0x1b   : > { %v273_v2 = vsel %vm1157_vm4, %v268_v59, %v272_v44  ;;  %v303_v3 = vshrl.u32 %v1169_v53, 16  ;;  %v306_v4 = vshll.u32 %v1169_v53, 16  ;;  %v312_v5 = vshll.u32 %v1172_v54, 16 }
  0x1c   : > { %v1193_v7 = vpack.c.b16 %v1180_v61, %v1178_v58  ;;  %v287_v8 = vsel %vm1157_vm4, %v282_v62, %v286_v49  ;;  %v1197_v9 = vunpack.c.l.b16 %v273_v2  ;;  %v295_v14 = vor.u32 %v294_v63, %v291_v60  ;;  %v197_v2 = vld [vmem:[%s1479_s1 + $0x14] sm:$0xf] }
  0x1d   : > { %v1202_v16 = vunpack.c.l.b16 %v287_v8  ;;  %v305_v17 = vrot.slane %v303_v3, 4  ;;  %v308_v18 = vrot.slane %v306_v4, 5  ;;  %v314_v19 = vrot.slane %v312_v5, 5 }
  0x1e   : > { %992 = vmatmul.msk.bf16.vlgmr.msra.gmra.mxu1 %vm328_vm3, %v1193_v7  ;;  %v296_v22 = vrot.slane %v295_v14, 4  ;;  %v205_v23 = vshrl.u32 %v1183_v1, 16  ;;  %v208_v24 = vshll.u32 %v1183_v1, 16  ;;  %v214_v25 = vshll.u32 %v173_v6, 16 }
  0x1f   : > { %v1210_v27 = vpack.c.b16 %v1202_v16, %v1197_v9  ;;  %v309_v28 = vor.u32 %v308_v18, %v305_v17  ;;  %v219_v31 = vshrl.u32 %v1200_v15, 16  ;;  %v222_v32 = vshll.u32 %v1200_v15, 16 }
  0x20   : > { %v301_v33 = vsel %vm1157_vm4, %v296_v22, %v300_v0  ;;  %v207_v34 = vrot.slane %v205_v23, 4  ;;  %v210_v35 = vrot.slane %v208_v24, 5  ;;  %vm447_vm6 = vcmask 1046532   ;;  %v199_v0 = vld [vmem:[%s1479_s1 + $0x1c] sm:$0xf] }
  0x21   : > { %993 = vmatmul.msk.bf16.vlgmr.msra.gmra.mxu2 %vm328_vm3, %v1210_v27  ;;  %v310_v38 = vrot.slane %v309_v28, 4  ;;  %v216_v39 = vrot.slane %v214_v25, 5  ;;  %v221_v40 = vrot.slane %v219_v31, 4  ;;  %v224_v41 = vrot.slane %v222_v32, 5  ;;  %vm1224_vm7 = vmor %vm446_vm5, %vm447_vm6 }
  0x22   : > { %v1219_v43 = vunpack.c.l.b16 %v301_v33  ;;  %v211_v44 = vor.u32 %v210_v35, %v207_v34  ;;  %v228_v45 = vshll.u32 %v175_v30, 16  ;;  %v451_v46 = vrot.slane %v173_v6, 5 }
  0x23   : > { %v315_v47 = vsel %vm1157_vm4, %v310_v38, %v314_v19  ;;  %v225_v48 = vor.u32 %v224_v41, %v221_v40  ;;  %v455_v49 = vrot.slane %v175_v30, 5  ;;  %v999_v57 = vrot.slane %v1183_v1, 9 }
  0x24   : > { %v1231_v52 = vunpack.c.l.b16 %v315_v47  ;;  %v212_v55 = vrot.slane %v211_v44, 4  ;;  %v230_v56 = vrot.slane %v228_v45, 5  ;;  %v382_v60 = vunpack.c.l.b16 %v1183_v1 }
  0x25   : > { %v226_v59 = vrot.slane %v225_v48, 4  ;;  %v383_v62 = vunpack.c.l.b16 %v1200_v15  ;;  %v1000_v63 = vrot.slane %v1200_v15, 9  ;;  %v452_v1 = vsel %vm1224_vm7, %v999_v57, %v451_v46  ;;  %v200_v15 = vld [vmem:[%s1479_s1 + $0x20] sm:$0xf] }
  0x26   : > { %v1245_v3 = vpack.c.b16 %v1231_v52, %v1219_v43  ;;  %v217_v4 = vsel %vm1157_vm4, %v212_v55, %v216_v39  ;;  %v743_v5 = vsel %vm341_vm0, %v198_v51, 0  ;;  %v802_v18 = vsel %vm341_vm0, %v199_v0, 0 }
  0x27   : > { %v231_v6 = vsel %vm1157_vm4, %v226_v59, %v230_v56  ;;  %v316_v8 = vunpack.c.l.b16 %v217_v4  ;;  %v1256_v14 = vsel %vm1224_vm7, %v1000_v63, %v455_v49  ;;  %752 = vmatpush.bf16.msra.mxu2 %v743_v5  ;;  %v697_v19 = vsel %vm341_vm0, %v197_v2, 0 }
  0x28   : > { %994 = vmatmul.msk.bf16.vlgmr.msra.gmra.mxu3 %vm328_vm3, %v1245_v3  ;;  %v317_v17 = vunpack.c.l.b16 %v231_v6  ;;  %v481_v22 = vunpack.c.l.b16 %v452_v1  ;;  %v482_v23 = vunpack.c.l.b16 %v1256_v14  ;;  %706 = vmatpush.bf16.msra.mxu1 %v697_v19  ;;  %v390_v25 = vpack.c.b16 %v383_v62, %v382_v60  ;;  %v190_v14 = vld [vmem:[%s1114_s27 + $0x48] sm:$0xf] }
  0x29   : > { %811 = vmatpush.bf16.msra.mxu3 %v802_v18  ;;  %v852_v28 = vsel %vm341_vm0, %v200_v15, 0  ;;  %v384_v31 = vunpack.c.l.b16 %v1118_v10  ;;  %v1001_v32 = vrot.slane %v1118_v10, 9  ;;  %v459_v33 = vrot.slane %v1121_v11, 5 }
  0x2a   : > { %v324_v24 = vpack.c.b16 %v317_v17, %v316_v8  ;;  %v489_v30 = vpack.c.b16 %v482_v23, %v481_v22  ;;  %v1002_v34 = vrot.slane %v1124_v12, 9  ;;  %v463_v35 = vrot.slane %v1127_v13, 5 }
  0x2b   : > { %v547_v38 = vpack.c.b16 %v384_v31, %v383_v62  ;;  %v385_v39 = vunpack.c.l.b16 %v1124_v12  ;;  %v1280_v40 = vsel %vm1224_vm7, %v1001_v32, %v459_v33  ;;  %v618_v10 = vpack.c.b16 %v1178_v58, %v317_v17  ;;  %v189_v17 = vld [vmem:[%s1114_s27 + $0x44] sm:$0x1] }
  0x2c   : > { %991 = vmatmul.msk.bf16.vlgmr.msra.gmra.mxu0 %vm328_vm3, %v324_v24  ;;  %v1284_v41 = vsel %vm1224_vm7, %v1002_v34, %v463_v35  ;;  %v483_v11 = vunpack.c.l.b16 %v1280_v40  ;;  %v386_v45 = vunpack.c.l.b16 %v1136_v20  ;;  %v1003_v46 = vrot.slane %v1136_v20, 9  ;;  %v191_v40 = vld [vmem:[%s1114_s27 + $0x4c] sm:$0x1] }
  0x2d   : > { %861 = vmatpush.bf16.msra.mxu0 %v852_v28  ;;  %v484_v44 = vunpack.c.l.b16 %v1284_v41  ;;  %v391_v13 = vpack.c.b16 %v385_v39, %v384_v31  ;;  %v467_v58 = vrot.slane %v1139_v21, 5  ;;  %v1004_v47 = vrot.slane %v1142_v26, 9 }
  0x2e   : > { %995 = vmatmul.msk.bf16.vlgmr.msrb.gmra.mxu1 %vm328_vm3, %v390_v25  ;;  %v471_v48 = vrot.slane %v1145_v29, 5  ;;  %v548_v49 = vpack.c.b16 %v386_v45, %v385_v39  ;;  %v387_v51 = vunpack.c.l.b16 %v1142_v26  ;;  %v619_v20 = vpack.c.b16 %v1197_v9, %v1180_v61  ;;  %v1311_v26 = vld [vmem:[%s1114_s27 + $0x40] sm:$0xf] }
  0x2f   : > { %v490_v12 = vpack.c.b16 %v484_v44, %v483_v11  ;;  %v468_v55 = vsel %vm1224_vm7, %v1003_v46, %v467_v58  ;;  %v388_v60 = vunpack.c.l.b16 %v1153_v36  ;;  %v604_v62 = vshrl.u32 %v1311_v26, 16 }
  0x30   : > { %v472_v56 = vsel %vm1224_vm7, %v1004_v47, %v471_v48  ;;  %v485_v57 = vunpack.c.l.b16 %v468_v55  ;;  %v392_v59 = vpack.c.b16 %v387_v51, %v386_v45  ;;  %v607_v63 = vshll.u32 %v1311_v26, 16 }
  0x31   : > { %1007 = vmatmul.msk.bf16.vlgmr.msrb.gmra.mxu2 %vm328_vm3, %v489_v30  ;;  %v486_v21 = vunpack.c.l.b16 %v472_v56  ;;  %v1005_v61 = vrot.slane %v1153_v36, 9  ;;  %v475_v9 = vrot.slane %v1163_v42, 5  ;;  %v1006_v0 = vrot.slane %v1169_v53, 9 }
  0x32   : > { %v479_v2 = vrot.slane %v1172_v54, 5  ;;  %v549_v4 = vpack.c.b16 %v388_v60, %v387_v51  ;;  %v606_v1 = vrot.slane %v604_v62, 4  ;;  %v609_v5 = vrot.slane %v607_v63, 5 }
  0x33   : > { %v491_v29 = vpack.c.b16 %v486_v21, %v485_v57  ;;  %v389_v6 = vunpack.c.l.b16 %v1169_v53  ;;  %v476_v8 = vsel %vm1224_vm7, %v1005_v61, %v475_v9  ;;  %v620_v36 = vpack.c.b16 %v1219_v43, %v1202_v16 }
  0x34   : > { %v480_v15 = vsel %vm1224_vm7, %v1006_v0, %v479_v2  ;;  %v487_v42 = vunpack.c.l.b16 %v476_v8  ;;  %v610_v54 = vor.u32 %v609_v5, %v606_v1  ;;  %v613_v19 = vshll.u32 %v189_v17, 16 }
  0x35   : > { %v488_v18 = vunpack.c.l.b16 %v480_v15  ;;  %v393_v22 = vpack.c.b16 %v389_v6, %v388_v60  ;;  %v546_v28 = vunpack.c.l.b16 %v1311_v26  ;;  %v680_v32 = vpack.c.b16 %v483_v11, %v482_v23 }
  0x36   : > { %v611_v24 = vrot.slane %v610_v54, 4  ;;  %v615_v25 = vrot.slane %v613_v19, 5  ;;  %v681_v33 = vpack.c.b16 %v485_v57, %v484_v44  ;;  %v783_v23 = vshrl.u32 %v190_v14, 16 }
  0x37   : > { %v492_v53 = vpack.c.b16 %v488_v18, %v487_v42  ;;  %v550_v16 = vpack.c.b16 %v546_v28, %v389_v6  ;;  %v786_v34 = vshll.u32 %v190_v14, 16  ;;  %v677_v35 = vrot.slane %v189_v17, 5 }
  0x38   : > { %1011 = vmatmul.msk.bf16.vlgmr.msrb.gmra.mxu3 %vm328_vm3, %v547_v38  ;;  %v616_v30 = vsel %vm1157_vm4, %v611_v24, %v615_v25  ;;  %v785_v38 = vrot.slane %v783_v23, 4  ;;  %v737_v44 = vunpack.c.l.b16 %v190_v14  ;;  %v1032_v48 = vrot.slane %v190_v14, 9 }
  0x39   : > { %v617_v43 = vunpack.c.l.b16 %v616_v30  ;;  %v788_v39 = vrot.slane %v786_v34, 5  ;;  %vm919_vm8 = vcmask 125952  }
  0x3a   : > { %v738_v58 = vpack.c.b16 %v737_v44, %v546_v28 }
  0x3b   : > { %v621_v31 = vpack.c.b16 %v617_v43, %v1231_v52  ;;  %v682_v52 = vpack.c.b16 %v487_v42, %v486_v21 }
  0x3c   : > { %1015 = vmatmul.msk.bf16.vlgmr.msrb.gmra.mxu0 %vm328_vm3, %v618_v10  ;;  %v792_v10 = vshll.u32 %v191_v40, 16 }
  0x3e   : > { %996 = vmatmul.msk.bf16.gmra.mxu1 %vm328_vm3, %v391_v13 }
  0x41   : > { %1008 = vmatmul.msk.bf16.gmra.mxu2 %vm328_vm3, %v490_v12 }
  0x48   : > { %1012 = vmatmul.msk.bf16.gmra.mxu3 %vm328_vm3, %v548_v49  ;;  %v844_v49 = vrot.slane %v191_v40, 5 }
  0x4c   : > { %1016 = vmatmul.msk.bf16.gmra.mxu0 %vm328_vm3, %v619_v20 }
  0x4e   : > { %997 = vmatmul.msk.bf16.gmra.mxu1 %vm328_vm3, %v392_v59 }
  0x51   : > { %1009 = vmatmul.msk.bf16.gmra.mxu2 %vm328_vm3, %v491_v29 }
  0x58   : > { %1013 = vmatmul.msk.bf16.gmra.mxu3 %vm328_vm3, %v549_v4 }
  0x5c   : > { %1017 = vmatmul.msk.bf16.gmra.mxu0 %vm328_vm3, %v620_v36 }
  0x5e   : > { %998 = vmatmul.msk.bf16.gmra.mxu1 %vm328_vm3, %v393_v22 }
  0x61   : > { %1010 = vmatmul.msk.bf16.gmra.mxu2 %vm328_vm3, %v492_v53 }
  0x68   : > { %1014 = vmatmul.msk.bf16.gmra.mxu3 %vm328_vm3, %v550_v16 }
  0x6c   : > { %1018 = vmatmul.msk.bf16.gmra.mxu0 %vm328_vm3, %v621_v31 }
  0x6e   : > { %1020 = vmatmul.msk.bf16.vlgmr.msra.gmra.mxu1 %vm328_vm3, %v680_v32 }
  0x71   : > { %1024 = vmatmul.msk.bf16.vlgmr.msra.gmra.mxu2 %vm328_vm3, %v391_v13 }
  0x78   : > { %1028 = vmatmul.msk.bf16.vlgmr.msra.gmra.mxu3 %vm328_vm3, %v1193_v7  ;;  %v1019_v7 = vrot.slane %v1311_v26, 9 }
  0x7a   : > { %v678_v41 = vsel %vm1224_vm7, %v1019_v7, %v677_v35 }
  0x7b   : > { %v679_v11 = vunpack.c.l.b16 %v678_v41 }
  0x7c   : > { %1033 = vmatmul.msk.bf16.vlgmr.msra.gmra.mxu0 %vm328_vm3, %v490_v12  ;;  %v794_v12 = vrot.slane %v792_v10, 5 }
  0x7d   : > { %v683_v45 = vpack.c.b16 %v679_v11, %v488_v18 }
  0x7e   : > { %1021 = vmatmul.msk.bf16.gmra.mxu1 %vm328_vm3, %v681_v33 }
  0x81   : > { %1025 = vmatmul.msk.bf16.gmra.mxu2 %vm328_vm3, %v392_v59 }
  0x88   : > { %1029 = vmatmul.msk.bf16.gmra.mxu3 %vm328_vm3, %v1210_v27  ;;  %v789_v27 = vor.u32 %v788_v39, %v785_v38 }
  0x8a   : > { %v790_v13 = vrot.slane %v789_v27, 4 }
  0x8c   : > { %1034 = vmatmul.msk.bf16.gmra.mxu0 %vm328_vm3, %v491_v29  ;;  %v795_v47 = vsel %vm1157_vm4, %v790_v13, %v794_v12 }
  0x8d   : > { %v796_v51 = vunpack.c.l.b16 %v795_v47 }
  0x8e   : > { %1022 = vmatmul.msk.bf16.gmra.mxu1 %vm328_vm3, %v682_v52 }
  0x8f   : > { %v797_v56 = vpack.c.b16 %v796_v51, %v617_v43 }
  0x91   : > { %1026 = vmatmul.msk.bf16.gmra.mxu2 %vm328_vm3, %v393_v22 }
  0x98   : > { %1030 = vmatmul.msk.bf16.gmra.mxu3 %vm328_vm3, %v1245_v3  ;;  %v845_v3 = vsel %vm1224_vm7, %v1032_v48, %v844_v49  ;;  %v1421_v49 = vld [vmem:[%s1480_s2] ss:$0 sm:$0xff] }
  0x99   : > { %v846_v20 = vunpack.c.l.b16 %v845_v3 }
  0x9b   : > { %v1362_v46 = vpop.f32.mrf.mxu1  ;;  %v847_v37 = vpack.c.b16 %v846_v20, %v679_v11 }
  0x9c   : > { %1035 = vmatmul.msk.bf16.gmra.mxu0 %vm328_vm3, %v492_v53 }
  0x9e   : > { %1023 = vmatmul.msk.bf16.gmra.mxu1 %vm328_vm3, %v683_v45 }
  0xa1   : > { %1027 = vmatmul.msk.bf16.gmra.mxu2 %vm328_vm3, %v738_v58 }
  0xa3   : > { %v1371_v55 = vpop.f32.mrf.mxu1 }
  0xa4   : > { %v1373_v57 = vpop.f32.mrf.mxu2 }
  0xa8   : > { %1031 = vmatmul.msk.bf16.gmra.mxu3 %vm328_vm3, %v797_v56 }
  0xa9   : > { %v354_v21 = vpop.f32.mrf.mxu0 }
  0xab   : > { %v1376_v59 = vpop.f32.mrf.mxu3  ;;  %v418_v29 = vpop.f32.mrf.mxu1 }
  0xac   : > { %1036 = vmatmul.msk.bf16.gmra.mxu0 %vm328_vm3, %v847_v37  ;;  %v1379_v26 = vpop.f32.mrf.mxu2  ;;  %v419_v32 = vadd.f32 %v418_v29, %v354_v21 }
  0xb1   : > { %v356_v60 = vpop.f32.mrf.mxu0 }
  0xb3   : > { %v1381_v50 = vpop.f32.mrf.mxu3  ;;  %v420_v62 = vpop.f32.mrf.mxu1 }
  0xb4   : > { %v517_v63 = vpop.f32.mrf.mxu2  ;;  %v421_v35 = vadd.f32 %v420_v62, %v356_v60 }
  0xb5   : > { %v537_v14 = vadd.f32 %v517_v63, %v419_v32 }
  0xb9   : > { %v646_v61 = vpop.f32.mrf.mxu0 }
  0xbb   : > { %v575_v9 = vpop.f32.mrf.mxu3  ;;  %v423_v0 = vpop.f32.mrf.mxu1 }
  0xbc   : > { %v519_v2 = vpop.f32.mrf.mxu2  ;;  %v595_v34 = vadd.f32 %v575_v9, %v537_v14  ;;  %v424_v12 = vadd.f32 %v423_v0, %v1362_v46 }
  0xbd   : > { %v538_v40 = vadd.f32 %v519_v2, %v421_v35 }
  0xbe   : > { %v666_v41 = vadd.f32 %v646_v61, %v595_v34 }
  0xc1   : > { %v648_v4 = vpop.f32.mrf.mxu0 }
  0xc3   : > { %v577_v1 = vpop.f32.mrf.mxu3  ;;  %v425_v5 = vpop.f32.mrf.mxu1 }
  0xc4   : > { %v522_v6 = vpop.f32.mrf.mxu2  ;;  %v596_v11 = vadd.f32 %v577_v1, %v538_v40  ;;  %v426_v46 = vadd.f32 %v425_v5, %v1371_v55 }
  0xc5   : > { %v539_v47 = vadd.f32 %v522_v6, %v424_v12 }
  0xc6   : > { %v667_v51 = vadd.f32 %v648_v4, %v596_v11 }
  0xc9   : > { %v651_v8 = vpop.f32.mrf.mxu0 }
  0xcb   : > { %v580_v15 = vpop.f32.mrf.mxu3  ;;  %v1383_v17 = vpop.f32.mrf.mxu1 }
  0xcc   : > { %v524_v36 = vpop.f32.mrf.mxu2  ;;  %v597_v37 = vadd.f32 %v580_v15, %v539_v47  ;;  %v429_v14 = vadd.f32 %v1383_v17, %v1373_v57 }
  0xcd   : > { %v540_v9 = vadd.f32 %v524_v36, %v426_v46 }
  0xce   : > { %v668_v4 = vadd.f32 %v651_v8, %v597_v37 }
  0xd1   : > { %v1385_v42 = vpop.f32.mrf.mxu0 }
  0xd3   : > { %v582_v18 = vpop.f32.mrf.mxu3  ;;  %v1387_v54 = vpop.f32.mrf.mxu1 }
  0xd4   : > { %v1389_v19 = vpop.f32.mrf.mxu2  ;;  %v598_v5 = vadd.f32 %v582_v18, %v540_v9 }
  0xd5   : > { %v541_v36 = vadd.f32 %v1389_v19, %v429_v14  ;;  %v431_v19 = vadd.f32 %v1387_v54, %v1379_v26 }
  0xd6   : > { %v669_v40 = vadd.f32 %v1385_v42, %v598_v5 }
  0xd9   : > { %v1391_v22 = vpop.f32.mrf.mxu0 }
  0xdb   : > { %v1393_v53 = vpop.f32.mrf.mxu3  ;;  %v1395_v24 = vpop.f32.mrf.mxu1 }
  0xdc   : > { %v1397_v25 = vpop.f32.mrf.mxu2  ;;  %v599_v11 = vadd.f32 %v1393_v53, %v541_v36 }
  0xdd   : > { %v542_v42 = vadd.f32 %v1397_v25, %v431_v19  ;;  %v434_v25 = vadd.f32 %v1395_v24, %v1376_v59 }
  0xde   : > { %v670_v47 = vadd.f32 %v1391_v22, %v599_v11 }
  0xe1   : > { %v1399_v28 = vpop.f32.mrf.mxu0 }
  0xe3   : > { %v1401_v30 = vpop.f32.mrf.mxu3  ;;  %v1403_v16 = vpop.f32.mrf.mxu1 }
  0xe4   : > { %v1405_v43 = vpop.f32.mrf.mxu2 }
  0xe5   : > { %v543_v22 = vadd.f32 %v1405_v43, %v434_v25  ;;  %v436_v43 = vadd.f32 %v1403_v16, %v1381_v50 }
  0xe9   : > { %v1407_v31 = vpop.f32.mrf.mxu0 }
  0xeb   : > { %v1409_v33 = vpop.f32.mrf.mxu3  ;;  %v708_v52 = vpop.f32.mrf.mxu1 }
  0xec   : > { %v1411_v23 = vpop.f32.mrf.mxu2  ;;  %v728_v10 = vadd.f32 %v708_v52, %v666_v41 }
  0xf1   : > { %v1413_v7 = vpop.f32.mrf.mxu0 }
  0xf3   : > { %v1415_v38 = vpop.f32.mrf.mxu3  ;;  %v710_v39 = vpop.f32.mrf.mxu1 }
  0xf4   : > { %v754_v27 = vpop.f32.mrf.mxu2  ;;  %v729_v20 = vadd.f32 %v710_v39, %v667_v51 }
  0xf5   : > { %v774_v44 = vadd.f32 %v754_v27, %v728_v10 }
  0xf9   : > { %v863_v13 = vpop.f32.mrf.mxu0 }
  0xfb   : > { %v813_v45 = vpop.f32.mrf.mxu3  ;;  %v713_v58 = vpop.f32.mrf.mxu1 }
  0xfc   : > { %v833_v48 = vadd.f32 %v813_v45, %v774_v44  ;;  %v756_v3 = vpop.f32.mrf.mxu2  ;;  %v730_v55 = vadd.f32 %v713_v58, %v668_v4 }
  0xfd   : > { %v775_v29 = vadd.f32 %v756_v3, %v729_v20 }
  0xfe   : > { %v883_v56 = vadd.f32 %v863_v13, %v833_v48 }
 0x100   : > { %v895_v21 = vadd.f32 %v1421_v49, %v883_v56  ;;  %v600_v56 = vadd.f32 %v1401_v30, %v542_v42 }
 0x101   : > { %v865_v60 = vpop.f32.mrf.mxu0 }
 0x102   : > { %v903_v62 = vmax.f32 %v895_v21, 0.0  ;;  %v671_v46 = vadd.f32 %v1399_v28, %v600_v56  ;;  %v544_v28 = vadd.f32 %v1411_v23, %v436_v43 }
 0x103   : > { %v815_v63 = vpop.f32.mrf.mxu3  ;;  %v715_v61 = vpop.f32.mrf.mxu1 }
 0x104   : > { %v911_v0 = vpack.c.bf16 %v903_v62, %v903_v62  ;;  %v834_v2 = vadd.f32 %v815_v63, %v775_v29  ;;  %v759_v1 = vpop.f32.mrf.mxu2  ;;  %v731_v10 = vadd.f32 %v715_v61, %v669_v40  ;;  %v601_v61 = vadd.f32 %v1409_v33, %v543_v22 }
 0x105   : > { %v776_v32 = vadd.f32 %v759_v1, %v730_v55 }
 0x106   : > { %920 = vst.msk [vmem:[%s1429_s16] sm:$0xf] %vm919_vm8, %v911_v0  ;;  %v884_v6 = vadd.f32 %v865_v60, %v834_v2  ;;  %v672_v55 = vadd.f32 %v1407_v31, %v601_v61 }
 0x108   : > { %v896_v15 = vadd.f32 %v1421_v49, %v884_v6 }
 0x109   : > { %v868_v52 = vpop.f32.mrf.mxu0 }
 0x10a   : > { %v904_v34 = vmax.f32 %v896_v15, 0.0 }
 0x10b   : > { %v818_v35 = vpop.f32.mrf.mxu3  ;;  %v718_v27 = vpop.f32.mrf.mxu1 }
 0x10c   : > { %v912_v39 = vpack.c.bf16 %v904_v34, %v904_v34  ;;  %v835_v8 = vadd.f32 %v818_v35, %v776_v32  ;;  %v761_v41 = vpop.f32.mrf.mxu2  ;;  %v732_v51 = vadd.f32 %v718_v27, %v670_v47  ;;  %v602_v32 = vadd.f32 %v1415_v38, %v544_v28 }
 0x10d   : > { %v777_v57 = vadd.f32 %v761_v41, %v731_v10 }
 0x10e   : > { %921 = vst.msk [vmem:[%s1429_s16 + $0x4] sm:$0xf] %vm919_vm8, %v912_v39  ;;  %v885_v18 = vadd.f32 %v868_v52, %v835_v8  ;;  %v673_v31 = vadd.f32 %v1413_v7, %v602_v32 }
 0x110   : > { %v897_v44 = vadd.f32 %v1421_v49, %v885_v18 }
 0x111   : > { %v870_v17 = vpop.f32.mrf.mxu0 }
 0x112   : > { %v905_v13 = vmax.f32 %v897_v44, 0.0 }
 0x113   : > { %v820_v12 = vpop.f32.mrf.mxu3  ;;  %v720_v3 = vpop.f32.mrf.mxu1 }
 0x114   : > { %v913_v45 = vpack.c.bf16 %v905_v13, %v905_v13  ;;  %v836_v58 = vadd.f32 %v820_v12, %v777_v57  ;;  %v764_v48 = vpop.f32.mrf.mxu2  ;;  %v733_v63 = vadd.f32 %v720_v3, %v671_v46 }
 0x115   : > { %v778_v26 = vadd.f32 %v764_v48, %v732_v51 }
 0x116   : > { %922 = vst.msk [vmem:[%s1429_s16 + $0x8] sm:$0xf] %vm919_vm8, %v913_v45  ;;  %v886_v53 = vadd.f32 %v870_v17, %v836_v58 }
 0x118   : > { %v898_v20 = vadd.f32 %v1421_v49, %v886_v53 }
 0x119   : > { %v873_v54 = vpop.f32.mrf.mxu0 }
 0x11a   : > { %v906_v37 = vmax.f32 %v898_v20, 0.0 }
 0x11b   : > { %v823_v21 = vpop.f32.mrf.mxu3  ;;  %v723_v59 = vpop.f32.mrf.mxu1 }
 0x11c   : > { %v914_v29 = vpack.c.bf16 %v906_v37, %v906_v37  ;;  %v837_v60 = vadd.f32 %v823_v21, %v778_v26  ;;  %v766_v62 = vpop.f32.mrf.mxu2  ;;  %v734_v15 = vadd.f32 %v723_v59, %v672_v55 }
 0x11d   : > { %v779_v0 = vadd.f32 %v766_v62, %v733_v63 }
 0x11e   : > { %923 = vst.msk [vmem:[%s1429_s16 + $0xc] sm:$0xf] %vm919_vm8, %v914_v29  ;;  %v887_v30 = vadd.f32 %v873_v54, %v837_v60 }
 0x120   : > { %v899_v9 = vadd.f32 %v1421_v49, %v887_v30 }
 0x121   : > { %v875_v24 = vpop.f32.mrf.mxu0 }
 0x122   : > { %v907_v2 = vmax.f32 %v899_v9, 0.0 }
 0x123   : > { %v825_v4 = vpop.f32.mrf.mxu3  ;;  %v725_v16 = vpop.f32.mrf.mxu1 }
 0x124   : > { %v915_v1 = vpack.c.bf16 %v907_v2, %v907_v2  ;;  %v838_v6 = vadd.f32 %v825_v4, %v779_v0  ;;  %v769_v5 = vpop.f32.mrf.mxu2  ;;  %v735_v40 = vadd.f32 %v725_v16, %v673_v31 }
 0x125   : > { %v780_v14 = vadd.f32 %v769_v5, %v734_v15 }
 0x126   : > { %924 = vst.msk [vmem:[%s1429_s16 + $0x10] sm:$0xf] %vm919_vm8, %v915_v1  ;;  %v888_v33 = vadd.f32 %v875_v24, %v838_v6 }
 0x128   : > { %v900_v52 = vadd.f32 %v1421_v49, %v888_v33 }
 0x129   : > { %v878_v34 = vpop.f32.mrf.mxu0 }
 0x12a   : > { %v908_v50 = vmax.f32 %v900_v52, 0.0 }
 0x12b   : > { %v828_v23 = vpop.f32.mrf.mxu3 }
 0x12c   : > { %v916_v35 = vpack.c.bf16 %v908_v50, %v908_v50  ;;  %v839_v36 = vadd.f32 %v828_v23, %v780_v14  ;;  %v771_v39 = vpop.f32.mrf.mxu2 }
 0x12d   : > { %v781_v41 = vadd.f32 %v771_v39, %v735_v40 }
 0x12e   : > { %925 = vst.msk [vmem:[%s1429_s16 + $0x14] sm:$0xf] %vm919_vm8, %v916_v35  ;;  %v889_v8 = vadd.f32 %v878_v34, %v839_v36 }
 0x130   : > { %v901_v38 = vadd.f32 %v1421_v49, %v889_v8 }
 0x131   : > { %v880_v44 = vpop.f32.mrf.mxu0 }
 0x132   : > { %v909_v27 = vmax.f32 %v901_v38, 0.0 }
 0x133   : > { %v830_v18 = vpop.f32.mrf.mxu3 }
 0x134   : > { %v917_v10 = vpack.c.bf16 %v909_v27, %v909_v27  ;;  %v840_v11 = vadd.f32 %v830_v18, %v781_v41 }
 0x136   : > { %926 = vst.msk [vmem:[%s1429_s16 + $0x18] sm:$0xf] %vm919_vm8, %v917_v10  ;;  %v890_v57 = vadd.f32 %v880_v44, %v840_v11 }
 0x138   : > { %v902_v17 = vadd.f32 %v1421_v49, %v890_v57 }
 0x13a   : > { %v910_v7 = vmax.f32 %v902_v17, 0.0 }
 0x13c   : > { %v918_v19 = vpack.c.bf16 %v910_v7, %v910_v7 }
 0x13e   : > { %927 = vst.msk [vmem:[%s1429_s16 + $0x1c] sm:$0xf] %vm919_vm8, %v918_v19 }
 0x13f PF: > { %s13_s12 = sadd.s32 1, %s1059_s12  }
 0x140   : > { %p10_p4 = scmp.ge.s32.totalorder %s13_s12, 4  }
 0x142   :  { %12 = sbr.rel (!%p10_p4) target bundleno = 1 (0x1), region = 62 }

// kernel: homography_model_forward.12
= control target key start
LH: loop header
LB: loop body
LE: loop exit
PB: predicated region body
PF: predicated region fallthrough
CT: control target
= control target key end

     0   :  { %s1476_s12 = smov 0   ;;  %s1858_s0 = inlined_call_operand.vmem [shape: bf16[2,10,10,16], index: 0, kind: input, shape index: {}]   ;;  %s1859_s1 = inlined_call_operand.vmem [shape: bf16[144,16], index: 1, kind: input, shape index: {}]   ;;  %s1860_s2 = inlined_call_operand.vmem [shape: f32[1,16], index: 2, kind: input, shape index: {}]   ;;  %s1861_s3 = inlined_call_operand.vmem [shape: bf16[2,4,4,16], index: 3, kind: output, shape index: {}]  }
   0x1 LB: > { %s1317_s13 = sadd.s32 4294967295, %s1454_s12   ;;  %p1321_p0 = scmp.ge.s32.totalorder %s1454_s12, 1  ;;  %s1454_s12 = sphi %s1476_s12, %s13_s12  }
   0x2   : > { %p137_p1 = scmp.lt.s32.totalorder %s1454_s12, 3 }
   0x4   : > { %p138_p2 = pnand %p1321_p0, %p137_p1 }
   0x5   : > { %p161_p3 = scmp.lt.s32.totalorder (!%p138_p2), %s1317_s13, 1 }
   0x6   : > { %141 = sbr.rel (%p138_p2) target bundleno = 351 (0x15f), region = 32 }
   0xb   : > { %v1427_v0 = vld [vmem:[%s1859_s1 + $0x8] sm:$0xff]  ;;  %v1428_v1 = vld [vmem:[%s1859_s1 + $0x10] sm:$0xff]  ;;  %s1867_s13 = smov (!%p161_p3, %s1317_s13), 1  ;;  %v1429_v2 = vld [vmem:[%s1859_s1 + $0x18] sm:$0xff]  ;;  %vm210_vm0 = vsmask.f32 3328 }
   0xc   : > { %1435 = vmatpush.bf16.msra.mxu1 %v1427_v0  ;;  %1436 = vmatpush.bf16.msra.mxu2 %v1427_v0  ;;  %s1438_s18 = smul.u32 80, %s1867_s13  ;;  %v1426_v3 = vld [vmem:[%s1859_s1] sm:$0xff]  ;;  %vm211_vm1 = vsmask.f32 7440  ;;  %vm343_vm2 = vcmask 130048   ;;  %vm460_vm4 = vcmask 1042432  }
   0xd   : > { %1437 = vmatpush.bf16.msra.mxu3 %v1427_v0  ;;  %363 = vmatpush.bf16.msra.mxu0 %v1427_v0  ;;  %v1430_v4 = vld [vmem:[%s1859_s1 + $0x20] sm:$0xff]  ;;  %vm1547_vm3 = vmor %vm210_vm0, %vm211_vm1  ;;  %vm461_vm5 = vcmask 1046532   ;;  %vm1090_vm7 = vcmask 1041408   ;;  %vm1207_vm8 = vcmask 1041409   ;;  %vm1210_vm9 = vcmask 1042434   ;;  %s1425_s11 = sshll.u32 %s1867_s13, 3 }
   0xe   : > { %s1505_s27 = scalar_lea.vmem %s1858_s0, %s1438_s18  ;;  %vm1620_vm6 = vmor %vm460_vm4, %vm461_vm5  ;;  %vm1213_vm10 = vcmask 1043459   ;;  %s1821_s16 = scalar_lea.vmem %s1861_s3, %s1425_s11  ;;  %vm1257_vm11 = vcmask 123904  }
   0xf   : > { %v1508_v5 = vld [vmem:[%s1505_s27 + $0x10] sm:$0xf]  ;;  %v1511_v6 = vld [vmem:[%s1505_s27 + $0x14] sm:$0x1]  ;;  %v1514_v7 = vld [vmem:[%s1505_s27 + $0x18] sm:$0xf] }
  0x10   : > { %532 = vmatpush.bf16.msrb.mxu2 %v1428_v1  ;;  %430 = vmatpush.bf16.msrb.mxu1 %v1426_v3  ;;  %v1517_v8 = vld [vmem:[%s1505_s27 + $0x1c] sm:$0x1]  ;;  %v242_v9 = vshrl.u32 %v1508_v5, 16  ;;  %v245_v10 = vshll.u32 %v1508_v5, 16  ;;  %v251_v11 = vshll.u32 %v1511_v6, 16  ;;  %v256_v12 = vshrl.u32 %v1514_v7, 16 }
  0x11   : > { %593 = vmatpush.bf16.msrb.mxu3 %v1429_v2  ;;  %667 = vmatpush.bf16.msrb.mxu0 %v1430_v4  ;;  %v259_v13 = vshll.u32 %v1514_v7, 16  ;;  %v265_v14 = vshll.u32 %v1517_v8, 16  ;;  %v1526_v15 = vld [vmem:[%s1505_s27 + $0x20] sm:$0xf]  ;;  %v1529_v16 = vld [vmem:[%s1505_s27 + $0x24] sm:$0x1] }
  0x12   : > { %v244_v17 = vrot.slane %v242_v9, 4  ;;  %v247_v18 = vrot.slane %v245_v10, 5  ;;  %v253_v19 = vrot.slane %v251_v11, 5  ;;  %v258_v20 = vrot.slane %v256_v12, 4  ;;  %v1532_v21 = vld [vmem:[%s1505_s27 + $0x28] sm:$0xf] }
  0x13   : > { %v261_v22 = vrot.slane %v259_v13, 5  ;;  %v267_v23 = vrot.slane %v265_v14, 5  ;;  %v1535_v24 = vld [vmem:[%s1505_s27 + $0x2c] sm:$0x1]  ;;  %v270_v25 = vshrl.u32 %v1526_v15, 16  ;;  %v273_v26 = vshll.u32 %v1526_v15, 16 }
  0x14   : > { %v248_v27 = vor.u32 %v247_v18, %v244_v17  ;;  %v279_v28 = vshll.u32 %v1529_v16, 16  ;;  %v284_v29 = vshrl.u32 %v1532_v21, 16  ;;  %v287_v30 = vshll.u32 %v1532_v21, 16  ;;  %v1543_v31 = vld [vmem:[%s1505_s27 + $0x30] sm:$0xf]  ;;  %v1431_v11 = vld [vmem:[%s1859_s1 + $0x28] sm:$0xff] }
  0x15   : > { %v262_v33 = vor.u32 %v261_v22, %v258_v20  ;;  %v272_v34 = vrot.slane %v270_v25, 4  ;;  %v275_v35 = vrot.slane %v273_v26, 5  ;;  %v293_v36 = vshll.u32 %v1535_v24, 16  ;;  %v1553_v37 = vld [vmem:[%s1505_s27 + $0x34] sm:$0x1] }
  0x16   : > { %v249_v38 = vrot.slane %v248_v27, 4  ;;  %v281_v39 = vrot.slane %v279_v28, 5  ;;  %v286_v40 = vrot.slane %v284_v29, 4  ;;  %v289_v41 = vrot.slane %v287_v30, 5  ;;  %v1559_v48 = vld [vmem:[%s1505_s27 + $0x38] sm:$0xf] }
  0x17   : > { %v263_v42 = vrot.slane %v262_v33, 4  ;;  %v276_v43 = vor.u32 %v275_v35, %v272_v34  ;;  %v295_v44 = vrot.slane %v293_v36, 5  ;;  %v298_v45 = vshrl.u32 %v1543_v31, 16  ;;  %v1562_v49 = vld [vmem:[%s1505_s27 + $0x3c] sm:$0x1] }
  0x18   : > { %v254_v46 = vsel %vm1547_vm3, %v249_v38, %v253_v19  ;;  %v290_v47 = vor.u32 %v289_v41, %v286_v40  ;;  %v301_v50 = vshll.u32 %v1543_v31, 16  ;;  %v307_v51 = vshll.u32 %v1553_v37, 16  ;;  %v1573_v60 = vld [vmem:[%s1505_s27] sm:$0xf]  ;;  %v173_v1 = vld [vmem:[%s1505_s27 + $0x4] sm:$0x1] }
  0x19   : > { %v268_v52 = vsel %vm1547_vm3, %v263_v42, %v267_v23  ;;  %v1568_v53 = vunpack.c.l.b16 %v254_v46  ;;  %v277_v54 = vrot.slane %v276_v43, 4  ;;  %v300_v55 = vrot.slane %v298_v45, 4  ;;  %v1590_v10 = vld [vmem:[%s1505_s27 + $0x8] sm:$0xf]  ;;  %v1432_v23 = vld [vmem:[%s1859_s1 + $0x30] sm:$0xff] }
  0x1a   : > { %v1570_v56 = vunpack.c.l.b16 %v268_v52  ;;  %v291_v57 = vrot.slane %v290_v47, 4  ;;  %v303_v58 = vrot.slane %v301_v50, 5  ;;  %v309_v59 = vrot.slane %v307_v51, 5  ;;  %v175_v27 = vld [vmem:[%s1505_s27 + $0xc] sm:$0x1] }
  0x1b   : > { %v282_v61 = vsel %vm1547_vm3, %v277_v54, %v281_v39  ;;  %v312_v62 = vshrl.u32 %v1559_v48, 16  ;;  %v315_v63 = vshll.u32 %v1559_v48, 16  ;;  %v321_v0 = vshll.u32 %v1562_v49, 16 }
  0x1c   : > { %v1583_v2 = vpack.c.b16 %v1570_v56, %v1568_v53  ;;  %v296_v3 = vsel %vm1547_vm3, %v291_v57, %v295_v44  ;;  %v1587_v4 = vunpack.c.l.b16 %v282_v61  ;;  %v304_v9 = vor.u32 %v303_v58, %v300_v55 }
  0x1d   : > { %v1595_v12 = vunpack.c.l.b16 %v296_v3  ;;  %v314_v13 = vrot.slane %v312_v62, 4  ;;  %v317_v14 = vrot.slane %v315_v63, 5  ;;  %v323_v17 = vrot.slane %v321_v0, 5 }
  0x1e   : > { %1330 = vmatmul.msk.bf16.vlgmr.msra.gmra.mxu1 %vm343_vm2, %v1583_v2  ;;  %v305_v18 = vrot.slane %v304_v9, 4  ;;  %v214_v19 = vshrl.u32 %v1573_v60, 16  ;;  %v217_v20 = vshll.u32 %v1573_v60, 16  ;;  %v223_v22 = vshll.u32 %v173_v1, 16 }
  0x1f   : > { %v1606_v25 = vpack.c.b16 %v1595_v12, %v1587_v4  ;;  %v318_v26 = vor.u32 %v317_v14, %v314_v13  ;;  %v228_v28 = vshrl.u32 %v1590_v10, 16  ;;  %v231_v29 = vshll.u32 %v1590_v10, 16  ;;  %732 = vmatpush.bf16.msra.mxu1 %v1431_v11 }
  0x20   : > { %v310_v30 = vsel %vm1547_vm3, %v305_v18, %v309_v59  ;;  %v216_v33 = vrot.slane %v214_v19, 4  ;;  %v219_v34 = vrot.slane %v217_v20, 5  ;;  %v225_v36 = vrot.slane %v223_v22, 5  ;;  %v1433_v59 = vld [vmem:[%s1859_s1 + $0x38] sm:$0xff] }
  0x21   : > { %1331 = vmatmul.msk.bf16.vlgmr.msra.gmra.mxu2 %vm343_vm2, %v1606_v25  ;;  %v319_v35 = vrot.slane %v318_v26, 4  ;;  %v230_v38 = vrot.slane %v228_v28, 4  ;;  %v233_v39 = vrot.slane %v231_v29, 5  ;;  %v1615_v40 = vunpack.c.l.b16 %v310_v30 }
  0x22   : > { %v220_v41 = vor.u32 %v219_v34, %v216_v33  ;;  %v237_v42 = vshll.u32 %v175_v27, 16  ;;  %v465_v43 = vrot.slane %v173_v1, 5  ;;  %781 = vmatpush.bf16.msra.mxu2 %v1432_v23  ;;  %v469_v46 = vrot.slane %v175_v27, 5 }
  0x23   : > { %v324_v44 = vsel %vm1547_vm3, %v319_v35, %v323_v17  ;;  %v234_v45 = vor.u32 %v233_v39, %v230_v38  ;;  %v1341_v54 = vrot.slane %v1573_v60, 9  ;;  %v393_v57 = vunpack.c.l.b16 %v1573_v60 }
  0x24   : > { %v1624_v50 = vunpack.c.l.b16 %v324_v44  ;;  %v221_v51 = vrot.slane %v220_v41, 4  ;;  %v239_v52 = vrot.slane %v237_v42, 5  ;;  %v1342_v58 = vrot.slane %v1590_v10, 9 }
  0x25   : > { %v235_v55 = vrot.slane %v234_v45, 4  ;;  %v394_v63 = vunpack.c.l.b16 %v1590_v10  ;;  %v466_v0 = vsel %vm1620_vm6, %v1341_v54, %v465_v43  ;;  %v1434_v10 = vld [vmem:[%s1859_s1 + $0x40] sm:$0xff]  ;;  %v395_v19 = vunpack.c.l.b16 %v1508_v5 }
  0x26   : > { %v1634_v61 = vpack.c.b16 %v1624_v50, %v1615_v40  ;;  %v226_v62 = vsel %vm1547_vm3, %v221_v51, %v225_v36  ;;  %v1645_v3 = vsel %vm1620_vm6, %v1342_v58, %v469_v46  ;;  %v495_v11 = vunpack.c.l.b16 %v466_v0 }
  0x27   : > { %v240_v60 = vsel %vm1547_vm3, %v235_v55, %v239_v52  ;;  %v325_v1 = vunpack.c.l.b16 %v226_v62  ;;  %v496_v13 = vunpack.c.l.b16 %v1645_v3  ;;  %v401_v17 = vpack.c.b16 %v394_v63, %v393_v57  ;;  %v190_v3 = vld [vmem:[%s1505_s27 + $0x48] sm:$0xf] }
  0x28   : > { %1332 = vmatmul.msk.bf16.vlgmr.msra.gmra.mxu3 %vm343_vm2, %v1634_v61  ;;  %v326_v9 = vunpack.c.l.b16 %v240_v60  ;;  %v1343_v20 = vrot.slane %v1508_v5, 9  ;;  %v473_v22 = vrot.slane %v1511_v6, 5  ;;  %v1344_v23 = vrot.slane %v1514_v7, 9  ;;  %v189_v60 = vld [vmem:[%s1505_s27 + $0x44] sm:$0x1] }
  0x29   : > { %843 = vmatpush.bf16.msra.mxu3 %v1433_v59  ;;  %v503_v18 = vpack.c.b16 %v496_v13, %v495_v11  ;;  %v477_v26 = vrot.slane %v1517_v8, 5  ;;  %v564_v27 = vpack.c.b16 %v395_v19, %v394_v63  ;;  %v396_v28 = vunpack.c.l.b16 %v1514_v7 }
  0x2a   : > { %v333_v14 = vpack.c.b16 %v326_v9, %v325_v1  ;;  %v1666_v29 = vsel %vm1620_vm6, %v1343_v20, %v473_v22  ;;  %v638_v5 = vpack.c.b16 %v1568_v53, %v326_v9  ;;  %v397_v34 = vunpack.c.l.b16 %v1526_v15 }
  0x2b   : > { %v1670_v30 = vsel %vm1620_vm6, %v1344_v23, %v477_v26  ;;  %v497_v6 = vunpack.c.l.b16 %v1666_v29  ;;  %v402_v8 = vpack.c.b16 %v396_v28, %v395_v19  ;;  %v1345_v35 = vrot.slane %v1526_v15, 9  ;;  %v191_v29 = vld [vmem:[%s1505_s27 + $0x4c] sm:$0x1] }
  0x2c   : > { %1329 = vmatmul.msk.bf16.vlgmr.msra.gmra.mxu0 %vm343_vm2, %v333_v14  ;;  %v498_v33 = vunpack.c.l.b16 %v1670_v30  ;;  %v481_v53 = vrot.slane %v1529_v16, 5  ;;  %v1346_v36 = vrot.slane %v1532_v21, 9  ;;  %v485_v38 = vrot.slane %v1535_v24, 5 }
  0x2d   : > { %896 = vmatpush.bf16.msra.mxu0 %v1434_v10  ;;  %v565_v39 = vpack.c.b16 %v397_v34, %v396_v28  ;;  %v398_v41 = vunpack.c.l.b16 %v1532_v21  ;;  %v639_v15 = vpack.c.b16 %v1587_v4, %v1570_v56  ;;  %v1697_v21 = vld [vmem:[%s1505_s27 + $0x40] sm:$0xf]  ;;  %v399_v46 = vunpack.c.l.b16 %v1543_v31 }
  0x2e   : > { %1337 = vmatmul.msk.bf16.vlgmr.msrb.gmra.mxu1 %vm343_vm2, %v401_v17  ;;  %v504_v7 = vpack.c.b16 %v498_v33, %v497_v6  ;;  %v482_v42 = vsel %vm1620_vm6, %v1345_v35, %v481_v53  ;;  %v486_v43 = vsel %vm1620_vm6, %v1346_v36, %v485_v38  ;;  %v624_v51 = vshrl.u32 %v1697_v21, 16 }
  0x2f   : > { %v499_v44 = vunpack.c.l.b16 %v482_v42  ;;  %v500_v16 = vunpack.c.l.b16 %v486_v43  ;;  %v403_v45 = vpack.c.b16 %v398_v41, %v397_v34  ;;  %v627_v52 = vshll.u32 %v1697_v21, 16 }
  0x30   : > { %v1347_v56 = vrot.slane %v1543_v31, 9  ;;  %v489_v4 = vrot.slane %v1553_v37, 5  ;;  %v1348_v54 = vrot.slane %v1559_v48, 9  ;;  %v493_v55 = vrot.slane %v1562_v49, 5 }
  0x31   : > { %1353 = vmatmul.msk.bf16.vlgmr.msrb.gmra.mxu2 %vm343_vm2, %v503_v18  ;;  %v505_v24 = vpack.c.b16 %v500_v16, %v499_v44  ;;  %v566_v57 = vpack.c.b16 %v399_v46, %v398_v41  ;;  %v626_v58 = vrot.slane %v624_v51, 4  ;;  %v629_v59 = vrot.slane %v627_v52, 5 }
  0x32   : > { %v400_v62 = vunpack.c.l.b16 %v1559_v48  ;;  %v490_v63 = vsel %vm1620_vm6, %v1347_v56, %v489_v4  ;;  %v494_v0 = vsel %vm1620_vm6, %v1348_v54, %v493_v55  ;;  %v640_v31 = vpack.c.b16 %v1615_v40, %v1595_v12 }
  0x33   : > { %v501_v37 = vunpack.c.l.b16 %v490_v63  ;;  %v502_v1 = vunpack.c.l.b16 %v494_v0  ;;  %v630_v49 = vor.u32 %v629_v59, %v626_v58  ;;  %v633_v9 = vshll.u32 %v189_v60, 16 }
  0x34   : > { %v404_v11 = vpack.c.b16 %v400_v62, %v399_v46  ;;  %v563_v17 = vunpack.c.l.b16 %v1697_v21  ;;  %v703_v20 = vpack.c.b16 %v497_v6, %v496_v13  ;;  %v704_v22 = vpack.c.b16 %v499_v44, %v498_v33 }
  0x35   : > { %v506_v48 = vpack.c.b16 %v502_v1, %v501_v37  ;;  %v631_v10 = vrot.slane %v630_v49, 4  ;;  %v635_v14 = vrot.slane %v633_v9, 5  ;;  %v812_v13 = vshrl.u32 %v190_v3, 16 }
  0x36   : > { %v567_v12 = vpack.c.b16 %v563_v17, %v400_v62  ;;  %v815_v23 = vshll.u32 %v190_v3, 16  ;;  %v700_v26 = vrot.slane %v189_v60, 5  ;;  %v763_v33 = vunpack.c.l.b16 %v190_v3 }
  0x37   : > { %v636_v18 = vsel %vm1547_vm3, %v631_v10, %v635_v14  ;;  %v1398_v38 = vrot.slane %v190_v3, 9 }
  0x38   : > { %1361 = vmatmul.msk.bf16.vlgmr.msrb.gmra.mxu3 %vm343_vm2, %v564_v27  ;;  %v637_v40 = vunpack.c.l.b16 %v636_v18  ;;  %v814_v27 = vrot.slane %v812_v13, 4  ;;  %v817_v28 = vrot.slane %v815_v23, 5  ;;  %v764_v53 = vpack.c.b16 %v763_v33, %v563_v17 }
  0x3a   : > { %v641_v19 = vpack.c.b16 %v637_v40, %v1624_v50  ;;  %v705_v50 = vpack.c.b16 %v501_v37, %v500_v16 }
  0x3c   : > { %1369 = vmatmul.msk.bf16.vlgmr.msrb.gmra.mxu0 %vm343_vm2, %v638_v5  ;;  %v821_v5 = vshll.u32 %v191_v29, 16 }
  0x3e   : > { %1338 = vmatmul.msk.bf16.gmra.mxu1 %vm343_vm2, %v402_v8 }
  0x41   : > { %1354 = vmatmul.msk.bf16.gmra.mxu2 %vm343_vm2, %v504_v7 }
  0x48   : > { %1362 = vmatmul.msk.bf16.gmra.mxu3 %vm343_vm2, %v565_v39  ;;  %v876_v39 = vrot.slane %v191_v29, 5 }
  0x4c   : > { %1370 = vmatmul.msk.bf16.gmra.mxu0 %vm343_vm2, %v639_v15 }
  0x4e   : > { %1339 = vmatmul.msk.bf16.gmra.mxu1 %vm343_vm2, %v403_v45 }
  0x51   : > { %1355 = vmatmul.msk.bf16.gmra.mxu2 %vm343_vm2, %v505_v24 }
  0x58   : > { %1363 = vmatmul.msk.bf16.gmra.mxu3 %vm343_vm2, %v566_v57 }
  0x5c   : > { %1371 = vmatmul.msk.bf16.gmra.mxu0 %vm343_vm2, %v640_v31 }
  0x5e   : > { %1340 = vmatmul.msk.bf16.gmra.mxu1 %vm343_vm2, %v404_v11 }
  0x61   : > { %1356 = vmatmul.msk.bf16.gmra.mxu2 %vm343_vm2, %v506_v48 }
  0x68   : > { %1364 = vmatmul.msk.bf16.gmra.mxu3 %vm343_vm2, %v567_v12 }
  0x6c   : > { %1372 = vmatmul.msk.bf16.gmra.mxu0 %vm343_vm2, %v641_v19 }
  0x6e   : > { %1378 = vmatmul.msk.bf16.vlgmr.msra.gmra.mxu1 %vm343_vm2, %v703_v20 }
  0x71   : > { %1386 = vmatmul.msk.bf16.vlgmr.msra.gmra.mxu2 %vm343_vm2, %v402_v8 }
  0x78   : > { %1394 = vmatmul.msk.bf16.vlgmr.msra.gmra.mxu3 %vm343_vm2, %v1583_v2  ;;  %v1373_v2 = vrot.slane %v1697_v21, 9 }
  0x7a   : > { %v701_v30 = vsel %vm1620_vm6, %v1373_v2, %v700_v26 }
  0x7b   : > { %v702_v6 = vunpack.c.l.b16 %v701_v30 }
  0x7c   : > { %1403 = vmatmul.msk.bf16.vlgmr.msra.gmra.mxu0 %vm343_vm2, %v504_v7  ;;  %v823_v7 = vrot.slane %v821_v5, 5 }
  0x7d   : > { %v706_v34 = vpack.c.b16 %v702_v6, %v502_v1 }
  0x7e   : > { %1379 = vmatmul.msk.bf16.gmra.mxu1 %vm343_vm2, %v704_v22 }
  0x81   : > { %1387 = vmatmul.msk.bf16.gmra.mxu2 %vm343_vm2, %v403_v45 }
  0x88   : > { %1395 = vmatmul.msk.bf16.gmra.mxu3 %vm343_vm2, %v1606_v25  ;;  %v818_v25 = vor.u32 %v817_v28, %v814_v27 }
  0x8a   : > { %v819_v8 = vrot.slane %v818_v25, 4 }
  0x8c   : > { %1404 = vmatmul.msk.bf16.gmra.mxu0 %vm343_vm2, %v505_v24  ;;  %v824_v36 = vsel %vm1547_vm3, %v819_v8, %v823_v7 }
  0x8d   : > { %v825_v41 = vunpack.c.l.b16 %v824_v36 }
  0x8e   : > { %1380 = vmatmul.msk.bf16.gmra.mxu1 %vm343_vm2, %v705_v50 }
  0x8f   : > { %v826_v43 = vpack.c.b16 %v825_v41, %v637_v40 }
  0x91   : > { %1388 = vmatmul.msk.bf16.gmra.mxu2 %vm343_vm2, %v404_v11 }
  0x98   : > { %1396 = vmatmul.msk.bf16.gmra.mxu3 %vm343_vm2, %v1634_v61  ;;  %v877_v61 = vsel %vm1620_vm6, %v1398_v38, %v876_v39 }
  0x99   : > { %v878_v15 = vunpack.c.l.b16 %v877_v61 }
  0x9b   : > { %v370_v35 = vpop.f32.mrf.mxu1  ;;  %v879_v16 = vpack.c.b16 %v878_v15, %v702_v6 }
  0x9c   : > { %1405 = vmatmul.msk.bf16.gmra.mxu0 %vm343_vm2, %v506_v48 }
  0x9e   : > { %1381 = vmatmul.msk.bf16.gmra.mxu1 %vm343_vm2, %v706_v34 }
  0xa1   : > { %1389 = vmatmul.msk.bf16.gmra.mxu2 %vm343_vm2, %v764_v53 }
  0xa3   : > { %v1755_v42 = vpop.f32.mrf.mxu1 }
  0xa4   : > { %v375_v44 = vpop.f32.mrf.mxu2 }
  0xa8   : > { %1397 = vmatmul.msk.bf16.gmra.mxu3 %vm343_vm2, %v826_v43 }
  0xa9   : > { %v365_v32 = vpop.f32.mrf.mxu0 }
  0xab   : > { %v380_v45 = vpop.f32.mrf.mxu3  ;;  %v432_v24 = vpop.f32.mrf.mxu1 }
  0xac   : > { %1406 = vmatmul.msk.bf16.gmra.mxu0 %vm343_vm2, %v879_v16  ;;  %v1759_v21 = vpop.f32.mrf.mxu2  ;;  %v433_v46 = vadd.f32 %v432_v24, %v365_v32 }
  0xb1   : > { %v367_v51 = vpop.f32.mrf.mxu0 }
  0xb3   : > { %v1761_v52 = vpop.f32.mrf.mxu3  ;;  %v434_v47 = vpop.f32.mrf.mxu1 }
  0xb4   : > { %v534_v56 = vpop.f32.mrf.mxu2  ;;  %v435_v53 = vadd.f32 %v434_v47, %v367_v51  ;;  %v1786_v51 = vld [vmem:[%s1860_s2] ss:$0 sm:$0xff] }
  0xb5   : > { %v554_v4 = vadd.f32 %v534_v56, %v433_v46 }
  0xb9   : > { %v669_v54 = vpop.f32.mrf.mxu0 }
  0xbb   : > { %v595_v55 = vpop.f32.mrf.mxu3  ;;  %v437_v57 = vpop.f32.mrf.mxu1 }
  0xbc   : > { %v615_v58 = vadd.f32 %v595_v55, %v554_v4  ;;  %v536_v59 = vpop.f32.mrf.mxu2  ;;  %v438_v62 = vadd.f32 %v437_v57, %v370_v35 }
  0xbd   : > { %v555_v39 = vadd.f32 %v536_v59, %v435_v53 }
  0xbe   : > { %v689_v63 = vadd.f32 %v669_v54, %v615_v58 }
  0xc1   : > { %v671_v0 = vpop.f32.mrf.mxu0 }
  0xc3   : > { %v597_v60 = vpop.f32.mrf.mxu3  ;;  %v439_v31 = vpop.f32.mrf.mxu1 }
  0xc4   : > { %v539_v37 = vpop.f32.mrf.mxu2  ;;  %v616_v61 = vadd.f32 %v597_v60, %v555_v39  ;;  %v440_v47 = vadd.f32 %v439_v31, %v1755_v42 }
  0xc5   : > { %v556_v1 = vadd.f32 %v539_v37, %v438_v62 }
  0xc9   : > { %v674_v49 = vpop.f32.mrf.mxu0 }
  0xcb   : > { %v600_v9 = vpop.f32.mrf.mxu3  ;;  %v442_v11 = vpop.f32.mrf.mxu1 }
  0xcc   : > { %v617_v48 = vadd.f32 %v600_v9, %v556_v1  ;;  %v541_v10 = vpop.f32.mrf.mxu2  ;;  %v443_v14 = vadd.f32 %v442_v11, %v375_v44 }
  0xce   : > { %v691_v17 = vadd.f32 %v674_v49, %v617_v48 }
  0xd1   : > { %v676_v18 = vpop.f32.mrf.mxu0 }
  0xd3   : > { %v602_v12 = vpop.f32.mrf.mxu3  ;;  %v1763_v40 = vpop.f32.mrf.mxu1 }
  0xd4   : > { %v544_v19 = vpop.f32.mrf.mxu2 }
  0xd5   : > { %v558_v20 = vadd.f32 %v544_v19, %v443_v14 }
  0xd9   : > { %v679_v22 = vpop.f32.mrf.mxu0 }
  0xdb   : > { %v605_v50 = vpop.f32.mrf.mxu3  ;;  %v447_v3 = vpop.f32.mrf.mxu1 }
  0xdc   : > { %v619_v13 = vadd.f32 %v605_v50, %v558_v20  ;;  %v1765_v23 = vpop.f32.mrf.mxu2  ;;  %v448_v2 = vadd.f32 %v447_v3, %v380_v45  ;;  %v690_v45 = vadd.f32 %v671_v0, %v616_v61 }
  0xde   : > { %v1767_v26 = vadd.f32 %v679_v22, %v619_v13 }
  0xe1   : > { %v1769_v27 = vpop.f32.mrf.mxu0 }
  0xe3   : > { %v1771_v28 = vpop.f32.mrf.mxu3  ;;  %v1773_v29 = vpop.f32.mrf.mxu1 }
  0xe4   : > { %v549_v30 = vpop.f32.mrf.mxu2 }
  0xe5   : > { %v560_v25 = vadd.f32 %v549_v30, %v448_v2 }
  0xe9   : > { %v684_v5 = vpop.f32.mrf.mxu0 }
  0xeb   : > { %v610_v6 = vpop.f32.mrf.mxu3  ;;  %v734_v33 = vpop.f32.mrf.mxu1 }
  0xec   : > { %v621_v8 = vadd.f32 %v610_v6, %v560_v25  ;;  %v1775_v7 = vpop.f32.mrf.mxu2  ;;  %v754_v43 = vadd.f32 %v734_v33, %v689_v63  ;;  %v557_v63 = vadd.f32 %v541_v10, %v440_v47 }
  0xee   : > { %v1777_v34 = vadd.f32 %v684_v5, %v621_v8  ;;  %v618_v1 = vadd.f32 %v602_v12, %v557_v63 }
  0xf0   : > { %v692_v31 = vadd.f32 %v676_v18, %v618_v1  ;;  %v450_v1 = vadd.f32 %v1773_v29, %v1761_v52 }
  0xf1   : > { %v1779_v35 = vpop.f32.mrf.mxu0 }
  0xf3   : > { %v1781_v36 = vpop.f32.mrf.mxu3  ;;  %v736_v38 = vpop.f32.mrf.mxu1 }
  0xf4   : > { %v783_v41 = vpop.f32.mrf.mxu2  ;;  %v755_v56 = vadd.f32 %v736_v38, %v690_v45 }
  0xf5   : > { %v803_v44 = vadd.f32 %v783_v41, %v754_v43 }
  0xf9   : > { %v898_v15 = vpop.f32.mrf.mxu0 }
  0xfb   : > { %v845_v16 = vpop.f32.mrf.mxu3  ;;  %v739_v32 = vpop.f32.mrf.mxu1 }
  0xfc   : > { %v785_v24 = vpop.f32.mrf.mxu2  ;;  %v865_v46 = vadd.f32 %v845_v16, %v803_v44  ;;  %v756_v49 = vadd.f32 %v739_v32, %v691_v17  ;;  %v445_v17 = vadd.f32 %v1763_v40, %v1759_v21 }
  0xfd   : > { %v804_v4 = vadd.f32 %v785_v24, %v755_v56 }
  0xfe   : > { %v918_v55 = vadd.f32 %v898_v15, %v865_v46  ;;  %v559_v18 = vadd.f32 %v1765_v23, %v445_v17 }
 0x100   : > { %v930_v0 = vadd.f32 %v1786_v51, %v918_v55 }
 0x101   : > { %v900_v54 = vpop.f32.mrf.mxu0 }
 0x102   : > { %v938_v11 = vmax.f32 %v930_v0, 0.0 }
 0x103   : > { %v847_v57 = vpop.f32.mrf.mxu3  ;;  %v741_v58 = vpop.f32.mrf.mxu1 }
 0x104   : > { %v866_v59 = vadd.f32 %v847_v57, %v804_v4  ;;  %v788_v62 = vpop.f32.mrf.mxu2  ;;  %v757_v30 = vadd.f32 %v741_v58, %v692_v31 }
 0x105   : > { %v805_v14 = vadd.f32 %v788_v62, %v756_v49 }
 0x106   : > { %v919_v60 = vadd.f32 %v900_v54, %v866_v59  ;;  %v620_v54 = vadd.f32 %v1771_v28, %v559_v18 }
 0x108   : > { %v931_v37 = vadd.f32 %v1786_v51, %v919_v60  ;;  %v694_v49 = vadd.f32 %v1769_v27, %v620_v54 }
 0x109   : > { %v903_v9 = vpop.f32.mrf.mxu0 }
 0x10a   : > { %v939_v48 = vmax.f32 %v931_v37, 0.0 }
 0x10b   : > { %v850_v19 = vpop.f32.mrf.mxu3  ;;  %v744_v20 = vpop.f32.mrf.mxu1 }
 0x10c   : > { %v946_v22 = vmax.f32 %v938_v11, %v939_v48  ;;  %v790_v42 = vpop.f32.mrf.mxu2  ;;  %v867_v2 = vadd.f32 %v850_v19, %v805_v14  ;;  %v758_v59 = vadd.f32 %v744_v20, %v1767_v26  ;;  %v561_v26 = vadd.f32 %v1775_v7, %v450_v1 }
 0x10d   : > { %v806_v8 = vadd.f32 %v790_v42, %v757_v30 }
 0x10e   : > { %v954_v50 = vrot.slane %v946_v22, 2  ;;  %v955_v3 = vrot.slane %v946_v22, 4  ;;  %v956_v13 = vrot.slane %v946_v22, 6  ;;  %v1407_v10 = vrot.slane %v946_v22, 9 }
 0x10f   : > { %v920_v61 = vadd.f32 %v903_v9, %v867_v2 }
 0x110   : > { %v1408_v25 = vrot.slane %v954_v50, 9  ;;  %v1409_v5 = vrot.slane %v955_v3, 9  ;;  %v1410_v6 = vrot.slane %v956_v13, 9  ;;  %v1026_v12 = vmax.f32 %v946_v22, %v1407_v10 }
 0x111   : > { %v905_v33 = vpop.f32.mrf.mxu0  ;;  %v932_v23 = vadd.f32 %v1786_v51, %v920_v61 }
 0x112   : > { %v1027_v53 = vmax.f32 %v954_v50, %v1408_v25  ;;  %v1028_v38 = vmax.f32 %v955_v3, %v1409_v5  ;;  %v1029_v39 = vmax.f32 %v956_v13, %v1410_v6  ;;  %v1042_v41 = vpack.c.bf16 %v1026_v12, %v1026_v12 }
 0x113   : > { %v852_v43 = vpop.f32.mrf.mxu3  ;;  %v746_v15 = vpop.f32.mrf.mxu1  ;;  %v940_v28 = vmax.f32 %v932_v23, 0.0  ;;  %v622_v23 = vadd.f32 %v1781_v36, %v561_v26 }
 0x114   : > { %v1043_v44 = vpack.c.bf16 %v1027_v53, %v1027_v53  ;;  %v1044_v16 = vpack.c.bf16 %v1028_v38, %v1028_v38  ;;  %v1045_v32 = vpack.c.bf16 %v1029_v39, %v1029_v39  ;;  %v1074_v45 = vrot.slane %v1042_v41, 2  ;;  %v793_v24 = vpop.f32.mrf.mxu2 }
 0x115   : > { %v868_v46 = vadd.f32 %v852_v43, %v806_v8  ;;  %v807_v0 = vadd.f32 %v793_v24, %v758_v59  ;;  %v759_v20 = vadd.f32 %v746_v15, %v694_v49 }
 0x116   : > { %v1075_v56 = vrot.slane %v1043_v44, 2  ;;  %v1076_v21 = vrot.slane %v1044_v16, 2  ;;  %v1077_v40 = vrot.slane %v1045_v32, 2  ;;  %v1093_v4 = vsel %vm1090_vm7, %v1042_v41, %v1074_v45 }
 0x117   : > { %1139 = vst [vmem:[#allocation1] ss:$2 sm:$0xff] %v1093_v4  ;;  %v921_v55 = vadd.f32 %v905_v33, %v868_v46 }
 0x118   : > { %v1096_v47 = vsel %vm1090_vm7, %v1043_v44, %v1075_v56  ;;  %v1099_v57 = vsel %vm1090_vm7, %v1044_v16, %v1076_v21  ;;  %v1102_v58 = vsel %vm1090_vm7, %v1045_v32, %v1077_v40 }
 0x119   : > { %1143 = vst [vmem:[#allocation1 + $0x10] ss:$2 sm:$0xff] %v1096_v47  ;;  %v933_v62 = vadd.f32 %v1786_v51, %v921_v55  ;;  %v908_v63 = vpop.f32.mrf.mxu0 }
 0x11a   : > { %1147 = vst [vmem:[#allocation1 + $0x20] ss:$2 sm:$0xff] %v1099_v57 }
 0x11b   : > { %1151 = vst [vmem:[#allocation1 + $0x30] ss:$2 sm:$0xff] %v1102_v58  ;;  %v941_v60 = vmax.f32 %v933_v62, 0.0  ;;  %v855_v37 = vpop.f32.mrf.mxu3  ;;  %v749_v48 = vpop.f32.mrf.mxu1 }
 0x11c   : > { %v795_v9 = vpop.f32.mrf.mxu2  ;;  %v869_v19 = vadd.f32 %v855_v37, %v807_v0  ;;  %v760_v52 = vadd.f32 %v749_v48, %v1777_v34  ;;  %v696_v48 = vadd.f32 %v1779_v35, %v622_v23 }
 0x11d   : > { %v947_v11 = vmax.f32 %v940_v28, %v941_v60  ;;  %v808_v13 = vadd.f32 %v795_v9, %v759_v20 }
 0x11e   : > { %v1140_v14 = vld.sshfl [vmem:[#allocation1] sm:$0xff pattern:$0x75643120]  ;;  %v922_v12 = vadd.f32 %v908_v63, %v869_v19 }
 0x11f   : > { %v957_v22 = vrot.slane %v947_v11, 2  ;;  %v958_v42 = vrot.slane %v947_v11, 4  ;;  %v959_v31 = vrot.slane %v947_v11, 6  ;;  %v1411_v50 = vrot.slane %v947_v11, 9 }
 0x120   : > { %v1144_v3 = vld.sshfl [vmem:[#allocation1 + $0x10] sm:$0xff pattern:$0x75643120]  ;;  %v1190_v25 = vunpack.c.l.b16 %v1140_v14  ;;  %v934_v46 = vadd.f32 %v1786_v51, %v922_v12 }
 0x121   : > { %v1412_v27 = vrot.slane %v957_v22, 9  ;;  %v1413_v29 = vrot.slane %v958_v42, 9  ;;  %v1414_v10 = vrot.slane %v959_v31, 9  ;;  %v1030_v2 = vmax.f32 %v947_v11, %v1411_v50  ;;  %v1148_v30 = vld.sshfl [vmem:[#allocation1 + $0x20] sm:$0xff pattern:$0x75643120]  ;;  %v910_v17 = vpop.f32.mrf.mxu0 }
 0x122   : > { %v1152_v7 = vld.sshfl [vmem:[#allocation1 + $0x30] sm:$0xff pattern:$0x75643120]  ;;  %v1191_v5 = vunpack.c.l.b16 %v1144_v3  ;;  %v1192_v6 = vunpack.c.l.b16 %v1148_v30  ;;  %v942_v28 = vmax.f32 %v934_v46, 0.0 }
 0x123   : > { %v1031_v33 = vmax.f32 %v957_v22, %v1412_v27  ;;  %v1032_v8 = vmax.f32 %v958_v42, %v1413_v29  ;;  %v1033_v53 = vmax.f32 %v959_v31, %v1414_v10  ;;  %v1046_v38 = vpack.c.bf16 %v1030_v2, %v1030_v2  ;;  %v857_v39 = vpop.f32.mrf.mxu3  ;;  %v751_v9 = vpop.f32.mrf.mxu1 }
 0x124   : > { %v1193_v41 = vunpack.c.l.b16 %v1152_v7  ;;  %v1206_v18 = vrot.slane %v1191_v5, 7  ;;  %v1209_v61 = vrot.slane %v1192_v6, 6  ;;  %v870_v34 = vadd.f32 %v857_v39, %v808_v13  ;;  %v798_v43 = vpop.f32.mrf.mxu2 }
 0x125   : > { %v1047_v15 = vpack.c.bf16 %v1031_v33, %v1031_v33  ;;  %v1048_v44 = vpack.c.bf16 %v1032_v8, %v1032_v8  ;;  %v1049_v16 = vpack.c.bf16 %v1033_v53, %v1033_v53  ;;  %v1078_v32 = vrot.slane %v1046_v38, 2 }
 0x126   : > { %v1208_v45 = vsel %vm1207_vm8, %v1206_v18, %v1190_v25  ;;  %v1212_v24 = vrot.slane %v1193_v41, 5  ;;  %v923_v56 = vadd.f32 %v910_v17, %v870_v34  ;;  %v809_v57 = vadd.f32 %v798_v43, %v760_v52 }
 0x127   : > { %v1079_v21 = vrot.slane %v1047_v15, 2  ;;  %v1080_v40 = vrot.slane %v1048_v44, 2  ;;  %v1081_v4 = vrot.slane %v1049_v16, 2  ;;  %v1105_v54 = vsel %vm1090_vm7, %v1046_v38, %v1078_v32 }
 0x128   : > { %1154 = vst [vmem:[#allocation1] ss:$2 sm:$0xff] %v1105_v54  ;;  %v1211_v55 = vsel %vm1210_vm9, %v1209_v61, %v1208_v45  ;;  %v935_v47 = vadd.f32 %v1786_v51, %v923_v56  ;;  %v761_v31 = vadd.f32 %v751_v9, %v696_v48 }
 0x129   : > { %v1108_v58 = vsel %vm1090_vm7, %v1047_v15, %v1079_v21  ;;  %v1111_v59 = vsel %vm1090_vm7, %v1048_v44, %v1080_v40  ;;  %v1114_v62 = vsel %vm1090_vm7, %v1049_v16, %v1081_v4  ;;  %v1214_v63 = vsel %vm1213_vm10, %v1212_v24, %v1211_v55  ;;  %v913_v49 = vpop.f32.mrf.mxu0 }
 0x12a   : > { %1157 = vst [vmem:[#allocation1 + $0x10] ss:$2 sm:$0xff] %v1108_v58  ;;  %v1233_v0 = vpack.c.b16 %v1214_v63, %v1214_v63  ;;  %v943_v60 = vmax.f32 %v935_v47, 0.0 }
 0x12b   : > { %1160 = vst [vmem:[#allocation1 + $0x20] ss:$2 sm:$0xff] %v1111_v59  ;;  %v860_v36 = vpop.f32.mrf.mxu3 }
 0x12c   : > { %1163 = vst [vmem:[#allocation1 + $0x30] ss:$2 sm:$0xff] %v1114_v62  ;;  %v1237_v37 = vrot.slane %v1233_v0, 2  ;;  %v948_v1 = vmax.f32 %v942_v28, %v943_v60  ;;  %v871_v11 = vadd.f32 %v860_v36, %v809_v57  ;;  %v800_v22 = vpop.f32.mrf.mxu2 }
 0x12d   : > { %v810_v2 = vadd.f32 %v800_v22, %v761_v31 }
 0x12e   : > { %v1243_v26 = vsel %vm1090_vm7, %v1233_v0, %v1237_v37  ;;  %v960_v14 = vrot.slane %v948_v1, 2  ;;  %v961_v19 = vrot.slane %v948_v1, 4  ;;  %v962_v20 = vrot.slane %v948_v1, 6 }
 0x12f   : > { %1258 = vst.msk [vmem:[%s1821_s16] sm:$0x3] %vm1257_vm11, %v1243_v26  ;;  %v1415_v42 = vrot.slane %v948_v1, 9  ;;  %v1155_v52 = vld.sshfl [vmem:[#allocation1] sm:$0xff pattern:$0x75643120]  ;;  %v924_v10 = vadd.f32 %v913_v49, %v871_v11 }
 0x130   : > { %v1416_v50 = vrot.slane %v960_v14, 9  ;;  %v1417_v3 = vrot.slane %v961_v19, 9  ;;  %v1418_v13 = vrot.slane %v962_v20, 9  ;;  %v1194_v17 = vunpack.c.l.b16 %v1155_v52 }
 0x131   : > { %v1034_v27 = vmax.f32 %v948_v1, %v1415_v42  ;;  %v1158_v29 = vld.sshfl [vmem:[#allocation1 + $0x10] sm:$0xff pattern:$0x75643120]  ;;  %v936_v32 = vadd.f32 %v1786_v51, %v924_v10  ;;  %v915_v45 = vpop.f32.mrf.mxu0 }
 0x132   : > { %v1035_v30 = vmax.f32 %v960_v14, %v1416_v50  ;;  %v1036_v35 = vmax.f32 %v961_v19, %v1417_v3  ;;  %v1037_v7 = vmax.f32 %v962_v20, %v1418_v13  ;;  %v1161_v25 = vld.sshfl [vmem:[#allocation1 + $0x20] sm:$0xff pattern:$0x75643120]  ;;  %v1195_v5 = vunpack.c.l.b16 %v1158_v29 }
 0x133   : > { %v1050_v6 = vpack.c.bf16 %v1034_v27, %v1034_v27  ;;  %v1164_v12 = vld.sshfl [vmem:[#allocation1 + $0x30] sm:$0xff pattern:$0x75643120]  ;;  %v1196_v33 = vunpack.c.l.b16 %v1161_v25  ;;  %v862_v41 = vpop.f32.mrf.mxu3  ;;  %v944_v58 = vmax.f32 %v936_v32, 0.0 }
 0x134   : > { %v1051_v8 = vpack.c.bf16 %v1035_v30, %v1035_v30  ;;  %v1052_v53 = vpack.c.bf16 %v1036_v35, %v1036_v35  ;;  %v1053_v38 = vpack.c.bf16 %v1037_v7, %v1037_v7  ;;  %v1197_v39 = vunpack.c.l.b16 %v1164_v12 }
 0x135   : > { %v1082_v18 = vrot.slane %v1050_v6, 2  ;;  %v1215_v61 = vrot.slane %v1195_v5, 7  ;;  %v1217_v34 = vrot.slane %v1196_v33, 6  ;;  %v872_v43 = vadd.f32 %v862_v41, %v810_v2 }
 0x136   : > { %v1083_v15 = vrot.slane %v1051_v8, 2  ;;  %v1084_v44 = vrot.slane %v1052_v53, 2  ;;  %v1085_v16 = vrot.slane %v1053_v38, 2  ;;  %v1219_v56 = vrot.slane %v1197_v39, 5 }
 0x137   : > { %v1117_v24 = vsel %vm1090_vm7, %v1050_v6, %v1082_v18  ;;  %v1216_v46 = vsel %vm1207_vm8, %v1215_v61, %v1194_v17  ;;  %v925_v21 = vadd.f32 %v915_v45, %v872_v43 }
 0x138   : > { %v1120_v40 = vsel %vm1090_vm7, %v1051_v8, %v1083_v15  ;;  %v1123_v4 = vsel %vm1090_vm7, %v1052_v53, %v1084_v44  ;;  %v1126_v54 = vsel %vm1090_vm7, %v1053_v38, %v1085_v16  ;;  %1166 = vst [vmem:[#allocation1] ss:$2 sm:$0xff] %v1117_v24  ;;  %v1218_v23 = vsel %vm1210_vm9, %v1217_v34, %v1216_v46 }
 0x139   : > { %1169 = vst [vmem:[#allocation1 + $0x10] ss:$2 sm:$0xff] %v1120_v40  ;;  %v1220_v55 = vsel %vm1213_vm10, %v1219_v56, %v1218_v23  ;;  %v937_v47 = vadd.f32 %v1786_v51, %v925_v21 }
 0x13a   : > { %1172 = vst [vmem:[#allocation1 + $0x20] ss:$2 sm:$0xff] %v1123_v4  ;;  %v1234_v57 = vpack.c.b16 %v1220_v55, %v1220_v55 }
 0x13b   : > { %1175 = vst [vmem:[#allocation1 + $0x30] ss:$2 sm:$0xff] %v1126_v54  ;;  %v945_v59 = vmax.f32 %v937_v47, 0.0 }
 0x13c   : > { %v1238_v62 = vrot.slane %v1234_v57, 2 }
 0x13d   : > { %v949_v63 = vmax.f32 %v944_v58, %v945_v59 }
 0x13e   : > { %v1246_v0 = vsel %vm1090_vm7, %v1234_v57, %v1238_v62 }
 0x13f   : > { %1259 = vst.msk [vmem:[%s1821_s16 + $0x2] sm:$0x3] %vm1257_vm11, %v1246_v0  ;;  %v963_v28 = vrot.slane %v949_v63, 2  ;;  %v964_v60 = vrot.slane %v949_v63, 4  ;;  %v965_v36 = vrot.slane %v949_v63, 6  ;;  %v1419_v37 = vrot.slane %v949_v63, 9 }
 0x140   : > { %v1167_v1 = vld.sshfl [vmem:[#allocation1] sm:$0xff pattern:$0x75643120]  ;;  %v1170_v49 = vld.sshfl [vmem:[#allocation1 + $0x10] sm:$0xff pattern:$0x75643120] }
 0x141   : > { %v1420_v9 = vrot.slane %v963_v28, 9  ;;  %v1421_v11 = vrot.slane %v964_v60, 9  ;;  %v1422_v51 = vrot.slane %v965_v36, 9  ;;  %v1038_v48 = vmax.f32 %v949_v63, %v1419_v37  ;;  %v1173_v26 = vld.sshfl [vmem:[#allocation1 + $0x20] sm:$0xff pattern:$0x75643120] }
 0x142   : > { %v1176_v14 = vld.sshfl [vmem:[#allocation1 + $0x30] sm:$0xff pattern:$0x75643120]  ;;  %v1199_v19 = vunpack.c.l.b16 %v1170_v49  ;;  %v1200_v20 = vunpack.c.l.b16 %v1173_v26  ;;  %v1198_v3 = vunpack.c.l.b16 %v1167_v1 }
 0x143   : > { %v1039_v22 = vmax.f32 %v963_v28, %v1420_v9  ;;  %v1040_v42 = vmax.f32 %v964_v60, %v1421_v11  ;;  %v1041_v31 = vmax.f32 %v965_v36, %v1422_v51  ;;  %v1054_v50 = vpack.c.bf16 %v1038_v48, %v1038_v48 }
 0x144   : > { %v1201_v13 = vunpack.c.l.b16 %v1176_v14  ;;  %v1221_v52 = vrot.slane %v1199_v19, 7  ;;  %v1223_v27 = vrot.slane %v1200_v20, 6 }
 0x145   : > { %v1055_v29 = vpack.c.bf16 %v1039_v22, %v1039_v22  ;;  %v1056_v10 = vpack.c.bf16 %v1040_v42, %v1040_v42  ;;  %v1057_v2 = vpack.c.bf16 %v1041_v31, %v1041_v31  ;;  %v1086_v30 = vrot.slane %v1054_v50, 2 }
 0x146   : > { %v1222_v35 = vsel %vm1207_vm8, %v1221_v52, %v1198_v3  ;;  %v1225_v7 = vrot.slane %v1201_v13, 5 }
 0x147   : > { %v1087_v25 = vrot.slane %v1055_v29, 2  ;;  %v1088_v5 = vrot.slane %v1056_v10, 2  ;;  %v1089_v6 = vrot.slane %v1057_v2, 2  ;;  %v1129_v12 = vsel %vm1090_vm7, %v1054_v50, %v1086_v30 }
 0x148   : > { %1178 = vst [vmem:[#allocation1] ss:$2 sm:$0xff] %v1129_v12  ;;  %v1224_v17 = vsel %vm1210_vm9, %v1223_v27, %v1222_v35 }
 0x149   : > { %v1132_v33 = vsel %vm1090_vm7, %v1055_v29, %v1087_v25  ;;  %v1135_v8 = vsel %vm1090_vm7, %v1056_v10, %v1088_v5  ;;  %v1138_v53 = vsel %vm1090_vm7, %v1057_v2, %v1089_v6  ;;  %v1226_v38 = vsel %vm1213_vm10, %v1225_v7, %v1224_v17 }
 0x14a   : > { %1181 = vst [vmem:[#allocation1 + $0x10] ss:$2 sm:$0xff] %v1132_v33  ;;  %v1235_v39 = vpack.c.b16 %v1226_v38, %v1226_v38 }
 0x14b   : > { %1184 = vst [vmem:[#allocation1 + $0x20] ss:$2 sm:$0xff] %v1135_v8 }
 0x14c   : > { %1187 = vst [vmem:[#allocation1 + $0x30] ss:$2 sm:$0xff] %v1138_v53  ;;  %v1239_v41 = vrot.slane %v1235_v39, 2 }
 0x14e   : > { %v1249_v18 = vsel %vm1090_vm7, %v1235_v39, %v1239_v41 }
 0x14f   : > { %1260 = vst.msk [vmem:[%s1821_s16 + $0x4] sm:$0x3] %vm1257_vm11, %v1249_v18  ;;  %v1179_v61 = vld.sshfl [vmem:[#allocation1] sm:$0xff pattern:$0x75643120] }
 0x150   : > { %v1202_v32 = vunpack.c.l.b16 %v1179_v61 }
 0x151   : > { %v1182_v34 = vld.sshfl [vmem:[#allocation1 + $0x10] sm:$0xff pattern:$0x75643120] }
 0x152   : > { %v1185_v43 = vld.sshfl [vmem:[#allocation1 + $0x20] sm:$0xff pattern:$0x75643120]  ;;  %v1203_v15 = vunpack.c.l.b16 %v1182_v34 }
 0x153   : > { %v1188_v44 = vld.sshfl [vmem:[#allocation1 + $0x30] sm:$0xff pattern:$0x75643120]  ;;  %v1204_v16 = vunpack.c.l.b16 %v1185_v43 }
 0x154   : > { %v1205_v45 = vunpack.c.l.b16 %v1188_v44  ;;  %v1227_v24 = vrot.slane %v1203_v15, 7 }
 0x155   : > { %v1229_v46 = vrot.slane %v1204_v16, 6 }
 0x156   : > { %v1228_v56 = vsel %vm1207_vm8, %v1227_v24, %v1202_v32  ;;  %v1231_v21 = vrot.slane %v1205_v45, 5 }
 0x157   : > { %v1230_v40 = vsel %vm1210_vm9, %v1229_v46, %v1228_v56 }
 0x158   : > { %v1232_v4 = vsel %vm1213_vm10, %v1231_v21, %v1230_v40 }
 0x159   : > { %v1236_v54 = vpack.c.b16 %v1232_v4, %v1232_v4 }
 0x15b   : > { %v1240_v23 = vrot.slane %v1236_v54, 2 }
 0x15d   : > { %v1252_v55 = vsel %vm1090_vm7, %v1236_v54, %v1240_v23 }
 0x15e   : > { %1261 = vst.msk [vmem:[%s1821_s16 + $0x6] sm:$0x3] %vm1257_vm11, %v1252_v55 }
 0x15f PF: > { %s13_s12 = sadd.s32 1, %s1454_s12  }
 0x160   : > { %p10_p4 = scmp.ge.s32.totalorder %s13_s12, 4  }
 0x162   :  { %12 = sbr.rel (!%p10_p4) target bundleno = 1 (0x1), region = 65 }

// kernel: homography_model_forward.10
= control target key start
LH: loop header
LB: loop body
LE: loop exit
PB: predicated region body
PF: predicated region fallthrough
CT: control target
= control target key end

     0   :  { %s3451_s12 = smov 0   ;;  %s4673_s0 = inlined_call_operand.vmem [shape: bf16[2,18,18,8], index: 0, kind: input, shape index: {}]   ;;  %s4674_s1 = inlined_call_operand.vmem [shape: bf16[72,8], index: 1, kind: input, shape index: {}]   ;;  %s4675_s2 = inlined_call_operand.vmem [shape: f32[1,8], index: 2, kind: input, shape index: {}]   ;;  %s4676_s3 = inlined_call_operand.vmem [shape: bf16[2,8,8,8], index: 3, kind: output, shape index: {}]  }
   0x1 LB: > { %s3074_s13 = sadd.s32 4294967295, %s3429_s12   ;;  %p3078_p0 = scmp.ge.s32.totalorder %s3429_s12, 1  ;;  %s3429_s12 = sphi %s3451_s12, %s13_s12  }
   0x2   : > { %p137_p1 = scmp.lt.s32.totalorder %s3429_s12, 3 }
   0x4   : > { %p138_p2 = pnand %p3078_p0, %p137_p1 }
   0x6   : > { %141 = sbr.rel (%p138_p2) target bundleno = 778 (0x30a), region = 32 }
   0xb   : > { %v227_v0 = vld [vmem:[%s4674_s1 + $0x4] sm:$0xf]  ;;  %vm719_vm0 = vcmask 1043456   ;;  %p161_p3 = scmp.lt.s32.totalorder %s3074_s13, 1  ;;  %v228_v2 = vld [vmem:[%s4674_s1 + $0x8] sm:$0xf] }
   0xc   : > { %v721_v1 = vsel %vm719_vm0, %v227_v0, 0  ;;  %v1260_v3 = vsel %vm719_vm0, %v228_v2, 0  ;;  %v229_v4 = vld [vmem:[%s4674_s1 + $0xc] sm:$0xf]  ;;  %v226_v5 = vld [vmem:[%s4674_s1] sm:$0xf] }
   0xd   : > { %3401 = vmatpush.bf16.msra.mxu1 %v721_v1  ;;  %3402 = vmatpush.bf16.msra.mxu2 %v721_v1  ;;  %s4817_s13 = smov (!%p161_p3, %s3074_s13), 1  ;;  %v230_v6 = vld [vmem:[%s4674_s1 + $0x10] sm:$0xf]  ;;  %v1392_v7 = vsel %vm719_vm0, %v229_v4, 0  ;;  %v941_v8 = vsel %vm719_vm0, %v226_v5, 0  ;;  %vm670_vm4 = vcmask 64512  }
   0xe   : > { %3403 = vmatpush.bf16.msra.mxu3 %v721_v1  ;;  %730 = vmatpush.bf16.msra.mxu0 %v721_v1  ;;  %s3404_s24 = smul.u32 216, %s4817_s13  ;;  %v1546_v9 = vsel %vm719_vm0, %v230_v6, 0  ;;  %vm235_vm1 = vsmask.f32 3328  ;;  %vm236_vm2 = vsmask.f32 7440 }
   0xf   : > { %vm3512_vm3 = vmor %vm235_vm1, %vm236_vm2  ;;  %vm1048_vm5 = vcmask 1042432   ;;  %vm1049_vm6 = vcmask 1046532   ;;  %vm2876_vm8 = vcmask 1041409   ;;  %vm2879_vm9 = vcmask 1042434   ;;  %s3382_s11 = sshll.u32 %s4817_s13, 5 }
  0x10   : > { %s3485_s27 = scalar_lea.vmem %s4673_s0, %s3404_s24  ;;  %vm3815_vm7 = vmor %vm1048_vm5, %vm1049_vm6  ;;  %vm2882_vm10 = vcmask 1043459   ;;  %vm2885_vm11 = vcmask 1044484   ;;  %vm2888_vm12 = vcmask 1045509   ;;  %vm2891_vm13 = vcmask 1046534   ;;  %s4454_s13 = scalar_lea.vmem %s4676_s3, %s3382_s11 }
  0x11   : > { %1269 = vmatpush.bf16.msrb.mxu2 %v1260_v3  ;;  %950 = vmatpush.bf16.msrb.mxu1 %v941_v8  ;;  %v3488_v10 = vld [vmem:[%s3485_s27 + $0x30] sm:$0xf]  ;;  %v3491_v11 = vld [vmem:[%s3485_s27 + $0x34] sm:$0xf]  ;;  %v3494_v12 = vld [vmem:[%s3485_s27 + $0x38] sm:$0x1] }
  0x12   : > { %1401 = vmatpush.bf16.msrb.mxu3 %v1392_v7  ;;  %1555 = vmatpush.bf16.msrb.mxu0 %v1546_v9  ;;  %v335_v13 = vshrl.u32 %v3488_v10, 16  ;;  %v338_v14 = vshll.u32 %v3488_v10, 16  ;;  %v344_v15 = vshll.u32 %v3491_v11, 16  ;;  %v348_v16 = vshrl.u32 %v3491_v11, 16  ;;  %v196_v17 = vld [vmem:[%s3485_s27 + $0x60] sm:$0xf] }
  0x13   : > { %v354_v18 = vshll.u32 %v3494_v12, 16  ;;  %v3503_v19 = vld [vmem:[%s3485_s27 + $0x64] sm:$0xf]  ;;  %v198_v20 = vld [vmem:[%s3485_s27 + $0x68] sm:$0x1]  ;;  %v431_v21 = vshrl.u32 %v196_v17, 16 }
  0x14   : > { %v337_v22 = vrot.slane %v335_v13, 4  ;;  %v340_v23 = vrot.slane %v338_v14, 5  ;;  %v346_v24 = vrot.slane %v344_v15, 5  ;;  %v350_v25 = vrot.slane %v348_v16, 4  ;;  %v208_v26 = vld [vmem:[%s3485_s27 + $0x90] sm:$0xf] }
  0x15   : > { %v356_v27 = vrot.slane %v354_v18, 5  ;;  %v433_v28 = vrot.slane %v431_v21, 4  ;;  %v434_v29 = vshll.u32 %v196_v17, 16  ;;  %v440_v30 = vshll.u32 %v3503_v19, 16  ;;  %v209_v35 = vld [vmem:[%s3485_s27 + $0x94] sm:$0xf] }
  0x16   : > { %v341_v31 = vor.u32 %v340_v23, %v337_v22  ;;  %v351_v32 = vor.u32 %v350_v25, %v346_v24  ;;  %v444_v33 = vshrl.u32 %v3503_v19, 16  ;;  %v450_v34 = vshll.u32 %v198_v20, 16  ;;  %v210_v45 = vld [vmem:[%s3485_s27 + $0x98] sm:$0x1]  ;;  %v3522_v61 = vld [vmem:[%s3485_s27] sm:$0xf] }
  0x17   : > { %v436_v37 = vrot.slane %v434_v29, 5  ;;  %v442_v38 = vrot.slane %v440_v30, 5  ;;  %v527_v39 = vshrl.u32 %v208_v26, 16  ;;  %v530_v47 = vshll.u32 %v208_v26, 16  ;;  %v3529_v1 = vld [vmem:[%s3485_s27 + $0x4] sm:$0xf] }
  0x18   : > { %v342_v40 = vrot.slane %v341_v31, 4  ;;  %v352_v41 = vrot.slane %v351_v32, 4  ;;  %v446_v42 = vrot.slane %v444_v33, 4  ;;  %v452_v43 = vrot.slane %v450_v34, 5  ;;  %v3532_v2 = vld [vmem:[%s3485_s27 + $0x8] sm:$0x1] }
  0x19   : > { %v437_v44 = vor.u32 %v436_v37, %v433_v28  ;;  %v529_v46 = vrot.slane %v527_v39, 4  ;;  %v536_v48 = vshll.u32 %v209_v35, 16  ;;  %v540_v52 = vshrl.u32 %v209_v35, 16  ;;  %v3548_v23 = vld [vmem:[%s3485_s27 + $0x3c] sm:$0xf] }
  0x1a   : > { %v347_v49 = vsel %vm3512_vm3, %v342_v40, %v346_v24  ;;  %v357_v50 = vsel %vm3512_vm3, %v352_v41, %v356_v27  ;;  %v447_v51 = vor.u32 %v446_v42, %v442_v38  ;;  %v532_v56 = vrot.slane %v530_v47, 5  ;;  %v3551_v24 = vld [vmem:[%s3485_s27 + $0x40] sm:$0xf]  ;;  %v3556_v29 = vld [vmem:[%s3485_s27 + $0x44] sm:$0x1] }
  0x1b   : > { %v630_v53 = vunpack.c.l.b16 %v347_v49  ;;  %v631_v54 = vunpack.c.l.b16 %v357_v50  ;;  %v438_v55 = vrot.slane %v437_v44, 4  ;;  %v538_v58 = vrot.slane %v536_v48, 5  ;;  %v3571_v47 = vld [vmem:[%s3485_s27 + $0x70] sm:$0xf] }
  0x1c   : > { %v448_v57 = vrot.slane %v447_v51, 4  ;;  %v542_v59 = vrot.slane %v540_v52, 4  ;;  %v546_v60 = vshll.u32 %v210_v45, 16  ;;  %v533_v0 = vor.u32 %v532_v56, %v529_v46  ;;  %v3578_v51 = vld [vmem:[%s3485_s27 + $0x74] sm:$0x1] }
  0x1d   : > { %v3524_v62 = vpack.c.b16 %v631_v54, %v630_v53  ;;  %v443_v63 = vsel %vm3512_vm3, %v438_v55, %v442_v38  ;;  %v239_v9 = vshrl.u32 %v3522_v61, 16  ;;  %v242_v13 = vshll.u32 %v3522_v61, 16  ;;  %v3564_v38 = vld [vmem:[%s3485_s27 + $0x6c] sm:$0xf] }
  0x1e   : > { %v453_v3 = vsel %vm3512_vm3, %v448_v57, %v452_v43  ;;  %v638_v4 = vunpack.c.l.b16 %v443_v63  ;;  %v543_v5 = vor.u32 %v542_v59, %v538_v58  ;;  %v548_v6 = vrot.slane %v546_v60, 5 }
  0x1f   : > { %3086 = vmatmul.msk.bf16.vlgmr.msra.gmra.mxu1 %vm670_vm4, %v3524_v62  ;;  %v639_v7 = vunpack.c.l.b16 %v453_v3  ;;  %v534_v8 = vrot.slane %v533_v0, 4  ;;  %v248_v15 = vshll.u32 %v3529_v1, 16  ;;  %v252_v16 = vshrl.u32 %v3529_v1, 16 }
  0x20   : > { %v544_v14 = vrot.slane %v543_v5, 4  ;;  %v258_v17 = vshll.u32 %v3532_v2, 16  ;;  %v241_v21 = vrot.slane %v239_v9, 4  ;;  %v244_v22 = vrot.slane %v242_v13, 5  ;;  %v211_v5 = vld [vmem:[%s3485_s27 + $0x9c] sm:$0xf] }
  0x21   : > { %v3543_v18 = vpack.c.b16 %v639_v7, %v638_v4  ;;  %v539_v20 = vsel %vm3512_vm3, %v534_v8, %v538_v58  ;;  %v250_v27 = vrot.slane %v248_v15, 5  ;;  %v254_v28 = vrot.slane %v252_v16, 4  ;;  %v212_v9 = vld [vmem:[%s3485_s27 + $0xa0] sm:$0xf] }
  0x22   : > { %v549_v25 = vsel %vm3512_vm3, %v544_v14, %v548_v6  ;;  %v646_v26 = vunpack.c.l.b16 %v539_v20  ;;  %v245_v31 = vor.u32 %v244_v22, %v241_v21  ;;  %v260_v32 = vrot.slane %v258_v17, 5  ;;  %v213_v17 = vld [vmem:[%s3485_s27 + $0xa4] sm:$0x1] }
  0x23   : > { %4719 = vst [vmem:[#allocation2_spill] sm:$0xff] %v3543_v18  ;;  %3090 = vmatmul.msk.bf16.vlgmr.msra.gmra.mxu2 %vm670_vm4, %v3543_v18  ;;  %v647_v30 = vunpack.c.l.b16 %v549_v25  ;;  %v255_v33 = vor.u32 %v254_v28, %v250_v27  ;;  %v359_v34 = vshrl.u32 %v3548_v23, 16  ;;  %v362_v35 = vshll.u32 %v3548_v23, 16 }
  0x24   : > { %v368_v37 = vshll.u32 %v3551_v24, 16  ;;  %v246_v40 = vrot.slane %v245_v31, 4  ;;  %v372_v41 = vshrl.u32 %v3551_v24, 16  ;;  %v378_v42 = vshll.u32 %v3556_v29, 16 }
  0x25   : > { %v3566_v39 = vpack.c.b16 %v647_v30, %v646_v26  ;;  %v256_v43 = vrot.slane %v255_v33, 4  ;;  %v361_v44 = vrot.slane %v359_v34, 4  ;;  %v364_v45 = vrot.slane %v362_v35, 5  ;;  %v3596_v35 = vld [vmem:[%s3485_s27 + $0xc] sm:$0xf] }
  0x26   : > { %v370_v46 = vrot.slane %v368_v37, 5  ;;  %v251_v48 = vsel %vm3512_vm3, %v246_v40, %v250_v27  ;;  %v374_v49 = vrot.slane %v372_v41, 4  ;;  %v380_v50 = vrot.slane %v378_v42, 5 }
  0x27   : > { %4720 = vst [vmem:[#allocation3_spill] sm:$0xff] %v3566_v39  ;;  %3094 = vmatmul.msk.bf16.vlgmr.msra.gmra.mxu3 %vm670_vm4, %v3566_v39  ;;  %v455_v52 = vshrl.u32 %v3564_v38, 16  ;;  %v261_v53 = vsel %vm3512_vm3, %v256_v43, %v260_v32  ;;  %v622_v54 = vunpack.c.l.b16 %v251_v48  ;;  %v365_v55 = vor.u32 %v364_v45, %v361_v44  ;;  %v3603_v43 = vld [vmem:[%s3485_s27 + $0x10] sm:$0xf]  ;;  %v3606_v48 = vld [vmem:[%s3485_s27 + $0x14] sm:$0x1] }
  0x28   : > { %v458_v56 = vshll.u32 %v3564_v38, 16  ;;  %v623_v57 = vunpack.c.l.b16 %v261_v53  ;;  %v375_v58 = vor.u32 %v374_v49, %v370_v46  ;;  %v464_v60 = vshll.u32 %v3571_v47, 16  ;;  %v3783_v39 = vld [vmem:[%s3485_s27 + $0x2c] sm:$0x1] }
  0x29   : > { %v457_v59 = vrot.slane %v455_v52, 4  ;;  %v366_v63 = vrot.slane %v365_v55, 4  ;;  %v468_v3 = vshrl.u32 %v3571_v47, 16  ;;  %v474_v4 = vshll.u32 %v3578_v51, 16 }
  0x2a   : > { %v460_v0 = vrot.slane %v458_v56, 5  ;;  %v654_v6 = vpack.c.b16 %v623_v57, %v622_v54  ;;  %v376_v7 = vrot.slane %v375_v58, 4  ;;  %v466_v8 = vrot.slane %v464_v60, 5  ;;  %v3616_v58 = vld [vmem:[%s3485_s27 + $0x48] sm:$0xf] }
  0x2b   : > { %v371_v13 = vsel %vm3512_vm3, %v366_v63, %v370_v46  ;;  %v470_v15 = vrot.slane %v468_v3, 4  ;;  %v476_v16 = vrot.slane %v474_v4, 5  ;;  %v551_v22 = vshrl.u32 %v211_v5, 16  ;;  %v3621_v3 = vld [vmem:[%s3485_s27 + $0x4c] sm:$0xf] }
  0x2c   : > { %v461_v14 = vor.u32 %v460_v0, %v457_v59  ;;  %3082 = vmatmul.msk.bf16.vlgmr.msra.gmra.mxu0 %vm670_vm4, %v654_v6  ;;  %v381_v20 = vsel %vm3512_vm3, %v376_v7, %v380_v50  ;;  %v632_v21 = vunpack.c.l.b16 %v371_v13  ;;  %v554_v25 = vshll.u32 %v211_v5, 16 }
  0x2d   : > { %v633_v26 = vunpack.c.l.b16 %v381_v20  ;;  %v471_v28 = vor.u32 %v470_v15, %v466_v8  ;;  %v560_v30 = vshll.u32 %v212_v9, 16  ;;  %v553_v31 = vrot.slane %v551_v22, 4  ;;  %v3628_v15 = vld [vmem:[%s3485_s27 + $0x50] sm:$0x1] }
  0x2e   : > { %v462_v27 = vrot.slane %v461_v14, 4  ;;  %v556_v32 = vrot.slane %v554_v25, 5  ;;  %v564_v33 = vshrl.u32 %v212_v9, 16  ;;  %v570_v34 = vshll.u32 %v213_v17, 16 }
  0x2f   : > { %v3598_v37 = vpack.c.b16 %v633_v26, %v632_v21  ;;  %v472_v41 = vrot.slane %v471_v28, 4  ;;  %v562_v42 = vrot.slane %v560_v30, 5  ;;  %v263_v52 = vshrl.u32 %v3596_v35, 16  ;;  %v3639_v28 = vld [vmem:[%s3485_s27 + $0x78] sm:$0xf] }
  0x30   : > { %v467_v40 = vsel %vm3512_vm3, %v462_v27, %v466_v8  ;;  %v557_v45 = vor.u32 %v556_v32, %v553_v31  ;;  %v566_v46 = vrot.slane %v564_v33, 4  ;;  %v572_v50 = vrot.slane %v570_v34, 5  ;;  %v3643_v34 = vld [vmem:[%s3485_s27 + $0x7c] sm:$0xf] }
  0x31   : > { %v640_v44 = vunpack.c.l.b16 %v467_v40  ;;  %3087 = vmatmul.msk.bf16.gmra.mxu1 %vm670_vm4, %v3598_v37  ;;  %v477_v49 = vsel %vm3512_vm3, %v472_v41, %v476_v16  ;;  %v266_v53 = vshll.u32 %v3596_v35, 16  ;;  %v272_v57 = vshll.u32 %v3603_v43, 16 }
  0x32   : > { %v641_v54 = vunpack.c.l.b16 %v477_v49  ;;  %v558_v55 = vrot.slane %v557_v45, 4  ;;  %v567_v56 = vor.u32 %v566_v46, %v562_v42  ;;  %v265_v59 = vrot.slane %v263_v52, 4 }
  0x33   : > { %v268_v60 = vrot.slane %v266_v53, 5  ;;  %v276_v63 = vshrl.u32 %v3603_v43, 16  ;;  %v282_v0 = vshll.u32 %v3606_v48, 16  ;;  %v274_v7 = vrot.slane %v272_v57, 5 }
  0x34   : > { %v3623_v4 = vpack.c.b16 %v641_v54, %v640_v44  ;;  %v563_v5 = vsel %vm3512_vm3, %v558_v55, %v562_v42  ;;  %v568_v6 = vrot.slane %v567_v56, 4  ;;  %v383_v17 = vshrl.u32 %v3616_v58, 16 }
  0x35   : > { %v648_v8 = vunpack.c.l.b16 %v563_v5  ;;  %v269_v9 = vor.u32 %v268_v60, %v265_v59  ;;  %v278_v13 = vrot.slane %v276_v63, 4  ;;  %v284_v14 = vrot.slane %v282_v0, 5 }
  0x36   : > { %3091 = vmatmul.msk.bf16.gmra.mxu2 %vm670_vm4, %v3623_v4  ;;  %v573_v16 = vsel %vm3512_vm3, %v568_v6, %v572_v50  ;;  %v386_v20 = vshll.u32 %v3616_v58, 16  ;;  %v392_v21 = vshll.u32 %v3621_v3, 16  ;;  %v396_v27 = vshrl.u32 %v3621_v3, 16  ;;  %v3650_v50 = vld [vmem:[%s3485_s27 + $0x80] sm:$0x1] }
  0x37   : > { %v649_v22 = vunpack.c.l.b16 %v573_v16  ;;  %v270_v25 = vrot.slane %v269_v9, 4  ;;  %v279_v26 = vor.u32 %v278_v13, %v274_v7  ;;  %v385_v30 = vrot.slane %v383_v17, 4  ;;  %v3669_v16 = vld [vmem:[%s3485_s27 + $0xac] sm:$0xf]  ;;  %v3672_v17 = vld [vmem:[%s3485_s27 + $0xb0] sm:$0x1] }
  0x38   : > { %v388_v31 = vrot.slane %v386_v20, 5  ;;  %v394_v32 = vrot.slane %v392_v21, 5  ;;  %v402_v33 = vshll.u32 %v3628_v15, 16  ;;  %v398_v44 = vrot.slane %v396_v27, 4  ;;  %4723 = vst [vmem:[#allocation6_spill] sm:$0xff] %v3669_v16 }
  0x39   : > { %v3645_v40 = vpack.c.b16 %v649_v22, %v648_v8  ;;  %v275_v41 = vsel %vm3512_vm3, %v270_v25, %v274_v7  ;;  %v280_v42 = vrot.slane %v279_v26, 4  ;;  %v479_v52 = vshrl.u32 %v3639_v28, 16  ;;  %v3662_v8 = vld [vmem:[%s3485_s27 + $0xa8] sm:$0xf]  ;;  %4724 = vst [vmem:[#allocation7_spill] sm:$0xff] %v3672_v17 }
  0x3a   : > { %v624_v45 = vunpack.c.l.b16 %v275_v41  ;;  %v389_v46 = vor.u32 %v388_v31, %v385_v30  ;;  %v404_v49 = vrot.slane %v402_v33, 5  ;;  %v399_v54 = vor.u32 %v398_v44, %v394_v32  ;;  %4722 = vst [vmem:[#allocation5_spill] sm:$0xff] %v3662_v8 }
  0x3b   : > { %4721 = vst [vmem:[#allocation4_spill] sm:$0xff] %v3645_v40  ;;  %3095 = vmatmul.msk.bf16.gmra.mxu3 %vm670_vm4, %v3645_v40  ;;  %v285_v53 = vsel %vm3512_vm3, %v280_v42, %v284_v14  ;;  %v482_v55 = vshll.u32 %v3639_v28, 16  ;;  %v488_v56 = vshll.u32 %v3643_v34, 16  ;;  %v481_v60 = vrot.slane %v479_v52, 4  ;;  %v3686_v52 = vld [vmem:[%s3485_s27 + $0x18] sm:$0xf] }
  0x3c   : > { %v625_v57 = vunpack.c.l.b16 %v285_v53  ;;  %v390_v59 = vrot.slane %v389_v46, 4  ;;  %v492_v63 = vshrl.u32 %v3643_v34, 16  ;;  %v400_v0 = vrot.slane %v399_v54, 4  ;;  %v3772_v40 = vld [vmem:[%s3485_s27 + $0x24] sm:$0xf] }
  0x3d   : > { %v484_v5 = vrot.slane %v482_v55, 5  ;;  %v490_v6 = vrot.slane %v488_v56, 5  ;;  %v498_v7 = vshll.u32 %v3650_v50, 16  ;;  %v575_v30 = vshrl.u32 %v3662_v8, 16  ;;  %v3691_v56 = vld [vmem:[%s3485_s27 + $0x1c] sm:$0xf] }
  0x3e   : > { %v3664_v9 = vpack.c.b16 %v625_v57, %v624_v45  ;;  %v395_v13 = vsel %vm3512_vm3, %v390_v59, %v394_v32  ;;  %v494_v14 = vrot.slane %v492_v63, 4  ;;  %v405_v20 = vsel %vm3512_vm3, %v400_v0, %v404_v49  ;;  %v3694_v57 = vld [vmem:[%s3485_s27 + $0x20] sm:$0x1] }
  0x3f   : > { %v634_v21 = vunpack.c.l.b16 %v395_v13  ;;  %v485_v22 = vor.u32 %v484_v5, %v481_v60  ;;  %v500_v25 = vrot.slane %v498_v7, 5  ;;  %v635_v26 = vunpack.c.l.b16 %v405_v20 }
  0x40   : > { %3083 = vmatmul.msk.bf16.gmra.mxu0 %vm670_vm4, %v3664_v9  ;;  %v495_v27 = vor.u32 %v494_v14, %v490_v6  ;;  %v578_v31 = vshll.u32 %v3662_v8, 16  ;;  %v584_v33 = vshll.u32 %v3669_v16, 16  ;;  %v588_v41 = vshrl.u32 %v3669_v16, 16 }
  0x41   : > { %v486_v32 = vrot.slane %v485_v22, 4  ;;  %v594_v42 = vshll.u32 %v3672_v17, 16  ;;  %v3683_v44 = vpack.c.b16 %v635_v26, %v634_v21  ;;  %v577_v46 = vrot.slane %v575_v30, 4  ;;  %v3706_v26 = vld [vmem:[%s3485_s27 + $0x54] sm:$0xf] }
  0x42   : > { %v496_v45 = vrot.slane %v495_v27, 4  ;;  %v580_v49 = vrot.slane %v578_v31, 5  ;;  %v586_v54 = vrot.slane %v584_v33, 5  ;;  %v590_v55 = vrot.slane %v588_v41, 4  ;;  %v3750_v17 = vld [vmem:[%s3485_s27 + $0xb4] sm:$0xf] }
  0x43   : > { %4725 = vst [vmem:[#allocation8_spill] sm:$0xff] %v3683_v44  ;;  %v491_v53 = vsel %vm3512_vm3, %v486_v32, %v490_v6  ;;  %3088 = vmatmul.msk.bf16.gmra.mxu1 %vm670_vm4, %v3683_v44  ;;  %v596_v0 = vrot.slane %v594_v42, 5  ;;  %v287_v6 = vshrl.u32 %v3686_v52, 16  ;;  %v290_v13 = vshll.u32 %v3686_v52, 16  ;;  %v3711_v32 = vld [vmem:[%s3485_s27 + $0x58] sm:$0xf] }
  0x44   : > { %v501_v59 = vsel %vm3512_vm3, %v496_v45, %v500_v25  ;;  %v642_v60 = vunpack.c.l.b16 %v491_v53  ;;  %v581_v63 = vor.u32 %v580_v49, %v577_v46  ;;  %v591_v7 = vor.u32 %v590_v55, %v586_v54  ;;  %v3716_v46 = vld [vmem:[%s3485_s27 + $0x5c] sm:$0x1]  ;;  %4728 = vst [vmem:[#allocation11_spill] sm:$0xff] %v3750_v17 }
  0x45   : > { %v643_v5 = vunpack.c.l.b16 %v501_v59  ;;  %v296_v20 = vshll.u32 %v3691_v56, 16  ;;  %v300_v21 = vshrl.u32 %v3691_v56, 16  ;;  %v306_v22 = vshll.u32 %v3694_v57, 16 }
  0x46   : > { %v582_v14 = vrot.slane %v581_v63, 4  ;;  %v592_v27 = vrot.slane %v591_v7, 4  ;;  %v289_v30 = vrot.slane %v287_v6, 4  ;;  %v292_v31 = vrot.slane %v290_v13, 5  ;;  %v3726_v7 = vld [vmem:[%s3485_s27 + $0x84] sm:$0xf] }
  0x47   : > { %v3708_v25 = vpack.c.b16 %v643_v5, %v642_v60  ;;  %v298_v41 = vrot.slane %v296_v20, 5  ;;  %v302_v42 = vrot.slane %v300_v21, 4  ;;  %v308_v45 = vrot.slane %v306_v22, 5  ;;  %4726 = vst [vmem:[#allocation9_spill] sm:$0xff] %v3726_v7 }
  0x48   : > { %v587_v33 = vsel %vm3512_vm3, %v582_v14, %v586_v54  ;;  %v597_v49 = vsel %vm3512_vm3, %v592_v27, %v596_v0  ;;  %v293_v55 = vor.u32 %v292_v31, %v289_v30  ;;  %v407_v59 = vshrl.u32 %v3706_v26, 16  ;;  %v3733_v30 = vld [vmem:[%s3485_s27 + $0x88] sm:$0xf] }
  0x49   : > { %3092 = vmatmul.msk.bf16.gmra.mxu2 %vm670_vm4, %v3708_v25  ;;  %v650_v53 = vunpack.c.l.b16 %v587_v33  ;;  %v651_v60 = vunpack.c.l.b16 %v597_v49  ;;  %v303_v63 = vor.u32 %v302_v42, %v298_v41  ;;  %v410_v54 = vshll.u32 %v3706_v26, 16  ;;  %v3738_v49 = vld [vmem:[%s3485_s27 + $0x8c] sm:$0x1] }
  0x4a   : > { %v416_v5 = vshll.u32 %v3711_v32, 16  ;;  %v294_v6 = vrot.slane %v293_v55, 4  ;;  %v409_v13 = vrot.slane %v407_v59, 4  ;;  %v420_v14 = vshrl.u32 %v3711_v32, 16 }
  0x4b   : > { %v426_v0 = vshll.u32 %v3716_v46, 16  ;;  %v3730_v20 = vpack.c.b16 %v651_v60, %v650_v53  ;;  %v304_v21 = vrot.slane %v303_v63, 4  ;;  %v412_v22 = vrot.slane %v410_v54, 5 }
  0x4c   : > { %v418_v27 = vrot.slane %v416_v5, 5  ;;  %v299_v31 = vsel %vm3512_vm3, %v294_v6, %v298_v41  ;;  %v422_v33 = vrot.slane %v420_v14, 4  ;;  %v503_v55 = vshrl.u32 %v3726_v7, 16 }
  0x4d   : > { %4727 = vst [vmem:[#allocation10_spill] sm:$0xff] %v3730_v20  ;;  %v428_v42 = vrot.slane %v426_v0, 5  ;;  %3096 = vmatmul.msk.bf16.gmra.mxu3 %vm670_vm4, %v3730_v20  ;;  %v309_v53 = vsel %vm3512_vm3, %v304_v21, %v308_v45  ;;  %v626_v59 = vunpack.c.l.b16 %v299_v31  ;;  %v413_v60 = vor.u32 %v412_v22, %v409_v13  ;;  %v3755_v22 = vld [vmem:[%s3485_s27 + $0xb8] sm:$0xf] }
  0x4e   : > { %v506_v63 = vshll.u32 %v3726_v7, 16  ;;  %v627_v54 = vunpack.c.l.b16 %v309_v53  ;;  %v423_v41 = vor.u32 %v422_v33, %v418_v27  ;;  %v505_v5 = vrot.slane %v503_v55, 4  ;;  %4729 = vst [vmem:[#allocation12_spill] sm:$0xff] %v3755_v22 }
  0x4f   : > { %v512_v6 = vshll.u32 %v3733_v30, 16  ;;  %v414_v14 = vrot.slane %v413_v60, 4  ;;  %v516_v8 = vshrl.u32 %v3733_v30, 16  ;;  %v522_v20 = vshll.u32 %v3738_v49, 16  ;;  %v3760_v60 = vld [vmem:[%s3485_s27 + $0xbc] sm:$0x1] }
  0x50   : > { %v508_v0 = vrot.slane %v506_v63, 5  ;;  %v3752_v45 = vpack.c.b16 %v627_v54, %v626_v59  ;;  %v424_v21 = vrot.slane %v423_v41, 4  ;;  %4730 = vst [vmem:[#allocation13_spill] sm:$0xff] %v3760_v60  ;;  %v599_v54 = vshrl.u32 %v3750_v17, 16 }
  0x51   : > { %v514_v13 = vrot.slane %v512_v6, 5  ;;  %v419_v31 = vsel %vm3512_vm3, %v414_v14, %v418_v27  ;;  %v518_v55 = vrot.slane %v516_v8, 4  ;;  %v524_v53 = vrot.slane %v522_v20, 5 }
  0x52   : > { %v509_v33 = vor.u32 %v508_v0, %v505_v5  ;;  %3084 = vmatmul.msk.bf16.gmra.mxu0 %vm670_vm4, %v3752_v45  ;;  %v429_v59 = vsel %vm3512_vm3, %v424_v21, %v428_v42  ;;  %v636_v63 = vunpack.c.l.b16 %v419_v31  ;;  %v602_v41 = vshll.u32 %v3750_v17, 16 }
  0x53   : > { %v637_v6 = vunpack.c.l.b16 %v429_v59  ;;  %v519_v5 = vor.u32 %v518_v55, %v514_v13  ;;  %v608_v8 = vshll.u32 %v3755_v22, 16  ;;  %v601_v20 = vrot.slane %v599_v54, 4 }
  0x54   : > { %v510_v27 = vrot.slane %v509_v33, 4  ;;  %v604_v14 = vrot.slane %v602_v41, 5  ;;  %v612_v0 = vshrl.u32 %v3755_v22, 16  ;;  %v618_v16 = vshll.u32 %v3760_v60, 16  ;;  %v3779_v33 = vld [vmem:[%s3485_s27 + $0x28] sm:$0xf] }
  0x55   : > { %v3774_v42 = vpack.c.b16 %v637_v6, %v636_v63  ;;  %v520_v31 = vrot.slane %v519_v5, 4  ;;  %v610_v59 = vrot.slane %v608_v8, 5  ;;  %v1056_v55 = vrot.slane %v3532_v2, 5 }
  0x56   : > { %v515_v21 = vsel %vm3512_vm3, %v510_v27, %v514_v13  ;;  %v605_v54 = vor.u32 %v604_v14, %v601_v20  ;;  %v614_v41 = vrot.slane %v612_v0, 4  ;;  %v620_v6 = vrot.slane %v618_v16, 5 }
  0x57   : > { %4731 = vst [vmem:[#allocation14_spill] sm:$0xff] %v3774_v42  ;;  %v644_v17 = vunpack.c.l.b16 %v515_v21  ;;  %3089 = vmatmul.msk.bf16.gmra.mxu1 %vm670_vm4, %v3774_v42  ;;  %v525_v63 = vsel %vm3512_vm3, %v520_v31, %v524_v53  ;;  %v311_v13 = vshrl.u32 %v3772_v40, 16  ;;  %v314_v27 = vshll.u32 %v3772_v40, 16 }
  0x58   : > { %v645_v5 = vunpack.c.l.b16 %v525_v63  ;;  %v606_v8 = vrot.slane %v605_v54, 4  ;;  %v615_v60 = vor.u32 %v614_v41, %v610_v59  ;;  %v320_v2 = vshll.u32 %v3779_v33, 16  ;;  %v232_v54 = vld [vmem:[%s4674_s1 + $0x18] sm:$0xf]  ;;  %v233_v41 = vld [vmem:[%s4674_s1 + $0x1c] sm:$0xf] }
  0x59   : > { %v313_v20 = vrot.slane %v311_v13, 4  ;;  %v316_v14 = vrot.slane %v314_v27, 5  ;;  %v324_v0 = vshrl.u32 %v3779_v33, 16  ;;  %v330_v21 = vshll.u32 %v3783_v39, 16 }
  0x5a   : > { %v3794_v22 = vpack.c.b16 %v645_v5, %v644_v17  ;;  %v611_v16 = vsel %vm3512_vm3, %v606_v8, %v610_v59  ;;  %v616_v53 = vrot.slane %v615_v60, 4  ;;  %v322_v31 = vrot.slane %v320_v2, 5  ;;  %v231_v17 = vld [vmem:[%s4674_s1 + $0x14] sm:$0xf]  ;;  %v234_v60 = vld [vmem:[%s4674_s1 + $0x20] sm:$0xf] }
  0x5b   : > { %v652_v63 = vunpack.c.l.b16 %v611_v16  ;;  %v317_v13 = vor.u32 %v316_v14, %v313_v20  ;;  %v326_v27 = vrot.slane %v324_v0, 4  ;;  %v332_v7 = vrot.slane %v330_v21, 5 }
  0x5c   : > { %4732 = vst [vmem:[#allocation15_spill] sm:$0xff] %v3794_v22  ;;  %3093 = vmatmul.msk.bf16.gmra.mxu2 %vm670_vm4, %v3794_v22  ;;  %v621_v59 = vsel %vm3512_vm3, %v616_v53, %v620_v6  ;;  %v3178_v5 = vrot.slane %v3522_v61, 9  ;;  %v1053_v0 = vrot.slane %v3529_v1, 5  ;;  %v1816_v21 = vsel %vm719_vm0, %v232_v54, 0 }
  0x5d   : > { %v653_v8 = vunpack.c.l.b16 %v621_v59  ;;  %v318_v2 = vrot.slane %v317_v13, 4  ;;  %v327_v20 = vor.u32 %v326_v27, %v322_v31  ;;  %v1970_v16 = vsel %vm719_vm0, %v233_v41, 0  ;;  %1825 = vmatpush.bf16.msra.mxu2 %v1816_v21  ;;  %v3384_v21 = vld [vmem:[%s3485_s27 + $0xc] sm:$0xff] }
  0x5e   : > { %v1684_v22 = vsel %vm719_vm0, %v231_v17, 0  ;;  %v2108_v6 = vsel %vm719_vm0, %v234_v60, 0  ;;  %v1054_v27 = vsel %vm3815_vm7, %v3178_v5, %v1053_v0  ;;  %1979 = vmatpush.bf16.msra.mxu3 %v1970_v16  ;;  %v1055_v54 = vrot.slane %v1053_v0, 4 }
  0x5f   : > { %v3824_v53 = vpack.c.b16 %v653_v8, %v652_v63  ;;  %v323_v61 = vsel %vm3512_vm3, %v318_v2, %v322_v31  ;;  %v328_v13 = vrot.slane %v327_v20, 4  ;;  %1693 = vmatpush.bf16.msra.mxu1 %v1684_v22  ;;  %2117 = vmatpush.bf16.msra.mxu0 %v2108_v6  ;;  %v3179_v41 = vrot.slane %v3596_v35, 9  ;;  %v3383_v22 = vld [vmem:[%s3485_s27] sm:$0xff]  ;;  %v3861_v6 = vld [vmem:[%s3485_s27 + $0x18] sm:$0xff] }
  0x60   : > { %v628_v1 = vunpack.c.l.b16 %v323_v61  ;;  %v1163_v31 = vunpack.c.l.b16 %v1054_v27  ;;  %v1060_v17 = vrot.slane %v3603_v43, 5  ;;  %v1063_v60 = vrot.slane %v3606_v48, 5 }
  0x61   : > { %3097 = vmatmul.msk.bf16.gmra.mxu3 %vm670_vm4, %v3824_v53  ;;  %v333_v63 = vsel %vm3512_vm3, %v328_v13, %v332_v7  ;;  %v1057_v5 = vsel %vm3815_vm7, %v1055_v54, %v1056_v55  ;;  %v1067_v16 = vrot.slane %v3691_v56, 5  ;;  %v3180_v61 = vrot.slane %v3686_v52, 9 }
  0x62   : > { %v629_v59 = vunpack.c.l.b16 %v333_v63  ;;  %v1164_v8 = vunpack.c.l.b16 %v1057_v5  ;;  %v1061_v35 = vsel %vm3815_vm7, %v3179_v41, %v1060_v17  ;;  %v1062_v2 = vrot.slane %v1060_v17, 4  ;;  %v3881_v41 = vld [vmem:[%s3485_s27 + $0x24] sm:$0xff] }
  0x63   : > { %v1165_v7 = vunpack.c.l.b16 %v1061_v35  ;;  %v1069_v13 = vrot.slane %v1067_v16, 4  ;;  %v1070_v27 = vrot.slane %v3694_v57, 5  ;;  %v1074_v57 = vrot.slane %v3779_v33, 5 }
  0x64   : > { %v3842_v20 = vpack.c.b16 %v629_v59, %v628_v1  ;;  %v1195_v0 = vpack.c.b16 %v1164_v8, %v1163_v31  ;;  %v1064_v43 = vsel %vm3815_vm7, %v1062_v2, %v1063_v60  ;;  %v3181_v63 = vrot.slane %v3772_v40, 9  ;;  %v3903_v8 = vld [vmem:[%s3485_s27 + $0x30] sm:$0xff] }
  0x65   : > { %v1166_v48 = vunpack.c.l.b16 %v1064_v43  ;;  %v1071_v56 = vsel %vm3815_vm7, %v1069_v13, %v1070_v27  ;;  %v1076_v31 = vrot.slane %v1074_v57, 4  ;;  %v1077_v17 = vrot.slane %v3783_v39, 5  ;;  %v3931_v27 = vld [vmem:[%s3485_s27 + $0x3c] sm:$0xff] }
  0x66   : > { %3085 = vmatmul.msk.bf16.gmra.mxu0 %vm670_vm4, %v3842_v20  ;;  %v1168_v54 = vunpack.c.l.b16 %v1071_v56  ;;  %v1075_v60 = vsel %vm3815_vm7, %v3181_v63, %v1074_v57  ;;  %v1081_v39 = vrot.slane %v3491_v11, 5  ;;  %v3182_v35 = vrot.slane %v3488_v10, 9 }
  0x67   : > { %3162 = vmatmul.msk.bf16.vlgmr.msrb.gmra.mxu1 %vm670_vm4, %v3383_v22  ;;  %v3849_v55 = vpack.c.b16 %v1166_v48, %v1165_v7  ;;  %v1078_v33 = vsel %vm3815_vm7, %v1076_v31, %v1077_v17  ;;  %v1169_v59 = vunpack.c.l.b16 %v1075_v60  ;;  %v1084_v7 = vrot.slane %v3494_v12, 5 }
  0x68   : > { %v1170_v5 = vunpack.c.l.b16 %v1078_v33  ;;  %v1083_v2 = vrot.slane %v1081_v39, 4  ;;  %v1088_v13 = vrot.slane %v3551_v24, 5  ;;  %v3183_v56 = vrot.slane %v3548_v23, 9 }
  0x69   : > { %vm2894_vm14 = vcmask 1047559   ;;  %vm3010_vm15 = vcmask 60416  }
  0x6a   : > { %v3895_v40 = vpack.c.b16 %v1170_v5, %v1169_v59  ;;  %v1085_v11 = vsel %vm3815_vm7, %v1083_v2, %v1084_v7  ;;  %v1089_v24 = vsel %vm3815_vm7, %v3183_v56, %v1088_v13  ;;  %v1095_v5 = vrot.slane %v3621_v3, 5 }
  0x6b   : > { %v1173_v23 = vunpack.c.l.b16 %v1089_v24  ;;  %v3184_v7 = vrot.slane %v3616_v58, 9  ;;  %v1102_v24 = vrot.slane %v3711_v32, 5 }
  0x6c   : > { %3194 = vmatmul.msk.bf16.vlgmr.msrb.gmra.mxu2 %vm670_vm4, %v1195_v0  ;;  %v1082_v0 = vsel %vm3815_vm7, %v3182_v35, %v1081_v39  ;;  %v3965_v35 = vld [vmem:[%s3485_s27 + $0x48] sm:$0xff] }
  0x6d   : > { %v1171_v48 = vunpack.c.l.b16 %v1082_v0  ;;  %4737 = vst [vmem:[#allocation18_spill] sm:$0xff] %v3965_v35  ;;  %v1097_v0 = vrot.slane %v1095_v5, 4 }
  0x71   : > { %3214 = vmatmul.msk.bf16.vlgmr.msrb.gmra.mxu3 %vm670_vm4, %v3384_v21 }
  0x76   : > { %3230 = vmatmul.msk.bf16.vlgmr.msrb.gmra.mxu0 %vm670_vm4, %v3664_v9  ;;  %v1068_v9 = vsel %vm3815_vm7, %v3180_v61, %v1067_v16 }
  0x77   : > { %3163 = vmatmul.msk.bf16.gmra.mxu1 %vm670_vm4, %v3384_v21  ;;  %v1167_v1 = vunpack.c.l.b16 %v1068_v9  ;;  %v1172_v21 = vunpack.c.l.b16 %v1085_v11  ;;  %v1098_v11 = vrot.slane %v3628_v15, 5 }
  0x79   : > { %v3875_v52 = vpack.c.b16 %v1168_v54, %v1167_v1  ;;  %v3923_v12 = vpack.c.b16 %v1172_v21, %v1171_v48  ;;  %v1090_v1 = vrot.slane %v1088_v13, 4  ;;  %v1091_v54 = vrot.slane %v3556_v29, 5 }
  0x7a   : > { %v1096_v21 = vsel %vm3815_vm7, %v3184_v7, %v1095_v5  ;;  %v1099_v13 = vsel %vm3815_vm7, %v1097_v0, %v1098_v11  ;;  %v3185_v5 = vrot.slane %v3706_v26, 9  ;;  %v1104_v7 = vrot.slane %v1102_v24, 4 }
  0x7b   : > { %v1092_v63 = vsel %vm3815_vm7, %v1090_v1, %v1091_v54  ;;  %v1175_v56 = vunpack.c.l.b16 %v1096_v21  ;;  %v1176_v1 = vunpack.c.l.b16 %v1099_v13  ;;  %v1105_v0 = vrot.slane %v3716_v46, 5 }
  0x7c   : > { %3195 = vmatmul.msk.bf16.gmra.mxu2 %vm670_vm4, %v3849_v55  ;;  %v1174_v60 = vunpack.c.l.b16 %v1092_v63  ;;  %v1103_v32 = vsel %vm3815_vm7, %v3185_v5, %v1102_v24  ;;  %v1109_v5 = vrot.slane %v3503_v19, 5 }
  0x7d   : > { %v3989_v54 = vpack.c.b16 %v1176_v1, %v1175_v56  ;;  %v1106_v13 = vsel %vm3815_vm7, %v1104_v7, %v1105_v0  ;;  %v1177_v56 = vunpack.c.l.b16 %v1103_v32  ;;  %v3414_v32 = vld [vmem:[%s3485_s27 + $0x68] sm:$0x1] }
  0x7e   : > { %v3955_v33 = vpack.c.b16 %v1174_v60, %v1173_v23  ;;  %v3999_v60 = vld [vmem:[%s3485_s27 + $0x54] sm:$0xff]  ;;  %v1178_v46 = vunpack.c.l.b16 %v1106_v13  ;;  %v1112_v13 = vrot.slane %v3414_v32, 5 }
  0x7f   : > { %4740 = vst [vmem:[#allocation21_spill] sm:$0xff] %v3989_v54 }
  0x80   : > { %4741 = vst [vmem:[#allocation22_spill] sm:$0xff] %v3999_v60 }
  0x81   : > { %3215 = vmatmul.msk.bf16.gmra.mxu3 %vm670_vm4, %v3861_v6 }
  0x86   : > { %3231 = vmatmul.msk.bf16.gmra.mxu0 %vm670_vm4, %v3752_v45 }
  0x87   : > { %3164 = vmatmul.msk.bf16.gmra.mxu1 %vm670_vm4, %v3861_v6 }
  0x8c   : > { %3196 = vmatmul.msk.bf16.gmra.mxu2 %vm670_vm4, %v3875_v52 }
  0x91   : > { %3216 = vmatmul.msk.bf16.gmra.mxu3 %vm670_vm4, %v3881_v41 }
  0x96   : > { %3232 = vmatmul.msk.bf16.gmra.mxu0 %vm670_vm4, %v3842_v20 }
  0x97   : > { %3165 = vmatmul.msk.bf16.gmra.mxu1 %vm670_vm4, %v3881_v41 }
  0x9c   : > { %v3898_v22 = vpop.f32.mrf.mxu1  ;;  %3197 = vmatmul.msk.bf16.gmra.mxu2 %vm670_vm4, %v3895_v40 }
  0xa1   : > { %3217 = vmatmul.msk.bf16.gmra.mxu3 %vm670_vm4, %v3903_v8 }
  0xa4   : > { %v3913_v43 = vpop.f32.mrf.mxu1 }
  0xa6   : > { %v3915_v16 = vpop.f32.mrf.mxu2  ;;  %3233 = vmatmul.msk.bf16.gmra.mxu0 %vm670_vm4, %v3524_v62 }
  0xa7   : > { %3166 = vmatmul.msk.bf16.gmra.mxu1 %vm670_vm4, %v3903_v8 }
  0xa9   : > { %v3921_v10 = vpop.f32.mrf.mxu0 }
  0xaa   : > { %v3925_v61 = vpop.f32.mrf.mxu3 }
  0xab   : > { %4735 = vst [vmem:[#allocation16_spill] sm:$0xff] %v3925_v61 }
  0xac   : > { %3198 = vmatmul.msk.bf16.gmra.mxu2 %vm670_vm4, %v3923_v12 }
  0xae   : > { %v3933_v9 = vpop.f32.mrf.mxu1  ;;  %v3937_v57 = vpop.f32.mrf.mxu2 }
  0xb1   : > { %3218 = vmatmul.msk.bf16.gmra.mxu3 %vm670_vm4, %v3931_v27  ;;  %v3945_v31 = vpop.f32.mrf.mxu0 }
  0xb2   : > { %v3947_v17 = vpop.f32.mrf.mxu3 }
  0xb3   : > { %4736 = vst [vmem:[#allocation17_spill] sm:$0xff] %v3947_v17 }
  0xb6   : > { %3234 = vmatmul.msk.bf16.gmra.mxu0 %vm670_vm4, %v3598_v37  ;;  %v3951_v29 = vpop.f32.mrf.mxu1 }
  0xb7   : > { %3167 = vmatmul.msk.bf16.gmra.mxu1 %vm670_vm4, %v3931_v27 }
  0xb9   : > { %v3957_v59 = vpop.f32.mrf.mxu2 }
  0xbc   : > { %3199 = vmatmul.msk.bf16.gmra.mxu2 %vm670_vm4, %v3955_v33 }
  0xbd   : > { %v3960_v39 = vpop.f32.mrf.mxu0 }
  0xbe   : > { %v3967_v2 = vpop.f32.mrf.mxu3 }
  0xbf   : > { %4738 = vst [vmem:[#allocation19_spill] sm:$0xff] %v3967_v2 }
  0xc0   : > { %v3971_v48 = vpop.f32.mrf.mxu1 }
  0xc1   : > { %3219 = vmatmul.msk.bf16.gmra.mxu3 %vm670_vm4, %v3965_v35  ;;  %v3975_v3 = vpop.f32.mrf.mxu2 }
  0xc5   : > { %v3981_v58 = vpop.f32.mrf.mxu0 }
  0xc6   : > { %3235 = vmatmul.msk.bf16.gmra.mxu0 %vm670_vm4, %v3683_v44  ;;  %v3985_v15 = vpop.f32.mrf.mxu3 }
  0xc7   : > { %4739 = vst [vmem:[#allocation20_spill] sm:$0xff] %v3985_v15  ;;  %3168 = vmatmul.msk.bf16.gmra.mxu1 %vm670_vm4, %v3965_v35  ;;  %v4034_v15 = vld [vmem:[%s3485_s27 + $0x60] sm:$0xff] }
  0xc8   : > { %v3992_v63 = vpop.f32.mrf.mxu1  ;;  %4745 = vst [vmem:[#allocation26_spill] sm:$0xff] %v4034_v15 }
  0xcc   : > { %v3994_v23 = vpop.f32.mrf.mxu2  ;;  %3200 = vmatmul.msk.bf16.gmra.mxu2 %vm670_vm4, %v3989_v54 }
  0xcf   : > { %v4003_v11 = vpop.f32.mrf.mxu0 }
  0xd0   : > { %v4005_v21 = vpop.f32.mrf.mxu3 }
  0xd1   : > { %4742 = vst [vmem:[#allocation23_spill] sm:$0xff] %v4005_v21  ;;  %3220 = vmatmul.msk.bf16.gmra.mxu3 %vm670_vm4, %v3999_v60  ;;  %v4021_v21 = vpack.c.b16 %v1178_v46, %v1177_v56 }
  0xd3   : > { %4743 = vst [vmem:[#allocation24_spill] sm:$0xff] %v4021_v21 }
  0xd4   : > { %v4013_v26 = vpop.f32.mrf.mxu1  ;;  %v4015_v1 = vpop.f32.mrf.mxu2 }
  0xd6   : > { %3236 = vmatmul.msk.bf16.gmra.mxu0 %vm670_vm4, %v3774_v42  ;;  %v3415_v42 = vld [vmem:[%s3485_s27 + $0x60] sm:$0xf] }
  0xd7   : > { %3169 = vmatmul.msk.bf16.gmra.mxu1 %vm670_vm4, %v3999_v60  ;;  %v4023_v24 = vpop.f32.mrf.mxu0  ;;  %v3186_v2 = vrot.slane %v3415_v42, 9  ;;  %v1111_v60 = vrot.slane %v1109_v5, 4 }
  0xd8   : > { %v4026_v7 = vpop.f32.mrf.mxu3 }
  0xd9   : > { %4744 = vst [vmem:[#allocation25_spill] sm:$0xff] %v4026_v7  ;;  %v1110_v19 = vsel %vm3815_vm7, %v3186_v2, %v1109_v5  ;;  %v1113_v46 = vsel %vm3815_vm7, %v1111_v60, %v1112_v13  ;;  %v1116_v60 = vrot.slane %v3571_v47, 5 }
  0xda   : > { %v1179_v17 = vunpack.c.l.b16 %v1110_v19  ;;  %v1180_v42 = vunpack.c.l.b16 %v1113_v46  ;;  %v4067_v19 = vld [vmem:[%s3485_s27 + $0x6c] sm:$0xff] }
  0xdc   : > { %3201 = vmatmul.msk.bf16.gmra.mxu2 %vm670_vm4, %v4021_v21  ;;  %v4030_v0 = vpop.f32.mrf.mxu1  ;;  %v4056_v2 = vpack.c.b16 %v1180_v42, %v1179_v17  ;;  %v1118_v17 = vrot.slane %v1116_v60, 4 }
  0xde   : > { %4747 = vst [vmem:[#allocation28_spill] sm:$0xff] %v4056_v2 }
  0xdf   : > { %v4037_v56 = vpop.f32.mrf.mxu2 }
  0xe1   : > { %3221 = vmatmul.msk.bf16.gmra.mxu3 %vm670_vm4, %v4034_v15 }
  0xe3   : > { %v4045_v7 = vpop.f32.mrf.mxu0 }
  0xe4   : > { %v4047_v32 = vpop.f32.mrf.mxu3  ;;  %v952_v21 = vpop.f32.mrf.mxu1 }
  0xe5   : > { %4746 = vst [vmem:[#allocation27_spill] sm:$0xff] %v4047_v32  ;;  %v953_v54 = vadd.f32 %v952_v21, %v3921_v10  ;;  %v1119_v21 = vrot.slane %v3578_v51, 5  ;;  %v3187_v32 = vrot.slane %v3564_v38, 9 }
  0xe6   : > { %3237 = vmatmul.msk.bf16.gmra.mxu0 %vm670_vm4, %v3543_v18 }
  0xe7   : > { %v4052_v44 = vpop.f32.mrf.mxu2  ;;  %3170 = vmatmul.msk.bf16.gmra.mxu1 %vm670_vm4, %v4034_v15  ;;  %v1117_v47 = vsel %vm3815_vm7, %v3187_v32, %v1116_v60 }
  0xe8   : > { %v1181_v61 = vunpack.c.l.b16 %v1117_v47 }
  0xeb   : > { %v4059_v5 = vpop.f32.mrf.mxu0 }
  0xec   : > { %v4061_v13 = vpop.f32.mrf.mxu3  ;;  %3202 = vmatmul.msk.bf16.gmra.mxu2 %vm670_vm4, %v4056_v2  ;;  %v954_v10 = vpop.f32.mrf.mxu1 }
  0xed   : > { %4748 = vst [vmem:[#allocation29_spill] sm:$0xff] %v4061_v13  ;;  %v955_v46 = vadd.f32 %v954_v10, %v3945_v31  ;;  %v1120_v13 = vsel %vm3815_vm7, %v1118_v17, %v1119_v21  ;;  %v1123_v21 = vrot.slane %v3643_v34, 5 }
  0xee   : > { %v1182_v35 = vunpack.c.l.b16 %v1120_v13  ;;  %v1126_v13 = vrot.slane %v3650_v50, 5 }
  0xef   : > { %v1271_v42 = vpop.f32.mrf.mxu2 }
  0xf0   : > { %v1351_v18 = vadd.f32 %v1271_v42, %v953_v54  ;;  %v4084_v10 = vpack.c.b16 %v1182_v35, %v1181_v61  ;;  %v4091_v42 = vld [vmem:[%s3485_s27 + $0x78] sm:$0xff] }
  0xf1   : > { %3222 = vmatmul.msk.bf16.gmra.mxu3 %vm670_vm4, %v4067_v19 }
  0xf3   : > { %v1557_v2 = vpop.f32.mrf.mxu0 }
  0xf4   : > { %v1403_v51 = vpop.f32.mrf.mxu3  ;;  %v957_v15 = vpop.f32.mrf.mxu1 }
  0xf5   : > { %v1483_v31 = vadd.f32 %v1403_v51, %v1351_v18  ;;  %v958_v38 = vadd.f32 %v957_v15, %v3960_v39 }
  0xf6   : > { %3238 = vmatmul.msk.bf16.gmra.mxu0 %vm670_vm4, %v3623_v4 }
  0xf7   : > { %v1273_v54 = vpop.f32.mrf.mxu2  ;;  %3171 = vmatmul.msk.bf16.gmra.mxu1 %vm670_vm4, %v4067_v19  ;;  %v4082_v32 = vadd.f32 %v1557_v2, %v1483_v31  ;;  %v3188_v2 = vrot.slane %v3639_v28, 9 }
  0xf8   : > { %v1352_v60 = vadd.f32 %v1273_v54, %v955_v46  ;;  %v1125_v46 = vrot.slane %v1123_v21, 4 }
  0xf9   : > { %v1124_v50 = vsel %vm3815_vm7, %v3188_v2, %v1123_v21 }
  0xfa   : > { %v1127_v51 = vsel %vm3815_vm7, %v1125_v46, %v1126_v13  ;;  %v1133_v46 = vrot.slane %v3738_v49, 5 }
  0xfb   : > { %v1559_v17 = vpop.f32.mrf.mxu0 }
  0xfc   : > { %v1405_v18 = vpop.f32.mrf.mxu3  ;;  %3203 = vmatmul.msk.bf16.gmra.mxu2 %vm670_vm4, %v4084_v10  ;;  %v959_v39 = vpop.f32.mrf.mxu1 }
  0xfd   : > { %v1484_v15 = vadd.f32 %v1405_v18, %v1352_v60  ;;  %v960_v47 = vadd.f32 %v959_v39, %v3981_v58  ;;  %v1183_v58 = vunpack.c.l.b16 %v1124_v50  ;;  %v1184_v18 = vunpack.c.l.b16 %v1127_v51  ;;  %v4117_v50 = vld [vmem:[%s3485_s27 + $0x84] sm:$0xff] }
  0xff   : > { %v1276_v61 = vpop.f32.mrf.mxu2  ;;  %v4095_v35 = vadd.f32 %v1559_v17, %v1484_v15  ;;  %v4110_v13 = vpack.c.b16 %v1184_v18, %v1183_v58  ;;  %v1130_v15 = vrot.slane %v3733_v30, 5 }
 0x100   : > { %v1353_v34 = vadd.f32 %v1276_v61, %v958_v38 }
 0x101   : > { %4749 = vst [vmem:[#allocation30_spill] sm:$0xff] %v4095_v35  ;;  %3223 = vmatmul.msk.bf16.gmra.mxu3 %vm670_vm4, %v4091_v42 }
 0x103   : > { %v1562_v31 = vpop.f32.mrf.mxu0 }
 0x104   : > { %v1408_v54 = vpop.f32.mrf.mxu3  ;;  %v962_v60 = vpop.f32.mrf.mxu1 }
 0x105   : > { %v1485_v28 = vadd.f32 %v1408_v54, %v1353_v34  ;;  %v963_v17 = vadd.f32 %v962_v60, %v4003_v11 }
 0x106   : > { %3239 = vmatmul.msk.bf16.gmra.mxu0 %vm670_vm4, %v3708_v25 }
 0x107   : > { %v1278_v38 = vpop.f32.mrf.mxu2  ;;  %3172 = vmatmul.msk.bf16.gmra.mxu1 %vm670_vm4, %v4091_v42  ;;  %v4108_v21 = vadd.f32 %v1562_v31, %v1485_v28  ;;  %v4750_v31 = vld [vmem:[#allocation9_spill] sm:$0xff] }
 0x108   : > { %v1354_v39 = vadd.f32 %v1278_v38, %v960_v47  ;;  %v3189_v54 = vrot.slane %v4750_v31, 9  ;;  %v1132_v47 = vrot.slane %v1130_v15, 4 }
 0x10a   : > { %v1131_v49 = vsel %vm3815_vm7, %v3189_v54, %v1130_v15  ;;  %v1134_v18 = vsel %vm3815_vm7, %v1132_v47, %v1133_v46  ;;  %v3416_v54 = vld [vmem:[%s3485_s27 + $0x94] sm:$0xf] }
 0x10b   : > { %v1564_v2 = vpop.f32.mrf.mxu0  ;;  %v1137_v47 = vrot.slane %v3416_v54, 5 }
 0x10c   : > { %v1410_v61 = vpop.f32.mrf.mxu3  ;;  %3204 = vmatmul.msk.bf16.gmra.mxu2 %vm670_vm4, %v4110_v13  ;;  %v964_v11 = vpop.f32.mrf.mxu1 }
 0x10d   : > { %v1486_v34 = vadd.f32 %v1410_v61, %v1354_v39  ;;  %v965_v51 = vadd.f32 %v964_v11, %v4023_v24  ;;  %v1185_v39 = vunpack.c.l.b16 %v1131_v49  ;;  %v1186_v61 = vunpack.c.l.b16 %v1134_v18 }
 0x10f   : > { %v1281_v60 = vpop.f32.mrf.mxu2  ;;  %v4121_v58 = vadd.f32 %v1564_v2, %v1486_v34  ;;  %v4136_v31 = vpack.c.b16 %v1186_v61, %v1185_v39 }
 0x110   : > { %v1355_v30 = vadd.f32 %v1281_v60, %v963_v17  ;;  %v4752_v17 = vld [vmem:[#allocation15_spill] sm:$0xff] }
 0x111   : > { %4751 = vst [vmem:[#allocation9_spill] sm:$0xff] %v4121_v58  ;;  %3224 = vmatmul.msk.bf16.gmra.mxu3 %vm670_vm4, %v4117_v50 }
 0x112   : > { %4754 = vst [vmem:[#allocation31_spill] sm:$0xff] %v4136_v31 }
 0x113   : > { %v1567_v28 = vpop.f32.mrf.mxu0 }
 0x114   : > { %v1413_v24 = vpop.f32.mrf.mxu3  ;;  %v967_v38 = vpop.f32.mrf.mxu1 }
 0x115   : > { %v1487_v11 = vadd.f32 %v1413_v24, %v1355_v30  ;;  %v968_v2 = vadd.f32 %v967_v38, %v4045_v7  ;;  %v3417_v30 = vld [vmem:[%s3485_s27 + $0x98] sm:$0x1]  ;;  %v4143_v38 = vld [vmem:[%s3485_s27 + $0x90] sm:$0xff] }
 0x116   : > { %3240 = vmatmul.msk.bf16.gmra.mxu0 %vm670_vm4, %v4752_v17  ;;  %v1140_v49 = vrot.slane %v3417_v30, 5  ;;  %4755 = vst [vmem:[#allocation32_spill] sm:$0xff] %v4143_v38 }
 0x117   : > { %v1283_v34 = vpop.f32.mrf.mxu2  ;;  %3173 = vmatmul.msk.bf16.gmra.mxu1 %vm670_vm4, %v4117_v50  ;;  %v4134_v15 = vadd.f32 %v1567_v28, %v1487_v11  ;;  %v3418_v28 = vld [vmem:[%s3485_s27 + $0x90] sm:$0xf] }
 0x118   : > { %v1356_v46 = vadd.f32 %v1283_v34, %v965_v51  ;;  %v3190_v11 = vrot.slane %v3418_v28, 9  ;;  %v1139_v51 = vrot.slane %v1137_v47, 4 }
 0x119   : > { %4753 = vst [vmem:[#allocation15_spill] sm:$0xff] %v4134_v15 }
 0x11a   : > { %v1138_v54 = vsel %vm3815_vm7, %v3190_v11, %v1137_v47  ;;  %v3419_v11 = vld [vmem:[%s3485_s27 + $0xa0] sm:$0xf] }
 0x11b   : > { %v1569_v60 = vpop.f32.mrf.mxu0 }
 0x11c   : > { %v1415_v7 = vpop.f32.mrf.mxu3  ;;  %3205 = vmatmul.msk.bf16.gmra.mxu2 %vm670_vm4, %v4136_v31  ;;  %v969_v18 = vpop.f32.mrf.mxu1  ;;  %v3421_v31 = vld [vmem:[%s3485_s27 + $0x9c] sm:$0xf] }
 0x11d   : > { %v1488_v24 = vadd.f32 %v1415_v7, %v1356_v46  ;;  %v970_v58 = vadd.f32 %v969_v18, %v4059_v5  ;;  %v1141_v46 = vsel %vm3815_vm7, %v1139_v51, %v1140_v49  ;;  %v1187_v18 = vunpack.c.l.b16 %v1138_v54 }
 0x11e   : > { %v1188_v28 = vunpack.c.l.b16 %v1141_v46  ;;  %v1144_v51 = vrot.slane %v3419_v11, 5  ;;  %v3420_v46 = vld [vmem:[%s3485_s27 + $0xa4] sm:$0x1] }
 0x11f   : > { %v1286_v39 = vpop.f32.mrf.mxu2  ;;  %v4147_v61 = vadd.f32 %v1569_v60, %v1488_v24  ;;  %v4757_v60 = vld [vmem:[#allocation3_spill] sm:$0xff] }
 0x120   : > { %v1357_v34 = vadd.f32 %v1286_v39, %v968_v2  ;;  %v4161_v49 = vpack.c.b16 %v1188_v28, %v1187_v18 }
 0x121   : > { %4756 = vst [vmem:[#allocation33_spill] sm:$0xff] %v4147_v61  ;;  %3225 = vmatmul.msk.bf16.gmra.mxu3 %vm670_vm4, %v4143_v38 }
 0x122   : > { %4759 = vst [vmem:[#allocation35_spill] sm:$0xff] %v4161_v49 }
 0x123   : > { %v1572_v30 = vpop.f32.mrf.mxu0 }
 0x124   : > { %v1418_v7 = vpop.f32.mrf.mxu3  ;;  %v972_v5 = vpop.f32.mrf.mxu1 }
 0x125   : > { %v1489_v15 = vadd.f32 %v1418_v7, %v1357_v34  ;;  %v1147_v7 = vrot.slane %v3420_v46, 5 }
 0x126   : > { %3241 = vmatmul.msk.bf16.gmra.mxu0 %vm670_vm4, %v4757_v60  ;;  %v4168_v60 = vld [vmem:[%s3485_s27 + $0x9c] sm:$0xff] }
 0x127   : > { %v1288_v2 = vpop.f32.mrf.mxu2  ;;  %3174 = vmatmul.msk.bf16.gmra.mxu1 %vm670_vm4, %v4143_v38  ;;  %v4159_v47 = vadd.f32 %v1572_v30, %v1489_v15  ;;  %4760 = vst [vmem:[#allocation36_spill] sm:$0xff] %v4168_v60  ;;  %v3191_v38 = vrot.slane %v3421_v31, 9  ;;  %v1146_v15 = vrot.slane %v1144_v51, 4 }
 0x128   : > { %v1358_v24 = vadd.f32 %v1288_v2, %v970_v58  ;;  %v973_v58 = vadd.f32 %v972_v5, %v3898_v22  ;;  %v4762_v5 = vld [vmem:[#allocation4_spill] sm:$0xff] }
 0x129   : > { %4758 = vst [vmem:[#allocation34_spill] sm:$0xff] %v4159_v47  ;;  %v1145_v2 = vsel %vm3815_vm7, %v3191_v38, %v1144_v51 }
 0x12a   : > { %v1189_v31 = vunpack.c.l.b16 %v1145_v2 }
 0x12b   : > { %v1574_v39 = vpop.f32.mrf.mxu0 }
 0x12c   : > { %v1420_v54 = vpop.f32.mrf.mxu3  ;;  %3206 = vmatmul.msk.bf16.gmra.mxu2 %vm670_vm4, %v4161_v49  ;;  %v974_v34 = vpop.f32.mrf.mxu1 }
 0x12d   : > { %v1490_v61 = vadd.f32 %v1420_v54, %v1358_v24  ;;  %v1148_v24 = vsel %vm3815_vm7, %v1146_v15, %v1147_v7  ;;  %v4765_v15 = vld [vmem:[#allocation6_spill] sm:$0xff] }
 0x12e   : > { %v1190_v47 = vunpack.c.l.b16 %v1148_v24  ;;  %v4766_v24 = vld [vmem:[#allocation7_spill] sm:$0xff] }
 0x12f   : > { %v1291_v30 = vpop.f32.mrf.mxu2  ;;  %v4172_v18 = vadd.f32 %v1574_v39, %v1490_v61  ;;  %v975_v61 = vadd.f32 %v974_v34, %v3913_v43  ;;  %v4194_v34 = vld [vmem:[%s3485_s27 + $0xa8] sm:$0xff] }
 0x130   : > { %v1359_v28 = vadd.f32 %v1291_v30, %v973_v58  ;;  %v4187_v7 = vpack.c.b16 %v1190_v47, %v1189_v31  ;;  %v1151_v58 = vrot.slane %v4765_v15, 5  ;;  %4767 = vst [vmem:[#allocation6_spill] sm:$0xff] %v4194_v34 }
 0x131   : > { %4761 = vst [vmem:[#allocation37_spill] sm:$0xff] %v4172_v18  ;;  %3226 = vmatmul.msk.bf16.gmra.mxu3 %vm670_vm4, %v4168_v60  ;;  %v4768_v18 = vld [vmem:[#allocation5_spill] sm:$0xff] }
 0x132   : > { %4764 = vst [vmem:[#allocation39_spill] sm:$0xff] %v4187_v7 }
 0x133   : > { %v1577_v11 = vpop.f32.mrf.mxu0 }
 0x134   : > { %v1423_v54 = vpop.f32.mrf.mxu3  ;;  %v977_v46 = vpop.f32.mrf.mxu1 }
 0x135   : > { %v1491_v22 = vadd.f32 %v1423_v54, %v1359_v28  ;;  %v1154_v54 = vrot.slane %v4766_v24, 5 }
 0x136   : > { %3242 = vmatmul.msk.bf16.gmra.mxu0 %vm670_vm4, %v4762_v5  ;;  %v3192_v5 = vrot.slane %v4768_v18, 9 }
 0x137   : > { %v1293_v39 = vpop.f32.mrf.mxu2  ;;  %3175 = vmatmul.msk.bf16.gmra.mxu1 %vm670_vm4, %v4168_v60  ;;  %v4185_v38 = vadd.f32 %v1577_v11, %v1491_v22  ;;  %v1153_v11 = vrot.slane %v1151_v58, 4  ;;  %v978_v22 = vadd.f32 %v977_v46, %v3933_v9 }
 0x138   : > { %v1360_v51 = vadd.f32 %v1293_v39, %v975_v61  ;;  %v1152_v39 = vsel %vm3815_vm7, %v3192_v5, %v1151_v58  ;;  %v4212_v5 = vld [vmem:[%s3485_s27 + $0xc0] sm:$0xf] }
 0x139   : > { %4763 = vst [vmem:[#allocation38_spill] sm:$0xff] %v4185_v38  ;;  %v1191_v24 = vunpack.c.l.b16 %v1152_v39  ;;  %v4770_v38 = vld [vmem:[#allocation10_spill] sm:$0xff]  ;;  %v1516_v39 = vshrl.u32 %v4212_v5, 16 }
 0x13a   : > { %4771 = vst [vmem:[#allocation5_spill] sm:$0xff] %v4212_v5 }
 0x13b   : > { %v1579_v30 = vpop.f32.mrf.mxu0 }
 0x13c   : > { %v1425_v2 = vpop.f32.mrf.mxu3  ;;  %3207 = vmatmul.msk.bf16.gmra.mxu2 %vm670_vm4, %v4187_v7  ;;  %v979_v28 = vpop.f32.mrf.mxu1 }
 0x13d   : > { %v1492_v43 = vadd.f32 %v1425_v2, %v1360_v51  ;;  %v1155_v51 = vsel %vm3815_vm7, %v1153_v11, %v1154_v54 }
 0x13e   : > { %v1192_v9 = vunpack.c.l.b16 %v1155_v51 }
 0x13f   : > { %v1296_v47 = vpop.f32.mrf.mxu2  ;;  %v4198_v31 = vadd.f32 %v1579_v30, %v1492_v43  ;;  %v980_v30 = vadd.f32 %v979_v28, %v3951_v29  ;;  %v1519_v29 = vshll.u32 %v4212_v5, 16 }
 0x140   : > { %v1361_v61 = vadd.f32 %v1296_v47, %v978_v22  ;;  %v4216_v11 = vpack.c.b16 %v1192_v9, %v1191_v24  ;;  %v4219_v22 = vld [vmem:[%s3485_s27 + $0xc4] sm:$0xf]  ;;  %v4775_v47 = vld [vmem:[#allocation12_spill] sm:$0xff]  ;;  %v4776_v24 = vld [vmem:[#allocation13_spill] sm:$0xff] }
 0x141   : > { %4769 = vst [vmem:[#allocation7_spill] sm:$0xff] %v4198_v31  ;;  %3227 = vmatmul.msk.bf16.gmra.mxu3 %vm670_vm4, %v4194_v34  ;;  %v1525_v28 = vshll.u32 %v4219_v22, 16  ;;  %v1161_v9 = vrot.slane %v4776_v24, 5  ;;  %v1521_v7 = vrot.slane %v1519_v29, 5 }
 0x142   : > { %4773 = vst [vmem:[#allocation41_spill] sm:$0xff] %v4216_v11 }
 0x143   : > { %v1582_v15 = vpop.f32.mrf.mxu0  ;;  %4774 = vst [vmem:[#allocation42_spill] sm:$0xff] %v4219_v22 }
 0x144   : > { %v1428_v18 = vpop.f32.mrf.mxu3  ;;  %v982_v2 = vpop.f32.mrf.mxu1 }
 0x145   : > { %v1493_v46 = vadd.f32 %v1428_v18, %v1361_v61  ;;  %v1158_v61 = vrot.slane %v4775_v47, 5  ;;  %v1529_v18 = vshrl.u32 %v4219_v22, 16  ;;  %v983_v5 = vadd.f32 %v982_v2, %v3971_v48 }
 0x146   : > { %3243 = vmatmul.msk.bf16.gmra.mxu0 %vm670_vm4, %v4770_v38  ;;  %v1518_v38 = vrot.slane %v1516_v39, 4  ;;  %v1527_v22 = vrot.slane %v1525_v28, 5 }
 0x147   : > { %v1298_v43 = vpop.f32.mrf.mxu2  ;;  %3176 = vmatmul.msk.bf16.gmra.mxu1 %vm670_vm4, %v4194_v34  ;;  %v4214_v58 = vadd.f32 %v1582_v15, %v1493_v46  ;;  %v1531_v60 = vrot.slane %v1529_v18, 4 }
 0x148   : > { %v1362_v54 = vadd.f32 %v1298_v43, %v980_v30  ;;  %v4230_v30 = vld [vmem:[%s3485_s27 + $0xb4] sm:$0xff]  ;;  %v4777_v43 = vld [vmem:[#allocation11_spill] sm:$0xff]  ;;  %v1522_v2 = vor.u32 %v1521_v7, %v1518_v38 }
 0x149   : > { %4772 = vst [vmem:[#allocation40_spill] sm:$0xff] %v4214_v58  ;;  %v3193_v47 = vrot.slane %v4777_v43, 9  ;;  %v1160_v58 = vrot.slane %v1158_v61, 4  ;;  %v1532_v39 = vor.u32 %v1531_v60, %v1527_v22 }
 0x14b   : > { %v1584_v51 = vpop.f32.mrf.mxu0  ;;  %v1533_v38 = vrot.slane %v1532_v39, 4 }
 0x14c   : > { %v1430_v31 = vpop.f32.mrf.mxu3  ;;  %3208 = vmatmul.msk.bf16.gmra.mxu2 %vm670_vm4, %v4216_v11  ;;  %v984_v15 = vpop.f32.mrf.mxu1  ;;  %v4237_v11 = vld [vmem:[%s3485_s27 + $0xc8] sm:$0x1] }
 0x14d   : > { %v1494_v46 = vadd.f32 %v1430_v31, %v1362_v54  ;;  %v1159_v31 = vsel %vm3815_vm7, %v3193_v47, %v1158_v61  ;;  %v1162_v54 = vsel %vm3815_vm7, %v1160_v58, %v1161_v9  ;;  %v1535_v29 = vshll.u32 %v4237_v11, 16 }
 0x14e   : > { %v1193_v18 = vunpack.c.l.b16 %v1159_v31  ;;  %v985_v24 = vadd.f32 %v984_v15, %v3992_v63  ;;  %v1523_v58 = vrot.slane %v1522_v2, 4 }
 0x14f   : > { %v1301_v34 = vpop.f32.mrf.mxu2  ;;  %v4234_v49 = vadd.f32 %v1584_v51, %v1494_v46  ;;  %v1537_v60 = vrot.slane %v1535_v29, 5 }
 0x150   : > { %v1363_v35 = vadd.f32 %v1301_v34, %v983_v5  ;;  %v1194_v34 = vunpack.c.l.b16 %v1162_v54  ;;  %v4262_v54 = vld [vmem:[%s3485_s27 + $0xc0] sm:$0xff] }
 0x151   : > { %3228 = vmatmul.msk.bf16.gmra.mxu3 %vm670_vm4, %v4230_v30  ;;  %v1538_v63 = vsel %vm3512_vm3, %v1533_v38, %v1537_v60 }
 0x152   : > { %v4253_v46 = vpack.c.b16 %v1194_v34, %v1193_v18  ;;  %v1540_v39 = vunpack.c.l.b16 %v1538_v63 }
 0x153   : > { %v1587_v48 = vpop.f32.mrf.mxu0 }
 0x154   : > { %v1433_v28 = vpop.f32.mrf.mxu3  ;;  %v987_v51 = vpop.f32.mrf.mxu1 }
 0x155   : > { %v1495_v5 = vadd.f32 %v1433_v28, %v1363_v35  ;;  %v1528_v35 = vsel %vm3512_vm3, %v1523_v58, %v1527_v22 }
 0x156   : > { %3244 = vmatmul.msk.bf16.gmra.mxu0 %vm670_vm4, %v3824_v53  ;;  %v1539_v2 = vunpack.c.l.b16 %v1528_v35 }
 0x157   : > { %v1303_v61 = vpop.f32.mrf.mxu2  ;;  %3177 = vmatmul.msk.bf16.gmra.mxu1 %vm670_vm4, %v4230_v30  ;;  %v4251_v7 = vadd.f32 %v1587_v48, %v1495_v5  ;;  %v988_v48 = vadd.f32 %v987_v51, %v4013_v26 }
 0x158   : > { %v1364_v9 = vadd.f32 %v1303_v61, %v985_v24  ;;  %v4269_v22 = vpack.c.b16 %v1540_v39, %v1539_v2 }
 0x15b   : > { %v1589_v43 = vpop.f32.mrf.mxu0 }
 0x15c   : > { %v1435_v15 = vpop.f32.mrf.mxu3  ;;  %3209 = vmatmul.msk.bf16.gmra.mxu2 %vm670_vm4, %v4253_v46  ;;  %v989_v47 = vpop.f32.mrf.mxu1 }
 0x15d   : > { %v1496_v31 = vadd.f32 %v1435_v15, %v1364_v9  ;;  %v990_v26 = vadd.f32 %v989_v47, %v4030_v0 }
 0x15f   : > { %v1306_v29 = vpop.f32.mrf.mxu2  ;;  %v4265_v28 = vadd.f32 %v1589_v43, %v1496_v31 }
 0x160   : > { %v1365_v18 = vadd.f32 %v1306_v29, %v988_v48 }
 0x161   : > { %3229 = vmatmul.msk.bf16.gmra.mxu3 %vm670_vm4, %v4262_v54 }
 0x163   : > { %v1592_v34 = vpop.f32.mrf.mxu0 }
 0x164   : > { %v1438_v5 = vpop.f32.mrf.mxu3  ;;  %v992_v24 = vpop.f32.mrf.mxu1 }
 0x165   : > { %v1497_v61 = vadd.f32 %v1438_v5, %v1365_v18  ;;  %v993_v63 = vadd.f32 %v992_v24, %v3915_v16 }
 0x166   : > { %3245 = vmatmul.msk.bf16.gmra.mxu0 %vm670_vm4, %v4269_v22 }
 0x167   : > { %v1308_v51 = vpop.f32.mrf.mxu2  ;;  %3247 = vmatmul.msk.bf16.vlgmr.msra.gmra.mxu1 %vm670_vm4, %v3849_v55  ;;  %v4276_v58 = vadd.f32 %v1592_v34, %v1497_v61 }
 0x168   : > { %v1366_v38 = vadd.f32 %v1308_v51, %v990_v26 }
 0x16b   : > { %v1594_v60 = vpop.f32.mrf.mxu0 }
 0x16c   : > { %v1440_v9 = vpop.f32.mrf.mxu3  ;;  %3267 = vmatmul.msk.bf16.vlgmr.msra.gmra.mxu2 %vm670_vm4, %v3861_v6  ;;  %v994_v43 = vpop.f32.mrf.mxu1 }
 0x16d   : > { %v1498_v35 = vadd.f32 %v1440_v9, %v1366_v38  ;;  %v995_v6 = vadd.f32 %v994_v43, %v3937_v57 }
 0x16f   : > { %v1311_v15 = vpop.f32.mrf.mxu2  ;;  %v4281_v31 = vadd.f32 %v1594_v60, %v1498_v35 }
 0x170   : > { %v1367_v0 = vadd.f32 %v1311_v15, %v993_v63 }
 0x171   : > { %3283 = vmatmul.msk.bf16.vlgmr.msra.gmra.mxu3 %vm670_vm4, %v3752_v45 }
 0x173   : > { %v1597_v55 = vpop.f32.mrf.mxu0 }
 0x174   : > { %v1443_v47 = vpop.f32.mrf.mxu3  ;;  %v997_v48 = vpop.f32.mrf.mxu1 }
 0x175   : > { %v1499_v2 = vadd.f32 %v1443_v47, %v1367_v0  ;;  %v998_v24 = vadd.f32 %v997_v48, %v3957_v59 }
 0x176   : > { %3300 = vmatmul.msk.bf16.vlgmr.msra.gmra.mxu0 %vm670_vm4, %v3875_v52 }
 0x177   : > { %v1313_v39 = vpop.f32.mrf.mxu2  ;;  %3248 = vmatmul.msk.bf16.gmra.mxu1 %vm670_vm4, %v3875_v52  ;;  %v4290_v16 = vadd.f32 %v1597_v55, %v1499_v2 }
 0x178   : > { %v1368_v29 = vadd.f32 %v1313_v39, %v995_v6 }
 0x17b   : > { %v1599_v18 = vpop.f32.mrf.mxu0 }
 0x17c   : > { %v1445_v34 = vpop.f32.mrf.mxu3  ;;  %3268 = vmatmul.msk.bf16.gmra.mxu2 %vm670_vm4, %v3881_v41  ;;  %v999_v45 = vpop.f32.mrf.mxu1 }
 0x17d   : > { %v1500_v5 = vadd.f32 %v1445_v34, %v1368_v29  ;;  %v1000_v41 = vadd.f32 %v999_v45, %v3975_v3 }
 0x17f   : > { %v1316_v61 = vpop.f32.mrf.mxu2  ;;  %v4295_v26 = vadd.f32 %v1599_v18, %v1500_v5 }
 0x180   : > { %v1369_v57 = vadd.f32 %v1316_v61, %v998_v24 }
 0x181   : > { %3284 = vmatmul.msk.bf16.gmra.mxu3 %vm670_vm4, %v3842_v20 }
 0x183   : > { %v1602_v52 = vpop.f32.mrf.mxu0 }
 0x184   : > { %v1448_v51 = vpop.f32.mrf.mxu3  ;;  %v1002_v38 = vpop.f32.mrf.mxu1 }
 0x185   : > { %v1501_v60 = vadd.f32 %v1448_v51, %v1369_v57  ;;  %v1003_v0 = vadd.f32 %v1002_v38, %v3994_v23 }
 0x186   : > { %3301 = vmatmul.msk.bf16.gmra.mxu0 %vm670_vm4, %v3895_v40 }
 0x187   : > { %v1318_v9 = vpop.f32.mrf.mxu2  ;;  %3249 = vmatmul.msk.bf16.gmra.mxu1 %vm670_vm4, %v3895_v40  ;;  %v4304_v59 = vadd.f32 %v1602_v52, %v1501_v60 }
 0x188   : > { %v1370_v43 = vadd.f32 %v1318_v9, %v1000_v41 }
 0x18b   : > { %v1604_v35 = vpop.f32.mrf.mxu0 }
 0x18c   : > { %v1450_v63 = vpop.f32.mrf.mxu3  ;;  %3269 = vmatmul.msk.bf16.gmra.mxu2 %vm670_vm4, %v3903_v8  ;;  %v1004_v20 = vpop.f32.mrf.mxu1 }
 0x18d   : > { %v1502_v15 = vadd.f32 %v1450_v63, %v1370_v43  ;;  %v1005_v8 = vadd.f32 %v1004_v20, %v4015_v1  ;;  %v4778_v43 = vld [vmem:[#allocation18_spill] sm:$0xff]  ;;  %v4779_v63 = vld [vmem:[#allocation16_spill] sm:$0xff] }
 0x18f   : > { %v1321_v55 = vpop.f32.mrf.mxu2  ;;  %v4309_v47 = vadd.f32 %v1604_v35, %v1502_v15 }
 0x190   : > { %v1371_v3 = vadd.f32 %v1321_v55, %v1003_v0  ;;  %v4780_v55 = vld [vmem:[#allocation8_spill] sm:$0xff] }
 0x191   : > { %3285 = vmatmul.msk.bf16.gmra.mxu3 %vm670_vm4, %v3524_v62 }
 0x193   : > { %v1607_v40 = vpop.f32.mrf.mxu0 }
 0x194   : > { %v1453_v48 = vpop.f32.mrf.mxu3  ;;  %v1007_v2 = vpop.f32.mrf.mxu1 }
 0x195   : > { %v1503_v6 = vadd.f32 %v1453_v48, %v1371_v3  ;;  %v1008_v5 = vadd.f32 %v1007_v2, %v4037_v56  ;;  %v4781_v2 = vld [vmem:[#allocation21_spill] sm:$0xff] }
 0x196   : > { %3302 = vmatmul.msk.bf16.gmra.mxu0 %vm670_vm4, %v3923_v12 }
 0x197   : > { %v1323_v39 = vpop.f32.mrf.mxu2  ;;  %3250 = vmatmul.msk.bf16.gmra.mxu1 %vm670_vm4, %v3923_v12  ;;  %v4318_v23 = vadd.f32 %v1607_v40, %v1503_v6  ;;  %v4782_v6 = vld [vmem:[#allocation17_spill] sm:$0xff] }
 0x198   : > { %v1372_v29 = vadd.f32 %v1323_v39, %v1005_v8 }
 0x19b   : > { %v1609_v18 = vpop.f32.mrf.mxu0 }
 0x19c   : > { %v1455_v34 = vpop.f32.mrf.mxu3  ;;  %3270 = vmatmul.msk.bf16.gmra.mxu2 %vm670_vm4, %v3931_v27  ;;  %v1009_v62 = vpop.f32.mrf.mxu1 }
 0x19d   : > { %v1504_v45 = vadd.f32 %v1455_v34, %v1372_v29  ;;  %v1010_v27 = vadd.f32 %v1009_v62, %v4052_v44 }
 0x19f   : > { %v1326_v24 = vpop.f32.mrf.mxu2  ;;  %v4323_v61 = vadd.f32 %v1609_v18, %v1504_v45  ;;  %v4783_v45 = vld [vmem:[#allocation22_spill] sm:$0xff] }
 0x1a0   : > { %v1373_v1 = vadd.f32 %v1326_v24, %v1008_v5 }
 0x1a1   : > { %3286 = vmatmul.msk.bf16.gmra.mxu3 %vm670_vm4, %v3598_v37 }
 0x1a3   : > { %v1612_v12 = vpop.f32.mrf.mxu0 }
 0x1a4   : > { %v1458_v57 = vpop.f32.mrf.mxu3  ;;  %v1012_v52 = vpop.f32.mrf.mxu1 }
 0x1a5   : > { %v1505_v51 = vadd.f32 %v1458_v57, %v1373_v1  ;;  %v1013_v20 = vadd.f32 %v1012_v52, %v4779_v63  ;;  %v4784_v1 = vld [vmem:[#allocation19_spill] sm:$0xff] }
 0x1a6   : > { %3303 = vmatmul.msk.bf16.gmra.mxu0 %vm670_vm4, %v3955_v33 }
 0x1a7   : > { %v1328_v38 = vpop.f32.mrf.mxu2  ;;  %3251 = vmatmul.msk.bf16.gmra.mxu1 %vm670_vm4, %v3955_v33  ;;  %v4332_v56 = vadd.f32 %v1612_v12, %v1505_v51 }
 0x1a8   : > { %v1374_v60 = vadd.f32 %v1328_v38, %v1010_v27  ;;  %v4785_v27 = vld [vmem:[#allocation14_spill] sm:$0xff] }
 0x1ab   : > { %v1614_v41 = vpop.f32.mrf.mxu0 }
 0x1ac   : > { %v1460_v9 = vpop.f32.mrf.mxu3  ;;  %3271 = vmatmul.msk.bf16.gmra.mxu2 %vm670_vm4, %v4778_v43  ;;  %v1014_v37 = vpop.f32.mrf.mxu1  ;;  %v4786_v43 = vld [vmem:[#allocation24_spill] sm:$0xff] }
 0x1ad   : > { %v1506_v35 = vadd.f32 %v1460_v9, %v1374_v60  ;;  %v1015_v8 = vadd.f32 %v1014_v37, %v4782_v6  ;;  %v4787_v37 = vld [vmem:[#allocation20_spill] sm:$0xff] }
 0x1af   : > { %v1331_v15 = vpop.f32.mrf.mxu2  ;;  %v4337_v0 = vadd.f32 %v1614_v41, %v1506_v35 }
 0x1b0   : > { %v1375_v44 = vadd.f32 %v1331_v15, %v1013_v20 }
 0x1b1   : > { %3287 = vmatmul.msk.bf16.gmra.mxu3 %vm670_vm4, %v4780_v55 }
 0x1b3   : > { %v1617_v33 = vpop.f32.mrf.mxu0 }
 0x1b4   : > { %v1463_v3 = vpop.f32.mrf.mxu3  ;;  %v1017_v40 = vpop.f32.mrf.mxu1 }
 0x1b5   : > { %v1507_v48 = vadd.f32 %v1463_v3, %v1375_v44  ;;  %v1018_v12 = vadd.f32 %v1017_v40, %v4784_v1  ;;  %v4792_v1 = vld [vmem:[#allocation25_spill] sm:$0xff] }
 0x1b6   : > { %3304 = vmatmul.msk.bf16.gmra.mxu0 %vm670_vm4, %v4781_v2 }
 0x1b7   : > { %v1333_v39 = vpop.f32.mrf.mxu2  ;;  %3252 = vmatmul.msk.bf16.gmra.mxu1 %vm670_vm4, %v4781_v2  ;;  %v4346_v29 = vadd.f32 %v1617_v33, %v1507_v48  ;;  %v4788_v33 = vld [vmem:[#allocation26_spill] sm:$0xff]  ;;  %v4789_v48 = vld [vmem:[#allocation23_spill] sm:$0xff] }
 0x1b8   : > { %v1376_v18 = vadd.f32 %v1333_v39, %v1015_v8 }
 0x1bb   : > { %v1619_v34 = vpop.f32.mrf.mxu0 }
 0x1bc   : > { %v1465_v62 = vpop.f32.mrf.mxu3  ;;  %3272 = vmatmul.msk.bf16.gmra.mxu2 %vm670_vm4, %v4783_v45  ;;  %v1019_v5 = vpop.f32.mrf.mxu1 }
 0x1bd   : > { %v1508_v24 = vadd.f32 %v1465_v62, %v1376_v18  ;;  %v1020_v35 = vadd.f32 %v1019_v5, %v4787_v37  ;;  %v4790_v18 = vld [vmem:[#allocation2_spill] sm:$0xff] }
 0x1bf   : > { %v1336_v57 = vpop.f32.mrf.mxu2  ;;  %v4351_v52 = vadd.f32 %v1619_v34, %v1508_v24  ;;  %v4791_v24 = vld [vmem:[#allocation28_spill] sm:$0xff] }
 0x1c0   : > { %v1377_v51 = vadd.f32 %v1336_v57, %v1018_v12 }
 0x1c1   : > { %3288 = vmatmul.msk.bf16.gmra.mxu3 %vm670_vm4, %v4785_v27 }
 0x1c3   : > { %v1622_v38 = vpop.f32.mrf.mxu0 }
 0x1c4   : > { %v1468_v60 = vpop.f32.mrf.mxu3  ;;  %v1022_v41 = vpop.f32.mrf.mxu1 }
 0x1c5   : > { %v1509_v9 = vadd.f32 %v1468_v60, %v1377_v51  ;;  %v1023_v2 = vadd.f32 %v1022_v41, %v4789_v48 }
 0x1c6   : > { %3305 = vmatmul.msk.bf16.gmra.mxu0 %vm670_vm4, %v4786_v43 }
 0x1c7   : > { %v1338_v63 = vpop.f32.mrf.mxu2  ;;  %3253 = vmatmul.msk.bf16.gmra.mxu1 %vm670_vm4, %v4786_v43  ;;  %v4360_v20 = vadd.f32 %v1622_v38, %v1509_v9  ;;  %v4793_v43 = vld [vmem:[#allocation27_spill] sm:$0xff] }
 0x1c8   : > { %v1378_v15 = vadd.f32 %v1338_v63, %v1020_v35 }
 0x1cb   : > { %v1624_v44 = vpop.f32.mrf.mxu0 }
 0x1cc   : > { %v1470_v55 = vpop.f32.mrf.mxu3  ;;  %3273 = vmatmul.msk.bf16.gmra.mxu2 %vm670_vm4, %v4788_v33  ;;  %v1024_v3 = vpop.f32.mrf.mxu1 }
 0x1cd   : > { %v1510_v40 = vadd.f32 %v1470_v55, %v1378_v15  ;;  %v1025_v12 = vadd.f32 %v1024_v3, %v4792_v1 }
 0x1cf   : > { %v1341_v6 = vpop.f32.mrf.mxu2  ;;  %v4365_v8 = vadd.f32 %v1624_v44, %v1510_v40  ;;  %v4794_v40 = vld [vmem:[#allocation29_spill] sm:$0xff] }
 0x1d0   : > { %v1379_v39 = vadd.f32 %v1341_v6, %v1023_v2 }
 0x1d1   : > { %3289 = vmatmul.msk.bf16.gmra.mxu3 %vm670_vm4, %v4790_v18 }
 0x1d3   : > { %v1627_v34 = vpop.f32.mrf.mxu0 }
 0x1d4   : > { %v1473_v62 = vpop.f32.mrf.mxu3  ;;  %v1027_v45 = vpop.f32.mrf.mxu1 }
 0x1d5   : > { %v1511_v5 = vadd.f32 %v1473_v62, %v1379_v39  ;;  %v1028_v37 = vadd.f32 %v1027_v45, %v4793_v43  ;;  %v4795_v43 = vld [vmem:[#allocation30_spill] sm:$0xff] }
 0x1d6   : > { %3306 = vmatmul.msk.bf16.gmra.mxu0 %vm670_vm4, %v4791_v24 }
 0x1d7   : > { %v1343_v57 = vpop.f32.mrf.mxu2  ;;  %3254 = vmatmul.msk.bf16.gmra.mxu1 %vm670_vm4, %v4791_v24  ;;  %v4374_v51 = vadd.f32 %v1627_v34, %v1511_v5 }
 0x1d8   : > { %v1380_v27 = vadd.f32 %v1343_v57, %v1025_v12 }
 0x1db   : > { %v1629_v38 = vpop.f32.mrf.mxu0 }
 0x1dc   : > { %v1475_v60 = vpop.f32.mrf.mxu3  ;;  %3274 = vmatmul.msk.bf16.gmra.mxu2 %vm670_vm4, %v4067_v19  ;;  %v1029_v41 = vpop.f32.mrf.mxu1 }
 0x1dd   : > { %v1512_v9 = vadd.f32 %v1475_v60, %v1380_v27  ;;  %v1030_v19 = vadd.f32 %v1029_v41, %v4794_v40 }
 0x1df   : > { %v1346_v35 = vpop.f32.mrf.mxu2  ;;  %v4379_v63 = vadd.f32 %v1629_v38, %v1512_v9 }
 0x1e0   : > { %v1381_v15 = vadd.f32 %v1346_v35, %v1028_v37 }
 0x1e1   : > { %3290 = vmatmul.msk.bf16.gmra.mxu3 %vm670_vm4, %v3623_v4 }
 0x1e3   : > { %v1632_v44 = vpop.f32.mrf.mxu0 }
 0x1e4   : > { %v1478_v55 = vpop.f32.mrf.mxu3  ;;  %v1695_v33 = vpop.f32.mrf.mxu1 }
 0x1e5   : > { %v1513_v3 = vadd.f32 %v1478_v55, %v1381_v15 }
 0x1e6   : > { %3307 = vmatmul.msk.bf16.gmra.mxu0 %vm670_vm4, %v4084_v10 }
 0x1e7   : > { %v1348_v48 = vpop.f32.mrf.mxu2  ;;  %3255 = vmatmul.msk.bf16.gmra.mxu1 %vm670_vm4, %v4084_v10  ;;  %v4388_v2 = vadd.f32 %v1632_v44, %v1513_v3  ;;  %v4797_v3 = vld [vmem:[#allocation9_spill] sm:$0xff] }
 0x1e8   : > { %v1382_v6 = vadd.f32 %v1348_v48, %v1030_v19 }
 0x1eb   : > { %v1634_v39 = vpop.f32.mrf.mxu0 }
 0x1ec   : > { %v1480_v18 = vpop.f32.mrf.mxu3  ;;  %3275 = vmatmul.msk.bf16.gmra.mxu2 %vm670_vm4, %v4091_v42  ;;  %v1697_v4 = vpop.f32.mrf.mxu1  ;;  %v1775_v42 = vadd.f32 %v1695_v33, %v4082_v32  ;;  %v4410_v32 = vld [vmem:[%s4675_s2] ss:$0 sm:$0xff]  ;;  %v4796_v33 = vld [vmem:[#allocation31_spill] sm:$0xff] }
 0x1ed   : > { %v1514_v34 = vadd.f32 %v1480_v18, %v1382_v6  ;;  %v1776_v37 = vadd.f32 %v1697_v4, %v4795_v43 }
 0x1ef   : > { %v1827_v62 = vpop.f32.mrf.mxu2  ;;  %v4392_v45 = vadd.f32 %v1634_v39, %v1514_v34 }
 0x1f0   : > { %v1907_v12 = vadd.f32 %v1827_v62, %v1775_v42 }
 0x1f1   : > { %3291 = vmatmul.msk.bf16.gmra.mxu3 %vm670_vm4, %v3708_v25 }
 0x1f3   : > { %v2119_v5 = vpop.f32.mrf.mxu0 }
 0x1f4   : > { %v1981_v24 = vpop.f32.mrf.mxu3  ;;  %v1700_v1 = vpop.f32.mrf.mxu1 }
 0x1f5   : > { %v2061_v25 = vadd.f32 %v1981_v24, %v1907_v12  ;;  %v1777_v60 = vadd.f32 %v1700_v1, %v4108_v21  ;;  %v4798_v24 = vld [vmem:[#allocation32_spill] sm:$0xff] }
 0x1f6   : > { %3308 = vmatmul.msk.bf16.gmra.mxu0 %vm670_vm4, %v4110_v13 }
 0x1f7   : > { %v1829_v10 = vpop.f32.mrf.mxu2  ;;  %3256 = vmatmul.msk.bf16.gmra.mxu1 %vm670_vm4, %v4110_v13  ;;  %v2199_v13 = vadd.f32 %v2119_v5, %v2061_v25 }
 0x1f8   : > { %v1908_v15 = vadd.f32 %v1829_v10, %v1776_v37 }
 0x1f9   : > { %v2235_v21 = vadd.f32 %v4410_v32, %v2199_v13 }
 0x1fb   : > { %v2121_v57 = vpop.f32.mrf.mxu0  ;;  %v2267_v18 = vmax.f32 %v2235_v21, 0.0 }
 0x1fc   : > { %v1983_v27 = vpop.f32.mrf.mxu3  ;;  %3276 = vmatmul.msk.bf16.gmra.mxu2 %vm670_vm4, %v4117_v50  ;;  %v1702_v38 = vpop.f32.mrf.mxu1 }
 0x1fd   : > { %v1778_v40 = vadd.f32 %v1702_v38, %v4797_v3  ;;  %v2062_v48 = vadd.f32 %v1983_v27, %v1908_v15 }
 0x1ff   : > { %v1832_v41 = vpop.f32.mrf.mxu2  ;;  %v2200_v62 = vadd.f32 %v2121_v57, %v2062_v48 }
 0x200   : > { %v1909_v9 = vadd.f32 %v1832_v41, %v1777_v60 }
 0x201   : > { %3292 = vmatmul.msk.bf16.gmra.mxu3 %vm670_vm4, %v4752_v17  ;;  %v2236_v41 = vadd.f32 %v4410_v32, %v2200_v62 }
 0x203   : > { %v2124_v35 = vpop.f32.mrf.mxu0 }
 0x204   : > { %v1986_v50 = vpop.f32.mrf.mxu3  ;;  %v1705_v44 = vpop.f32.mrf.mxu1 }
 0x205   : > { %v2063_v55 = vadd.f32 %v1986_v50, %v1909_v9 }
 0x206   : > { %3309 = vmatmul.msk.bf16.gmra.mxu0 %vm670_vm4, %v4796_v33 }
 0x207   : > { %v2201_v17 = vadd.f32 %v2124_v35, %v2063_v55  ;;  %v1834_v19 = vpop.f32.mrf.mxu2  ;;  %3257 = vmatmul.msk.bf16.gmra.mxu1 %vm670_vm4, %v4796_v33  ;;  %v4799_v35 = vld [vmem:[#allocation3_spill] sm:$0xff] }
 0x208   : > { %v1910_v39 = vadd.f32 %v1834_v19, %v1778_v40 }
 0x209   : > { %v2237_v6 = vadd.f32 %v4410_v32, %v2201_v17  ;;  %v2268_v17 = vmax.f32 %v2236_v41, 0.0  ;;  %v4801_v41 = vld [vmem:[#allocation15_spill] sm:$0xff] }
 0x20b   : > { %v2269_v4 = vmax.f32 %v2237_v6, 0.0  ;;  %v2126_v34 = vpop.f32.mrf.mxu0 }
 0x20c   : > { %v1988_v5 = vpop.f32.mrf.mxu3  ;;  %3277 = vmatmul.msk.bf16.gmra.mxu2 %vm670_vm4, %v4798_v24  ;;  %v4421_v1 = vpop.f32.mrf.mxu1 }
 0x20d   : > { %v2299_v10 = vmax.f32 %v2267_v18, %v2269_v4  ;;  %v2064_v42 = vadd.f32 %v1988_v5, %v1910_v39  ;;  %v4800_v4 = vld [vmem:[#allocation35_spill] sm:$0xff] }
 0x20f   : > { %v2331_v12 = vrot.slane %v2299_v10, 2  ;;  %v2332_v38 = vrot.slane %v2299_v10, 4  ;;  %v2333_v25 = vrot.slane %v2299_v10, 6  ;;  %v3316_v60 = vrot.slane %v2299_v10, 9  ;;  %v1837_v27 = vpop.f32.mrf.mxu2 }
 0x210   : > { %v2202_v9 = vadd.f32 %v2126_v34, %v2064_v42 }
 0x211   : > { %v3317_v43 = vrot.slane %v2331_v12, 9  ;;  %v3318_v37 = vrot.slane %v2332_v38, 9  ;;  %v3319_v13 = vrot.slane %v2333_v25, 9  ;;  %v2619_v57 = vmax.f32 %v2299_v10, %v3316_v60  ;;  %3293 = vmatmul.msk.bf16.gmra.mxu3 %vm670_vm4, %v4799_v35 }
 0x212   : > { %v2238_v15 = vadd.f32 %v4410_v32, %v2202_v9  ;;  %v1779_v9 = vadd.f32 %v1705_v44, %v4801_v41 }
 0x213   : > { %v2620_v50 = vmax.f32 %v2331_v12, %v3317_v43  ;;  %v2621_v55 = vmax.f32 %v2332_v38, %v3318_v37  ;;  %v2622_v33 = vmax.f32 %v2333_v25, %v3319_v13  ;;  %v4427_v21 = vpop.f32.mrf.mxu0  ;;  %v2683_v48 = vpack.c.bf16 %v2619_v57, %v2619_v57 }
 0x214   : > { %v2270_v3 = vmax.f32 %v2238_v15, 0.0  ;;  %v1991_v40 = vpop.f32.mrf.mxu3  ;;  %v1710_v19 = vpop.f32.mrf.mxu1 }
 0x215   : > { %v2684_v6 = vpack.c.bf16 %v2620_v50, %v2620_v50  ;;  %v2685_v39 = vpack.c.bf16 %v2621_v55, %v2621_v55  ;;  %v2686_v34 = vpack.c.bf16 %v2622_v33, %v2622_v33  ;;  %v2811_v25 = vunpack.c.l.b16 %v2683_v48  ;;  %v4802_v48 = vld [vmem:[#allocation36_spill] sm:$0xff] }
 0x216   : > { %v2300_v18 = vmax.f32 %v2268_v17, %v2270_v3  ;;  %3310 = vmatmul.msk.bf16.gmra.mxu0 %vm670_vm4, %v4800_v4  ;;  %v1911_v50 = vadd.f32 %v1837_v27, %v1779_v9 }
 0x217   : > { %v2812_v62 = vunpack.c.l.b16 %v2684_v6  ;;  %v2813_v5 = vunpack.c.l.b16 %v2685_v39  ;;  %v1839_v24 = vpop.f32.mrf.mxu2  ;;  %3258 = vmatmul.msk.bf16.gmra.mxu1 %vm670_vm4, %v4800_v4  ;;  %v2814_v35 = vunpack.c.l.b16 %v2686_v34 }
 0x218   : > { %v2334_v10 = vrot.slane %v2300_v18, 2  ;;  %v2335_v42 = vrot.slane %v2300_v18, 4  ;;  %v2336_v12 = vrot.slane %v2300_v18, 6  ;;  %v3320_v38 = vrot.slane %v2300_v18, 9 }
 0x219   : > { %v2875_v60 = vrot.slane %v2812_v62, 7  ;;  %v2878_v15 = vrot.slane %v2813_v5, 6  ;;  %v2065_v5 = vadd.f32 %v1991_v40, %v1911_v50  ;;  %v4805_v40 = vld [vmem:[#allocation33_spill] sm:$0xff] }
 0x21a   : > { %v3321_v43 = vrot.slane %v2334_v10, 9  ;;  %v3322_v37 = vrot.slane %v2335_v42, 9  ;;  %v3323_v13 = vrot.slane %v2336_v12, 9  ;;  %v2623_v57 = vmax.f32 %v2300_v18, %v3320_v38  ;;  %v4803_v38 = vld [vmem:[#allocation34_spill] sm:$0xff] }
 0x21b   : > { %v2131_v55 = vpop.f32.mrf.mxu0  ;;  %v2877_v33 = vsel %vm2876_vm8, %v2875_v60, %v2811_v25  ;;  %v1780_v50 = vadd.f32 %v4421_v1, %v4805_v40 }
 0x21c   : > { %v2624_v17 = vmax.f32 %v2334_v10, %v3321_v43  ;;  %v2625_v3 = vmax.f32 %v2335_v42, %v3322_v37  ;;  %v2626_v6 = vmax.f32 %v2336_v12, %v3323_v13  ;;  %v1993_v39 = vpop.f32.mrf.mxu3  ;;  %3278 = vmatmul.msk.bf16.gmra.mxu2 %vm670_vm4, %v4802_v48  ;;  %v1712_v4 = vpop.f32.mrf.mxu1  ;;  %v2687_v44 = vpack.c.bf16 %v2623_v57, %v2623_v57  ;;  %v4804_v37 = vld [vmem:[#allocation4_spill] sm:$0xff] }
 0x21d   : > { %v2880_v34 = vsel %vm2879_vm9, %v2878_v15, %v2877_v33  ;;  %v1781_v10 = vadd.f32 %v1710_v19, %v4803_v38  ;;  %v2881_v12 = vrot.slane %v2814_v35, 5  ;;  %v2203_v35 = vadd.f32 %v4427_v21, %v2065_v5  ;;  %v4806_v21 = vld [vmem:[#allocation39_spill] sm:$0xff]  ;;  %v4807_v5 = vld [vmem:[#allocation37_spill] sm:$0xff] }
 0x21e   : > { %v2688_v62 = vpack.c.bf16 %v2624_v17, %v2624_v17  ;;  %v2689_v41 = vpack.c.bf16 %v2625_v3, %v2625_v3  ;;  %v2690_v18 = vpack.c.bf16 %v2626_v6, %v2626_v6  ;;  %v2815_v27 = vunpack.c.l.b16 %v2687_v44 }
 0x21f   : > { %v1842_v42 = vpop.f32.mrf.mxu2  ;;  %v2883_v57 = vsel %vm2882_vm10, %v2881_v12, %v2880_v34  ;;  %v1912_v48 = vadd.f32 %v1839_v24, %v1780_v50  ;;  %v2239_v24 = vadd.f32 %v4410_v32, %v2203_v35  ;;  %v1782_v38 = vadd.f32 %v1712_v4, %v4807_v5 }
 0x220   : > { %v2816_v25 = vunpack.c.l.b16 %v2688_v62  ;;  %v2817_v60 = vunpack.c.l.b16 %v2689_v41  ;;  %v2818_v9 = vunpack.c.l.b16 %v2690_v18  ;;  %v2884_v43 = vrot.slane %v2815_v27, 4 }
 0x221   : > { %3294 = vmatmul.msk.bf16.gmra.mxu3 %vm670_vm4, %v4804_v37  ;;  %v1913_v13 = vadd.f32 %v1842_v42, %v1781_v10  ;;  %v2066_v42 = vadd.f32 %v1993_v39, %v1912_v48 }
 0x222   : > { %v2887_v15 = vrot.slane %v2816_v25, 3  ;;  %v2890_v33 = vrot.slane %v2817_v60, 2  ;;  %v2886_v19 = vsel %vm2885_vm11, %v2884_v43, %v2883_v57  ;;  %v2893_v6 = vrot.slane %v2818_v9, 1  ;;  %v4808_v57 = vld [vmem:[#allocation6_spill] sm:$0xff] }
 0x223   : > { %v2134_v17 = vpop.f32.mrf.mxu0  ;;  %v2271_v60 = vmax.f32 %v2239_v24, 0.0  ;;  %v2204_v37 = vadd.f32 %v2131_v55, %v2066_v42 }
 0x224   : > { %v2889_v3 = vsel %vm2888_vm12, %v2887_v15, %v2886_v19  ;;  %v1996_v44 = vpop.f32.mrf.mxu3  ;;  %v4448_v62 = vpop.f32.mrf.mxu1 }
 0x225   : > { %v2892_v41 = vsel %vm2891_vm13, %v2890_v33, %v2889_v3  ;;  %v2067_v18 = vadd.f32 %v1996_v44, %v1913_v13 }
 0x226   : > { %v2895_v1 = vsel %vm2894_vm14, %v2893_v6, %v2892_v41  ;;  %3311 = vmatmul.msk.bf16.gmra.mxu0 %vm670_vm4, %v4806_v21  ;;  %v4809_v41 = vld [vmem:[#allocation10_spill] sm:$0xff] }
 0x227   : > { %v2994_v34 = vpack.c.b16 %v2895_v1, %v2895_v1  ;;  %v2205_v27 = vadd.f32 %v2134_v17, %v2067_v18  ;;  %v1844_v10 = vpop.f32.mrf.mxu2  ;;  %3259 = vmatmul.msk.bf16.gmra.mxu1 %vm670_vm4, %v4806_v21  ;;  %v2240_v17 = vadd.f32 %v4410_v32, %v2204_v37 }
 0x228   : > { %v1914_v25 = vadd.f32 %v1844_v10, %v1782_v38 }
 0x229   : > { %3011 = vst.msk [vmem:[%s4454_s13] sm:$0xf] %vm3010_vm15, %v2994_v34  ;;  %v2241_v12 = vadd.f32 %v4410_v32, %v2205_v27  ;;  %v2272_v27 = vmax.f32 %v2240_v17, 0.0  ;;  %v4811_v17 = vld [vmem:[#allocation38_spill] sm:$0xff] }
 0x22b   : > { %v2273_v9 = vmax.f32 %v2241_v12, 0.0  ;;  %v2136_v43 = vpop.f32.mrf.mxu0 }
 0x22c   : > { %v1998_v13 = vpop.f32.mrf.mxu3  ;;  %3279 = vmatmul.msk.bf16.gmra.mxu2 %vm670_vm4, %v4808_v57  ;;  %v4468_v15 = vpop.f32.mrf.mxu1 }
 0x22d   : > { %v2301_v4 = vmax.f32 %v2271_v60, %v2273_v9  ;;  %v2068_v33 = vadd.f32 %v1998_v13, %v1914_v25  ;;  %v4810_v9 = vld [vmem:[#allocation41_spill] sm:$0xff] }
 0x22f   : > { %v2337_v40 = vrot.slane %v2301_v4, 2  ;;  %v2338_v50 = vrot.slane %v2301_v4, 4  ;;  %v2339_v39 = vrot.slane %v2301_v4, 6  ;;  %v3324_v19 = vrot.slane %v2301_v4, 9  ;;  %v1847_v35 = vpop.f32.mrf.mxu2 }
 0x230   : > { %v2206_v3 = vadd.f32 %v2136_v43, %v2068_v33 }
 0x231   : > { %v3325_v6 = vrot.slane %v2337_v40, 9  ;;  %v3326_v48 = vrot.slane %v2338_v50, 9  ;;  %v3327_v44 = vrot.slane %v2339_v39, 9  ;;  %v2627_v55 = vmax.f32 %v2301_v4, %v3324_v19  ;;  %3295 = vmatmul.msk.bf16.gmra.mxu3 %vm670_vm4, %v4809_v41 }
 0x232   : > { %v2242_v18 = vadd.f32 %v4410_v32, %v2206_v3  ;;  %v1783_v3 = vadd.f32 %v4448_v62, %v4811_v17 }
 0x233   : > { %v2628_v1 = vmax.f32 %v2337_v40, %v3325_v6  ;;  %v2629_v21 = vmax.f32 %v2338_v50, %v3326_v48  ;;  %v2630_v34 = vmax.f32 %v2339_v39, %v3327_v44  ;;  %v4474_v24 = vpop.f32.mrf.mxu0  ;;  %v2691_v42 = vpack.c.bf16 %v2627_v55, %v2627_v55 }
 0x234   : > { %v2274_v5 = vmax.f32 %v2242_v18, 0.0  ;;  %v2001_v38 = vpop.f32.mrf.mxu3  ;;  %v1720_v10 = vpop.f32.mrf.mxu1 }
 0x235   : > { %v2692_v12 = vpack.c.bf16 %v2628_v1, %v2628_v1  ;;  %v2693_v25 = vpack.c.bf16 %v2629_v21, %v2629_v21  ;;  %v2694_v43 = vpack.c.bf16 %v2630_v34, %v2630_v34  ;;  %v2819_v39 = vunpack.c.l.b16 %v2691_v42 }
 0x236   : > { %v2302_v60 = vmax.f32 %v2272_v27, %v2274_v5  ;;  %3312 = vmatmul.msk.bf16.gmra.mxu0 %vm670_vm4, %v4810_v9  ;;  %v1915_v1 = vadd.f32 %v1847_v35, %v1783_v3 }
 0x237   : > { %v2820_v37 = vunpack.c.l.b16 %v2692_v12  ;;  %v2821_v13 = vunpack.c.l.b16 %v2693_v25  ;;  %v1849_v57 = vpop.f32.mrf.mxu2  ;;  %3260 = vmatmul.msk.bf16.gmra.mxu1 %vm670_vm4, %v4810_v9  ;;  %v2822_v41 = vunpack.c.l.b16 %v2694_v43  ;;  %v4812_v43 = vld [vmem:[#allocation42_spill] sm:$0xff] }
 0x238   : > { %v2340_v4 = vrot.slane %v2302_v60, 2  ;;  %v2341_v33 = vrot.slane %v2302_v60, 4  ;;  %v2342_v40 = vrot.slane %v2302_v60, 6  ;;  %v3328_v50 = vrot.slane %v2302_v60, 9 }
 0x239   : > { %v2896_v19 = vrot.slane %v2820_v37, 7  ;;  %v2898_v18 = vrot.slane %v2821_v13, 6  ;;  %v4489_v13 = vld [vmem:[%s3485_s27 + $0xcc] sm:$0xf] }
 0x23a   : > { %v3329_v6 = vrot.slane %v2340_v4, 9  ;;  %v3330_v48 = vrot.slane %v2341_v33, 9  ;;  %v3331_v44 = vrot.slane %v2342_v40, 9  ;;  %v2631_v55 = vmax.f32 %v2302_v60, %v3328_v50 }
 0x23b   : > { %v4482_v21 = vpop.f32.mrf.mxu0  ;;  %v2897_v34 = vsel %vm2876_vm8, %v2896_v19, %v2819_v39  ;;  %v1672_v50 = vrot.slane %v4812_v43, 5  ;;  %v2069_v39 = vadd.f32 %v2001_v38, %v1915_v1  ;;  %v2900_v19 = vrot.slane %v2822_v41, 5 }
 0x23c   : > { %v2632_v27 = vmax.f32 %v2340_v4, %v3329_v6  ;;  %v2633_v5 = vmax.f32 %v2341_v33, %v3330_v48  ;;  %v2634_v12 = vmax.f32 %v2342_v40, %v3331_v44  ;;  %v2003_v42 = vpop.f32.mrf.mxu3  ;;  %3280 = vmatmul.msk.bf16.gmra.mxu2 %vm670_vm4, %v4230_v30  ;;  %v1722_v62 = vpop.f32.mrf.mxu1  ;;  %v2695_v25 = vpack.c.bf16 %v2631_v55, %v2631_v55  ;;  %v4813_v4 = vld [vmem:[#allocation40_spill] sm:$0xff]  ;;  %v4814_v44 = vld [vmem:[#allocation7_spill] sm:$0xff] }
 0x23d   : > { %v2899_v35 = vsel %vm2879_vm9, %v2898_v18, %v2897_v34  ;;  %v1785_v33 = vadd.f32 %v1720_v10, %v4813_v4  ;;  %v1784_v55 = vadd.f32 %v4468_v15, %v4814_v44  ;;  %v1940_v18 = vshrl.u32 %v4489_v13, 16  ;;  %v4504_v15 = vld [vmem:[%s3485_s27 + $0xd0] sm:$0xf] }
 0x23e   : > { %v2696_v9 = vpack.c.bf16 %v2632_v27, %v2632_v27  ;;  %v2697_v37 = vpack.c.bf16 %v2633_v5, %v2633_v5  ;;  %v2698_v60 = vpack.c.bf16 %v2634_v12, %v2634_v12  ;;  %v2823_v17 = vunpack.c.l.b16 %v2695_v25  ;;  %v4815_v25 = vld [vmem:[#allocation5_spill] sm:$0xff] }
 0x23f   : > { %v1852_v40 = vpop.f32.mrf.mxu2  ;;  %v2901_v38 = vsel %vm2882_vm10, %v2900_v19, %v2899_v35  ;;  %v1943_v41 = vshll.u32 %v4489_v13, 16  ;;  %v2207_v5 = vadd.f32 %v4474_v24, %v2069_v39  ;;  %v1674_v35 = vrot.slane %v1672_v50, 4 }
 0x240   : > { %v2824_v3 = vunpack.c.l.b16 %v2696_v9  ;;  %v2825_v30 = vunpack.c.l.b16 %v2697_v37  ;;  %v2826_v6 = vunpack.c.l.b16 %v2698_v60  ;;  %v2902_v48 = vrot.slane %v2823_v17, 4 }
 0x241   : > { %3296 = vmatmul.msk.bf16.gmra.mxu3 %vm670_vm4, %v3824_v53  ;;  %v1917_v27 = vadd.f32 %v1852_v40, %v1785_v33  ;;  %v3246_v9 = vrot.slane %v4815_v25, 9  ;;  %v1916_v60 = vadd.f32 %v1849_v57, %v1784_v55  ;;  %v1675_v40 = vrot.slane %v4237_v11, 5 }
 0x242   : > { %v2904_v1 = vrot.slane %v2824_v3, 3  ;;  %v2906_v10 = vrot.slane %v2825_v30, 2  ;;  %v2903_v34 = vsel %vm2885_vm11, %v2902_v48, %v2901_v38  ;;  %v2908_v37 = vrot.slane %v2826_v6, 1 }
 0x243   : > { %v2144_v12 = vpop.f32.mrf.mxu0  ;;  %v1942_v24 = vrot.slane %v1940_v18, 4  ;;  %v1945_v19 = vrot.slane %v1943_v41, 5  ;;  %v1949_v3 = vshll.u32 %v4504_v15, 16  ;;  %v1953_v57 = vshrl.u32 %v4504_v15, 16 }
 0x244   : > { %v2905_v53 = vsel %vm2888_vm12, %v2904_v1, %v2903_v34  ;;  %v2006_v43 = vpop.f32.mrf.mxu3  ;;  %v4507_v17 = vpop.f32.mrf.mxu1  ;;  %v2243_v6 = vadd.f32 %v4410_v32, %v2207_v5  ;;  %v1786_v44 = vadd.f32 %v1722_v62, %v4234_v49  ;;  %v2070_v11 = vadd.f32 %v2003_v42, %v1916_v60 }
 0x245   : > { %v2907_v4 = vsel %vm2891_vm13, %v2906_v10, %v2905_v53  ;;  %v2071_v33 = vadd.f32 %v2006_v43, %v1917_v27  ;;  %v1673_v38 = vsel %vm3815_vm7, %v3246_v9, %v1672_v50  ;;  %v1676_v1 = vsel %vm3815_vm7, %v1674_v35, %v1675_v40 }
 0x246   : > { %v2909_v39 = vsel %vm2894_vm14, %v2908_v37, %v2907_v4  ;;  %3313 = vmatmul.msk.bf16.gmra.mxu0 %vm670_vm4, %v4253_v46  ;;  %v1946_v10 = vor.u32 %v1945_v19, %v1942_v24  ;;  %v1951_v41 = vrot.slane %v1949_v3, 5  ;;  %v1955_v34 = vrot.slane %v1953_v57, 4 }
 0x247   : > { %v2995_v30 = vpack.c.b16 %v2909_v39, %v2909_v39  ;;  %v2209_v48 = vadd.f32 %v2144_v12, %v2071_v33  ;;  %v1854_v55 = vpop.f32.mrf.mxu2  ;;  %3261 = vmatmul.msk.bf16.gmra.mxu1 %vm670_vm4, %v4253_v46  ;;  %v2275_v49 = vmax.f32 %v2243_v6, 0.0  ;;  %v4528_v12 = vld [vmem:[%s3485_s27 + $0xd4] sm:$0x1]  ;;  %v2208_v46 = vadd.f32 %v4482_v21, %v2070_v11 }
 0x248   : > { %v1918_v18 = vadd.f32 %v1854_v55, %v1786_v44  ;;  %v1677_v25 = vunpack.c.l.b16 %v1673_v38  ;;  %v1678_v53 = vunpack.c.l.b16 %v1676_v1  ;;  %v1947_v60 = vrot.slane %v1946_v10, 4 }
 0x249   : > { %3012 = vst.msk [vmem:[%s4454_s13 + $0x4] sm:$0xf] %vm3010_vm15, %v2995_v30  ;;  %v2245_v27 = vadd.f32 %v4410_v32, %v2209_v48  ;;  %v1956_v43 = vor.u32 %v1955_v34, %v1951_v41  ;;  %v1959_v35 = vshll.u32 %v4528_v12, 16  ;;  %v2244_v21 = vadd.f32 %v4410_v32, %v2208_v46 }
 0x24a   : > { %v1679_v3 = vpack.c.b16 %v1678_v53, %v1677_v25  ;;  %v2096_v11 = vrot.slane %v4504_v15, 5  ;;  %v1952_v10 = vsel %vm3512_vm3, %v1947_v60, %v1951_v41  ;;  %v1787_v15 = vadd.f32 %v4507_v17, %v4251_v7 }
 0x24b   : > { %v2277_v62 = vmax.f32 %v2245_v27, 0.0  ;;  %v2146_v5 = vpop.f32.mrf.mxu0  ;;  %v1957_v44 = vrot.slane %v1956_v43, 4  ;;  %v1961_v55 = vrot.slane %v1959_v35, 5  ;;  %v2276_v34 = vmax.f32 %v2244_v21, 0.0 }
 0x24c   : > { %v2008_v42 = vpop.f32.mrf.mxu3  ;;  %3281 = vmatmul.msk.bf16.gmra.mxu2 %vm670_vm4, %v4262_v54  ;;  %v4533_v50 = vpop.f32.mrf.mxu1  ;;  %v1963_v41 = vunpack.c.l.b16 %v1952_v10 }
 0x24d   : > { %v2303_v9 = vmax.f32 %v2275_v49, %v2277_v62  ;;  %v2072_v37 = vadd.f32 %v2008_v42, %v1918_v18 }
 0x24f   : > { %v2343_v4 = vrot.slane %v2303_v9, 2  ;;  %v2344_v33 = vrot.slane %v2303_v9, 4  ;;  %v2345_v40 = vrot.slane %v2303_v9, 6  ;;  %v3332_v24 = vrot.slane %v2303_v9, 9  ;;  %v1857_v39 = vpop.f32.mrf.mxu2 }
 0x250   : > { %v2210_v19 = vadd.f32 %v2146_v5, %v2072_v37  ;;  %v2099_v37 = vrot.slane %v4528_v12, 5 }
 0x251   : > { %v3333_v54 = vrot.slane %v2343_v4, 9  ;;  %v3334_v57 = vrot.slane %v2344_v33, 9  ;;  %v3335_v30 = vrot.slane %v2345_v40, 9  ;;  %v2635_v6 = vmax.f32 %v2303_v9, %v3332_v24  ;;  %3297 = vmatmul.msk.bf16.gmra.mxu3 %vm670_vm4, %v4269_v22  ;;  %v3400_v24 = vld [vmem:[%s3485_s27 + $0xcc] sm:$0xff] }
 0x252   : > { %v2246_v48 = vadd.f32 %v4410_v32, %v2210_v19  ;;  %v3299_v22 = vrot.slane %v4489_v13, 9  ;;  %v1962_v9 = vsel %vm3512_vm3, %v1957_v44, %v1961_v55  ;;  %v1919_v55 = vadd.f32 %v1857_v39, %v1787_v15 }
 0x253   : > { %v2636_v27 = vmax.f32 %v2343_v4, %v3333_v54  ;;  %v2637_v18 = vmax.f32 %v2344_v33, %v3334_v57  ;;  %v2638_v38 = vmax.f32 %v2345_v40, %v3335_v30  ;;  %v4541_v1 = vpop.f32.mrf.mxu0  ;;  %v2699_v46 = vpack.c.bf16 %v2635_v6, %v2635_v6 }
 0x254   : > { %v2278_v49 = vmax.f32 %v2246_v48, 0.0  ;;  %v2011_v62 = vpop.f32.mrf.mxu3  ;;  %v1730_v5 = vpop.f32.mrf.mxu1  ;;  %v2098_v4 = vrot.slane %v2096_v11, 4  ;;  %v1964_v54 = vunpack.c.l.b16 %v1962_v9  ;;  %v2097_v36 = vsel %vm3815_vm7, %v3299_v22, %v2096_v11 }
 0x255   : > { %v2700_v42 = vpack.c.bf16 %v2636_v27, %v2636_v27  ;;  %v2701_v25 = vpack.c.bf16 %v2637_v18, %v2637_v18  ;;  %v2702_v60 = vpack.c.bf16 %v2638_v38, %v2638_v38  ;;  %v2827_v21 = vunpack.c.l.b16 %v2699_v46 }
 0x256   : > { %v2304_v53 = vmax.f32 %v2276_v34, %v2278_v49  ;;  %3314 = vmatmul.msk.bf16.gmra.mxu0 %vm670_vm4, %v1679_v3  ;;  %v2100_v27 = vsel %vm3815_vm7, %v2098_v4, %v2099_v37  ;;  %v1965_v46 = vpack.c.b16 %v1964_v54, %v1963_v41  ;;  %v2073_v37 = vadd.f32 %v2011_v62, %v1919_v55 }
 0x257   : > { %v2828_v43 = vunpack.c.l.b16 %v2700_v42  ;;  %v2829_v35 = vunpack.c.l.b16 %v2701_v25  ;;  %v1859_v13 = vpop.f32.mrf.mxu2  ;;  %3262 = vmatmul.msk.bf16.gmra.mxu1 %vm670_vm4, %v1679_v3  ;;  %v2830_v48 = vunpack.c.l.b16 %v2702_v60  ;;  %v2101_v42 = vunpack.c.l.b16 %v2097_v36 }
 0x258   : > { %v2346_v33 = vrot.slane %v2304_v53, 2  ;;  %v2347_v40 = vrot.slane %v2304_v53, 4  ;;  %v2348_v7 = vrot.slane %v2304_v53, 6  ;;  %v3336_v17 = vrot.slane %v2304_v53, 9 }
 0x259   : > { %v2910_v19 = vrot.slane %v2828_v43, 7  ;;  %v2912_v44 = vrot.slane %v2829_v35, 6  ;;  %v2102_v39 = vunpack.c.l.b16 %v2100_v27  ;;  %v1789_v60 = vadd.f32 %v1730_v5, %v4276_v58 }
 0x25a   : > { %v3337_v57 = vrot.slane %v2346_v33, 9  ;;  %v3338_v12 = vrot.slane %v2347_v40, 9  ;;  %v3339_v30 = vrot.slane %v2348_v7, 9  ;;  %v2639_v6 = vmax.f32 %v2304_v53, %v3336_v17 }
 0x25b   : > { %v2151_v3 = vpop.f32.mrf.mxu0  ;;  %v2911_v18 = vsel %vm2876_vm8, %v2910_v19, %v2827_v21  ;;  %v2914_v35 = vrot.slane %v2830_v48, 5  ;;  %v1788_v41 = vadd.f32 %v4533_v50, %v4265_v28  ;;  %v2103_v54 = vpack.c.b16 %v2102_v39, %v2101_v42 }
 0x25c   : > { %v2640_v38 = vmax.f32 %v2346_v33, %v3337_v57  ;;  %v2641_v10 = vmax.f32 %v2347_v40, %v3338_v12  ;;  %v2642_v34 = vmax.f32 %v2348_v7, %v3339_v30  ;;  %v2013_v49 = vpop.f32.mrf.mxu3  ;;  %3282 = vmatmul.msk.bf16.gmra.mxu2 %vm670_vm4, %v3400_v24  ;;  %v1732_v11 = vpop.f32.mrf.mxu1  ;;  %v2703_v22 = vpack.c.bf16 %v2639_v6, %v2639_v6 }
 0x25d   : > { %v2913_v15 = vsel %vm2879_vm9, %v2912_v44, %v2911_v18  ;;  %v2211_v58 = vadd.f32 %v4541_v1, %v2073_v37  ;;  %v1920_v12 = vadd.f32 %v1859_v13, %v1788_v41  ;;  %v1790_v1 = vadd.f32 %v1732_v11, %v4281_v31 }
 0x25e   : > { %v2704_v25 = vpack.c.bf16 %v2640_v38, %v2640_v38  ;;  %v2705_v53 = vpack.c.bf16 %v2641_v10, %v2641_v10  ;;  %v2706_v9 = vpack.c.bf16 %v2642_v34, %v2642_v34  ;;  %v2831_v14 = vunpack.c.l.b16 %v2703_v22 }
 0x25f   : > { %v1862_v43 = vpop.f32.mrf.mxu2  ;;  %v2915_v24 = vsel %vm2882_vm10, %v2914_v35, %v2913_v15  ;;  %v2247_v55 = vadd.f32 %v4410_v32, %v2211_v58  ;;  %v2074_v38 = vadd.f32 %v2013_v49, %v1920_v12 }
 0x260   : > { %v2832_v4 = vunpack.c.l.b16 %v2704_v25  ;;  %v2833_v33 = vunpack.c.l.b16 %v2705_v53  ;;  %v2834_v40 = vunpack.c.l.b16 %v2706_v9  ;;  %v2916_v7 = vrot.slane %v2831_v14, 4 }
 0x261   : > { %3298 = vmatmul.msk.bf16.gmra.mxu3 %vm670_vm4, %v1965_v46  ;;  %v1921_v17 = vadd.f32 %v1862_v43, %v1789_v60  ;;  %v2279_v34 = vmax.f32 %v2247_v55, 0.0  ;;  %v2212_v42 = vadd.f32 %v2151_v3, %v2074_v38 }
 0x262   : > { %v2918_v21 = vrot.slane %v2832_v4, 3  ;;  %v2920_v19 = vrot.slane %v2833_v33, 2  ;;  %v2917_v62 = vsel %vm2885_vm11, %v2916_v7, %v2915_v24  ;;  %v2922_v57 = vrot.slane %v2834_v40, 1 }
 0x263   : > { %v2154_v5 = vpop.f32.mrf.mxu0  ;;  %v2248_v49 = vadd.f32 %v4410_v32, %v2212_v42 }
 0x264   : > { %v2919_v36 = vsel %vm2888_vm12, %v2918_v21, %v2917_v62  ;;  %v2016_v30 = vpop.f32.mrf.mxu3  ;;  %v1735_v28 = vpop.f32.mrf.mxu1 }
 0x265   : > { %v2921_v50 = vsel %vm2891_vm13, %v2920_v19, %v2919_v36  ;;  %v2075_v6 = vadd.f32 %v2016_v30, %v1921_v17  ;;  %v2280_v24 = vmax.f32 %v2248_v49, 0.0 }
 0x266   : > { %v2923_v48 = vsel %vm2894_vm14, %v2922_v57, %v2921_v50  ;;  %3315 = vmatmul.msk.bf16.gmra.mxu0 %vm670_vm4, %v2103_v54 }
 0x267   : > { %v2996_v44 = vpack.c.b16 %v2923_v48, %v2923_v48  ;;  %v2213_v27 = vadd.f32 %v2154_v5, %v2075_v6  ;;  %v1864_v18 = vpop.f32.mrf.mxu2 }
 0x268   : > { %v1922_v10 = vadd.f32 %v1864_v18, %v1790_v1  ;;  %v1791_v18 = vadd.f32 %v1735_v28, %v4290_v16 }
 0x269   : > { %3013 = vst.msk [vmem:[%s4454_s13 + $0x8] sm:$0xf] %vm3010_vm15, %v2996_v44  ;;  %v2249_v13 = vadd.f32 %v4410_v32, %v2213_v27 }
 0x26b   : > { %v2281_v22 = vmax.f32 %v2249_v13, 0.0  ;;  %v2156_v46 = vpop.f32.mrf.mxu0 }
 0x26c   : > { %v2018_v25 = vpop.f32.mrf.mxu3  ;;  %v4577_v53 = vpop.f32.mrf.mxu1 }
 0x26d   : > { %v2305_v9 = vmax.f32 %v2279_v34, %v2281_v22  ;;  %v2076_v39 = vadd.f32 %v2018_v25, %v1922_v10 }
 0x26f   : > { %v2349_v15 = vrot.slane %v2305_v9, 2  ;;  %v2350_v14 = vrot.slane %v2305_v9, 4  ;;  %v2351_v37 = vrot.slane %v2305_v9, 6  ;;  %v3340_v31 = vrot.slane %v2305_v9, 9  ;;  %v1867_v11 = vpop.f32.mrf.mxu2 }
 0x270   : > { %v2214_v60 = vadd.f32 %v2156_v46, %v2076_v39  ;;  %v1923_v42 = vadd.f32 %v1867_v11, %v1791_v18 }
 0x271   : > { %v3341_v43 = vrot.slane %v2349_v15, 9  ;;  %v3342_v35 = vrot.slane %v2350_v14, 9  ;;  %v3343_v4 = vrot.slane %v2351_v37, 9  ;;  %v2643_v33 = vmax.f32 %v2305_v9, %v3340_v31 }
 0x272   : > { %v2250_v40 = vadd.f32 %v4410_v32, %v2214_v60 }
 0x273   : > { %v2644_v3 = vmax.f32 %v2349_v15, %v3341_v43  ;;  %v2645_v7 = vmax.f32 %v2350_v14, %v3342_v35  ;;  %v2646_v41 = vmax.f32 %v2351_v37, %v3343_v4  ;;  %v2159_v17 = vpop.f32.mrf.mxu0  ;;  %v2707_v62 = vpack.c.bf16 %v2643_v33, %v2643_v33 }
 0x274   : > { %v2282_v21 = vmax.f32 %v2250_v40, 0.0  ;;  %v2021_v19 = vpop.f32.mrf.mxu3  ;;  %v1740_v54 = vpop.f32.mrf.mxu1 }
 0x275   : > { %v2708_v58 = vpack.c.bf16 %v2644_v3, %v2644_v3  ;;  %v2709_v5 = vpack.c.bf16 %v2645_v7, %v2645_v7  ;;  %v2710_v57 = vpack.c.bf16 %v2646_v41, %v2646_v41  ;;  %v2835_v27 = vunpack.c.l.b16 %v2707_v62 }
 0x276   : > { %v2306_v36 = vmax.f32 %v2280_v24, %v2282_v21  ;;  %v2077_v4 = vadd.f32 %v2021_v19, %v1923_v42  ;;  %v1793_v33 = vadd.f32 %v1740_v54, %v4304_v59 }
 0x277   : > { %v2836_v12 = vunpack.c.l.b16 %v2708_v58  ;;  %v2837_v30 = vunpack.c.l.b16 %v2709_v5  ;;  %v1869_v50 = vpop.f32.mrf.mxu2  ;;  %v2838_v22 = vunpack.c.l.b16 %v2710_v57 }
 0x278   : > { %v2352_v6 = vrot.slane %v2306_v36, 2  ;;  %v2353_v48 = vrot.slane %v2306_v36, 4  ;;  %v2354_v44 = vrot.slane %v2306_v36, 6  ;;  %v3344_v55 = vrot.slane %v2306_v36, 9 }
 0x279   : > { %v2924_v1 = vrot.slane %v2836_v12, 7  ;;  %v2926_v46 = vrot.slane %v2837_v30, 6  ;;  %v2928_v11 = vrot.slane %v2838_v22, 5  ;;  %v2215_v12 = vadd.f32 %v2159_v17, %v2077_v4 }
 0x27a   : > { %v3345_v38 = vrot.slane %v2352_v6, 9  ;;  %v3346_v13 = vrot.slane %v2353_v48, 9  ;;  %v3347_v10 = vrot.slane %v2354_v44, 9  ;;  %v2647_v34 = vmax.f32 %v2306_v36, %v3344_v55 }
 0x27b   : > { %v2161_v25 = vpop.f32.mrf.mxu0  ;;  %v2925_v9 = vsel %vm2876_vm8, %v2924_v1, %v2835_v27  ;;  %v1792_v36 = vadd.f32 %v4577_v53, %v4295_v26  ;;  %v2251_v18 = vadd.f32 %v4410_v32, %v2215_v12 }
 0x27c   : > { %v2648_v39 = vmax.f32 %v2352_v6, %v3345_v38  ;;  %v2649_v15 = vmax.f32 %v2353_v48, %v3346_v13  ;;  %v2650_v14 = vmax.f32 %v2354_v44, %v3347_v10  ;;  %v2023_v37 = vpop.f32.mrf.mxu3  ;;  %v1742_v31 = vpop.f32.mrf.mxu1  ;;  %v2711_v49 = vpack.c.bf16 %v2647_v34, %v2647_v34 }
 0x27d   : > { %v2927_v16 = vsel %vm2879_vm9, %v2926_v46, %v2925_v9  ;;  %v1924_v30 = vadd.f32 %v1869_v50, %v1792_v36  ;;  %v1794_v53 = vadd.f32 %v1742_v31, %v4309_v47  ;;  %v2283_v10 = vmax.f32 %v2251_v18, 0.0 }
 0x27e   : > { %v2712_v60 = vpack.c.bf16 %v2648_v39, %v2648_v39  ;;  %v2713_v43 = vpack.c.bf16 %v2649_v15, %v2649_v15  ;;  %v2714_v35 = vpack.c.bf16 %v2650_v14, %v2650_v14  ;;  %v2839_v28 = vunpack.c.l.b16 %v2711_v49 }
 0x27f   : > { %v1872_v40 = vpop.f32.mrf.mxu2  ;;  %v2929_v62 = vsel %vm2882_vm10, %v2928_v11, %v2927_v16  ;;  %v2078_v38 = vadd.f32 %v2023_v37, %v1924_v30 }
 0x280   : > { %v2840_v3 = vunpack.c.l.b16 %v2712_v60  ;;  %v2841_v7 = vunpack.c.l.b16 %v2713_v43  ;;  %v2842_v41 = vunpack.c.l.b16 %v2714_v35  ;;  %v2930_v24 = vrot.slane %v2839_v28, 4 }
 0x281   : > { %v1925_v21 = vadd.f32 %v1872_v40, %v1793_v33  ;;  %v2216_v46 = vadd.f32 %v2161_v25, %v2078_v38 }
 0x282   : > { %v2932_v58 = vrot.slane %v2840_v3, 3  ;;  %v2934_v5 = vrot.slane %v2841_v7, 2  ;;  %v2931_v57 = vsel %vm2885_vm11, %v2930_v24, %v2929_v62  ;;  %v2936_v54 = vrot.slane %v2842_v41, 1 }
 0x283   : > { %v2164_v19 = vpop.f32.mrf.mxu0  ;;  %v2252_v37 = vadd.f32 %v4410_v32, %v2216_v46 }
 0x284   : > { %v2933_v59 = vsel %vm2888_vm12, %v2932_v58, %v2931_v57  ;;  %v2026_v6 = vpop.f32.mrf.mxu3  ;;  %v1745_v48 = vpop.f32.mrf.mxu1 }
 0x285   : > { %v2935_v44 = vsel %vm2891_vm13, %v2934_v5, %v2933_v59  ;;  %v2079_v55 = vadd.f32 %v2026_v6, %v1925_v21  ;;  %v2284_v7 = vmax.f32 %v2252_v37, 0.0 }
 0x286   : > { %v2937_v27 = vsel %vm2894_vm14, %v2936_v54, %v2935_v44 }
 0x287   : > { %v2997_v1 = vpack.c.b16 %v2937_v27, %v2937_v27  ;;  %v2217_v26 = vadd.f32 %v2164_v19, %v2079_v55  ;;  %v1874_v17 = vpop.f32.mrf.mxu2  ;;  %v1795_v27 = vadd.f32 %v1745_v48, %v4318_v23 }
 0x288   : > { %v1926_v50 = vadd.f32 %v1874_v17, %v1794_v53 }
 0x289   : > { %3014 = vst.msk [vmem:[%s4454_s13 + $0xc] sm:$0xf] %vm3010_vm15, %v2997_v1  ;;  %v2253_v13 = vadd.f32 %v4410_v32, %v2217_v26 }
 0x28b   : > { %v2285_v34 = vmax.f32 %v2253_v13, 0.0  ;;  %v2166_v22 = vpop.f32.mrf.mxu0 }
 0x28c   : > { %v2028_v42 = vpop.f32.mrf.mxu3  ;;  %v4597_v9 = vpop.f32.mrf.mxu1 }
 0x28d   : > { %v2307_v39 = vmax.f32 %v2283_v10, %v2285_v34  ;;  %v2080_v15 = vadd.f32 %v2028_v42, %v1926_v50 }
 0x28f   : > { %v2355_v14 = vrot.slane %v2307_v39, 2  ;;  %v2356_v49 = vrot.slane %v2307_v39, 4  ;;  %v2357_v60 = vrot.slane %v2307_v39, 6  ;;  %v3348_v47 = vrot.slane %v2307_v39, 9  ;;  %v1877_v31 = vpop.f32.mrf.mxu2 }
 0x290   : > { %v2218_v43 = vadd.f32 %v2166_v22, %v2080_v15  ;;  %v1927_v13 = vadd.f32 %v1877_v31, %v1795_v27 }
 0x291   : > { %v3349_v35 = vrot.slane %v2355_v14, 9  ;;  %v3350_v16 = vrot.slane %v2356_v49, 9  ;;  %v3351_v28 = vrot.slane %v2357_v60, 9  ;;  %v2651_v4 = vmax.f32 %v2307_v39, %v3348_v47 }
 0x292   : > { %v2254_v33 = vadd.f32 %v4410_v32, %v2218_v43 }
 0x293   : > { %v2652_v25 = vmax.f32 %v2355_v14, %v3349_v35  ;;  %v2653_v40 = vmax.f32 %v2356_v49, %v3350_v16  ;;  %v2654_v11 = vmax.f32 %v2357_v60, %v3351_v28  ;;  %v2169_v3 = vpop.f32.mrf.mxu0  ;;  %v2715_v62 = vpack.c.bf16 %v2651_v4, %v2651_v4 }
 0x294   : > { %v2286_v41 = vmax.f32 %v2254_v33, 0.0  ;;  %v2031_v24 = vpop.f32.mrf.mxu3  ;;  %v1750_v21 = vpop.f32.mrf.mxu1 }
 0x295   : > { %v2716_v58 = vpack.c.bf16 %v2652_v25, %v2652_v25  ;;  %v2717_v5 = vpack.c.bf16 %v2653_v40, %v2653_v40  ;;  %v2718_v57 = vpack.c.bf16 %v2654_v11, %v2654_v11  ;;  %v2843_v44 = vunpack.c.l.b16 %v2715_v62 }
 0x296   : > { %v2308_v36 = vmax.f32 %v2284_v7, %v2286_v41  ;;  %v2081_v47 = vadd.f32 %v2031_v24, %v1927_v13  ;;  %v1797_v37 = vadd.f32 %v1750_v21, %v4332_v56  ;;  %v1796_v7 = vadd.f32 %v4597_v9, %v4323_v61  ;;  %v4615_v61 = vld [vmem:[%s4675_s2] ss:$0 sm:$0xff] }
 0x297   : > { %v2844_v12 = vunpack.c.l.b16 %v2716_v58  ;;  %v2845_v19 = vunpack.c.l.b16 %v2717_v5  ;;  %v1879_v59 = vpop.f32.mrf.mxu2  ;;  %v2846_v17 = vunpack.c.l.b16 %v2718_v57 }
 0x298   : > { %v2358_v54 = vrot.slane %v2308_v36, 2  ;;  %v2359_v30 = vrot.slane %v2308_v36, 4  ;;  %v2360_v6 = vrot.slane %v2308_v36, 6  ;;  %v3352_v32 = vrot.slane %v2308_v36, 9 }
 0x299   : > { %v2938_v55 = vrot.slane %v2844_v12, 7  ;;  %v2940_v38 = vrot.slane %v2845_v19, 6  ;;  %v2942_v31 = vrot.slane %v2846_v17, 5  ;;  %v2219_v62 = vadd.f32 %v2169_v3, %v2081_v47 }
 0x29a   : > { %v3353_v1 = vrot.slane %v2358_v54, 9  ;;  %v3354_v18 = vrot.slane %v2359_v30, 9  ;;  %v3355_v26 = vrot.slane %v2360_v6, 9  ;;  %v2655_v53 = vmax.f32 %v2308_v36, %v3352_v32 }
 0x29b   : > { %v2171_v50 = vpop.f32.mrf.mxu0  ;;  %v2939_v10 = vsel %vm2876_vm8, %v2938_v55, %v2843_v44  ;;  %v1928_v58 = vadd.f32 %v1879_v59, %v1796_v7  ;;  %v2255_v9 = vadd.f32 %v4615_v61, %v2219_v62 }
 0x29c   : > { %v2656_v34 = vmax.f32 %v2358_v54, %v3353_v1  ;;  %v2657_v22 = vmax.f32 %v2359_v30, %v3354_v18  ;;  %v2658_v46 = vmax.f32 %v2360_v6, %v3355_v26  ;;  %v2033_v42 = vpop.f32.mrf.mxu3  ;;  %v1752_v39 = vpop.f32.mrf.mxu1  ;;  %v2719_v15 = vpack.c.bf16 %v2655_v53, %v2655_v53 }
 0x29d   : > { %v2941_v23 = vsel %vm2879_vm9, %v2940_v38, %v2939_v10  ;;  %v1798_v30 = vadd.f32 %v1752_v39, %v4337_v0  ;;  %v2082_v59 = vadd.f32 %v2033_v42, %v1928_v58  ;;  %v2287_v55 = vmax.f32 %v2255_v9, 0.0 }
 0x29e   : > { %v2720_v14 = vpack.c.bf16 %v2656_v34, %v2656_v34  ;;  %v2721_v49 = vpack.c.bf16 %v2657_v22, %v2657_v22  ;;  %v2722_v60 = vpack.c.bf16 %v2658_v46, %v2658_v46  ;;  %v2847_v48 = vunpack.c.l.b16 %v2719_v15 }
 0x29f   : > { %v1882_v43 = vpop.f32.mrf.mxu2  ;;  %v2943_v25 = vsel %vm2882_vm10, %v2942_v31, %v2941_v23  ;;  %v2220_v18 = vadd.f32 %v2171_v50, %v2082_v59 }
 0x2a0   : > { %v2848_v35 = vunpack.c.l.b16 %v2720_v14  ;;  %v2849_v16 = vunpack.c.l.b16 %v2721_v49  ;;  %v2850_v28 = vunpack.c.l.b16 %v2722_v60  ;;  %v2944_v4 = vrot.slane %v2847_v48, 4 }
 0x2a1   : > { %v1929_v33 = vadd.f32 %v1882_v43, %v1797_v37  ;;  %v2256_v46 = vadd.f32 %v4615_v61, %v2220_v18 }
 0x2a2   : > { %v2946_v40 = vrot.slane %v2848_v35, 3  ;;  %v2948_v11 = vrot.slane %v2849_v16, 2  ;;  %v2945_v41 = vsel %vm2885_vm11, %v2944_v4, %v2943_v25  ;;  %v2950_v21 = vrot.slane %v2850_v28, 1 }
 0x2a3   : > { %v2174_v24 = vpop.f32.mrf.mxu0  ;;  %v2288_v37 = vmax.f32 %v2256_v46, 0.0 }
 0x2a4   : > { %v2947_v56 = vsel %vm2888_vm12, %v2946_v40, %v2945_v41  ;;  %v2036_v5 = vpop.f32.mrf.mxu3  ;;  %v1755_v36 = vpop.f32.mrf.mxu1 }
 0x2a5   : > { %v2949_v57 = vsel %vm2891_vm13, %v2948_v11, %v2947_v56  ;;  %v2083_v12 = vadd.f32 %v2036_v5, %v1929_v33  ;;  %v1799_v5 = vadd.f32 %v1755_v36, %v4346_v29 }
 0x2a6   : > { %v2951_v19 = vsel %vm2894_vm14, %v2950_v21, %v2949_v57 }
 0x2a7   : > { %v2998_v54 = vpack.c.b16 %v2951_v19, %v2951_v19  ;;  %v2221_v3 = vadd.f32 %v2174_v24, %v2083_v12  ;;  %v1884_v6 = vpop.f32.mrf.mxu2 }
 0x2a8   : > { %v1930_v44 = vadd.f32 %v1884_v6, %v1798_v30 }
 0x2a9   : > { %3015 = vst.msk [vmem:[%s4454_s13 + $0x10] sm:$0xf] %vm3010_vm15, %v2998_v54  ;;  %v2257_v32 = vadd.f32 %v4615_v61, %v2221_v3 }
 0x2ab   : > { %v2289_v27 = vmax.f32 %v2257_v32, 0.0  ;;  %v2176_v1 = vpop.f32.mrf.mxu0 }
 0x2ac   : > { %v2038_v26 = vpop.f32.mrf.mxu3  ;;  %v4622_v53 = vpop.f32.mrf.mxu1 }
 0x2ad   : > { %v2309_v17 = vmax.f32 %v2287_v55, %v2289_v27  ;;  %v2084_v38 = vadd.f32 %v2038_v26, %v1930_v44 }
 0x2af   : > { %v2361_v13 = vrot.slane %v2309_v17, 2  ;;  %v2362_v10 = vrot.slane %v2309_v17, 4  ;;  %v2363_v34 = vrot.slane %v2309_v17, 6  ;;  %v3356_v0 = vrot.slane %v2309_v17, 9  ;;  %v1887_v22 = vpop.f32.mrf.mxu2 }
 0x2b0   : > { %v2222_v42 = vadd.f32 %v2176_v1, %v2084_v38  ;;  %v1931_v30 = vadd.f32 %v1887_v22, %v1799_v5 }
 0x2b1   : > { %v3357_v39 = vrot.slane %v2361_v13, 9  ;;  %v3358_v15 = vrot.slane %v2362_v10, 9  ;;  %v3359_v14 = vrot.slane %v2363_v34, 9  ;;  %v2659_v49 = vmax.f32 %v2309_v17, %v3356_v0 }
 0x2b2   : > { %v2258_v60 = vadd.f32 %v4615_v61, %v2222_v42 }
 0x2b3   : > { %v2660_v50 = vmax.f32 %v2361_v13, %v3357_v39  ;;  %v2661_v23 = vmax.f32 %v2362_v10, %v3358_v15  ;;  %v2662_v48 = vmax.f32 %v2363_v34, %v3359_v14  ;;  %v2179_v47 = vpop.f32.mrf.mxu0  ;;  %v2723_v16 = vpack.c.bf16 %v2659_v49, %v2659_v49 }
 0x2b4   : > { %v2290_v43 = vmax.f32 %v2258_v60, 0.0  ;;  %v2041_v31 = vpop.f32.mrf.mxu3  ;;  %v1760_v35 = vpop.f32.mrf.mxu1 }
 0x2b5   : > { %v2724_v28 = vpack.c.bf16 %v2660_v50, %v2660_v50  ;;  %v2725_v4 = vpack.c.bf16 %v2661_v23, %v2661_v23  ;;  %v2726_v25 = vpack.c.bf16 %v2662_v48, %v2662_v48  ;;  %v2851_v21 = vunpack.c.l.b16 %v2723_v16 }
 0x2b6   : > { %v2310_v33 = vmax.f32 %v2288_v37, %v2290_v43  ;;  %v2085_v13 = vadd.f32 %v2041_v31, %v1931_v30  ;;  %v1801_v10 = vadd.f32 %v1760_v35, %v4360_v20  ;;  %v1800_v50 = vadd.f32 %v4622_v53, %v4351_v52 }
 0x2b7   : > { %v2852_v40 = vunpack.c.l.b16 %v2724_v28  ;;  %v2853_v11 = vunpack.c.l.b16 %v2725_v4  ;;  %v1889_v7 = vpop.f32.mrf.mxu2  ;;  %v2854_v9 = vunpack.c.l.b16 %v2726_v25 }
 0x2b8   : > { %v2364_v41 = vrot.slane %v2310_v33, 2  ;;  %v2365_v62 = vrot.slane %v2310_v33, 4  ;;  %v2366_v24 = vrot.slane %v2310_v33, 6  ;;  %v3360_v56 = vrot.slane %v2310_v33, 9 }
 0x2b9   : > { %v2952_v58 = vrot.slane %v2852_v40, 7  ;;  %v2954_v3 = vrot.slane %v2853_v11, 6  ;;  %v2956_v0 = vrot.slane %v2854_v9, 5  ;;  %v2223_v48 = vadd.f32 %v2179_v47, %v2085_v13 }
 0x2ba   : > { %v3361_v57 = vrot.slane %v2364_v41, 9  ;;  %v3362_v12 = vrot.slane %v2365_v62, 9  ;;  %v3363_v19 = vrot.slane %v2366_v24, 9  ;;  %v2663_v54 = vmax.f32 %v2310_v33, %v3360_v56 }
 0x2bb   : > { %v2181_v6 = vpop.f32.mrf.mxu0  ;;  %v2953_v59 = vsel %vm2876_vm8, %v2952_v58, %v2851_v21  ;;  %v1932_v31 = vadd.f32 %v1889_v7, %v1800_v50  ;;  %v2259_v40 = vadd.f32 %v4615_v61, %v2223_v48 }
 0x2bc   : > { %v2664_v32 = vmax.f32 %v2364_v41, %v3361_v57  ;;  %v2665_v44 = vmax.f32 %v2365_v62, %v3362_v12  ;;  %v2666_v55 = vmax.f32 %v2366_v24, %v3363_v19  ;;  %v2043_v27 = vpop.f32.mrf.mxu3  ;;  %v1762_v1 = vpop.f32.mrf.mxu1  ;;  %v2727_v18 = vpack.c.bf16 %v2663_v54, %v2663_v54 }
 0x2bd   : > { %v2955_v29 = vsel %vm2879_vm9, %v2954_v3, %v2953_v59  ;;  %v1802_v53 = vadd.f32 %v1762_v1, %v4365_v8  ;;  %v2086_v11 = vadd.f32 %v2043_v27, %v1932_v31  ;;  %v2291_v62 = vmax.f32 %v2259_v40, 0.0 }
 0x2be   : > { %v2728_v26 = vpack.c.bf16 %v2664_v32, %v2664_v32  ;;  %v2729_v17 = vpack.c.bf16 %v2665_v44, %v2665_v44  ;;  %v2730_v38 = vpack.c.bf16 %v2666_v55, %v2666_v55  ;;  %v2855_v36 = vunpack.c.l.b16 %v2727_v18 }
 0x2bf   : > { %v1892_v34 = vpop.f32.mrf.mxu2  ;;  %v2957_v14 = vsel %vm2882_vm10, %v2956_v0, %v2955_v29  ;;  %v2224_v21 = vadd.f32 %v2181_v6, %v2086_v11 }
 0x2c0   : > { %v2856_v22 = vunpack.c.l.b16 %v2728_v26  ;;  %v2857_v46 = vunpack.c.l.b16 %v2729_v17  ;;  %v2858_v42 = vunpack.c.l.b16 %v2730_v38  ;;  %v2958_v39 = vrot.slane %v2855_v36, 4 }
 0x2c1   : > { %v1933_v15 = vadd.f32 %v1892_v34, %v1801_v10  ;;  %v2260_v8 = vadd.f32 %v4615_v61, %v2224_v21 }
 0x2c2   : > { %v2960_v49 = vrot.slane %v2856_v22, 3  ;;  %v2962_v60 = vrot.slane %v2857_v46, 2  ;;  %v2959_v23 = vsel %vm2885_vm11, %v2958_v39, %v2957_v14  ;;  %v2964_v43 = vrot.slane %v2858_v42, 1 }
 0x2c3   : > { %v2184_v37 = vpop.f32.mrf.mxu0  ;;  %v2292_v38 = vmax.f32 %v2260_v8, 0.0 }
 0x2c4   : > { %v2961_v20 = vsel %vm2888_vm12, %v2960_v49, %v2959_v23  ;;  %v2046_v35 = vpop.f32.mrf.mxu3  ;;  %v1765_v33 = vpop.f32.mrf.mxu1 }
 0x2c5   : > { %v2963_v16 = vsel %vm2891_vm13, %v2962_v60, %v2961_v20  ;;  %v2087_v28 = vadd.f32 %v2046_v35, %v1933_v15  ;;  %v1803_v48 = vadd.f32 %v1765_v33, %v4374_v51 }
 0x2c6   : > { %v2965_v4 = vsel %vm2894_vm14, %v2964_v43, %v2963_v16 }
 0x2c7   : > { %v2999_v25 = vpack.c.b16 %v2965_v4, %v2965_v4  ;;  %v2225_v52 = vadd.f32 %v2184_v37, %v2087_v28  ;;  %v1894_v47 = vpop.f32.mrf.mxu2 }
 0x2c8   : > { %v1934_v7 = vadd.f32 %v1894_v47, %v1802_v53 }
 0x2c9   : > { %3016 = vst.msk [vmem:[%s4454_s13 + $0x14] sm:$0xf] %vm3010_vm15, %v2999_v25  ;;  %v2261_v41 = vadd.f32 %v4615_v61, %v2225_v52 }
 0x2cb   : > { %v2293_v24 = vmax.f32 %v2261_v41, 0.0  ;;  %v2186_v56 = vpop.f32.mrf.mxu0 }
 0x2cc   : > { %v2048_v58 = vpop.f32.mrf.mxu3  ;;  %v1767_v59 = vpop.f32.mrf.mxu1 }
 0x2cd   : > { %v2311_v5 = vmax.f32 %v2291_v62, %v2293_v24  ;;  %v2088_v57 = vadd.f32 %v2048_v58, %v1934_v7 }
 0x2cf   : > { %v2367_v12 = vrot.slane %v2311_v5, 2  ;;  %v2368_v19 = vrot.slane %v2311_v5, 4  ;;  %v2369_v54 = vrot.slane %v2311_v5, 6  ;;  %v3364_v9 = vrot.slane %v2311_v5, 9  ;;  %v1897_v3 = vpop.f32.mrf.mxu2 }
 0x2d0   : > { %v2226_v30 = vadd.f32 %v2186_v56, %v2088_v57  ;;  %v1935_v4 = vadd.f32 %v1897_v3, %v1803_v48 }
 0x2d1   : > { %v3365_v32 = vrot.slane %v2367_v12, 9  ;;  %v3366_v44 = vrot.slane %v2368_v19, 9  ;;  %v3367_v55 = vrot.slane %v2369_v54, 9  ;;  %v2667_v27 = vmax.f32 %v2311_v5, %v3364_v9 }
 0x2d2   : > { %v2262_v1 = vadd.f32 %v4615_v61, %v2226_v30 }
 0x2d3   : > { %v2668_v18 = vmax.f32 %v2367_v12, %v3365_v32  ;;  %v2669_v6 = vmax.f32 %v2368_v19, %v3366_v44  ;;  %v2670_v26 = vmax.f32 %v2369_v54, %v3367_v55  ;;  %v2189_v17 = vpop.f32.mrf.mxu0  ;;  %v2731_v13 = vpack.c.bf16 %v2667_v27, %v2667_v27 }
 0x2d4   : > { %v2294_v29 = vmax.f32 %v2262_v1, 0.0  ;;  %v2051_v36 = vpop.f32.mrf.mxu3  ;;  %v1770_v35 = vpop.f32.mrf.mxu1  ;;  %v1804_v32 = vadd.f32 %v1767_v59, %v4379_v63 }
 0x2d5   : > { %v2732_v10 = vpack.c.bf16 %v2668_v18, %v2668_v18  ;;  %v2733_v34 = vpack.c.bf16 %v2669_v6, %v2669_v6  ;;  %v2734_v22 = vpack.c.bf16 %v2670_v26, %v2670_v26  ;;  %v2859_v50 = vunpack.c.l.b16 %v2731_v13 }
 0x2d6   : > { %v2312_v0 = vmax.f32 %v2292_v38, %v2294_v29  ;;  %v2089_v56 = vadd.f32 %v2051_v36, %v1935_v4  ;;  %v1805_v21 = vadd.f32 %v1770_v35, %v4388_v2 }
 0x2d7   : > { %v2860_v46 = vunpack.c.l.b16 %v2732_v10  ;;  %v2861_v42 = vunpack.c.l.b16 %v2733_v34  ;;  %v1899_v39 = vpop.f32.mrf.mxu2  ;;  %v2862_v16 = vunpack.c.l.b16 %v2734_v22 }
 0x2d8   : > { %v2370_v15 = vrot.slane %v2312_v0, 2  ;;  %v2371_v14 = vrot.slane %v2312_v0, 4  ;;  %v2372_v49 = vrot.slane %v2312_v0, 6  ;;  %v3368_v60 = vrot.slane %v2312_v0, 9 }
 0x2d9   : > { %v2966_v23 = vrot.slane %v2860_v46, 7  ;;  %v2968_v28 = vrot.slane %v2861_v42, 6  ;;  %v2970_v5 = vrot.slane %v2862_v16, 5  ;;  %v2227_v55 = vadd.f32 %v2189_v17, %v2089_v56 }
 0x2da   : > { %v3369_v37 = vrot.slane %v2370_v15, 9  ;;  %v3370_v20 = vrot.slane %v2371_v14, 9  ;;  %v3371_v43 = vrot.slane %v2372_v49, 9  ;;  %v2671_v31 = vmax.f32 %v2312_v0, %v3368_v60 }
 0x2db   : > { %v2191_v25 = vpop.f32.mrf.mxu0  ;;  %v2967_v40 = vsel %vm2876_vm8, %v2966_v23, %v2859_v50  ;;  %v1936_v1 = vadd.f32 %v1899_v39, %v1804_v32  ;;  %v2263_v10 = vadd.f32 %v4615_v61, %v2227_v55 }
 0x2dc   : > { %v2672_v52 = vmax.f32 %v2370_v15, %v3369_v37  ;;  %v2673_v53 = vmax.f32 %v2371_v14, %v3370_v20  ;;  %v2674_v47 = vmax.f32 %v2372_v49, %v3371_v43  ;;  %v2053_v11 = vpop.f32.mrf.mxu3  ;;  %v2735_v41 = vpack.c.bf16 %v2671_v31, %v2671_v31  ;;  %v1772_v6 = vpop.f32.mrf.mxu1 }
 0x2dd   : > { %v2969_v51 = vsel %vm2879_vm9, %v2968_v28, %v2967_v40  ;;  %v1806_v59 = vadd.f32 %v1772_v6, %v4392_v45  ;;  %v2090_v34 = vadd.f32 %v2053_v11, %v1936_v1  ;;  %v2295_v46 = vmax.f32 %v2263_v10, 0.0 }
 0x2de   : > { %v2736_v7 = vpack.c.bf16 %v2672_v52, %v2672_v52  ;;  %v2737_v62 = vpack.c.bf16 %v2673_v53, %v2673_v53  ;;  %v2738_v24 = vpack.c.bf16 %v2674_v47, %v2674_v47  ;;  %v2863_v33 = vunpack.c.l.b16 %v2735_v41 }
 0x2df   : > { %v1902_v58 = vpop.f32.mrf.mxu2  ;;  %v2971_v3 = vsel %vm2882_vm10, %v2970_v5, %v2969_v51  ;;  %v2228_v39 = vadd.f32 %v2191_v25, %v2090_v34 }
 0x2e0   : > { %v2864_v57 = vunpack.c.l.b16 %v2736_v7  ;;  %v2865_v12 = vunpack.c.l.b16 %v2737_v62  ;;  %v2866_v19 = vunpack.c.l.b16 %v2738_v24  ;;  %v2972_v54 = vrot.slane %v2863_v33, 4 }
 0x2e1   : > { %v1937_v9 = vadd.f32 %v1902_v58, %v1805_v21  ;;  %v2264_v45 = vadd.f32 %v4615_v61, %v2228_v39 }
 0x2e2   : > { %v2974_v8 = vrot.slane %v2864_v57, 3  ;;  %v2976_v30 = vrot.slane %v2865_v12, 2  ;;  %v2973_v44 = vsel %vm2885_vm11, %v2972_v54, %v2971_v3  ;;  %v2978_v2 = vrot.slane %v2866_v19, 1 }
 0x2e3   : > { %v2194_v38 = vpop.f32.mrf.mxu0  ;;  %v2296_v52 = vmax.f32 %v2264_v45, 0.0 }
 0x2e4   : > { %v2975_v27 = vsel %vm2888_vm12, %v2974_v8, %v2973_v44  ;;  %v2056_v18 = vpop.f32.mrf.mxu3 }
 0x2e5   : > { %v2977_v26 = vsel %vm2891_vm13, %v2976_v30, %v2975_v27  ;;  %v2091_v29 = vadd.f32 %v2056_v18, %v1937_v9 }
 0x2e6   : > { %v2979_v36 = vsel %vm2894_vm14, %v2978_v2, %v2977_v26 }
 0x2e7   : > { %v3000_v13 = vpack.c.b16 %v2979_v36, %v2979_v36  ;;  %v2229_v63 = vadd.f32 %v2194_v38, %v2091_v29  ;;  %v1904_v17 = vpop.f32.mrf.mxu2 }
 0x2e8   : > { %v1938_v22 = vadd.f32 %v1904_v17, %v1806_v59 }
 0x2e9   : > { %3017 = vst.msk [vmem:[%s4454_s13 + $0x18] sm:$0xf] %vm3010_vm15, %v3000_v13  ;;  %v2265_v0 = vadd.f32 %v4615_v61, %v2229_v63 }
 0x2eb   : > { %v2297_v42 = vmax.f32 %v2265_v0, 0.0  ;;  %v2196_v37 = vpop.f32.mrf.mxu0 }
 0x2ec   : > { %v2058_v15 = vpop.f32.mrf.mxu3 }
 0x2ed   : > { %v2313_v14 = vmax.f32 %v2295_v46, %v2297_v42  ;;  %v2092_v49 = vadd.f32 %v2058_v15, %v1938_v22 }
 0x2ef   : > { %v2373_v60 = vrot.slane %v2313_v14, 2  ;;  %v2374_v50 = vrot.slane %v2313_v14, 4  ;;  %v2375_v23 = vrot.slane %v2313_v14, 6  ;;  %v3372_v48 = vrot.slane %v2313_v14, 9 }
 0x2f0   : > { %v2230_v20 = vadd.f32 %v2196_v37, %v2092_v49 }
 0x2f1   : > { %v3373_v43 = vrot.slane %v2373_v60, 9  ;;  %v3374_v31 = vrot.slane %v2374_v50, 9  ;;  %v3375_v35 = vrot.slane %v2375_v23, 9  ;;  %v2675_v16 = vmax.f32 %v2313_v14, %v3372_v48 }
 0x2f2   : > { %v2266_v28 = vadd.f32 %v4615_v61, %v2230_v20 }
 0x2f3   : > { %v2676_v4 = vmax.f32 %v2373_v60, %v3373_v43  ;;  %v2677_v40 = vmax.f32 %v2374_v50, %v3374_v31  ;;  %v2678_v25 = vmax.f32 %v2375_v23, %v3375_v35  ;;  %v2739_v47 = vpack.c.bf16 %v2675_v16, %v2675_v16 }
 0x2f4   : > { %v2298_v53 = vmax.f32 %v2266_v28, 0.0 }
 0x2f5   : > { %v2740_v11 = vpack.c.bf16 %v2676_v4, %v2676_v4  ;;  %v2741_v41 = vpack.c.bf16 %v2677_v40, %v2677_v40  ;;  %v2742_v62 = vpack.c.bf16 %v2678_v25, %v2678_v25  ;;  %v2867_v5 = vunpack.c.l.b16 %v2739_v47 }
 0x2f6   : > { %v2314_v7 = vmax.f32 %v2296_v52, %v2298_v53 }
 0x2f7   : > { %v2868_v24 = vunpack.c.l.b16 %v2740_v11  ;;  %v2869_v51 = vunpack.c.l.b16 %v2741_v41  ;;  %v2870_v9 = vunpack.c.l.b16 %v2742_v62 }
 0x2f8   : > { %v2376_v33 = vrot.slane %v2314_v7, 2  ;;  %v2377_v56 = vrot.slane %v2314_v7, 4  ;;  %v2378_v21 = vrot.slane %v2314_v7, 6  ;;  %v3376_v58 = vrot.slane %v2314_v7, 9 }
 0x2f9   : > { %v2980_v57 = vrot.slane %v2868_v24, 7  ;;  %v2982_v3 = vrot.slane %v2869_v51, 6  ;;  %v2984_v26 = vrot.slane %v2870_v9, 5 }
 0x2fa   : > { %v3377_v12 = vrot.slane %v2376_v33, 9  ;;  %v3378_v61 = vrot.slane %v2377_v56, 9  ;;  %v3379_v19 = vrot.slane %v2378_v21, 9  ;;  %v2679_v54 = vmax.f32 %v2314_v7, %v3376_v58 }
 0x2fb   : > { %v2981_v8 = vsel %vm2876_vm8, %v2980_v57, %v2867_v5 }
 0x2fc   : > { %v2680_v30 = vmax.f32 %v2376_v33, %v3377_v12  ;;  %v2681_v32 = vmax.f32 %v2377_v56, %v3378_v61  ;;  %v2682_v44 = vmax.f32 %v2378_v21, %v3379_v19  ;;  %v2743_v55 = vpack.c.bf16 %v2679_v54, %v2679_v54 }
 0x2fd   : > { %v2983_v18 = vsel %vm2879_vm9, %v2982_v3, %v2981_v8 }
 0x2fe   : > { %v2744_v27 = vpack.c.bf16 %v2680_v30, %v2680_v30  ;;  %v2745_v2 = vpack.c.bf16 %v2681_v32, %v2681_v32  ;;  %v2746_v1 = vpack.c.bf16 %v2682_v44, %v2682_v44  ;;  %v2871_v6 = vunpack.c.l.b16 %v2743_v55 }
 0x2ff   : > { %v2985_v10 = vsel %vm2882_vm10, %v2984_v26, %v2983_v18 }
 0x300   : > { %v2872_v38 = vunpack.c.l.b16 %v2744_v27  ;;  %v2873_v29 = vunpack.c.l.b16 %v2745_v2  ;;  %v2874_v36 = vunpack.c.l.b16 %v2746_v1  ;;  %v2986_v13 = vrot.slane %v2871_v6, 4 }
 0x302   : > { %v2988_v63 = vrot.slane %v2872_v38, 3  ;;  %v2990_v59 = vrot.slane %v2873_v29, 2  ;;  %v2987_v17 = vsel %vm2885_vm11, %v2986_v13, %v2985_v10  ;;  %v2992_v0 = vrot.slane %v2874_v36, 1 }
 0x304   : > { %v2989_v34 = vsel %vm2888_vm12, %v2988_v63, %v2987_v17 }
 0x305   : > { %v2991_v22 = vsel %vm2891_vm13, %v2990_v59, %v2989_v34 }
 0x306   : > { %v2993_v46 = vsel %vm2894_vm14, %v2992_v0, %v2991_v22 }
 0x307   : > { %v3001_v42 = vpack.c.b16 %v2993_v46, %v2993_v46 }
 0x309   : > { %3018 = vst.msk [vmem:[%s4454_s13 + $0x1c] sm:$0xf] %vm3010_vm15, %v3001_v42 }
 0x30a PF: > { %s13_s12 = sadd.s32 1, %s3429_s12  }
 0x30b   : > { %p10_p4 = scmp.ge.s32.totalorder %s13_s12, 4  }
 0x30d   :  { %12 = sbr.rel (!%p10_p4) target bundleno = 1 (0x1), region = 62 }

// kernel: homography_model_forward.9
= control target key start
LH: loop header
LB: loop body
LE: loop exit
PB: predicated region body
PF: predicated region fallthrough
CT: control target
= control target key end

     0   :  { %s2738_s12 = smov 0   ;;  %s3897_s0 = inlined_call_operand.vmem [shape: bf16[2,18,18,2], index: 0, kind: input, shape index: {}]   ;;  %s3898_s1 = inlined_call_operand.vmem [shape: bf16[18,8], index: 1, kind: input, shape index: {}]   ;;  %s3899_s2 = inlined_call_operand.vmem [shape: f32[1,8], index: 2, kind: input, shape index: {}]   ;;  %s3900_s3 = inlined_call_operand.vmem [shape: bf16[2,16,16,8], index: 3, kind: output, shape index: {}]  }
   0x1 LB: > { %s2425_s13 = sadd.s32 4294967295, %s2716_s12   ;;  %p2429_p0 = scmp.ge.s32.totalorder %s2716_s12, 1  ;;  %s2716_s12 = sphi %s2738_s12, %s13_s12  }
   0x2   : > { %p137_p1 = scmp.lt.s32.totalorder %s2716_s12, 3 }
   0x4   : > { %p138_p2 = pnand %p2429_p0, %p137_p1 }
   0x6   : > { %141 = sbr.rel (%p138_p2) target bundleno = 761 (0x2f9), region = 32 }
   0xb   : > { %v226_v0 = vld [vmem:[%s3898_s1] sm:$0xf]  ;;  %p161_p3 = scmp.lt.s32.totalorder %s2425_s13, 1  ;;  %v2754_v3 = vld [vmem:[%s3898_s1 + $0x4] sm:$0xf]  ;;  %vm717_vm0 = vcmask 1040384  }
   0xc   : > { %v665_v1 = vunpack.c.l.b16 %v226_v0  ;;  %vm229_vm1 = vsmask.f32 3328  ;;  %vm230_vm2 = vsmask.f32 7440  ;;  %v939_v7 = vsel %vm717_vm0, %v226_v0, 0 }
   0xd   : > { %s4042_s13 = smov (!%p161_p3, %s2425_s13), 1  ;;  %v1546_v8 = vsel %vm717_vm0, %v2754_v3, 0  ;;  %vm2789_vm3 = vmor %vm229_vm1, %vm230_vm2  ;;  %vm668_vm4 = vcmask 15360   ;;  %vm1046_vm5 = vcmask 1042432   ;;  %vm1047_vm6 = vcmask 1046532  }
   0xe   : > { %v666_v2 = vpack.c.b16 %v665_v1, %v665_v1  ;;  %s2691_s18 = smul.u32 216, %s4042_s13  ;;  %vm3085_vm7 = vmor %vm1046_vm5, %vm1047_vm6  ;;  %s2669_s26 = sshll.u32 %s4042_s13, 7  ;;  %vm2337_vm8 = vcmask 60416  }
   0xf   : > { %s3689_s29 = scalar_lea.vmem %s3900_s3, %s2669_s26 }
  0x10   : > { %v667_v4 = vrot.slane %v666_v2, 1  ;;  %v1209_v5 = vrot.slane %v666_v2, 2  ;;  %v1387_v6 = vrot.slane %v666_v2, 3  ;;  %s2760_s21 = scalar_lea.vmem %s3897_s0, %s2691_s18 }
  0x11   : > { %v2767_v10 = vld [vmem:[%s2760_s21 + $0x30] sm:$0xf]  ;;  %v2770_v11 = vld [vmem:[%s2760_s21 + $0x34] sm:$0xf]  ;;  %v2774_v13 = vld [vmem:[%s2760_s21 + $0x38] sm:$0x1] }
  0x12   : > { %v719_v9 = vsel %vm717_vm0, %v667_v4, 0  ;;  %v1259_v12 = vsel %vm717_vm0, %v1209_v5, 0  ;;  %v329_v14 = vshrl.u32 %v2767_v10, 16  ;;  %v332_v15 = vshll.u32 %v2767_v10, 16  ;;  %v196_v19 = vld [vmem:[%s2760_s21 + $0x60] sm:$0xf] }
  0x13   : > { %2688 = vmatpush.bf16.msra.mxu1 %v719_v9  ;;  %2689 = vmatpush.bf16.msra.mxu2 %v719_v9  ;;  %v338_v16 = vshll.u32 %v2770_v11, 16  ;;  %v342_v17 = vshrl.u32 %v2770_v11, 16  ;;  %v348_v18 = vshll.u32 %v2774_v13, 16  ;;  %v197_v20 = vld [vmem:[%s2760_s21 + $0x64] sm:$0xf]  ;;  %v1392_v21 = vsel %vm717_vm0, %v1387_v6, 0 }
  0x14   : > { %2690 = vmatpush.bf16.msra.mxu3 %v719_v9  ;;  %728 = vmatpush.bf16.msra.mxu0 %v719_v9  ;;  %v331_v22 = vrot.slane %v329_v14, 4  ;;  %v334_v23 = vrot.slane %v332_v15, 5  ;;  %v198_v26 = vld [vmem:[%s2760_s21 + $0x68] sm:$0x1]  ;;  %v425_v28 = vshrl.u32 %v196_v19, 16  ;;  %v428_v29 = vshll.u32 %v196_v19, 16 }
  0x15   : > { %v340_v24 = vrot.slane %v338_v16, 5  ;;  %v344_v25 = vrot.slane %v342_v17, 4  ;;  %v350_v27 = vrot.slane %v348_v18, 5  ;;  %v434_v30 = vshll.u32 %v197_v20, 16  ;;  %v208_v35 = vld [vmem:[%s2760_s21 + $0x90] sm:$0xf] }
  0x16   : > { %v335_v31 = vor.u32 %v334_v23, %v331_v22  ;;  %v438_v33 = vshrl.u32 %v197_v20, 16  ;;  %v444_v34 = vshll.u32 %v198_v26, 16  ;;  %v209_v36 = vld [vmem:[%s2760_s21 + $0x94] sm:$0xf]  ;;  %v427_v38 = vrot.slane %v425_v28, 4 }
  0x17   : > { %1268 = vmatpush.bf16.msrb.mxu2 %v1259_v12  ;;  %948 = vmatpush.bf16.msrb.mxu1 %v939_v7  ;;  %v345_v32 = vor.u32 %v344_v25, %v340_v24  ;;  %v430_v39 = vrot.slane %v428_v29, 5  ;;  %v436_v40 = vrot.slane %v434_v30, 5  ;;  %v521_v46 = vshrl.u32 %v208_v35, 16  ;;  %v210_v52 = vld [vmem:[%s2760_s21 + $0x98] sm:$0x1] }
  0x18   : > { %1401 = vmatpush.bf16.msrb.mxu3 %v1392_v21  ;;  %1555 = vmatpush.bf16.msrb.mxu0 %v1546_v8  ;;  %v336_v41 = vrot.slane %v335_v31, 4  ;;  %v440_v43 = vrot.slane %v438_v33, 4  ;;  %v446_v44 = vrot.slane %v444_v34, 5  ;;  %v524_v47 = vshll.u32 %v208_v35, 16  ;;  %v2799_v62 = vld [vmem:[%s2760_s21] sm:$0xf] }
  0x19   : > { %v346_v42 = vrot.slane %v345_v32, 4  ;;  %v431_v45 = vor.u32 %v430_v39, %v427_v38  ;;  %v530_v48 = vshll.u32 %v209_v36, 16  ;;  %v534_v53 = vshrl.u32 %v209_v36, 16  ;;  %v2806_v2 = vld [vmem:[%s2760_s21 + $0x4] sm:$0xf] }
  0x1a   : > { %v341_v49 = vsel %vm2789_vm3, %v336_v41, %v340_v24  ;;  %v441_v51 = vor.u32 %v440_v43, %v436_v40  ;;  %v523_v57 = vrot.slane %v521_v46, 4  ;;  %v526_v59 = vrot.slane %v524_v47, 5  ;;  %v2811_v8 = vld [vmem:[%s2760_s21 + $0x8] sm:$0x1]  ;;  %v2823_v24 = vld [vmem:[%s2760_s21 + $0x3c] sm:$0xf] }
  0x1b   : > { %v351_v50 = vsel %vm2789_vm3, %v346_v42, %v350_v27  ;;  %v624_v54 = vunpack.c.l.b16 %v341_v49  ;;  %v432_v56 = vrot.slane %v431_v45, 4  ;;  %v532_v60 = vrot.slane %v530_v48, 5  ;;  %v2830_v29 = vld [vmem:[%s2760_s21 + $0x40] sm:$0xf]  ;;  %v2835_v33 = vld [vmem:[%s2760_s21 + $0x44] sm:$0x1] }
  0x1c   : > { %v625_v55 = vunpack.c.l.b16 %v351_v50  ;;  %v442_v58 = vrot.slane %v441_v51, 4  ;;  %v536_v61 = vrot.slane %v534_v53, 4  ;;  %v540_v1 = vshll.u32 %v210_v52, 16  ;;  %v2840_v39 = vld [vmem:[%s2760_s21 + $0x6c] sm:$0xf] }
  0x1d   : > { %v437_v0 = vsel %vm2789_vm3, %v432_v56, %v436_v40  ;;  %v527_v6 = vor.u32 %v526_v59, %v523_v57  ;;  %v233_v14 = vshrl.u32 %v2799_v62, 16  ;;  %v236_v15 = vshll.u32 %v2799_v62, 16  ;;  %v2848_v48 = vld [vmem:[%s2760_s21 + $0x70] sm:$0xf]  ;;  %v2855_v52 = vld [vmem:[%s2760_s21 + $0x74] sm:$0x1] }
  0x1e   : > { %v2801_v63 = vpack.c.b16 %v625_v55, %v624_v54  ;;  %v447_v4 = vsel %vm2789_vm3, %v442_v58, %v446_v44  ;;  %v632_v5 = vunpack.c.l.b16 %v437_v0  ;;  %v537_v7 = vor.u32 %v536_v61, %v532_v60 }
  0x1f   : > { %v633_v9 = vunpack.c.l.b16 %v447_v4  ;;  %v542_v12 = vrot.slane %v540_v1, 5  ;;  %v528_v16 = vrot.slane %v527_v6, 4  ;;  %v242_v18 = vshll.u32 %v2806_v2, 16  ;;  %v211_v6 = vld [vmem:[%s2760_s21 + $0x9c] sm:$0xf] }
  0x20   : > { %2437 = vmatmul.msk.bf16.vlgmr.msra.gmra.mxu1 %vm668_vm4, %v2801_v63  ;;  %v538_v17 = vrot.slane %v537_v7, 4  ;;  %v246_v19 = vshrl.u32 %v2806_v2, 16  ;;  %v235_v21 = vrot.slane %v233_v14, 4  ;;  %v238_v22 = vrot.slane %v236_v15, 5  ;;  %v212_v14 = vld [vmem:[%s2760_s21 + $0xa0] sm:$0xf] }
  0x21   : > { %v2819_v20 = vpack.c.b16 %v633_v9, %v632_v5  ;;  %v252_v23 = vshll.u32 %v2811_v8, 16  ;;  %v533_v25 = vsel %vm2789_vm3, %v528_v16, %v532_v60  ;;  %v244_v27 = vrot.slane %v242_v18, 5 }
  0x22   : > { %v543_v26 = vsel %vm2789_vm3, %v538_v17, %v542_v12  ;;  %v248_v28 = vrot.slane %v246_v19, 4  ;;  %v640_v30 = vunpack.c.l.b16 %v533_v25  ;;  %v239_v32 = vor.u32 %v238_v22, %v235_v21  ;;  %v213_v19 = vld [vmem:[%s2760_s21 + $0xa4] sm:$0x1] }
  0x23   : > { %3943 = vst [vmem:[#allocation2_spill] sm:$0xff] %v2819_v20  ;;  %2441 = vmatmul.msk.bf16.vlgmr.msra.gmra.mxu2 %vm668_vm4, %v2819_v20  ;;  %v641_v31 = vunpack.c.l.b16 %v543_v26  ;;  %v254_v35 = vrot.slane %v252_v23, 5  ;;  %v353_v36 = vshrl.u32 %v2823_v24, 16  ;;  %v356_v38 = vshll.u32 %v2823_v24, 16 }
  0x24   : > { %v249_v34 = vor.u32 %v248_v28, %v244_v27  ;;  %v240_v41 = vrot.slane %v239_v32, 4  ;;  %v362_v42 = vshll.u32 %v2830_v29, 16  ;;  %v366_v43 = vshrl.u32 %v2830_v29, 16 }
  0x25   : > { %v2842_v40 = vpack.c.b16 %v641_v31, %v640_v30  ;;  %v355_v45 = vrot.slane %v353_v36, 4  ;;  %v358_v46 = vrot.slane %v356_v38, 5  ;;  %v372_v47 = vshll.u32 %v2835_v33, 16  ;;  %v2873_v36 = vld [vmem:[%s2760_s21 + $0xc] sm:$0xf] }
  0x26   : > { %v250_v44 = vrot.slane %v249_v34, 4  ;;  %v245_v49 = vsel %vm2789_vm3, %v240_v41, %v244_v27  ;;  %v364_v50 = vrot.slane %v362_v42, 5  ;;  %v368_v51 = vrot.slane %v366_v43, 4 }
  0x27   : > { %3944 = vst [vmem:[#allocation3_spill] sm:$0xff] %v2842_v40  ;;  %2445 = vmatmul.msk.bf16.vlgmr.msra.gmra.mxu3 %vm668_vm4, %v2842_v40  ;;  %v449_v53 = vshrl.u32 %v2840_v39, 16  ;;  %v616_v55 = vunpack.c.l.b16 %v245_v49  ;;  %v359_v56 = vor.u32 %v358_v46, %v355_v45  ;;  %v374_v57 = vrot.slane %v372_v47, 5  ;;  %v2883_v49 = vld [vmem:[%s2760_s21 + $0x14] sm:$0x1] }
  0x28   : > { %v255_v54 = vsel %vm2789_vm3, %v250_v44, %v254_v35  ;;  %v369_v59 = vor.u32 %v368_v51, %v364_v50  ;;  %v452_v61 = vshll.u32 %v2840_v39, 16  ;;  %v458_v1 = vshll.u32 %v2848_v48, 16  ;;  %v2878_v44 = vld [vmem:[%s2760_s21 + $0x10] sm:$0xf]  ;;  %v3055_v40 = vld [vmem:[%s2760_s21 + $0x24] sm:$0xf] }
  0x29   : > { %v617_v58 = vunpack.c.l.b16 %v255_v54  ;;  %v451_v60 = vrot.slane %v449_v53, 4  ;;  %v360_v0 = vrot.slane %v359_v56, 4  ;;  %v462_v4 = vshrl.u32 %v2848_v48, 16 }
  0x2a   : > { %v468_v5 = vshll.u32 %v2855_v52, 16  ;;  %v370_v9 = vrot.slane %v369_v59, 4  ;;  %v454_v12 = vrot.slane %v452_v61, 5  ;;  %v460_v16 = vrot.slane %v458_v1, 5  ;;  %v2893_v59 = vld [vmem:[%s2760_s21 + $0x48] sm:$0xf] }
  0x2b   : > { %v648_v7 = vpack.c.b16 %v617_v58, %v616_v55  ;;  %v365_v15 = vsel %vm2789_vm3, %v360_v0, %v364_v50  ;;  %v464_v17 = vrot.slane %v462_v4, 4  ;;  %v545_v25 = vshrl.u32 %v211_v6, 16 }
  0x2c   : > { %v470_v18 = vrot.slane %v468_v5, 5  ;;  %v375_v21 = vsel %vm2789_vm3, %v370_v9, %v374_v57  ;;  %v626_v22 = vunpack.c.l.b16 %v365_v15  ;;  %v455_v23 = vor.u32 %v454_v12, %v451_v60  ;;  %v2900_v9 = vld [vmem:[%s2760_s21 + $0x4c] sm:$0xf] }
  0x2d   : > { %2433 = vmatmul.msk.bf16.vlgmr.msra.gmra.mxu0 %vm668_vm4, %v648_v7  ;;  %v627_v26 = vunpack.c.l.b16 %v375_v21  ;;  %v465_v27 = vor.u32 %v464_v17, %v460_v16  ;;  %v548_v28 = vshll.u32 %v211_v6, 16  ;;  %v554_v30 = vshll.u32 %v212_v14, 16 }
  0x2e   : > { %v456_v31 = vrot.slane %v455_v23, 4  ;;  %v547_v32 = vrot.slane %v545_v25, 4  ;;  %v558_v34 = vshrl.u32 %v212_v14, 16  ;;  %v564_v35 = vshll.u32 %v213_v19, 16  ;;  %v2914_v23 = vld [vmem:[%s2760_s21 + $0x78] sm:$0xf] }
  0x2f   : > { %v2875_v38 = vpack.c.b16 %v627_v26, %v626_v22  ;;  %v466_v41 = vrot.slane %v465_v27, 4  ;;  %v550_v42 = vrot.slane %v548_v28, 5  ;;  %v556_v43 = vrot.slane %v554_v30, 5 }
  0x30   : > { %v461_v45 = vsel %vm2789_vm3, %v456_v31, %v460_v16  ;;  %v560_v46 = vrot.slane %v558_v34, 4  ;;  %v566_v47 = vrot.slane %v564_v35, 5  ;;  %v257_v54 = vshrl.u32 %v2873_v36, 16  ;;  %v2905_v16 = vld [vmem:[%s2760_s21 + $0x50] sm:$0x1] }
  0x31   : > { %2438 = vmatmul.msk.bf16.gmra.mxu1 %vm668_vm4, %v2875_v38  ;;  %v471_v50 = vsel %vm2789_vm3, %v466_v41, %v470_v18  ;;  %v634_v51 = vunpack.c.l.b16 %v461_v45  ;;  %v551_v53 = vor.u32 %v550_v42, %v547_v32  ;;  %v260_v57 = vshll.u32 %v2873_v36, 16 }
  0x32   : > { %v635_v55 = vunpack.c.l.b16 %v471_v50  ;;  %v561_v56 = vor.u32 %v560_v46, %v556_v43  ;;  %v266_v58 = vshll.u32 %v2878_v44, 16  ;;  %v259_v61 = vrot.slane %v257_v54, 4 }
  0x33   : > { %v552_v60 = vrot.slane %v551_v53, 4  ;;  %v270_v0 = vshrl.u32 %v2878_v44, 16  ;;  %v276_v1 = vshll.u32 %v2883_v49, 16  ;;  %v262_v6 = vrot.slane %v260_v57, 5  ;;  %v2928_v53 = vld [vmem:[%s2760_s21 + $0x80] sm:$0x1] }
  0x34   : > { %v2897_v4 = vpack.c.b16 %v635_v55, %v634_v51  ;;  %v562_v5 = vrot.slane %v561_v56, 4  ;;  %v268_v7 = vrot.slane %v266_v58, 5  ;;  %v377_v17 = vshrl.u32 %v2893_v59, 16 }
  0x35   : > { %v557_v12 = vsel %vm2789_vm3, %v552_v60, %v556_v43  ;;  %v272_v14 = vrot.slane %v270_v0, 4  ;;  %v278_v15 = vrot.slane %v276_v1, 5  ;;  %v263_v21 = vor.u32 %v262_v6, %v259_v61  ;;  %v2922_v43 = vld [vmem:[%s2760_s21 + $0x7c] sm:$0xf]  ;;  %v2937_v1 = vld [vmem:[%s2760_s21 + $0xa8] sm:$0xf] }
  0x36   : > { %2442 = vmatmul.msk.bf16.gmra.mxu2 %vm668_vm4, %v2897_v4  ;;  %v567_v18 = vsel %vm2789_vm3, %v562_v5, %v566_v47  ;;  %v642_v19 = vunpack.c.l.b16 %v557_v12  ;;  %v380_v22 = vshll.u32 %v2893_v59, 16  ;;  %v379_v27 = vrot.slane %v377_v17, 4  ;;  %3946 = vst [vmem:[#allocation5_spill] sm:$0xff] %v2937_v1  ;;  %v2942_v12 = vld [vmem:[%s2760_s21 + $0xac] sm:$0xf] }
  0x37   : > { %v643_v25 = vunpack.c.l.b16 %v567_v18  ;;  %v273_v26 = vor.u32 %v272_v14, %v268_v7  ;;  %v386_v28 = vshll.u32 %v2900_v9, 16  ;;  %v264_v30 = vrot.slane %v263_v21, 4  ;;  %3947 = vst [vmem:[#allocation6_spill] sm:$0xff] %v2942_v12 }
  0x38   : > { %v382_v31 = vrot.slane %v380_v22, 5  ;;  %v390_v32 = vshrl.u32 %v2900_v9, 16  ;;  %v396_v34 = vshll.u32 %v2905_v16, 16  ;;  %v473_v45 = vshrl.u32 %v2914_v23, 16 }
  0x39   : > { %v2919_v35 = vpack.c.b16 %v643_v25, %v642_v19  ;;  %v274_v41 = vrot.slane %v273_v26, 4  ;;  %v388_v42 = vrot.slane %v386_v28, 5  ;;  %v269_v46 = vsel %vm2789_vm3, %v264_v30, %v268_v7  ;;  %v2949_v26 = vld [vmem:[%s2760_s21 + $0xb0] sm:$0x1] }
  0x3a   : > { %v383_v47 = vor.u32 %v382_v31, %v379_v27  ;;  %v392_v50 = vrot.slane %v390_v32, 4  ;;  %v398_v51 = vrot.slane %v396_v34, 5  ;;  %v618_v55 = vunpack.c.l.b16 %v269_v46  ;;  %3948 = vst [vmem:[#allocation7_spill] sm:$0xff] %v2949_v26 }
  0x3b   : > { %3945 = vst [vmem:[#allocation4_spill] sm:$0xff] %v2919_v35  ;;  %2446 = vmatmul.msk.bf16.gmra.mxu3 %vm668_vm4, %v2919_v35  ;;  %v279_v54 = vsel %vm2789_vm3, %v274_v41, %v278_v15  ;;  %v475_v56 = vrot.slane %v473_v45, 4  ;;  %v476_v57 = vshll.u32 %v2914_v23, 16  ;;  %v482_v0 = vshll.u32 %v2922_v43, 16 }
  0x3c   : > { %v619_v58 = vunpack.c.l.b16 %v279_v54  ;;  %v384_v60 = vrot.slane %v383_v47, 4  ;;  %v393_v61 = vor.u32 %v392_v50, %v388_v42  ;;  %v486_v6 = vshrl.u32 %v2922_v43, 16  ;;  %v2961_v54 = vld [vmem:[%s2760_s21 + $0x18] sm:$0xf] }
  0x3d   : > { %v478_v5 = vrot.slane %v476_v57, 5  ;;  %v492_v7 = vshll.u32 %v2928_v53, 16  ;;  %v484_v18 = vrot.slane %v482_v0, 5  ;;  %v569_v28 = vshrl.u32 %v2937_v1, 16 }
  0x3e   : > { %v2944_v14 = vpack.c.b16 %v619_v58, %v618_v55  ;;  %v389_v15 = vsel %vm2789_vm3, %v384_v60, %v388_v42  ;;  %v394_v17 = vrot.slane %v393_v61, 4  ;;  %v488_v22 = vrot.slane %v486_v6, 4  ;;  %v2968_v58 = vld [vmem:[%s2760_s21 + $0x1c] sm:$0xf]  ;;  %v2972_v6 = vld [vmem:[%s2760_s21 + $0x20] sm:$0x1] }
  0x3f   : > { %v628_v19 = vunpack.c.l.b16 %v389_v15  ;;  %v479_v21 = vor.u32 %v478_v5, %v475_v56  ;;  %v494_v25 = vrot.slane %v492_v7, 5  ;;  %v572_v30 = vshll.u32 %v2937_v1, 16  ;;  %v3028_v1 = vld [vmem:[%s2760_s21 + $0xb4] sm:$0xf] }
  0x40   : > { %2434 = vmatmul.msk.bf16.gmra.mxu0 %vm668_vm4, %v2944_v14  ;;  %v399_v27 = vsel %vm2789_vm3, %v394_v17, %v398_v51  ;;  %v578_v31 = vshll.u32 %v2942_v12, 16  ;;  %v489_v41 = vor.u32 %v488_v22, %v484_v18  ;;  %v582_v42 = vshrl.u32 %v2942_v12, 16  ;;  %3953 = vst [vmem:[#allocation12_spill] sm:$0xff] %v3028_v1  ;;  %v3043_v12 = vld [vmem:[%s2760_s21 + $0xbc] sm:$0x1] }
  0x41   : > { %v629_v32 = vunpack.c.l.b16 %v399_v27  ;;  %v480_v34 = vrot.slane %v479_v21, 4  ;;  %v571_v45 = vrot.slane %v569_v28, 4  ;;  %v574_v46 = vrot.slane %v572_v30, 5  ;;  %3956 = vst [vmem:[#allocation14_spill] sm:$0xff] %v3043_v12 }
  0x42   : > { %v580_v47 = vrot.slane %v578_v31, 5  ;;  %v588_v50 = vshll.u32 %v2949_v26, 16  ;;  %v490_v56 = vrot.slane %v489_v41, 4  ;;  %v584_v57 = vrot.slane %v582_v42, 4 }
  0x43   : > { %v2963_v51 = vpack.c.b16 %v629_v32, %v628_v19  ;;  %v485_v55 = vsel %vm2789_vm3, %v480_v34, %v484_v18  ;;  %v575_v0 = vor.u32 %v574_v46, %v571_v45  ;;  %v281_v17 = vshrl.u32 %v2961_v54, 16  ;;  %v2984_v34 = vld [vmem:[%s2760_s21 + $0x54] sm:$0xf]  ;;  %v2991_v46 = vld [vmem:[%s2760_s21 + $0x58] sm:$0xf] }
  0x44   : > { %v636_v61 = vunpack.c.l.b16 %v485_v55  ;;  %v590_v5 = vrot.slane %v588_v50, 5  ;;  %v495_v7 = vsel %vm2789_vm3, %v490_v56, %v494_v25  ;;  %v585_v15 = vor.u32 %v584_v57, %v580_v47  ;;  %v2994_v50 = vld [vmem:[%s2760_s21 + $0x5c] sm:$0x1] }
  0x45   : > { %3949 = vst [vmem:[#allocation8_spill] sm:$0xff] %v2963_v51  ;;  %2439 = vmatmul.msk.bf16.gmra.mxu1 %vm668_vm4, %v2963_v51  ;;  %v284_v18 = vshll.u32 %v2961_v54, 16  ;;  %v637_v19 = vunpack.c.l.b16 %v495_v7  ;;  %v576_v21 = vrot.slane %v575_v0, 4  ;;  %v290_v22 = vshll.u32 %v2968_v58, 16 }
  0x46   : > { %v294_v27 = vshrl.u32 %v2968_v58, 16  ;;  %v586_v28 = vrot.slane %v585_v15, 4  ;;  %v283_v30 = vrot.slane %v281_v17, 4  ;;  %v300_v32 = vshll.u32 %v2972_v6, 16 }
  0x47   : > { %v286_v31 = vrot.slane %v284_v18, 5  ;;  %v2986_v25 = vpack.c.b16 %v637_v19, %v636_v61  ;;  %v581_v41 = vsel %vm2789_vm3, %v576_v21, %v580_v47  ;;  %v292_v42 = vrot.slane %v290_v22, 5  ;;  %v3006_v21 = vld [vmem:[%s2760_s21 + $0x84] sm:$0xf] }
  0x48   : > { %v296_v45 = vrot.slane %v294_v27, 4  ;;  %v591_v55 = vsel %vm2789_vm3, %v586_v28, %v590_v5  ;;  %v644_v56 = vunpack.c.l.b16 %v581_v41  ;;  %v302_v0 = vrot.slane %v300_v32, 5  ;;  %3950 = vst [vmem:[#allocation9_spill] sm:$0xff] %v3006_v21 }
  0x49   : > { %v287_v57 = vor.u32 %v286_v31, %v283_v30  ;;  %2443 = vmatmul.msk.bf16.gmra.mxu2 %vm668_vm4, %v2986_v25  ;;  %v645_v61 = vunpack.c.l.b16 %v591_v55  ;;  %v401_v47 = vshrl.u32 %v2984_v34, 16  ;;  %v404_v15 = vshll.u32 %v2984_v34, 16  ;;  %v3011_v31 = vld [vmem:[%s2760_s21 + $0x88] sm:$0xf] }
  0x4a   : > { %v297_v7 = vor.u32 %v296_v45, %v292_v42  ;;  %v410_v18 = vshll.u32 %v2991_v46, 16  ;;  %v414_v19 = vshrl.u32 %v2991_v46, 16  ;;  %v420_v5 = vshll.u32 %v2994_v50, 16 }
  0x4b   : > { %v288_v17 = vrot.slane %v287_v57, 4  ;;  %v3008_v22 = vpack.c.b16 %v645_v61, %v644_v56  ;;  %v403_v28 = vrot.slane %v401_v47, 4  ;;  %v406_v30 = vrot.slane %v404_v15, 5  ;;  %v3016_v57 = vld [vmem:[%s2760_s21 + $0x8c] sm:$0x1] }
  0x4c   : > { %v298_v27 = vrot.slane %v297_v7, 4  ;;  %v412_v41 = vrot.slane %v410_v18, 5  ;;  %v416_v45 = vrot.slane %v414_v19, 4  ;;  %v422_v55 = vrot.slane %v420_v5, 5  ;;  %3952 = vst [vmem:[#allocation11_spill] sm:$0xff] %v3016_v57 }
  0x4d   : > { %3951 = vst [vmem:[#allocation10_spill] sm:$0xff] %v3008_v22  ;;  %v293_v32 = vsel %vm2789_vm3, %v288_v17, %v292_v42  ;;  %2447 = vmatmul.msk.bf16.gmra.mxu3 %vm668_vm4, %v3008_v22  ;;  %v407_v7 = vor.u32 %v406_v30, %v403_v28  ;;  %v497_v47 = vshrl.u32 %v3006_v21, 16  ;;  %v500_v42 = vshll.u32 %v3006_v21, 16 }
  0x4e   : > { %v303_v56 = vsel %vm2789_vm3, %v298_v27, %v302_v0  ;;  %v620_v61 = vunpack.c.l.b16 %v293_v32  ;;  %v417_v60 = vor.u32 %v416_v45, %v412_v41  ;;  %v506_v17 = vshll.u32 %v3011_v31, 16  ;;  %v3033_v32 = vld [vmem:[%s2760_s21 + $0xb8] sm:$0xf] }
  0x4f   : > { %v621_v15 = vunpack.c.l.b16 %v303_v56  ;;  %v408_v18 = vrot.slane %v407_v7, 4  ;;  %v499_v19 = vrot.slane %v497_v47, 4  ;;  %v510_v5 = vshrl.u32 %v3011_v31, 16  ;;  %3954 = vst [vmem:[#allocation13_spill] sm:$0xff] %v3033_v32 }
  0x50   : > { %v516_v22 = vshll.u32 %v3016_v57, 16  ;;  %v418_v27 = vrot.slane %v417_v60, 4  ;;  %v502_v28 = vrot.slane %v500_v42, 5  ;;  %v508_v30 = vrot.slane %v506_v17, 5 }
  0x51   : > { %v3030_v0 = vpack.c.b16 %v621_v15, %v620_v61  ;;  %v3955_v45 = vunpack.c.l.b16 %v2754_v3  ;;  %v413_v7 = vsel %vm2789_vm3, %v408_v18, %v412_v41  ;;  %v512_v47 = vrot.slane %v510_v5, 4 }
  0x52   : > { %v518_v26 = vrot.slane %v516_v22, 5  ;;  %v423_v60 = vsel %vm2789_vm3, %v418_v27, %v422_v55  ;;  %v630_v61 = vunpack.c.l.b16 %v413_v7  ;;  %v503_v3 = vor.u32 %v502_v28, %v499_v19  ;;  %v3060_v7 = vld [vmem:[%s2760_s21 + $0x28] sm:$0xf] }
  0x53   : > { %v3038_v56 = vpack.c.b16 %v3955_v45, %v3955_v45  ;;  %2435 = vmatmul.msk.bf16.gmra.mxu0 %vm668_vm4, %v3030_v0  ;;  %v593_v15 = vshrl.u32 %v3028_v1, 16  ;;  %v631_v42 = vunpack.c.l.b16 %v423_v60  ;;  %v513_v17 = vor.u32 %v512_v47, %v508_v30 }
  0x54   : > { %v596_v41 = vshll.u32 %v3028_v1, 16  ;;  %v602_v22 = vshll.u32 %v3033_v32, 16  ;;  %v504_v18 = vrot.slane %v503_v3, 4  ;;  %v606_v45 = vshrl.u32 %v3033_v32, 16  ;;  %v3066_v1 = vld [vmem:[%s2760_s21 + $0x2c] sm:$0x1] }
  0x55   : > { %v595_v5 = vrot.slane %v593_v15, 4  ;;  %v612_v35 = vshll.u32 %v3043_v12, 16  ;;  %v3057_v55 = vpack.c.b16 %v631_v42, %v630_v61  ;;  %v514_v19 = vrot.slane %v513_v17, 4 }
  0x56   : > { %v598_v27 = vrot.slane %v596_v41, 5  ;;  %v604_v28 = vrot.slane %v602_v22, 5  ;;  %v1054_v47 = vrot.slane %v2811_v8, 5  ;;  %v509_v60 = vsel %vm2789_vm3, %v504_v18, %v508_v30 }
  0x57   : > { %3957 = vst [vmem:[#allocation15_spill] sm:$0xff] %v3057_v55  ;;  %v608_v3 = vrot.slane %v606_v45, 4  ;;  %v614_v15 = vrot.slane %v612_v35, 5  ;;  %2440 = vmatmul.msk.bf16.gmra.mxu1 %vm668_vm4, %v3057_v55  ;;  %v519_v61 = vsel %vm2789_vm3, %v514_v19, %v518_v26  ;;  %v638_v42 = vunpack.c.l.b16 %v509_v60 }
  0x58   : > { %v599_v17 = vor.u32 %v598_v27, %v595_v5  ;;  %v305_v41 = vshrl.u32 %v3055_v40, 16  ;;  %v639_v22 = vunpack.c.l.b16 %v519_v61  ;;  %v308_v8 = vshll.u32 %v3055_v40, 16 }
  0x59   : > { %v609_v12 = vor.u32 %v608_v3, %v604_v28  ;;  %v314_v30 = vshll.u32 %v3060_v7, 16  ;;  %v318_v45 = vshrl.u32 %v3060_v7, 16  ;;  %v324_v32 = vshll.u32 %v3066_v1, 16 }
  0x5a   : > { %v600_v18 = vrot.slane %v599_v17, 4  ;;  %v307_v35 = vrot.slane %v305_v41, 4  ;;  %v3077_v21 = vpack.c.b16 %v639_v22, %v638_v42  ;;  %v310_v26 = vrot.slane %v308_v8, 5 }
  0x5b   : > { %v610_v57 = vrot.slane %v609_v12, 4  ;;  %v316_v19 = vrot.slane %v314_v30, 5  ;;  %v320_v27 = vrot.slane %v318_v45, 4  ;;  %v326_v60 = vrot.slane %v324_v32, 5 }
  0x5c   : > { %3958 = vst [vmem:[#allocation16_spill] sm:$0xff] %v3077_v21  ;;  %v605_v5 = vsel %vm2789_vm3, %v600_v18, %v604_v28  ;;  %2444 = vmatmul.msk.bf16.gmra.mxu2 %vm668_vm4, %v3077_v21  ;;  %v311_v17 = vor.u32 %v310_v26, %v307_v35  ;;  %v2529_v28 = vrot.slane %v2799_v62, 9  ;;  %v1051_v32 = vrot.slane %v2806_v2, 5  ;;  %v228_v62 = vld [vmem:[%s3898_s1 + $0x8] sm:$0x1] }
  0x5d   : > { %v615_v3 = vsel %vm2789_vm3, %v610_v57, %v614_v15  ;;  %v646_v61 = vunpack.c.l.b16 %v605_v5  ;;  %v321_v41 = vor.u32 %v320_v27, %v316_v19  ;;  %v1816_v8 = vrot.slane %v3038_v56, 2 }
  0x5e   : > { %v647_v42 = vunpack.c.l.b16 %v615_v3  ;;  %v312_v22 = vrot.slane %v311_v17, 4  ;;  %v1971_v30 = vrot.slane %v3038_v56, 3  ;;  %v1683_v57 = vrot.slane %v3038_v56, 1 }
  0x5f   : > { %v322_v18 = vrot.slane %v321_v41, 4  ;;  %v1052_v35 = vsel %vm3085_vm7, %v2529_v28, %v1051_v32  ;;  %v1053_v45 = vrot.slane %v1051_v32, 4  ;;  %v1821_v5 = vsel %vm717_vm0, %v1816_v8, 0  ;;  %v2670_v32 = vld [vmem:[%s2760_s21] sm:$0xff] }
  0x60   : > { %v3094_v15 = vpack.c.b16 %v647_v42, %v646_v61  ;;  %v317_v2 = vsel %vm2789_vm3, %v312_v22, %v316_v19  ;;  %v1161_v26 = vunpack.c.l.b16 %v1052_v35  ;;  %v1976_v56 = vsel %vm717_vm0, %v1971_v30, 0  ;;  %1830 = vmatpush.bf16.msra.mxu2 %v1821_v5 }
  0x61   : > { %v327_v27 = vsel %vm2789_vm3, %v322_v18, %v326_v60  ;;  %v622_v3 = vunpack.c.l.b16 %v317_v2  ;;  %v1055_v61 = vsel %vm3085_vm7, %v1053_v45, %v1054_v47  ;;  %v1688_v17 = vsel %vm717_vm0, %v1683_v57, 0  ;;  %1985 = vmatpush.bf16.msra.mxu3 %v1976_v56 }
  0x62   : > { %2448 = vmatmul.msk.bf16.gmra.mxu3 %vm668_vm4, %v3094_v15  ;;  %v623_v19 = vunpack.c.l.b16 %v327_v27  ;;  %v1162_v42 = vunpack.c.l.b16 %v1055_v61  ;;  %1697 = vmatpush.bf16.msra.mxu1 %v1688_v17  ;;  %v2114_v41 = vsel %vm717_vm0, %v228_v62, 0  ;;  %v2530_v28 = vrot.slane %v2873_v36, 9  ;;  %v3138_v62 = vld [vmem:[%s2760_s21 + $0x18] sm:$0xff] }
  0x63   : > { %2123 = vmatpush.bf16.msra.mxu0 %v2114_v41  ;;  %v1058_v60 = vrot.slane %v2878_v44, 5  ;;  %v1061_v22 = vrot.slane %v2883_v49, 5  ;;  %v2671_v49 = vld [vmem:[%s2760_s21 + $0xc] sm:$0xff]  ;;  %v1065_v45 = vrot.slane %v2968_v58, 5  ;;  %v2531_v2 = vrot.slane %v2961_v54, 9 }
  0x64   : > { %v3117_v8 = vpack.c.b16 %v623_v19, %v622_v3  ;;  %v1193_v47 = vpack.c.b16 %v1162_v42, %v1161_v26  ;;  %v1068_v5 = vrot.slane %v2972_v6, 5  ;;  %v1072_v6 = vrot.slane %v3060_v7, 5  ;;  %v3158_v3 = vld [vmem:[%s2760_s21 + $0x24] sm:$0xff] }
  0x65   : > { %v1059_v30 = vsel %vm3085_vm7, %v2530_v28, %v1058_v60  ;;  %v1060_v57 = vrot.slane %v1058_v60, 4  ;;  %v1067_v26 = vrot.slane %v1065_v45, 4  ;;  %v2532_v61 = vrot.slane %v3055_v40, 9  ;;  %v3180_v60 = vld [vmem:[%s2760_s21 + $0x30] sm:$0xff] }
  0x66   : > { %2436 = vmatmul.msk.bf16.gmra.mxu0 %vm668_vm4, %v3117_v8  ;;  %v1163_v18 = vunpack.c.l.b16 %v1059_v30  ;;  %v1074_v17 = vrot.slane %v1072_v6, 4  ;;  %v1075_v19 = vrot.slane %v3066_v1, 5  ;;  %v1079_v1 = vrot.slane %v2770_v11, 5 }
  0x67   : > { %2513 = vmatmul.msk.bf16.vlgmr.msrb.gmra.mxu1 %vm668_vm4, %v2670_v32  ;;  %v1062_v36 = vsel %vm3085_vm7, %v1060_v57, %v1061_v22  ;;  %v1069_v58 = vsel %vm3085_vm7, %v1067_v26, %v1068_v5  ;;  %v1073_v42 = vsel %vm3085_vm7, %v2532_v61, %v1072_v6  ;;  %v2533_v22 = vrot.slane %v2767_v10, 9  ;;  %v3208_v26 = vld [vmem:[%s2760_s21 + $0x3c] sm:$0xff] }
  0x68   : > { %v1164_v44 = vunpack.c.l.b16 %v1062_v36  ;;  %v1166_v27 = vunpack.c.l.b16 %v1069_v58  ;;  %v1076_v7 = vsel %vm3085_vm7, %v1074_v17, %v1075_v19  ;;  %v1167_v41 = vunpack.c.l.b16 %v1073_v42 }
  0x69   : > { %v1168_v28 = vunpack.c.l.b16 %v1076_v7  ;;  %v1082_v30 = vrot.slane %v2774_v13, 5  ;;  %v1080_v57 = vsel %vm3085_vm7, %v2533_v22, %v1079_v1 }
  0x6a   : > { %v3126_v35 = vpack.c.b16 %v1164_v44, %v1163_v18  ;;  %v1169_v36 = vunpack.c.l.b16 %v1080_v57  ;;  %v1096_v57 = vrot.slane %v2905_v16, 5 }
  0x6b   : > { %v3172_v40 = vpack.c.b16 %v1168_v28, %v1167_v41  ;;  %v1093_v41 = vrot.slane %v2900_v9, 5 }
  0x6c   : > { %2545 = vmatmul.msk.bf16.vlgmr.msrb.gmra.mxu2 %vm668_vm4, %v1193_v47  ;;  %v1081_v47 = vrot.slane %v1079_v1, 4  ;;  %v3242_v1 = vld [vmem:[%s2760_s21 + $0x48] sm:$0xff] }
  0x6d   : > { %3963 = vst [vmem:[#allocation19_spill] sm:$0xff] %v3242_v1 }
  0x6e   : > { %v1083_v11 = vsel %vm3085_vm7, %v1081_v47, %v1082_v30  ;;  %v2535_v47 = vrot.slane %v2893_v59, 9  ;;  %v1095_v30 = vrot.slane %v1093_v41, 4 }
  0x6f   : > { %v1170_v44 = vunpack.c.l.b16 %v1083_v11 }
  0x70   : > { %v1094_v9 = vsel %vm3085_vm7, %v2535_v47, %v1093_v41  ;;  %v1103_v47 = vrot.slane %v2994_v50, 5 }
  0x71   : > { %v3200_v13 = vpack.c.b16 %v1170_v44, %v1169_v36  ;;  %v1097_v36 = vsel %vm3085_vm7, %v1095_v30, %v1096_v57 }
  0x72   : > { %2565 = vmatmul.msk.bf16.vlgmr.msrb.gmra.mxu3 %vm668_vm4, %v2671_v49 }
  0x76   : > { %2581 = vmatmul.msk.bf16.vlgmr.msrb.gmra.mxu0 %vm668_vm4, %v2944_v14  ;;  %v1066_v14 = vsel %vm3085_vm7, %v2531_v2, %v1065_v45  ;;  %v1086_v2 = vrot.slane %v2830_v29, 5 }
  0x77   : > { %2514 = vmatmul.msk.bf16.gmra.mxu1 %vm668_vm4, %v2671_v49  ;;  %v1165_v56 = vunpack.c.l.b16 %v1066_v14  ;;  %v2534_v14 = vrot.slane %v2823_v24, 9 }
  0x78   : > { %v1088_v58 = vrot.slane %v1086_v2, 4 }
  0x79   : > { %v3152_v54 = vpack.c.b16 %v1166_v27, %v1165_v56  ;;  %v1089_v56 = vrot.slane %v2835_v33, 5  ;;  %v1087_v29 = vsel %vm3085_vm7, %v2534_v14, %v1086_v2  ;;  %v1173_v2 = vunpack.c.l.b16 %v1094_v9 }
  0x7a   : > { %v1171_v24 = vunpack.c.l.b16 %v1087_v29  ;;  %v1174_v14 = vunpack.c.l.b16 %v1097_v36 }
  0x7b   : > { %v1090_v6 = vsel %vm3085_vm7, %v1088_v58, %v1089_v56  ;;  %v1100_v56 = vrot.slane %v2991_v46, 5 }
  0x7c   : > { %2546 = vmatmul.msk.bf16.gmra.mxu2 %vm668_vm4, %v3126_v35  ;;  %v1172_v19 = vunpack.c.l.b16 %v1090_v6  ;;  %v3266_v58 = vpack.c.b16 %v1174_v14, %v1173_v2 }
  0x7d   : > { %v1102_v41 = vrot.slane %v1100_v56, 4 }
  0x7e   : > { %v3232_v42 = vpack.c.b16 %v1172_v19, %v1171_v24  ;;  %3966 = vst [vmem:[#allocation22_spill] sm:$0xff] %v3266_v58  ;;  %v3276_v24 = vld [vmem:[%s2760_s21 + $0x54] sm:$0xff]  ;;  %v2536_v19 = vrot.slane %v2984_v34, 9 }
  0x7f   : > { %3967 = vst [vmem:[#allocation23_spill] sm:$0xff] %v3276_v24  ;;  %v1104_v9 = vsel %vm3085_vm7, %v1102_v41, %v1103_v47 }
  0x80   : > { %v1101_v46 = vsel %vm3085_vm7, %v2536_v19, %v1100_v56  ;;  %v1176_v50 = vunpack.c.l.b16 %v1104_v9  ;;  %v2701_v19 = vld [vmem:[%s2760_s21 + $0x64] sm:$0xf]  ;;  %v2702_v9 = vld [vmem:[%s2760_s21 + $0x68] sm:$0x1] }
  0x81   : > { %v1175_v36 = vunpack.c.l.b16 %v1101_v46  ;;  %v1107_v41 = vrot.slane %v2701_v19, 5 }
  0x82   : > { %2566 = vmatmul.msk.bf16.gmra.mxu3 %vm668_vm4, %v3138_v62 }
  0x83   : > { %v3298_v14 = vpack.c.b16 %v1176_v50, %v1175_v36 }
  0x85   : > { %3969 = vst [vmem:[#allocation25_spill] sm:$0xff] %v3298_v14 }
  0x86   : > { %2582 = vmatmul.msk.bf16.gmra.mxu0 %vm668_vm4, %v3030_v0 }
  0x87   : > { %2515 = vmatmul.msk.bf16.gmra.mxu1 %vm668_vm4, %v3138_v62 }
  0x8c   : > { %2547 = vmatmul.msk.bf16.gmra.mxu2 %vm668_vm4, %v3152_v54 }
  0x92   : > { %2567 = vmatmul.msk.bf16.gmra.mxu3 %vm668_vm4, %v3158_v3 }
  0x96   : > { %2583 = vmatmul.msk.bf16.gmra.mxu0 %vm668_vm4, %v3117_v8 }
  0x97   : > { %2516 = vmatmul.msk.bf16.gmra.mxu1 %vm668_vm4, %v3158_v3 }
  0x9c   : > { %2548 = vmatmul.msk.bf16.gmra.mxu2 %vm668_vm4, %v3172_v40 }
  0x9d   : > { %v3175_v32 = vpop.f32.mrf.mxu1 }
  0xa2   : > { %2568 = vmatmul.msk.bf16.gmra.mxu3 %vm668_vm4, %v3180_v60 }
  0xa5   : > { %v3190_v18 = vpop.f32.mrf.mxu1 }
  0xa6   : > { %v3192_v49 = vpop.f32.mrf.mxu2  ;;  %2584 = vmatmul.msk.bf16.gmra.mxu0 %vm668_vm4, %v2801_v63 }
  0xa7   : > { %2517 = vmatmul.msk.bf16.gmra.mxu1 %vm668_vm4, %v3180_v60 }
  0xaa   : > { %v3198_v10 = vpop.f32.mrf.mxu0  ;;  %v3202_v45 = vpop.f32.mrf.mxu3 }
  0xab   : > { %3961 = vst [vmem:[#allocation17_spill] sm:$0xff] %v3202_v45 }
  0xac   : > { %2549 = vmatmul.msk.bf16.gmra.mxu2 %vm668_vm4, %v3200_v13 }
  0xae   : > { %v3210_v5 = vpop.f32.mrf.mxu1  ;;  %v3214_v27 = vpop.f32.mrf.mxu2 }
  0xb2   : > { %2569 = vmatmul.msk.bf16.gmra.mxu3 %vm668_vm4, %v3208_v26  ;;  %v3222_v61 = vpop.f32.mrf.mxu0  ;;  %v3224_v17 = vpop.f32.mrf.mxu3 }
  0xb3   : > { %3962 = vst [vmem:[#allocation18_spill] sm:$0xff] %v3224_v17 }
  0xb6   : > { %2585 = vmatmul.msk.bf16.gmra.mxu0 %vm668_vm4, %v2875_v38  ;;  %v3230_v33 = vpop.f32.mrf.mxu1 }
  0xb7   : > { %2518 = vmatmul.msk.bf16.gmra.mxu1 %vm668_vm4, %v3208_v26 }
  0xb9   : > { %v3234_v7 = vpop.f32.mrf.mxu2 }
  0xbc   : > { %2550 = vmatmul.msk.bf16.gmra.mxu2 %vm668_vm4, %v3232_v42 }
  0xbd   : > { %v3237_v28 = vpop.f32.mrf.mxu0 }
  0xbe   : > { %v3244_v22 = vpop.f32.mrf.mxu3 }
  0xbf   : > { %3964 = vst [vmem:[#allocation20_spill] sm:$0xff] %v3244_v22 }
  0xc1   : > { %v3256_v44 = vpop.f32.mrf.mxu2 }
  0xc2   : > { %2570 = vmatmul.msk.bf16.gmra.mxu3 %vm668_vm4, %v3242_v1  ;;  %v3250_v11 = vpop.f32.mrf.mxu1 }
  0xc5   : > { %v3258_v59 = vpop.f32.mrf.mxu0 }
  0xc6   : > { %2586 = vmatmul.msk.bf16.gmra.mxu0 %vm668_vm4, %v2963_v51  ;;  %v3262_v16 = vpop.f32.mrf.mxu3 }
  0xc7   : > { %3965 = vst [vmem:[#allocation21_spill] sm:$0xff] %v3262_v16  ;;  %2519 = vmatmul.msk.bf16.gmra.mxu1 %vm668_vm4, %v3242_v1  ;;  %v3311_v16 = vld [vmem:[%s2760_s21 + $0x60] sm:$0xff] }
  0xc8   : > { %3971 = vst [vmem:[#allocation27_spill] sm:$0xff] %v3311_v16 }
  0xca   : > { %v3269_v29 = vpop.f32.mrf.mxu1 }
  0xcc   : > { %2551 = vmatmul.msk.bf16.gmra.mxu2 %vm668_vm4, %v3266_v58  ;;  %v3273_v6 = vpop.f32.mrf.mxu2 }
  0xd0   : > { %v3280_v30 = vpop.f32.mrf.mxu0  ;;  %v3282_v57 = vpop.f32.mrf.mxu3 }
  0xd1   : > { %3968 = vst [vmem:[#allocation24_spill] sm:$0xff] %v3282_v57  ;;  %v1110_v57 = vrot.slane %v2702_v9, 5 }
  0xd2   : > { %2571 = vmatmul.msk.bf16.gmra.mxu3 %vm668_vm4, %v3276_v24 }
  0xd4   : > { %v3290_v34 = vpop.f32.mrf.mxu1  ;;  %v3292_v2 = vpop.f32.mrf.mxu2 }
  0xd6   : > { %2587 = vmatmul.msk.bf16.gmra.mxu0 %vm668_vm4, %v3057_v55  ;;  %v2703_v55 = vld [vmem:[%s2760_s21 + $0x60] sm:$0xf] }
  0xd7   : > { %2520 = vmatmul.msk.bf16.gmra.mxu1 %vm668_vm4, %v3276_v24  ;;  %v2537_v22 = vrot.slane %v2703_v55, 9  ;;  %v1109_v24 = vrot.slane %v1107_v41, 4 }
  0xd8   : > { %v3300_v56 = vpop.f32.mrf.mxu0  ;;  %v3303_v47 = vpop.f32.mrf.mxu3 }
  0xd9   : > { %3970 = vst [vmem:[#allocation26_spill] sm:$0xff] %v3303_v47  ;;  %v1108_v50 = vsel %vm3085_vm7, %v2537_v22, %v1107_v41  ;;  %v1111_v19 = vsel %vm3085_vm7, %v1109_v24, %v1110_v57  ;;  %v1114_v24 = vrot.slane %v2848_v48, 5 }
  0xda   : > { %v1177_v17 = vunpack.c.l.b16 %v1108_v50  ;;  %v1178_v55 = vunpack.c.l.b16 %v1111_v19  ;;  %v3344_v50 = vld [vmem:[%s2760_s21 + $0x6c] sm:$0xff] }
  0xdc   : > { %2552 = vmatmul.msk.bf16.gmra.mxu2 %vm668_vm4, %v3298_v14  ;;  %v3307_v46 = vpop.f32.mrf.mxu1  ;;  %v3333_v22 = vpack.c.b16 %v1178_v55, %v1177_v17  ;;  %v1116_v17 = vrot.slane %v1114_v24, 4 }
  0xde   : > { %3973 = vst [vmem:[#allocation29_spill] sm:$0xff] %v3333_v22 }
  0xdf   : > { %v3314_v36 = vpop.f32.mrf.mxu2 }
  0xe2   : > { %2572 = vmatmul.msk.bf16.gmra.mxu3 %vm668_vm4, %v3311_v16 }
  0xe3   : > { %v3322_v47 = vpop.f32.mrf.mxu0 }
  0xe4   : > { %v950_v14 = vpop.f32.mrf.mxu1 }
  0xe5   : > { %v3324_v9 = vpop.f32.mrf.mxu3  ;;  %v951_v58 = vadd.f32 %v950_v14, %v3198_v10  ;;  %v1117_v14 = vrot.slane %v2855_v52, 5 }
  0xe6   : > { %3972 = vst [vmem:[#allocation28_spill] sm:$0xff] %v3324_v9  ;;  %2588 = vmatmul.msk.bf16.gmra.mxu0 %vm668_vm4, %v2819_v20  ;;  %v2538_v9 = vrot.slane %v2840_v39, 9 }
  0xe7   : > { %v3329_v51 = vpop.f32.mrf.mxu2  ;;  %2521 = vmatmul.msk.bf16.gmra.mxu1 %vm668_vm4, %v3311_v16 }
  0xe8   : > { %v1115_v48 = vsel %vm3085_vm7, %v2538_v9, %v1114_v24 }
  0xe9   : > { %v1179_v45 = vunpack.c.l.b16 %v1115_v48 }
  0xeb   : > { %v3336_v57 = vpop.f32.mrf.mxu0 }
  0xec   : > { %2553 = vmatmul.msk.bf16.gmra.mxu2 %vm668_vm4, %v3333_v22  ;;  %v952_v10 = vpop.f32.mrf.mxu1 }
  0xed   : > { %v3338_v41 = vpop.f32.mrf.mxu3  ;;  %v953_v19 = vadd.f32 %v952_v10, %v3222_v61 }
  0xee   : > { %3974 = vst [vmem:[#allocation30_spill] sm:$0xff] %v3338_v41  ;;  %v1118_v41 = vsel %vm3085_vm7, %v1116_v17, %v1117_v14  ;;  %v1121_v14 = vrot.slane %v2922_v43, 5 }
  0xef   : > { %v1270_v55 = vpop.f32.mrf.mxu2  ;;  %v1180_v1 = vunpack.c.l.b16 %v1118_v41  ;;  %v1124_v41 = vrot.slane %v2928_v53, 5 }
  0xf0   : > { %v1350_v20 = vadd.f32 %v1270_v55, %v951_v58  ;;  %v3368_v55 = vld [vmem:[%s2760_s21 + $0x78] sm:$0xff] }
  0xf1   : > { %v3361_v10 = vpack.c.b16 %v1180_v1, %v1179_v45 }
  0xf2   : > { %2573 = vmatmul.msk.bf16.gmra.mxu3 %vm668_vm4, %v3344_v50 }
  0xf3   : > { %v1557_v22 = vpop.f32.mrf.mxu0 }
  0xf4   : > { %v955_v16 = vpop.f32.mrf.mxu1 }
  0xf5   : > { %v1403_v52 = vpop.f32.mrf.mxu3  ;;  %v956_v39 = vadd.f32 %v955_v16, %v3237_v28 }
  0xf6   : > { %v1483_v61 = vadd.f32 %v1403_v52, %v1350_v20  ;;  %2589 = vmatmul.msk.bf16.gmra.mxu0 %vm668_vm4, %v2897_v4 }
  0xf7   : > { %v1272_v58 = vpop.f32.mrf.mxu2  ;;  %2522 = vmatmul.msk.bf16.gmra.mxu1 %vm668_vm4, %v3344_v50 }
  0xf8   : > { %v3359_v9 = vadd.f32 %v1557_v22, %v1483_v61  ;;  %v1351_v24 = vadd.f32 %v1272_v58, %v953_v19  ;;  %v2539_v22 = vrot.slane %v2914_v23, 9  ;;  %v1123_v19 = vrot.slane %v1121_v14, 4 }
  0xfa   : > { %v1122_v53 = vsel %vm3085_vm7, %v2539_v22, %v1121_v14  ;;  %v1125_v52 = vsel %vm3085_vm7, %v1123_v19, %v1124_v41  ;;  %v3975_v19 = vld [vmem:[#allocation11_spill] sm:$0xff] }
  0xfb   : > { %v1559_v17 = vpop.f32.mrf.mxu0 }
  0xfc   : > { %2554 = vmatmul.msk.bf16.gmra.mxu2 %vm668_vm4, %v3361_v10  ;;  %v957_v28 = vpop.f32.mrf.mxu1 }
  0xfd   : > { %v1405_v20 = vpop.f32.mrf.mxu3  ;;  %v958_v48 = vadd.f32 %v957_v28, %v3258_v59  ;;  %v1181_v59 = vunpack.c.l.b16 %v1122_v53 }
  0xfe   : > { %v1484_v16 = vadd.f32 %v1405_v20, %v1351_v24  ;;  %v1182_v20 = vunpack.c.l.b16 %v1125_v52  ;;  %v3394_v52 = vld [vmem:[%s2760_s21 + $0x84] sm:$0xff] }
  0xff   : > { %v1275_v45 = vpop.f32.mrf.mxu2 }
 0x100   : > { %v3372_v1 = vadd.f32 %v1559_v17, %v1484_v16  ;;  %v1352_v43 = vadd.f32 %v1275_v45, %v956_v39  ;;  %v3387_v41 = vpack.c.b16 %v1182_v20, %v1181_v59  ;;  %v1128_v16 = vrot.slane %v3011_v31, 5 }
 0x101   : > { %v1131_v45 = vrot.slane %v3975_v19, 5 }
 0x102   : > { %2574 = vmatmul.msk.bf16.gmra.mxu3 %vm668_vm4, %v3368_v55 }
 0x103   : > { %v1562_v61 = vpop.f32.mrf.mxu0 }
 0x104   : > { %v960_v24 = vpop.f32.mrf.mxu1 }
 0x105   : > { %v1408_v58 = vpop.f32.mrf.mxu3  ;;  %v961_v17 = vadd.f32 %v960_v24, %v3280_v30 }
 0x106   : > { %v1485_v23 = vadd.f32 %v1408_v58, %v1352_v43  ;;  %2590 = vmatmul.msk.bf16.gmra.mxu0 %vm668_vm4, %v2986_v25 }
 0x107   : > { %v1277_v39 = vpop.f32.mrf.mxu2  ;;  %2523 = vmatmul.msk.bf16.gmra.mxu1 %vm668_vm4, %v3368_v55 }
 0x108   : > { %v3385_v14 = vadd.f32 %v1562_v61, %v1485_v23  ;;  %v1353_v28 = vadd.f32 %v1277_v39, %v958_v48  ;;  %v3976_v61 = vld [vmem:[#allocation9_spill] sm:$0xff]  ;;  %v1130_v48 = vrot.slane %v1128_v16, 4 }
 0x109   : > { %v2540_v24 = vrot.slane %v3976_v61, 9 }
 0x10a   : > { %v1132_v39 = vsel %vm3085_vm7, %v1130_v48, %v1131_v45 }
 0x10b   : > { %v1564_v22 = vpop.f32.mrf.mxu0  ;;  %v1129_v23 = vsel %vm3085_vm7, %v2540_v24, %v1128_v16  ;;  %v2704_v24 = vld [vmem:[%s2760_s21 + $0x94] sm:$0xf] }
 0x10c   : > { %2555 = vmatmul.msk.bf16.gmra.mxu2 %vm668_vm4, %v3387_v41  ;;  %v962_v30 = vpop.f32.mrf.mxu1  ;;  %v1135_v48 = vrot.slane %v2704_v24, 5 }
 0x10d   : > { %v1410_v43 = vpop.f32.mrf.mxu3  ;;  %v963_v58 = vadd.f32 %v962_v30, %v3300_v56  ;;  %v1184_v30 = vunpack.c.l.b16 %v1132_v39 }
 0x10e   : > { %v1486_v53 = vadd.f32 %v1410_v43, %v1353_v28  ;;  %v1183_v43 = vunpack.c.l.b16 %v1129_v23 }
 0x10f   : > { %v1280_v59 = vpop.f32.mrf.mxu2 }
 0x110   : > { %v3398_v20 = vadd.f32 %v1564_v22, %v1486_v53  ;;  %v1354_v31 = vadd.f32 %v1280_v59, %v961_v17  ;;  %v3413_v53 = vpack.c.b16 %v1184_v30, %v1183_v43 }
 0x112   : > { %3977 = vst [vmem:[#allocation11_spill] sm:$0xff] %v3398_v20  ;;  %2575 = vmatmul.msk.bf16.gmra.mxu3 %vm668_vm4, %v3394_v52 }
 0x113   : > { %v1567_v28 = vpop.f32.mrf.mxu0  ;;  %3979 = vst [vmem:[#allocation31_spill] sm:$0xff] %v3413_v53 }
 0x114   : > { %v965_v19 = vpop.f32.mrf.mxu1 }
 0x115   : > { %v1413_v56 = vpop.f32.mrf.mxu3  ;;  %v966_v22 = vadd.f32 %v965_v19, %v3322_v47  ;;  %v3420_v19 = vld [vmem:[%s2760_s21 + $0x90] sm:$0xff] }
 0x116   : > { %v1487_v61 = vadd.f32 %v1413_v56, %v1354_v31  ;;  %2591 = vmatmul.msk.bf16.gmra.mxu0 %vm668_vm4, %v3077_v21  ;;  %v2705_v31 = vld [vmem:[%s2760_s21 + $0x98] sm:$0x1]  ;;  %3980 = vst [vmem:[#allocation32_spill] sm:$0xff] %v3420_v19 }
 0x117   : > { %v1282_v17 = vpop.f32.mrf.mxu2  ;;  %2524 = vmatmul.msk.bf16.gmra.mxu1 %vm668_vm4, %v3394_v52  ;;  %v1138_v23 = vrot.slane %v2705_v31, 5 }
 0x118   : > { %v3411_v16 = vadd.f32 %v1567_v28, %v1487_v61  ;;  %v1355_v45 = vadd.f32 %v1282_v17, %v963_v58  ;;  %v2706_v28 = vld [vmem:[%s2760_s21 + $0x90] sm:$0xf]  ;;  %v1137_v58 = vrot.slane %v1135_v48, 4 }
 0x119   : > { %v2541_v61 = vrot.slane %v2706_v28, 9 }
 0x11a   : > { %3978 = vst [vmem:[#allocation9_spill] sm:$0xff] %v3411_v16 }
 0x11b   : > { %v1569_v59 = vpop.f32.mrf.mxu0  ;;  %v1136_v24 = vsel %vm3085_vm7, %v2541_v61, %v1135_v48  ;;  %v2707_v61 = vld [vmem:[%s2760_s21 + $0xa0] sm:$0xf] }
 0x11c   : > { %2556 = vmatmul.msk.bf16.gmra.mxu2 %vm668_vm4, %v3413_v53  ;;  %v967_v39 = vpop.f32.mrf.mxu1  ;;  %v2709_v53 = vld [vmem:[%s2760_s21 + $0x9c] sm:$0xf] }
 0x11d   : > { %v1415_v47 = vpop.f32.mrf.mxu3  ;;  %v968_v20 = vadd.f32 %v967_v39, %v3336_v57  ;;  %v1185_v39 = vunpack.c.l.b16 %v1136_v24 }
 0x11e   : > { %v1488_v56 = vadd.f32 %v1415_v47, %v1355_v45  ;;  %v1139_v45 = vsel %vm3085_vm7, %v1137_v58, %v1138_v23  ;;  %v1142_v58 = vrot.slane %v2707_v61, 5 }
 0x11f   : > { %v1285_v43 = vpop.f32.mrf.mxu2  ;;  %v1186_v28 = vunpack.c.l.b16 %v1139_v45  ;;  %v2708_v45 = vld [vmem:[%s2760_s21 + $0xa4] sm:$0x1] }
 0x120   : > { %v3424_v30 = vadd.f32 %v1569_v59, %v1488_v56  ;;  %v1356_v17 = vadd.f32 %v1285_v43, %v966_v22  ;;  %v3982_v59 = vld [vmem:[#allocation3_spill] sm:$0xff] }
 0x121   : > { %v3438_v23 = vpack.c.b16 %v1186_v28, %v1185_v39 }
 0x122   : > { %3981 = vst [vmem:[#allocation33_spill] sm:$0xff] %v3424_v30  ;;  %2576 = vmatmul.msk.bf16.gmra.mxu3 %vm668_vm4, %v3420_v19 }
 0x123   : > { %v1572_v31 = vpop.f32.mrf.mxu0  ;;  %3984 = vst [vmem:[#allocation35_spill] sm:$0xff] %v3438_v23 }
 0x124   : > { %v970_v57 = vpop.f32.mrf.mxu1 }
 0x125   : > { %v1418_v47 = vpop.f32.mrf.mxu3 }
 0x126   : > { %v1489_v16 = vadd.f32 %v1418_v47, %v1356_v17  ;;  %2592 = vmatmul.msk.bf16.gmra.mxu0 %vm668_vm4, %v3982_v59  ;;  %v1145_v47 = vrot.slane %v2708_v45, 5  ;;  %v3445_v59 = vld [vmem:[%s2760_s21 + $0x9c] sm:$0xff] }
 0x127   : > { %v1287_v22 = vpop.f32.mrf.mxu2  ;;  %2525 = vmatmul.msk.bf16.gmra.mxu1 %vm668_vm4, %v3420_v19  ;;  %3985 = vst [vmem:[#allocation36_spill] sm:$0xff] %v3445_v59  ;;  %v2542_v19 = vrot.slane %v2709_v53, 9 }
 0x128   : > { %v3436_v48 = vadd.f32 %v1572_v31, %v1489_v16  ;;  %v1357_v56 = vadd.f32 %v1287_v22, %v968_v20  ;;  %v1144_v16 = vrot.slane %v1142_v58, 4  ;;  %v971_v20 = vadd.f32 %v970_v57, %v3175_v32  ;;  %v3987_v57 = vld [vmem:[#allocation4_spill] sm:$0xff] }
 0x129   : > { %v1143_v22 = vsel %vm3085_vm7, %v2542_v19, %v1142_v58 }
 0x12a   : > { %3983 = vst [vmem:[#allocation34_spill] sm:$0xff] %v3436_v48  ;;  %v1187_v53 = vunpack.c.l.b16 %v1143_v22 }
 0x12b   : > { %v1574_v43 = vpop.f32.mrf.mxu0 }
 0x12c   : > { %2557 = vmatmul.msk.bf16.gmra.mxu2 %vm668_vm4, %v3438_v23  ;;  %v972_v17 = vpop.f32.mrf.mxu1 }
 0x12d   : > { %v1420_v24 = vpop.f32.mrf.mxu3 }
 0x12e   : > { %v1490_v30 = vadd.f32 %v1420_v24, %v1357_v56  ;;  %v1146_v56 = vsel %vm3085_vm7, %v1144_v16, %v1145_v47  ;;  %v3990_v16 = vld [vmem:[#allocation6_spill] sm:$0xff] }
 0x12f   : > { %v1290_v31 = vpop.f32.mrf.mxu2  ;;  %v1188_v48 = vunpack.c.l.b16 %v1146_v56  ;;  %v3991_v56 = vld [vmem:[#allocation7_spill] sm:$0xff] }
 0x130   : > { %v3449_v39 = vadd.f32 %v1574_v43, %v1490_v30  ;;  %v1358_v28 = vadd.f32 %v1290_v31, %v971_v20  ;;  %v973_v30 = vadd.f32 %v972_v17, %v3190_v18  ;;  %v1149_v20 = vrot.slane %v3990_v16, 5  ;;  %v3471_v17 = vld [vmem:[%s2760_s21 + $0xa8] sm:$0xff] }
 0x131   : > { %v3464_v47 = vpack.c.b16 %v1188_v48, %v1187_v53  ;;  %3992 = vst [vmem:[#allocation6_spill] sm:$0xff] %v3471_v17 }
 0x132   : > { %3986 = vst [vmem:[#allocation37_spill] sm:$0xff] %v3449_v39  ;;  %2577 = vmatmul.msk.bf16.gmra.mxu3 %vm668_vm4, %v3445_v59  ;;  %v3993_v39 = vld [vmem:[#allocation5_spill] sm:$0xff] }
 0x133   : > { %v1577_v61 = vpop.f32.mrf.mxu0  ;;  %3989 = vst [vmem:[#allocation39_spill] sm:$0xff] %v3464_v47 }
 0x134   : > { %v975_v45 = vpop.f32.mrf.mxu1 }
 0x135   : > { %v1423_v24 = vpop.f32.mrf.mxu3 }
 0x136   : > { %v1491_v32 = vadd.f32 %v1423_v24, %v1358_v28  ;;  %2593 = vmatmul.msk.bf16.gmra.mxu0 %vm668_vm4, %v3987_v57  ;;  %v1152_v24 = vrot.slane %v3991_v56, 5  ;;  %v2543_v57 = vrot.slane %v3993_v39, 9 }
 0x137   : > { %v1292_v43 = vpop.f32.mrf.mxu2  ;;  %2526 = vmatmul.msk.bf16.gmra.mxu1 %vm668_vm4, %v3445_v59 }
 0x138   : > { %v3462_v19 = vadd.f32 %v1577_v61, %v1491_v32  ;;  %v1359_v58 = vadd.f32 %v1292_v43, %v973_v30  ;;  %v1151_v61 = vrot.slane %v1149_v20, 4  ;;  %v976_v32 = vadd.f32 %v975_v45, %v3210_v5 }
 0x139   : > { %v1150_v43 = vsel %vm3085_vm7, %v2543_v57, %v1149_v20  ;;  %v3489_v57 = vld [vmem:[%s2760_s21 + $0xc0] sm:$0xf] }
 0x13a   : > { %3988 = vst [vmem:[#allocation38_spill] sm:$0xff] %v3462_v19  ;;  %v1189_v56 = vunpack.c.l.b16 %v1150_v43  ;;  %v3995_v19 = vld [vmem:[#allocation10_spill] sm:$0xff]  ;;  %v1516_v43 = vshrl.u32 %v3489_v57, 16 }
 0x13b   : > { %v1579_v31 = vpop.f32.mrf.mxu0  ;;  %3996 = vst [vmem:[#allocation5_spill] sm:$0xff] %v3489_v57 }
 0x13c   : > { %2558 = vmatmul.msk.bf16.gmra.mxu2 %vm668_vm4, %v3464_v47  ;;  %v977_v28 = vpop.f32.mrf.mxu1 }
 0x13d   : > { %v1425_v22 = vpop.f32.mrf.mxu3 }
 0x13e   : > { %v1492_v18 = vadd.f32 %v1425_v22, %v1359_v58  ;;  %v1153_v58 = vsel %vm3085_vm7, %v1151_v61, %v1152_v24 }
 0x13f   : > { %v1295_v48 = vpop.f32.mrf.mxu2  ;;  %v1190_v5 = vunpack.c.l.b16 %v1153_v58 }
 0x140   : > { %v3475_v53 = vadd.f32 %v1579_v31, %v1492_v18  ;;  %v1360_v30 = vadd.f32 %v1295_v48, %v976_v32  ;;  %v978_v31 = vadd.f32 %v977_v28, %v3230_v33  ;;  %v3496_v32 = vld [vmem:[%s2760_s21 + $0xc4] sm:$0xf]  ;;  %v4000_v48 = vld [vmem:[#allocation13_spill] sm:$0xff]  ;;  %v1519_v33 = vshll.u32 %v3489_v57, 16 }
 0x141   : > { %v3493_v61 = vpack.c.b16 %v1190_v5, %v1189_v56  ;;  %3999 = vst [vmem:[#allocation42_spill] sm:$0xff] %v3496_v32  ;;  %v1525_v28 = vshll.u32 %v3496_v32, 16  ;;  %v4001_v56 = vld [vmem:[#allocation14_spill] sm:$0xff] }
 0x142   : > { %3994 = vst [vmem:[#allocation7_spill] sm:$0xff] %v3475_v53  ;;  %2578 = vmatmul.msk.bf16.gmra.mxu3 %vm668_vm4, %v3471_v17  ;;  %v1159_v5 = vrot.slane %v4001_v56, 5  ;;  %v1521_v47 = vrot.slane %v1519_v33, 5 }
 0x143   : > { %v1582_v16 = vpop.f32.mrf.mxu0  ;;  %3998 = vst [vmem:[#allocation41_spill] sm:$0xff] %v3493_v61 }
 0x144   : > { %v980_v22 = vpop.f32.mrf.mxu1 }
 0x145   : > { %v1428_v39 = vpop.f32.mrf.mxu3  ;;  %v981_v57 = vadd.f32 %v980_v22, %v3250_v11 }
 0x146   : > { %v1493_v45 = vadd.f32 %v1428_v39, %v1360_v30  ;;  %2594 = vmatmul.msk.bf16.gmra.mxu0 %vm668_vm4, %v3995_v19  ;;  %v1156_v30 = vrot.slane %v4000_v48, 5  ;;  %v1529_v39 = vshrl.u32 %v3496_v32, 16  ;;  %v1518_v19 = vrot.slane %v1516_v43, 4 }
 0x147   : > { %v1297_v18 = vpop.f32.mrf.mxu2  ;;  %2527 = vmatmul.msk.bf16.gmra.mxu1 %vm668_vm4, %v3471_v17  ;;  %v1527_v32 = vrot.slane %v1525_v28, 5 }
 0x148   : > { %v3491_v20 = vadd.f32 %v1582_v16, %v1493_v45  ;;  %v1361_v24 = vadd.f32 %v1297_v18, %v978_v31  ;;  %v3507_v31 = vld [vmem:[%s2760_s21 + $0xb4] sm:$0xff]  ;;  %v1531_v59 = vrot.slane %v1529_v39, 4  ;;  %v1522_v22 = vor.u32 %v1521_v47, %v1518_v19 }
 0x149   : > { %v4002_v18 = vld [vmem:[#allocation12_spill] sm:$0xff] }
 0x14a   : > { %3997 = vst [vmem:[#allocation40_spill] sm:$0xff] %v3491_v20  ;;  %v2544_v48 = vrot.slane %v4002_v18, 9  ;;  %v1158_v20 = vrot.slane %v1156_v30, 4  ;;  %v1532_v43 = vor.u32 %v1531_v59, %v1527_v32 }
 0x14b   : > { %v1584_v58 = vpop.f32.mrf.mxu0 }
 0x14c   : > { %2559 = vmatmul.msk.bf16.gmra.mxu2 %vm668_vm4, %v3493_v61  ;;  %v982_v16 = vpop.f32.mrf.mxu1  ;;  %v3514_v61 = vld [vmem:[%s2760_s21 + $0xc8] sm:$0x1]  ;;  %v1533_v19 = vrot.slane %v1532_v43, 4 }
 0x14d   : > { %v1430_v53 = vpop.f32.mrf.mxu3  ;;  %v1535_v33 = vshll.u32 %v3514_v61, 16  ;;  %v983_v56 = vadd.f32 %v982_v16, %v3269_v29 }
 0x14e   : > { %v1494_v45 = vadd.f32 %v1430_v53, %v1361_v24  ;;  %v1157_v53 = vsel %vm3085_vm7, %v2544_v48, %v1156_v30  ;;  %v1160_v24 = vsel %vm3085_vm7, %v1158_v20, %v1159_v5  ;;  %v1523_v20 = vrot.slane %v1522_v22, 4 }
 0x14f   : > { %v1300_v17 = vpop.f32.mrf.mxu2  ;;  %v1191_v39 = vunpack.c.l.b16 %v1157_v53  ;;  %v1537_v59 = vrot.slane %v1535_v33, 5 }
 0x150   : > { %v3511_v23 = vadd.f32 %v1584_v58, %v1494_v45  ;;  %v1362_v21 = vadd.f32 %v1300_v17, %v981_v57  ;;  %v1192_v17 = vunpack.c.l.b16 %v1160_v24  ;;  %v3539_v24 = vld [vmem:[%s2760_s21 + $0xc0] sm:$0xff] }
 0x151   : > { %v1538_v29 = vsel %vm2789_vm3, %v1533_v19, %v1537_v59 }
 0x152   : > { %2579 = vmatmul.msk.bf16.gmra.mxu3 %vm668_vm4, %v3507_v31  ;;  %v3530_v45 = vpack.c.b16 %v1192_v17, %v1191_v39  ;;  %v1540_v43 = vunpack.c.l.b16 %v1538_v29 }
 0x153   : > { %v1587_v11 = vpop.f32.mrf.mxu0 }
 0x154   : > { %v985_v58 = vpop.f32.mrf.mxu1 }
 0x155   : > { %v1433_v28 = vpop.f32.mrf.mxu3 }
 0x156   : > { %v1495_v57 = vadd.f32 %v1433_v28, %v1362_v21  ;;  %2595 = vmatmul.msk.bf16.gmra.mxu0 %vm668_vm4, %v3094_v15  ;;  %v1528_v21 = vsel %vm2789_vm3, %v1523_v20, %v1527_v32 }
 0x157   : > { %v1302_v30 = vpop.f32.mrf.mxu2  ;;  %2528 = vmatmul.msk.bf16.gmra.mxu1 %vm668_vm4, %v3507_v31  ;;  %v1539_v22 = vunpack.c.l.b16 %v1528_v21 }
 0x158   : > { %v3528_v47 = vadd.f32 %v1587_v11, %v1495_v57  ;;  %v1363_v5 = vadd.f32 %v1302_v30, %v983_v56  ;;  %v986_v11 = vadd.f32 %v985_v58, %v3290_v34 }
 0x159   : > { %v3546_v32 = vpack.c.b16 %v1540_v43, %v1539_v22 }
 0x15b   : > { %v1589_v18 = vpop.f32.mrf.mxu0 }
 0x15c   : > { %2560 = vmatmul.msk.bf16.gmra.mxu2 %vm668_vm4, %v3530_v45  ;;  %v987_v48 = vpop.f32.mrf.mxu1 }
 0x15d   : > { %v1435_v16 = vpop.f32.mrf.mxu3  ;;  %v988_v34 = vadd.f32 %v987_v48, %v3307_v46 }
 0x15e   : > { %v1496_v53 = vadd.f32 %v1435_v16, %v1363_v5 }
 0x15f   : > { %v1305_v33 = vpop.f32.mrf.mxu2 }
 0x160   : > { %v3542_v28 = vadd.f32 %v1589_v18, %v1496_v53  ;;  %v1364_v39 = vadd.f32 %v1305_v33, %v986_v11 }
 0x162   : > { %2580 = vmatmul.msk.bf16.gmra.mxu3 %vm668_vm4, %v3539_v24 }
 0x163   : > { %v1592_v17 = vpop.f32.mrf.mxu0 }
 0x164   : > { %v990_v56 = vpop.f32.mrf.mxu1 }
 0x165   : > { %v1438_v57 = vpop.f32.mrf.mxu3  ;;  %v991_v29 = vadd.f32 %v990_v56, %v3192_v49 }
 0x166   : > { %v1497_v30 = vadd.f32 %v1438_v57, %v1364_v39  ;;  %2596 = vmatmul.msk.bf16.gmra.mxu0 %vm668_vm4, %v3546_v32 }
 0x167   : > { %v1307_v58 = vpop.f32.mrf.mxu2  ;;  %2598 = vmatmul.msk.bf16.vlgmr.msra.gmra.mxu1 %vm668_vm4, %v3126_v35 }
 0x168   : > { %v3553_v20 = vadd.f32 %v1592_v17, %v1497_v30  ;;  %v1365_v19 = vadd.f32 %v1307_v58, %v988_v34 }
 0x16b   : > { %v1594_v59 = vpop.f32.mrf.mxu0 }
 0x16c   : > { %2618 = vmatmul.msk.bf16.vlgmr.msra.gmra.mxu2 %vm668_vm4, %v3138_v62  ;;  %v992_v18 = vpop.f32.mrf.mxu1 }
 0x16d   : > { %v1440_v5 = vpop.f32.mrf.mxu3  ;;  %v993_v62 = vadd.f32 %v992_v18, %v3214_v27 }
 0x16e   : > { %v1498_v21 = vadd.f32 %v1440_v5, %v1365_v19 }
 0x16f   : > { %v1310_v16 = vpop.f32.mrf.mxu2 }
 0x170   : > { %v3558_v53 = vadd.f32 %v1594_v59, %v1498_v21  ;;  %v1366_v46 = vadd.f32 %v1310_v16, %v991_v29 }
 0x172   : > { %2634 = vmatmul.msk.bf16.vlgmr.msra.gmra.mxu3 %vm668_vm4, %v3030_v0 }
 0x173   : > { %v1597_v35 = vpop.f32.mrf.mxu0 }
 0x174   : > { %v995_v11 = vpop.f32.mrf.mxu1 }
 0x175   : > { %v1443_v48 = vpop.f32.mrf.mxu3  ;;  %v996_v56 = vadd.f32 %v995_v11, %v3234_v7 }
 0x176   : > { %v1499_v22 = vadd.f32 %v1443_v48, %v1366_v46  ;;  %2651 = vmatmul.msk.bf16.vlgmr.msra.gmra.mxu0 %vm668_vm4, %v3152_v54 }
 0x177   : > { %v1312_v43 = vpop.f32.mrf.mxu2  ;;  %2599 = vmatmul.msk.bf16.gmra.mxu1 %vm668_vm4, %v3152_v54 }
 0x178   : > { %v3567_v49 = vadd.f32 %v1597_v35, %v1499_v22  ;;  %v1367_v33 = vadd.f32 %v1312_v43, %v993_v62 }
 0x17b   : > { %v1599_v39 = vpop.f32.mrf.mxu0 }
 0x17c   : > { %2619 = vmatmul.msk.bf16.gmra.mxu2 %vm668_vm4, %v3158_v3  ;;  %v997_v0 = vpop.f32.mrf.mxu1 }
 0x17d   : > { %v1445_v17 = vpop.f32.mrf.mxu3  ;;  %v998_v3 = vadd.f32 %v997_v0, %v3256_v44 }
 0x17e   : > { %v1500_v57 = vadd.f32 %v1445_v17, %v1367_v33 }
 0x17f   : > { %v1315_v30 = vpop.f32.mrf.mxu2 }
 0x180   : > { %v3572_v34 = vadd.f32 %v1599_v39, %v1500_v57  ;;  %v1368_v27 = vadd.f32 %v1315_v30, %v996_v56 }
 0x182   : > { %2635 = vmatmul.msk.bf16.gmra.mxu3 %vm668_vm4, %v3117_v8 }
 0x183   : > { %v1602_v54 = vpop.f32.mrf.mxu0 }
 0x184   : > { %v1000_v19 = vpop.f32.mrf.mxu1 }
 0x185   : > { %v1448_v58 = vpop.f32.mrf.mxu3  ;;  %v1001_v46 = vadd.f32 %v1000_v19, %v3273_v6 }
 0x186   : > { %v1501_v59 = vadd.f32 %v1448_v58, %v1368_v27  ;;  %2652 = vmatmul.msk.bf16.gmra.mxu0 %vm668_vm4, %v3172_v40 }
 0x187   : > { %v1317_v5 = vpop.f32.mrf.mxu2  ;;  %2600 = vmatmul.msk.bf16.gmra.mxu1 %vm668_vm4, %v3172_v40 }
 0x188   : > { %v3581_v7 = vadd.f32 %v1602_v54, %v1501_v59  ;;  %v1369_v18 = vadd.f32 %v1317_v5, %v998_v3 }
 0x18b   : > { %v1604_v21 = vpop.f32.mrf.mxu0 }
 0x18c   : > { %2620 = vmatmul.msk.bf16.gmra.mxu2 %vm668_vm4, %v3180_v60  ;;  %v1002_v8 = vpop.f32.mrf.mxu1 }
 0x18d   : > { %v1450_v29 = vpop.f32.mrf.mxu3  ;;  %v1003_v60 = vadd.f32 %v1002_v8, %v3292_v2 }
 0x18e   : > { %v1502_v16 = vadd.f32 %v1450_v29, %v1369_v18  ;;  %v4003_v18 = vld [vmem:[#allocation19_spill] sm:$0xff]  ;;  %v4004_v29 = vld [vmem:[#allocation17_spill] sm:$0xff] }
 0x18f   : > { %v1320_v35 = vpop.f32.mrf.mxu2 }
 0x190   : > { %v3586_v48 = vadd.f32 %v1604_v21, %v1502_v16  ;;  %v1370_v44 = vadd.f32 %v1320_v35, %v1001_v46  ;;  %v4005_v35 = vld [vmem:[#allocation8_spill] sm:$0xff] }
 0x192   : > { %2636 = vmatmul.msk.bf16.gmra.mxu3 %vm668_vm4, %v2801_v63 }
 0x193   : > { %v1607_v40 = vpop.f32.mrf.mxu0 }
 0x194   : > { %v1005_v22 = vpop.f32.mrf.mxu1 }
 0x195   : > { %v1453_v11 = vpop.f32.mrf.mxu3  ;;  %v1006_v57 = vadd.f32 %v1005_v22, %v3314_v36  ;;  %v4006_v22 = vld [vmem:[#allocation22_spill] sm:$0xff] }
 0x196   : > { %v1503_v62 = vadd.f32 %v1453_v11, %v1370_v44  ;;  %2653 = vmatmul.msk.bf16.gmra.mxu0 %vm668_vm4, %v3200_v13 }
 0x197   : > { %v1322_v43 = vpop.f32.mrf.mxu2  ;;  %2601 = vmatmul.msk.bf16.gmra.mxu1 %vm668_vm4, %v3200_v13 }
 0x198   : > { %v3595_v6 = vadd.f32 %v1607_v40, %v1503_v62  ;;  %v1371_v33 = vadd.f32 %v1322_v43, %v1003_v60  ;;  %v4007_v62 = vld [vmem:[#allocation18_spill] sm:$0xff] }
 0x19b   : > { %v1609_v39 = vpop.f32.mrf.mxu0 }
 0x19c   : > { %2621 = vmatmul.msk.bf16.gmra.mxu2 %vm668_vm4, %v3208_v26  ;;  %v1007_v63 = vpop.f32.mrf.mxu1 }
 0x19d   : > { %v1455_v17 = vpop.f32.mrf.mxu3  ;;  %v1008_v26 = vadd.f32 %v1007_v63, %v3329_v51 }
 0x19e   : > { %v1504_v0 = vadd.f32 %v1455_v17, %v1371_v33 }
 0x19f   : > { %v1325_v56 = vpop.f32.mrf.mxu2 }
 0x1a0   : > { %v3600_v30 = vadd.f32 %v1609_v39, %v1504_v0  ;;  %v1372_v2 = vadd.f32 %v1325_v56, %v1006_v57  ;;  %v4008_v0 = vld [vmem:[#allocation23_spill] sm:$0xff] }
 0x1a2   : > { %2637 = vmatmul.msk.bf16.gmra.mxu3 %vm668_vm4, %v2875_v38 }
 0x1a3   : > { %v1612_v13 = vpop.f32.mrf.mxu0 }
 0x1a4   : > { %v1010_v54 = vpop.f32.mrf.mxu1 }
 0x1a5   : > { %v1458_v27 = vpop.f32.mrf.mxu3  ;;  %v1011_v8 = vadd.f32 %v1010_v54, %v4004_v29 }
 0x1a6   : > { %v1505_v58 = vadd.f32 %v1458_v27, %v1372_v2  ;;  %2654 = vmatmul.msk.bf16.gmra.mxu0 %vm668_vm4, %v3232_v42  ;;  %v4009_v2 = vld [vmem:[#allocation20_spill] sm:$0xff] }
 0x1a7   : > { %v1327_v19 = vpop.f32.mrf.mxu2  ;;  %2602 = vmatmul.msk.bf16.gmra.mxu1 %vm668_vm4, %v3232_v42 }
 0x1a8   : > { %v3609_v36 = vadd.f32 %v1612_v13, %v1505_v58  ;;  %v1373_v59 = vadd.f32 %v1327_v19, %v1008_v26  ;;  %v4010_v26 = vld [vmem:[#allocation15_spill] sm:$0xff] }
 0x1ab   : > { %v1614_v3 = vpop.f32.mrf.mxu0 }
 0x1ac   : > { %2622 = vmatmul.msk.bf16.gmra.mxu2 %vm668_vm4, %v4003_v18  ;;  %v1012_v38 = vpop.f32.mrf.mxu1  ;;  %v4011_v18 = vld [vmem:[#allocation25_spill] sm:$0xff] }
 0x1ad   : > { %v1460_v5 = vpop.f32.mrf.mxu3  ;;  %v1013_v60 = vadd.f32 %v1012_v38, %v4007_v62  ;;  %v4012_v38 = vld [vmem:[#allocation21_spill] sm:$0xff] }
 0x1ae   : > { %v1506_v21 = vadd.f32 %v1460_v5, %v1373_v59 }
 0x1af   : > { %v1330_v16 = vpop.f32.mrf.mxu2 }
 0x1b0   : > { %v3614_v46 = vadd.f32 %v1614_v3, %v1506_v21  ;;  %v1374_v51 = vadd.f32 %v1330_v16, %v1011_v8 }
 0x1b2   : > { %2638 = vmatmul.msk.bf16.gmra.mxu3 %vm668_vm4, %v4005_v35 }
 0x1b3   : > { %v1617_v42 = vpop.f32.mrf.mxu0 }
 0x1b4   : > { %v1015_v40 = vpop.f32.mrf.mxu1 }
 0x1b5   : > { %v1463_v44 = vpop.f32.mrf.mxu3  ;;  %v1016_v13 = vadd.f32 %v1015_v40, %v4009_v2  ;;  %v4017_v2 = vld [vmem:[#allocation26_spill] sm:$0xff] }
 0x1b6   : > { %v1507_v11 = vadd.f32 %v1463_v44, %v1374_v51  ;;  %2655 = vmatmul.msk.bf16.gmra.mxu0 %vm668_vm4, %v4006_v22 }
 0x1b7   : > { %v1332_v43 = vpop.f32.mrf.mxu2  ;;  %2603 = vmatmul.msk.bf16.gmra.mxu1 %vm668_vm4, %v4006_v22 }
 0x1b8   : > { %v3623_v33 = vadd.f32 %v1617_v42, %v1507_v11  ;;  %v1375_v39 = vadd.f32 %v1332_v43, %v1013_v60  ;;  %v4013_v42 = vld [vmem:[#allocation27_spill] sm:$0xff]  ;;  %v4014_v11 = vld [vmem:[#allocation24_spill] sm:$0xff] }
 0x1bb   : > { %v1619_v17 = vpop.f32.mrf.mxu0 }
 0x1bc   : > { %2623 = vmatmul.msk.bf16.gmra.mxu2 %vm668_vm4, %v4008_v0  ;;  %v1017_v57 = vpop.f32.mrf.mxu1 }
 0x1bd   : > { %v1465_v63 = vpop.f32.mrf.mxu3  ;;  %v1018_v21 = vadd.f32 %v1017_v57, %v4012_v38 }
 0x1be   : > { %v1508_v56 = vadd.f32 %v1465_v63, %v1375_v39  ;;  %v4015_v39 = vld [vmem:[#allocation2_spill] sm:$0xff] }
 0x1bf   : > { %v1335_v27 = vpop.f32.mrf.mxu2 }
 0x1c0   : > { %v3628_v54 = vadd.f32 %v1619_v17, %v1508_v56  ;;  %v1376_v58 = vadd.f32 %v1335_v27, %v1016_v13  ;;  %v4016_v56 = vld [vmem:[#allocation29_spill] sm:$0xff] }
 0x1c2   : > { %2639 = vmatmul.msk.bf16.gmra.mxu3 %vm668_vm4, %v4010_v26 }
 0x1c3   : > { %v1622_v19 = vpop.f32.mrf.mxu0 }
 0x1c4   : > { %v1020_v3 = vpop.f32.mrf.mxu1 }
 0x1c5   : > { %v1468_v59 = vpop.f32.mrf.mxu3  ;;  %v1021_v22 = vadd.f32 %v1020_v3, %v4014_v11 }
 0x1c6   : > { %v1509_v5 = vadd.f32 %v1468_v59, %v1376_v58  ;;  %2656 = vmatmul.msk.bf16.gmra.mxu0 %vm668_vm4, %v4011_v18 }
 0x1c7   : > { %v1337_v29 = vpop.f32.mrf.mxu2  ;;  %2604 = vmatmul.msk.bf16.gmra.mxu1 %vm668_vm4, %v4011_v18  ;;  %v4018_v18 = vld [vmem:[#allocation28_spill] sm:$0xff] }
 0x1c8   : > { %v3637_v8 = vadd.f32 %v1622_v19, %v1509_v5  ;;  %v1377_v16 = vadd.f32 %v1337_v29, %v1018_v21 }
 0x1cb   : > { %v1624_v51 = vpop.f32.mrf.mxu0 }
 0x1cc   : > { %2624 = vmatmul.msk.bf16.gmra.mxu2 %vm668_vm4, %v4013_v42  ;;  %v1022_v44 = vpop.f32.mrf.mxu1 }
 0x1cd   : > { %v1470_v35 = vpop.f32.mrf.mxu3  ;;  %v1023_v13 = vadd.f32 %v1022_v44, %v4017_v2 }
 0x1ce   : > { %v1510_v40 = vadd.f32 %v1470_v35, %v1377_v16 }
 0x1cf   : > { %v1340_v62 = vpop.f32.mrf.mxu2 }
 0x1d0   : > { %v3642_v60 = vadd.f32 %v1624_v51, %v1510_v40  ;;  %v1378_v43 = vadd.f32 %v1340_v62, %v1021_v22  ;;  %v4019_v40 = vld [vmem:[#allocation30_spill] sm:$0xff] }
 0x1d2   : > { %2640 = vmatmul.msk.bf16.gmra.mxu3 %vm668_vm4, %v4015_v39 }
 0x1d3   : > { %v1627_v17 = vpop.f32.mrf.mxu0 }
 0x1d4   : > { %v1025_v0 = vpop.f32.mrf.mxu1 }
 0x1d5   : > { %v1473_v63 = vpop.f32.mrf.mxu3  ;;  %v1026_v38 = vadd.f32 %v1025_v0, %v4018_v18 }
 0x1d6   : > { %v1511_v57 = vadd.f32 %v1473_v63, %v1378_v43  ;;  %2657 = vmatmul.msk.bf16.gmra.mxu0 %vm668_vm4, %v4016_v56 }
 0x1d7   : > { %v1342_v27 = vpop.f32.mrf.mxu2  ;;  %2605 = vmatmul.msk.bf16.gmra.mxu1 %vm668_vm4, %v4016_v56 }
 0x1d8   : > { %v3651_v58 = vadd.f32 %v1627_v17, %v1511_v57  ;;  %v1379_v26 = vadd.f32 %v1342_v27, %v1023_v13 }
 0x1db   : > { %v1629_v19 = vpop.f32.mrf.mxu0 }
 0x1dc   : > { %2625 = vmatmul.msk.bf16.gmra.mxu2 %vm668_vm4, %v3344_v50  ;;  %v1027_v3 = vpop.f32.mrf.mxu1 }
 0x1dd   : > { %v1475_v59 = vpop.f32.mrf.mxu3  ;;  %v1028_v50 = vadd.f32 %v1027_v3, %v4019_v40 }
 0x1de   : > { %v1512_v5 = vadd.f32 %v1475_v59, %v1379_v26 }
 0x1df   : > { %v1345_v21 = vpop.f32.mrf.mxu2 }
 0x1e0   : > { %v3656_v29 = vadd.f32 %v1629_v19, %v1512_v5  ;;  %v1380_v16 = vadd.f32 %v1345_v21, %v1026_v38 }
 0x1e2   : > { %2641 = vmatmul.msk.bf16.gmra.mxu3 %vm668_vm4, %v2897_v4 }
 0x1e3   : > { %v1632_v51 = vpop.f32.mrf.mxu0 }
 0x1e4   : > { %v1699_v42 = vpop.f32.mrf.mxu1 }
 0x1e5   : > { %v1478_v35 = vpop.f32.mrf.mxu3  ;;  %v1779_v63 = vadd.f32 %v1699_v42, %v3359_v9  ;;  %v4020_v42 = vld [vmem:[#allocation16_spill] sm:$0xff] }
 0x1e6   : > { %v1513_v44 = vadd.f32 %v1478_v35, %v1380_v16  ;;  %2658 = vmatmul.msk.bf16.gmra.mxu0 %vm668_vm4, %v3361_v10 }
 0x1e7   : > { %v1347_v11 = vpop.f32.mrf.mxu2  ;;  %2606 = vmatmul.msk.bf16.gmra.mxu1 %vm668_vm4, %v3361_v10 }
 0x1e8   : > { %v3665_v22 = vadd.f32 %v1632_v51, %v1513_v44  ;;  %v1381_v62 = vadd.f32 %v1347_v11, %v1028_v50 }
 0x1eb   : > { %v1634_v43 = vpop.f32.mrf.mxu0 }
 0x1ec   : > { %2626 = vmatmul.msk.bf16.gmra.mxu2 %vm668_vm4, %v3368_v55  ;;  %v1701_v4 = vpop.f32.mrf.mxu1  ;;  %v3677_v55 = vld [vmem:[%s3899_s2] ss:$0 sm:$0xff] }
 0x1ed   : > { %v1480_v39 = vpop.f32.mrf.mxu3  ;;  %v1780_v26 = vadd.f32 %v1701_v4, %v3372_v1  ;;  %v4022_v4 = vld [vmem:[#allocation11_spill] sm:$0xff] }
 0x1ee   : > { %v1514_v17 = vadd.f32 %v1480_v39, %v1381_v62  ;;  %v4021_v39 = vld [vmem:[#allocation31_spill] sm:$0xff] }
 0x1ef   : > { %v1832_v0 = vpop.f32.mrf.mxu2 }
 0x1f0   : > { %v3670_v57 = vadd.f32 %v1634_v43, %v1514_v17  ;;  %v1912_v10 = vadd.f32 %v1832_v0, %v1779_v63 }
 0x1f2   : > { %2642 = vmatmul.msk.bf16.gmra.mxu3 %vm668_vm4, %v2986_v25 }
 0x1f3   : > { %v2125_v56 = vpop.f32.mrf.mxu0 }
 0x1f4   : > { %v1704_v13 = vpop.f32.mrf.mxu1 }
 0x1f5   : > { %v1987_v2 = vpop.f32.mrf.mxu3  ;;  %v1781_v16 = vadd.f32 %v1704_v13, %v3385_v14 }
 0x1f6   : > { %v2067_v27 = vadd.f32 %v1987_v2, %v1912_v10  ;;  %2659 = vmatmul.msk.bf16.gmra.mxu0 %vm668_vm4, %v3387_v41 }
 0x1f7   : > { %v1834_v19 = vpop.f32.mrf.mxu2  ;;  %2607 = vmatmul.msk.bf16.gmra.mxu1 %vm668_vm4, %v3387_v41 }
 0x1f8   : > { %v2205_v9 = vadd.f32 %v2125_v56, %v2067_v27  ;;  %v1913_v59 = vadd.f32 %v1834_v19, %v1780_v26  ;;  %v4023_v27 = vld [vmem:[#allocation32_spill] sm:$0xff] }
 0x1fa   : > { %v2241_v25 = vadd.f32 %v3677_v55, %v2205_v9 }
 0x1fb   : > { %v2127_v5 = vpop.f32.mrf.mxu0 }
 0x1fc   : > { %v2273_v3 = vmax.f32 %v2241_v25, 0.0  ;;  %2627 = vmatmul.msk.bf16.gmra.mxu2 %vm668_vm4, %v3394_v52  ;;  %v1706_v1 = vpop.f32.mrf.mxu1 }
 0x1fd   : > { %v1989_v18 = vpop.f32.mrf.mxu3  ;;  %v1782_v17 = vadd.f32 %v1706_v1, %v4022_v4  ;;  %v4025_v1 = vld [vmem:[#allocation3_spill] sm:$0xff] }
 0x1fe   : > { %v2305_v38 = vpack.c.bf16 %v2273_v3, %v2273_v3  ;;  %v2068_v41 = vadd.f32 %v1989_v18, %v1913_v59  ;;  %v4024_v59 = vld [vmem:[#allocation9_spill] sm:$0xff] }
 0x1ff   : > { %v1837_v51 = vpop.f32.mrf.mxu2 }
 0x200   : > { %2338 = vst.msk [vmem:[%s3689_s29] sm:$0xf] %vm2337_vm8, %v2305_v38  ;;  %v2206_v21 = vadd.f32 %v2127_v5, %v2068_v41  ;;  %v1914_v44 = vadd.f32 %v1837_v51, %v1781_v16 }
 0x202   : > { %v2242_v35 = vadd.f32 %v3677_v55, %v2206_v21  ;;  %2643 = vmatmul.msk.bf16.gmra.mxu3 %vm668_vm4, %v4020_v42 }
 0x203   : > { %v2130_v50 = vpop.f32.mrf.mxu0 }
 0x204   : > { %v2274_v40 = vmax.f32 %v2242_v35, 0.0  ;;  %v1709_v52 = vpop.f32.mrf.mxu1 }
 0x205   : > { %v1992_v11 = vpop.f32.mrf.mxu3  ;;  %v1783_v3 = vadd.f32 %v1709_v52, %v4024_v59 }
 0x206   : > { %v2306_v62 = vpack.c.bf16 %v2274_v40, %v2274_v40  ;;  %v2069_v43 = vadd.f32 %v1992_v11, %v1914_v44  ;;  %2660 = vmatmul.msk.bf16.gmra.mxu0 %vm668_vm4, %v4021_v39  ;;  %v4026_v44 = vld [vmem:[#allocation35_spill] sm:$0xff] }
 0x207   : > { %v1839_v63 = vpop.f32.mrf.mxu2  ;;  %2608 = vmatmul.msk.bf16.gmra.mxu1 %vm668_vm4, %v4021_v39 }
 0x208   : > { %2339 = vst.msk [vmem:[%s3689_s29 + $0x4] sm:$0xf] %vm2337_vm8, %v2306_v62  ;;  %v2207_v14 = vadd.f32 %v2130_v50, %v2069_v43  ;;  %v1915_v10 = vadd.f32 %v1839_v63, %v1782_v17  ;;  %v4027_v50 = vld [vmem:[#allocation33_spill] sm:$0xff]  ;;  %v4028_v17 = vld [vmem:[#allocation36_spill] sm:$0xff] }
 0x20a   : > { %v2243_v0 = vadd.f32 %v3677_v55, %v2207_v14 }
 0x20b   : > { %v2132_v2 = vpop.f32.mrf.mxu0 }
 0x20c   : > { %v2275_v56 = vmax.f32 %v2243_v0, 0.0  ;;  %2628 = vmatmul.msk.bf16.gmra.mxu2 %vm668_vm4, %v4023_v27  ;;  %v1711_v9 = vpop.f32.mrf.mxu1 }
 0x20d   : > { %v1994_v13 = vpop.f32.mrf.mxu3  ;;  %v1784_v11 = vadd.f32 %v1711_v9, %v4027_v50 }
 0x20e   : > { %v2307_v26 = vpack.c.bf16 %v2275_v56, %v2275_v56  ;;  %v2070_v19 = vadd.f32 %v1994_v13, %v1915_v10 }
 0x20f   : > { %v1842_v5 = vpop.f32.mrf.mxu2 }
 0x210   : > { %2340 = vst.msk [vmem:[%s3689_s29 + $0x8] sm:$0xf] %vm2337_vm8, %v2307_v26  ;;  %v2208_v25 = vadd.f32 %v2132_v2, %v2070_v19  ;;  %v1916_v38 = vadd.f32 %v1842_v5, %v1783_v3  ;;  %v4029_v2 = vld [vmem:[#allocation34_spill] sm:$0xff]  ;;  %v4030_v26 = vld [vmem:[#allocation4_spill] sm:$0xff] }
 0x212   : > { %v2244_v18 = vadd.f32 %v3677_v55, %v2208_v25  ;;  %2644 = vmatmul.msk.bf16.gmra.mxu3 %vm668_vm4, %v4025_v1 }
 0x213   : > { %v2135_v21 = vpop.f32.mrf.mxu0 }
 0x214   : > { %v2276_v41 = vmax.f32 %v2244_v18, 0.0  ;;  %v1714_v51 = vpop.f32.mrf.mxu1 }
 0x215   : > { %v1997_v16 = vpop.f32.mrf.mxu3  ;;  %v1785_v13 = vadd.f32 %v1714_v51, %v4029_v2 }
 0x216   : > { %v2308_v35 = vpack.c.bf16 %v2276_v41, %v2276_v41  ;;  %v2071_v42 = vadd.f32 %v1997_v16, %v1916_v38  ;;  %2661 = vmatmul.msk.bf16.gmra.mxu0 %vm668_vm4, %v4026_v44  ;;  %v4031_v38 = vld [vmem:[#allocation39_spill] sm:$0xff] }
 0x217   : > { %v1844_v52 = vpop.f32.mrf.mxu2  ;;  %2609 = vmatmul.msk.bf16.gmra.mxu1 %vm668_vm4, %v4026_v44 }
 0x218   : > { %2341 = vst.msk [vmem:[%s3689_s29 + $0xc] sm:$0xf] %vm2337_vm8, %v2308_v35  ;;  %v2209_v40 = vadd.f32 %v2135_v21, %v2071_v42  ;;  %v1917_v43 = vadd.f32 %v1844_v52, %v1784_v11  ;;  %v4032_v21 = vld [vmem:[#allocation37_spill] sm:$0xff]  ;;  %v4033_v11 = vld [vmem:[#allocation6_spill] sm:$0xff] }
 0x21a   : > { %v2245_v62 = vadd.f32 %v3677_v55, %v2209_v40 }
 0x21b   : > { %v2137_v14 = vpop.f32.mrf.mxu0 }
 0x21c   : > { %v2277_v39 = vmax.f32 %v2245_v62, 0.0  ;;  %2629 = vmatmul.msk.bf16.gmra.mxu2 %vm668_vm4, %v4028_v17  ;;  %v1716_v63 = vpop.f32.mrf.mxu1 }
 0x21d   : > { %v1999_v4 = vpop.f32.mrf.mxu3  ;;  %v1786_v16 = vadd.f32 %v1716_v63, %v4032_v21 }
 0x21e   : > { %v2309_v0 = vpack.c.bf16 %v2277_v39, %v2277_v39  ;;  %v2072_v10 = vadd.f32 %v1999_v4, %v1917_v43 }
 0x21f   : > { %v1847_v27 = vpop.f32.mrf.mxu2 }
 0x220   : > { %2342 = vst.msk [vmem:[%s3689_s29 + $0x10] sm:$0xf] %vm2337_vm8, %v2309_v0  ;;  %v2210_v56 = vadd.f32 %v2137_v14, %v2072_v10  ;;  %v1918_v19 = vadd.f32 %v1847_v27, %v1785_v13  ;;  %v4034_v14 = vld [vmem:[#allocation38_spill] sm:$0xff] }
 0x221   : > { %v4035_v0 = vld [vmem:[#allocation10_spill] sm:$0xff] }
 0x222   : > { %v2246_v9 = vadd.f32 %v3677_v55, %v2210_v56  ;;  %2645 = vmatmul.msk.bf16.gmra.mxu3 %vm668_vm4, %v4030_v26 }
 0x223   : > { %v2140_v59 = vpop.f32.mrf.mxu0 }
 0x224   : > { %v2278_v25 = vmax.f32 %v2246_v9, 0.0  ;;  %v1719_v5 = vpop.f32.mrf.mxu1 }
 0x225   : > { %v2002_v3 = vpop.f32.mrf.mxu3  ;;  %v1787_v4 = vadd.f32 %v1719_v5, %v4034_v14  ;;  %v3765_v14 = vld [vmem:[%s2760_s21 + $0xcc] sm:$0xf] }
 0x226   : > { %v2310_v18 = vpack.c.bf16 %v2278_v25, %v2278_v25  ;;  %v2073_v1 = vadd.f32 %v2002_v3, %v1918_v19  ;;  %2662 = vmatmul.msk.bf16.gmra.mxu0 %vm668_vm4, %v4031_v38  ;;  %v4036_v19 = vld [vmem:[#allocation41_spill] sm:$0xff] }
 0x227   : > { %v1849_v51 = vpop.f32.mrf.mxu2  ;;  %2610 = vmatmul.msk.bf16.gmra.mxu1 %vm668_vm4, %v4031_v38 }
 0x228   : > { %2343 = vst.msk [vmem:[%s3689_s29 + $0x14] sm:$0xf] %vm2337_vm8, %v2310_v18  ;;  %v2211_v41 = vadd.f32 %v2140_v59, %v2073_v1  ;;  %v1919_v42 = vadd.f32 %v1849_v51, %v1786_v16  ;;  %v4037_v59 = vld [vmem:[#allocation7_spill] sm:$0xff] }
 0x22a   : > { %v2247_v35 = vadd.f32 %v3677_v55, %v2211_v41 }
 0x22b   : > { %v2142_v40 = vpop.f32.mrf.mxu0 }
 0x22c   : > { %v2279_v44 = vmax.f32 %v2247_v35, 0.0  ;;  %2630 = vmatmul.msk.bf16.gmra.mxu2 %vm668_vm4, %v4033_v11  ;;  %v1721_v52 = vpop.f32.mrf.mxu1 }
 0x22d   : > { %v2004_v50 = vpop.f32.mrf.mxu3  ;;  %v1788_v3 = vadd.f32 %v1721_v52, %v4037_v59 }
 0x22e   : > { %v2311_v62 = vpack.c.bf16 %v2279_v44, %v2279_v44  ;;  %v2074_v43 = vadd.f32 %v2004_v50, %v1919_v42  ;;  %v4038_v44 = vld [vmem:[#allocation40_spill] sm:$0xff] }
 0x22f   : > { %v1852_v17 = vpop.f32.mrf.mxu2 }
 0x230   : > { %2344 = vst.msk [vmem:[%s3689_s29 + $0x18] sm:$0xf] %vm2337_vm8, %v2311_v62  ;;  %v2212_v39 = vadd.f32 %v2142_v40, %v2074_v43  ;;  %v1920_v10 = vadd.f32 %v1852_v17, %v1787_v4  ;;  %v3768_v4 = vld [vmem:[%s2760_s21 + $0xd0] sm:$0xf] }
 0x232   : > { %v2248_v63 = vadd.f32 %v3677_v55, %v2212_v39  ;;  %2646 = vmatmul.msk.bf16.gmra.mxu3 %vm668_vm4, %v4035_v0  ;;  %v4039_v39 = vld [vmem:[#allocation42_spill] sm:$0xff] }
 0x233   : > { %v2145_v2 = vpop.f32.mrf.mxu0 }
 0x234   : > { %v2280_v56 = vmax.f32 %v2248_v63, 0.0  ;;  %v1724_v27 = vpop.f32.mrf.mxu1 }
 0x235   : > { %v2007_v13 = vpop.f32.mrf.mxu3  ;;  %v1789_v40 = vadd.f32 %v1724_v27, %v4038_v44  ;;  %v1954_v27 = vshll.u32 %v3768_v4, 16 }
 0x236   : > { %v2312_v9 = vpack.c.bf16 %v2280_v56, %v2280_v56  ;;  %v2075_v26 = vadd.f32 %v2007_v13, %v1920_v10  ;;  %2663 = vmatmul.msk.bf16.gmra.mxu0 %vm668_vm4, %v4036_v19  ;;  %v4040_v56 = vld [vmem:[#allocation5_spill] sm:$0xff]  ;;  %v1948_v13 = vshll.u32 %v3765_v14, 16 }
 0x237   : > { %v1854_v5 = vpop.f32.mrf.mxu2  ;;  %2611 = vmatmul.msk.bf16.gmra.mxu1 %vm668_vm4, %v4036_v19 }
 0x238   : > { %2345 = vst.msk [vmem:[%s3689_s29 + $0x1c] sm:$0xf] %vm2337_vm8, %v2312_v9  ;;  %v2213_v25 = vadd.f32 %v2145_v2, %v2075_v26  ;;  %v1921_v1 = vadd.f32 %v1854_v5, %v1788_v3  ;;  %v2597_v2 = vrot.slane %v4040_v56, 9  ;;  %v1958_v9 = vshrl.u32 %v3768_v4, 16 }
 0x239   : > { %v1675_v3 = vrot.slane %v3514_v61, 5 }
 0x23a   : > { %v2249_v18 = vadd.f32 %v3677_v55, %v2213_v25 }
 0x23b   : > { %v2147_v41 = vpop.f32.mrf.mxu0 }
 0x23c   : > { %v2281_v38 = vmax.f32 %v2249_v18, 0.0  ;;  %2631 = vmatmul.msk.bf16.gmra.mxu2 %vm668_vm4, %v3507_v31  ;;  %v1726_v16 = vpop.f32.mrf.mxu1  ;;  %v1672_v31 = vrot.slane %v4039_v39, 5 }
 0x23d   : > { %v2009_v21 = vpop.f32.mrf.mxu3  ;;  %v1790_v19 = vadd.f32 %v1726_v16, %v3511_v23 }
 0x23e   : > { %v2313_v51 = vpack.c.bf16 %v2281_v38, %v2281_v38  ;;  %v2076_v35 = vadd.f32 %v2009_v21, %v1921_v1  ;;  %v1674_v59 = vrot.slane %v1672_v31, 4  ;;  %v1673_v1 = vsel %vm3085_vm7, %v2597_v2, %v1672_v31 }
 0x23f   : > { %v1857_v50 = vpop.f32.mrf.mxu2  ;;  %v1956_v21 = vrot.slane %v1954_v27, 5 }
 0x240   : > { %2346 = vst.msk [vmem:[%s3689_s29 + $0x20] sm:$0xf] %vm2337_vm8, %v2313_v51  ;;  %v2214_v42 = vadd.f32 %v2147_v41, %v2076_v35  ;;  %v1922_v52 = vadd.f32 %v1857_v50, %v1789_v40  ;;  %v1950_v41 = vrot.slane %v1948_v13, 5  ;;  %v1960_v51 = vrot.slane %v1958_v9, 4 }
 0x241   : > { %v1676_v16 = vsel %vm3085_vm7, %v1674_v59, %v1675_v3  ;;  %v1677_v50 = vunpack.c.l.b16 %v1673_v1  ;;  %v2102_v9 = vrot.slane %v3768_v4, 5  ;;  %v2650_v59 = vrot.slane %v3765_v14, 9 }
 0x242   : > { %v2250_v11 = vadd.f32 %v3677_v55, %v2214_v42  ;;  %2647 = vmatmul.msk.bf16.gmra.mxu3 %vm668_vm4, %v3094_v15  ;;  %v1945_v15 = vshrl.u32 %v3765_v14, 16 }
 0x243   : > { %v2150_v43 = vpop.f32.mrf.mxu0  ;;  %v2103_v14 = vsel %vm3085_vm7, %v2650_v59, %v2102_v9 }
 0x244   : > { %v2282_v62 = vmax.f32 %v2250_v11, 0.0  ;;  %v1729_v63 = vpop.f32.mrf.mxu1  ;;  %v1947_v38 = vrot.slane %v1945_v15, 4  ;;  %v1678_v11 = vunpack.c.l.b16 %v1676_v16 }
 0x245   : > { %v2012_v17 = vpop.f32.mrf.mxu3  ;;  %v1791_v31 = vadd.f32 %v1729_v63, %v3528_v47 }
 0x246   : > { %v2314_v0 = vpack.c.bf16 %v2282_v62, %v2282_v62  ;;  %v2077_v10 = vadd.f32 %v2012_v17, %v1922_v52  ;;  %2664 = vmatmul.msk.bf16.gmra.mxu0 %vm668_vm4, %v3530_v45  ;;  %v1951_v52 = vor.u32 %v1950_v41, %v1947_v38  ;;  %v1961_v62 = vor.u32 %v1960_v51, %v1956_v21  ;;  %v2687_v38 = vld [vmem:[%s2760_s21 + $0xcc] sm:$0xff] }
 0x247   : > { %v1859_v25 = vpop.f32.mrf.mxu2  ;;  %2612 = vmatmul.msk.bf16.gmra.mxu1 %vm668_vm4, %v3530_v45  ;;  %v225_v45 = vld [vmem:[%s2760_s21 + $0xd4] sm:$0x1] }
 0x248   : > { %2347 = vst.msk [vmem:[%s3689_s29 + $0x24] sm:$0xf] %vm2337_vm8, %v2314_v0  ;;  %v2215_v26 = vadd.f32 %v2150_v43, %v2077_v10  ;;  %v1923_v18 = vadd.f32 %v1859_v25, %v1790_v19  ;;  %v1964_v43 = vshll.u32 %v225_v45, 16  ;;  %v1679_v10 = vpack.c.b16 %v1678_v11, %v1677_v50 }
 0x249   : > { %v1952_v56 = vrot.slane %v1951_v52, 4  ;;  %v1962_v2 = vrot.slane %v1961_v62, 4  ;;  %v2105_v1 = vrot.slane %v225_v45, 5 }
 0x24a   : > { %v2251_v5 = vadd.f32 %v3677_v55, %v2215_v26  ;;  %v1966_v15 = vrot.slane %v1964_v43, 5 }
 0x24b   : > { %v2152_v23 = vpop.f32.mrf.mxu0 }
 0x24c   : > { %v2283_v35 = vmax.f32 %v2251_v5, 0.0  ;;  %2632 = vmatmul.msk.bf16.gmra.mxu2 %vm668_vm4, %v3539_v24  ;;  %v1731_v61 = vpop.f32.mrf.mxu1  ;;  %v1967_v25 = vsel %vm2789_vm3, %v1962_v2, %v1966_v15 }
 0x24d   : > { %v2014_v42 = vpop.f32.mrf.mxu3  ;;  %v1792_v4 = vadd.f32 %v1731_v61, %v3542_v28  ;;  %v1969_v37 = vunpack.c.l.b16 %v1967_v25 }
 0x24e   : > { %v2315_v44 = vpack.c.bf16 %v2283_v35, %v2283_v35  ;;  %v2078_v40 = vadd.f32 %v2014_v42, %v1923_v18  ;;  %v2104_v18 = vrot.slane %v2102_v9, 4 }
 0x24f   : > { %v1862_v17 = vpop.f32.mrf.mxu2 }
 0x250   : > { %2348 = vst.msk [vmem:[%s3689_s29 + $0x28] sm:$0xf] %vm2337_vm8, %v2315_v44  ;;  %v2216_v39 = vadd.f32 %v2152_v23, %v2078_v40  ;;  %v1924_v24 = vadd.f32 %v1862_v17, %v1791_v31  ;;  %v2106_v28 = vsel %vm3085_vm7, %v2104_v18, %v2105_v1  ;;  %v2107_v40 = vunpack.c.l.b16 %v2103_v14 }
 0x251   : > { %v2108_v50 = vunpack.c.l.b16 %v2106_v28 }
 0x252   : > { %v2252_v0 = vadd.f32 %v3677_v55, %v2216_v39  ;;  %2648 = vmatmul.msk.bf16.gmra.mxu3 %vm668_vm4, %v3546_v32  ;;  %v1957_v32 = vsel %vm2789_vm3, %v1952_v56, %v1956_v21 }
 0x253   : > { %v2155_v27 = vpop.f32.mrf.mxu0  ;;  %v1968_v51 = vunpack.c.l.b16 %v1957_v32  ;;  %v2109_v39 = vpack.c.b16 %v2108_v50, %v2107_v40 }
 0x254   : > { %v2284_v13 = vmax.f32 %v2252_v0, 0.0  ;;  %v1734_v19 = vpop.f32.mrf.mxu1 }
 0x255   : > { %v2017_v26 = vpop.f32.mrf.mxu3  ;;  %v1970_v44 = vpack.c.b16 %v1969_v37, %v1968_v51  ;;  %v1793_v52 = vadd.f32 %v1734_v19, %v3553_v20 }
 0x256   : > { %v2316_v47 = vpack.c.bf16 %v2284_v13, %v2284_v13  ;;  %v2079_v63 = vadd.f32 %v2017_v26, %v1924_v24  ;;  %2665 = vmatmul.msk.bf16.gmra.mxu0 %vm668_vm4, %v1679_v10 }
 0x257   : > { %v1864_v5 = vpop.f32.mrf.mxu2  ;;  %2613 = vmatmul.msk.bf16.gmra.mxu1 %vm668_vm4, %v1679_v10 }
 0x258   : > { %2349 = vst.msk [vmem:[%s3689_s29 + $0x2c] sm:$0xf] %vm2337_vm8, %v2316_v47  ;;  %v2217_v3 = vadd.f32 %v2155_v27, %v2079_v63  ;;  %v1925_v21 = vadd.f32 %v1864_v5, %v1792_v4 }
 0x25a   : > { %v2253_v41 = vadd.f32 %v3677_v55, %v2217_v3 }
 0x25b   : > { %v2157_v23 = vpop.f32.mrf.mxu0 }
 0x25c   : > { %v2285_v35 = vmax.f32 %v2253_v41, 0.0  ;;  %2633 = vmatmul.msk.bf16.gmra.mxu2 %vm668_vm4, %v2687_v38  ;;  %v1736_v42 = vpop.f32.mrf.mxu1 }
 0x25d   : > { %v2019_v16 = vpop.f32.mrf.mxu3  ;;  %v1794_v20 = vadd.f32 %v1736_v42, %v3558_v53 }
 0x25e   : > { %v2317_v45 = vpack.c.bf16 %v2285_v35, %v2285_v35  ;;  %v2080_v61 = vadd.f32 %v2019_v16, %v1925_v21 }
 0x25f   : > { %v1867_v62 = vpop.f32.mrf.mxu2 }
 0x260   : > { %2350 = vst.msk [vmem:[%s3689_s29 + $0x30] sm:$0xf] %vm2337_vm8, %v2317_v45  ;;  %v2218_v11 = vadd.f32 %v2157_v23, %v2080_v61  ;;  %v1926_v12 = vadd.f32 %v1867_v62, %v1793_v52 }
 0x262   : > { %v2254_v43 = vadd.f32 %v3677_v55, %v2218_v11  ;;  %2649 = vmatmul.msk.bf16.gmra.mxu3 %vm668_vm4, %v1970_v44 }
 0x263   : > { %v2160_v17 = vpop.f32.mrf.mxu0 }
 0x264   : > { %v2286_v31 = vmax.f32 %v2254_v43, 0.0  ;;  %v1739_v24 = vpop.f32.mrf.mxu1 }
 0x265   : > { %v2022_v0 = vpop.f32.mrf.mxu3  ;;  %v1795_v59 = vadd.f32 %v1739_v24, %v3567_v49 }
 0x266   : > { %v2318_v10 = vpack.c.bf16 %v2286_v31, %v2286_v31  ;;  %v2081_v56 = vadd.f32 %v2022_v0, %v1926_v12  ;;  %2666 = vmatmul.msk.bf16.gmra.mxu0 %vm668_vm4, %v2109_v39 }
 0x267   : > { %v1869_v15 = vpop.f32.mrf.mxu2 }
 0x268   : > { %2351 = vst.msk [vmem:[%s3689_s29 + $0x34] sm:$0xf] %vm2337_vm8, %v2318_v10  ;;  %v2219_v2 = vadd.f32 %v2160_v17, %v2081_v56  ;;  %v1927_v27 = vadd.f32 %v1869_v15, %v1794_v20 }
 0x26a   : > { %v2255_v13 = vadd.f32 %v3677_v55, %v2219_v2 }
 0x26b   : > { %v2162_v26 = vpop.f32.mrf.mxu0 }
 0x26c   : > { %v2287_v9 = vmax.f32 %v2255_v13, 0.0  ;;  %v1741_v47 = vpop.f32.mrf.mxu1 }
 0x26d   : > { %v2024_v19 = vpop.f32.mrf.mxu3  ;;  %v1796_v37 = vadd.f32 %v1741_v47, %v3572_v34 }
 0x26e   : > { %v2319_v63 = vpack.c.bf16 %v2287_v9, %v2287_v9  ;;  %v2082_v32 = vadd.f32 %v2024_v19, %v1927_v27 }
 0x26f   : > { %v1872_v3 = vpop.f32.mrf.mxu2 }
 0x270   : > { %2352 = vst.msk [vmem:[%s3689_s29 + $0x38] sm:$0xf] %vm2337_vm8, %v2319_v63  ;;  %v2220_v25 = vadd.f32 %v2162_v26, %v2082_v32  ;;  %v1928_v53 = vadd.f32 %v1872_v3, %v1795_v59 }
 0x272   : > { %v2256_v4 = vadd.f32 %v3677_v55, %v2220_v25 }
 0x273   : > { %v2165_v18 = vpop.f32.mrf.mxu0 }
 0x274   : > { %v2288_v5 = vmax.f32 %v2256_v4, 0.0  ;;  %v1744_v38 = vpop.f32.mrf.mxu1 }
 0x275   : > { %v2027_v1 = vpop.f32.mrf.mxu3  ;;  %v1797_v40 = vadd.f32 %v1744_v38, %v3581_v7 }
 0x276   : > { %v2320_v41 = vpack.c.bf16 %v2288_v5, %v2288_v5  ;;  %v2083_v21 = vadd.f32 %v2027_v1, %v1928_v53 }
 0x277   : > { %v1874_v35 = vpop.f32.mrf.mxu2 }
 0x278   : > { %2353 = vst.msk [vmem:[%s3689_s29 + $0x3c] sm:$0xf] %vm2337_vm8, %v2320_v41  ;;  %v2221_v51 = vadd.f32 %v2165_v18, %v2083_v21  ;;  %v1929_v49 = vadd.f32 %v1874_v35, %v1796_v37 }
 0x27a   : > { %v2257_v23 = vadd.f32 %v3677_v55, %v2221_v51 }
 0x27b   : > { %v2167_v28 = vpop.f32.mrf.mxu0 }
 0x27c   : > { %v2289_v14 = vmax.f32 %v2257_v23, 0.0  ;;  %v1746_v42 = vpop.f32.mrf.mxu1 }
 0x27d   : > { %v2029_v16 = vpop.f32.mrf.mxu3  ;;  %v1798_v0 = vadd.f32 %v1746_v42, %v3586_v48 }
 0x27e   : > { %v2321_v45 = vpack.c.bf16 %v2289_v14, %v2289_v14  ;;  %v2084_v61 = vadd.f32 %v2029_v16, %v1929_v49 }
 0x27f   : > { %v1877_v50 = vpop.f32.mrf.mxu2 }
 0x280   : > { %2354 = vst.msk [vmem:[%s3689_s29 + $0x40] sm:$0xf] %vm2337_vm8, %v2321_v45  ;;  %v2222_v44 = vadd.f32 %v2167_v28, %v2084_v61  ;;  %v1930_v34 = vadd.f32 %v1877_v50, %v1797_v40 }
 0x282   : > { %v2258_v11 = vadd.f32 %v3677_v55, %v2222_v44 }
 0x283   : > { %v2170_v62 = vpop.f32.mrf.mxu0 }
 0x284   : > { %v2290_v52 = vmax.f32 %v2258_v11, 0.0  ;;  %v1749_v12 = vpop.f32.mrf.mxu1 }
 0x285   : > { %v2032_v43 = vpop.f32.mrf.mxu3  ;;  %v1799_v26 = vadd.f32 %v1749_v12, %v3595_v6 }
 0x286   : > { %v2322_v39 = vpack.c.bf16 %v2290_v52, %v2290_v52  ;;  %v2085_v31 = vadd.f32 %v2032_v43, %v1930_v34 }
 0x287   : > { %v1879_v24 = vpop.f32.mrf.mxu2 }
 0x288   : > { %2355 = vst.msk [vmem:[%s3689_s29 + $0x44] sm:$0xf] %vm2337_vm8, %v2322_v39  ;;  %v2223_v17 = vadd.f32 %v2170_v62, %v2085_v31  ;;  %v1931_v7 = vadd.f32 %v1879_v24, %v1798_v0 }
 0x28a   : > { %v2259_v10 = vadd.f32 %v3677_v55, %v2223_v17 }
 0x28b   : > { %v2172_v2 = vpop.f32.mrf.mxu0 }
 0x28c   : > { %v2291_v56 = vmax.f32 %v2259_v10, 0.0  ;;  %v1751_v15 = vpop.f32.mrf.mxu1 }
 0x28d   : > { %v2034_v20 = vpop.f32.mrf.mxu3  ;;  %v1800_v5 = vadd.f32 %v1751_v15, %v3600_v30 }
 0x28e   : > { %v2323_v13 = vpack.c.bf16 %v2291_v56, %v2291_v56  ;;  %v2086_v27 = vadd.f32 %v2034_v20, %v1931_v7 }
 0x28f   : > { %v1882_v19 = vpop.f32.mrf.mxu2 }
 0x290   : > { %2356 = vst.msk [vmem:[%s3689_s29 + $0x48] sm:$0xf] %vm2337_vm8, %v2323_v13  ;;  %v2224_v9 = vadd.f32 %v2172_v2, %v2086_v27  ;;  %v1932_v48 = vadd.f32 %v1882_v19, %v1799_v26 }
 0x292   : > { %v2260_v47 = vadd.f32 %v3677_v55, %v2224_v9 }
 0x293   : > { %v2175_v32 = vpop.f32.mrf.mxu0 }
 0x294   : > { %v2292_v63 = vmax.f32 %v2260_v47, 0.0  ;;  %v1754_v59 = vpop.f32.mrf.mxu1 }
 0x295   : > { %v2037_v25 = vpop.f32.mrf.mxu3  ;;  %v1801_v49 = vadd.f32 %v1754_v59, %v3609_v36 }
 0x296   : > { %v2324_v3 = vpack.c.bf16 %v2292_v63, %v2292_v63  ;;  %v2087_v4 = vadd.f32 %v2037_v25, %v1932_v48 }
 0x297   : > { %v1884_v18 = vpop.f32.mrf.mxu2 }
 0x298   : > { %2357 = vst.msk [vmem:[%s3689_s29 + $0x4c] sm:$0xf] %vm2337_vm8, %v2324_v3  ;;  %v2225_v53 = vadd.f32 %v2175_v32, %v2087_v4  ;;  %v1933_v6 = vadd.f32 %v1884_v18, %v1800_v5 }
 0x29a   : > { %v2261_v1 = vadd.f32 %v3677_v55, %v2225_v53 }
 0x29b   : > { %v2177_v41 = vpop.f32.mrf.mxu0 }
 0x29c   : > { %v2293_v38 = vmax.f32 %v2261_v1, 0.0  ;;  %v1756_v51 = vpop.f32.mrf.mxu1 }
 0x29d   : > { %v2039_v21 = vpop.f32.mrf.mxu3  ;;  %v1802_v11 = vadd.f32 %v1756_v51, %v3614_v46 }
 0x29e   : > { %v2325_v37 = vpack.c.bf16 %v2293_v38, %v2293_v38  ;;  %v2088_v35 = vadd.f32 %v2039_v21, %v1933_v6 }
 0x29f   : > { %v1887_v14 = vpop.f32.mrf.mxu2 }
 0x2a0   : > { %2358 = vst.msk [vmem:[%s3689_s29 + $0x50] sm:$0xf] %vm2337_vm8, %v2325_v37  ;;  %v2226_v23 = vadd.f32 %v2177_v41, %v2088_v35  ;;  %v1934_v30 = vadd.f32 %v1887_v14, %v1801_v49 }
 0x2a2   : > { %v2262_v28 = vadd.f32 %v3677_v55, %v2226_v23 }
 0x2a3   : > { %v2180_v42 = vpop.f32.mrf.mxu0 }
 0x2a4   : > { %v2294_v16 = vmax.f32 %v2262_v28, 0.0  ;;  %v1759_v61 = vpop.f32.mrf.mxu1 }
 0x2a5   : > { %v2042_v45 = vpop.f32.mrf.mxu3  ;;  %v1803_v24 = vadd.f32 %v1759_v61, %v3623_v33 }
 0x2a6   : > { %v2326_v44 = vpack.c.bf16 %v2294_v16, %v2294_v16  ;;  %v2089_v40 = vadd.f32 %v2042_v45, %v1934_v30 }
 0x2a7   : > { %v1889_v34 = vpop.f32.mrf.mxu2 }
 0x2a8   : > { %2359 = vst.msk [vmem:[%s3689_s29 + $0x54] sm:$0xf] %vm2337_vm8, %v2326_v44  ;;  %v2227_v50 = vadd.f32 %v2180_v42, %v2089_v40  ;;  %v1935_v36 = vadd.f32 %v1889_v34, %v1802_v11 }
 0x2aa   : > { %v2263_v52 = vadd.f32 %v3677_v55, %v2227_v50 }
 0x2ab   : > { %v2182_v43 = vpop.f32.mrf.mxu0 }
 0x2ac   : > { %v2295_v62 = vmax.f32 %v2263_v52, 0.0  ;;  %v1761_v39 = vpop.f32.mrf.mxu1 }
 0x2ad   : > { %v2044_v12 = vpop.f32.mrf.mxu3  ;;  %v1804_v26 = vadd.f32 %v1761_v39, %v3628_v54 }
 0x2ae   : > { %v2327_v31 = vpack.c.bf16 %v2295_v62, %v2295_v62  ;;  %v2090_v17 = vadd.f32 %v2044_v12, %v1935_v36 }
 0x2af   : > { %v1892_v10 = vpop.f32.mrf.mxu2 }
 0x2b0   : > { %2360 = vst.msk [vmem:[%s3689_s29 + $0x58] sm:$0xf] %vm2337_vm8, %v2327_v31  ;;  %v2228_v0 = vadd.f32 %v2182_v43, %v2090_v17  ;;  %v1936_v46 = vadd.f32 %v1892_v10, %v1803_v24 }
 0x2b2   : > { %v2264_v7 = vadd.f32 %v3677_v55, %v2228_v0 }
 0x2b3   : > { %v2185_v2 = vpop.f32.mrf.mxu0 }
 0x2b4   : > { %v2296_v56 = vmax.f32 %v2264_v7, 0.0  ;;  %v1764_v15 = vpop.f32.mrf.mxu1 }
 0x2b5   : > { %v2047_v20 = vpop.f32.mrf.mxu3  ;;  %v1805_v53 = vadd.f32 %v1764_v15, %v3637_v8 }
 0x2b6   : > { %v2328_v13 = vpack.c.bf16 %v2296_v56, %v2296_v56  ;;  %v2091_v27 = vadd.f32 %v2047_v20, %v1936_v46 }
 0x2b7   : > { %v1894_v19 = vpop.f32.mrf.mxu2 }
 0x2b8   : > { %2361 = vst.msk [vmem:[%s3689_s29 + $0x5c] sm:$0xf] %vm2337_vm8, %v2328_v13  ;;  %v2229_v9 = vadd.f32 %v2185_v2, %v2091_v27  ;;  %v1937_v33 = vadd.f32 %v1894_v19, %v1804_v26 }
 0x2ba   : > { %v2265_v47 = vadd.f32 %v3677_v55, %v2229_v9 }
 0x2bb   : > { %v2187_v63 = vpop.f32.mrf.mxu0 }
 0x2bc   : > { %v2297_v48 = vmax.f32 %v2265_v47, 0.0  ;;  %v1766_v25 = vpop.f32.mrf.mxu1 }
 0x2bd   : > { %v2049_v32 = vpop.f32.mrf.mxu3  ;;  %v1806_v35 = vadd.f32 %v1766_v25, %v3642_v60 }
 0x2be   : > { %v2329_v59 = vpack.c.bf16 %v2297_v48, %v2297_v48  ;;  %v2092_v3 = vadd.f32 %v2049_v32, %v1937_v33 }
 0x2bf   : > { %v1897_v5 = vpop.f32.mrf.mxu2 }
 0x2c0   : > { %2362 = vst.msk [vmem:[%s3689_s29 + $0x60] sm:$0xf] %vm2337_vm8, %v2329_v59  ;;  %v2230_v4 = vadd.f32 %v2187_v63, %v2092_v3  ;;  %v1938_v54 = vadd.f32 %v1897_v5, %v1805_v53 }
 0x2c2   : > { %v2266_v18 = vadd.f32 %v3677_v55, %v2230_v4 }
 0x2c3   : > { %v2190_v6 = vpop.f32.mrf.mxu0 }
 0x2c4   : > { %v2298_v1 = vmax.f32 %v2266_v18, 0.0  ;;  %v1769_v51 = vpop.f32.mrf.mxu1 }
 0x2c5   : > { %v2052_v38 = vpop.f32.mrf.mxu3  ;;  %v1807_v61 = vadd.f32 %v1769_v51, %v3651_v58 }
 0x2c6   : > { %v2330_v41 = vpack.c.bf16 %v2298_v1, %v2298_v1  ;;  %v2093_v21 = vadd.f32 %v2052_v38, %v1938_v54 }
 0x2c7   : > { %v1899_v23 = vpop.f32.mrf.mxu2 }
 0x2c8   : > { %2363 = vst.msk [vmem:[%s3689_s29 + $0x64] sm:$0xf] %vm2337_vm8, %v2330_v41  ;;  %v2231_v37 = vadd.f32 %v2190_v6, %v2093_v21  ;;  %v1939_v8 = vadd.f32 %v1899_v23, %v1806_v35 }
 0x2ca   : > { %v2267_v49 = vadd.f32 %v3677_v55, %v2231_v37 }
 0x2cb   : > { %v2192_v28 = vpop.f32.mrf.mxu0 }
 0x2cc   : > { %v2299_v14 = vmax.f32 %v2267_v49, 0.0  ;;  %v1771_v40 = vpop.f32.mrf.mxu1 }
 0x2cd   : > { %v2054_v30 = vpop.f32.mrf.mxu3  ;;  %v1808_v12 = vadd.f32 %v1771_v40, %v3656_v29 }
 0x2ce   : > { %v2331_v16 = vpack.c.bf16 %v2299_v14, %v2299_v14  ;;  %v2094_v42 = vadd.f32 %v2054_v30, %v1939_v8 }
 0x2cf   : > { %v1902_v44 = vpop.f32.mrf.mxu2 }
 0x2d0   : > { %2364 = vst.msk [vmem:[%s3689_s29 + $0x68] sm:$0xf] %vm2337_vm8, %v2331_v16  ;;  %v2232_v45 = vadd.f32 %v2192_v28, %v2094_v42  ;;  %v1940_v60 = vadd.f32 %v1902_v44, %v1807_v61 }
 0x2d2   : > { %v2268_v50 = vadd.f32 %v3677_v55, %v2232_v45 }
 0x2d3   : > { %v2195_v34 = vpop.f32.mrf.mxu0 }
 0x2d4   : > { %v2300_v11 = vmax.f32 %v2268_v50, 0.0  ;;  %v1774_v17 = vpop.f32.mrf.mxu1 }
 0x2d5   : > { %v2057_v52 = vpop.f32.mrf.mxu3  ;;  %v1809_v2 = vadd.f32 %v1774_v17, %v3665_v22 }
 0x2d6   : > { %v2332_v36 = vpack.c.bf16 %v2300_v11, %v2300_v11  ;;  %v2095_v62 = vadd.f32 %v2057_v52, %v1940_v60 }
 0x2d7   : > { %v1904_v39 = vpop.f32.mrf.mxu2 }
 0x2d8   : > { %2365 = vst.msk [vmem:[%s3689_s29 + $0x6c] sm:$0xf] %vm2337_vm8, %v2332_v36  ;;  %v2233_v43 = vadd.f32 %v2195_v34, %v2095_v62  ;;  %v1941_v58 = vadd.f32 %v1904_v39, %v1808_v12 }
 0x2da   : > { %v2269_v31 = vadd.f32 %v3677_v55, %v2233_v43 }
 0x2db   : > { %v2197_v24 = vpop.f32.mrf.mxu0 }
 0x2dc   : > { %v2301_v0 = vmax.f32 %v2269_v31, 0.0  ;;  %v1776_v27 = vpop.f32.mrf.mxu1 }
 0x2dd   : > { %v2059_v10 = vpop.f32.mrf.mxu3  ;;  %v1810_v48 = vadd.f32 %v1776_v27, %v3670_v57 }
 0x2de   : > { %v2333_v7 = vpack.c.bf16 %v2301_v0, %v2301_v0  ;;  %v2096_v46 = vadd.f32 %v2059_v10, %v1941_v58 }
 0x2df   : > { %v1907_v20 = vpop.f32.mrf.mxu2 }
 0x2e0   : > { %2366 = vst.msk [vmem:[%s3689_s29 + $0x70] sm:$0xf] %vm2337_vm8, %v2333_v7  ;;  %v2234_v56 = vadd.f32 %v2197_v24, %v2096_v46  ;;  %v1942_v29 = vadd.f32 %v1907_v20, %v1809_v2 }
 0x2e2   : > { %v2270_v15 = vadd.f32 %v3677_v55, %v2234_v56 }
 0x2e3   : > { %v2200_v9 = vpop.f32.mrf.mxu0 }
 0x2e4   : > { %v2302_v13 = vmax.f32 %v2270_v15, 0.0 }
 0x2e5   : > { %v2062_v26 = vpop.f32.mrf.mxu3 }
 0x2e6   : > { %v2334_v19 = vpack.c.bf16 %v2302_v13, %v2302_v13  ;;  %v2097_v47 = vadd.f32 %v2062_v26, %v1942_v29 }
 0x2e7   : > { %v1909_v63 = vpop.f32.mrf.mxu2 }
 0x2e8   : > { %2367 = vst.msk [vmem:[%s3689_s29 + $0x74] sm:$0xf] %vm2337_vm8, %v2334_v19  ;;  %v2235_v33 = vadd.f32 %v2200_v9, %v2097_v47  ;;  %v1943_v32 = vadd.f32 %v1909_v63, %v1810_v48 }
 0x2ea   : > { %v2271_v22 = vadd.f32 %v3677_v55, %v2235_v33 }
 0x2eb   : > { %v2202_v53 = vpop.f32.mrf.mxu0 }
 0x2ec   : > { %v2303_v25 = vmax.f32 %v2271_v22, 0.0 }
 0x2ed   : > { %v2064_v59 = vpop.f32.mrf.mxu3 }
 0x2ee   : > { %v2335_v3 = vpack.c.bf16 %v2303_v25, %v2303_v25  ;;  %v2098_v4 = vadd.f32 %v2064_v59, %v1943_v32 }
 0x2f0   : > { %2368 = vst.msk [vmem:[%s3689_s29 + $0x78] sm:$0xf] %vm2337_vm8, %v2335_v3  ;;  %v2236_v5 = vadd.f32 %v2202_v53, %v2098_v4 }
 0x2f2   : > { %v2272_v18 = vadd.f32 %v3677_v55, %v2236_v5 }
 0x2f4   : > { %v2304_v54 = vmax.f32 %v2272_v18, 0.0 }
 0x2f6   : > { %v2336_v1 = vpack.c.bf16 %v2304_v54, %v2304_v54 }
 0x2f8   : > { %2369 = vst.msk [vmem:[%s3689_s29 + $0x7c] sm:$0xf] %vm2337_vm8, %v2336_v1 }
 0x2f9 PF: > { %s13_s12 = sadd.s32 1, %s2716_s12  }
 0x2fa   : > { %p10_p4 = scmp.ge.s32.totalorder %s13_s12, 4  }
 0x2fc   :  { %12 = sbr.rel (!%p10_p4) target bundleno = 1 (0x1), region = 62 }

// kernel: homography_model_forward.13
= control target key start
LH: loop header
LB: loop body
LE: loop exit
PB: predicated region body
PF: predicated region fallthrough
CT: control target
= control target key end

     0   :  { %s852_s12 = smov 0   ;;  %s1074_s0 = inlined_call_operand.vmem [shape: bf16[2,6,6,16], index: 0, kind: input, shape index: {}]   ;;  %s1075_s1 = inlined_call_operand.vmem [shape: bf16[144,16], index: 1, kind: input, shape index: {}]   ;;  %s1076_s2 = inlined_call_operand.vmem [shape: f32[1,16], index: 2, kind: input, shape index: {}]   ;;  %s1077_s3 = inlined_call_operand.vmem [shape: bf16[2,4,4,16], index: 3, kind: output, shape index: {}]  }
   0x1 LB: > { %s743_s13 = sadd.s32 4294967295, %s830_s12   ;;  %p747_p0 = scmp.ge.s32.totalorder %s830_s12, 1  ;;  %s830_s12 = sphi %s852_s12, %s13_s12  }
   0x2   : > { %p137_p1 = scmp.lt.s32.totalorder %s830_s12, 3 }
   0x4   : > { %p138_p2 = pnand %p747_p0, %p137_p1 }
   0x5   : > { %p161_p3 = scmp.lt.s32.totalorder (!%p138_p2), %s743_s13, 1 }
   0x6   : > { %141 = sbr.rel (%p138_p2) target bundleno = 275 (0x113), region = 32 }
   0xb   : > { %v806_v0 = vld [vmem:[%s1075_s1 + $0x8] sm:$0xff]  ;;  %s1083_s13 = smov (!%p161_p3, %s743_s13), 1  ;;  %v807_v1 = vld [vmem:[%s1075_s1 + $0x10] sm:$0xff]  ;;  %vm204_vm0 = vcmask 1041408   ;;  %vm208_vm1 = vcmask 1043458   ;;  %v805_v59 = vld [vmem:[%s1075_s1] sm:$0xff] }
   0xc   : > { %317 = vmatpush.bf16.msra.mxu0 %v806_v0  ;;  %s814_s16 = smul.u32 24, %s1083_s13  ;;  %vm230_vm2 = vsmask.f32 1280  ;;  %408 = vmatpush.bf16.msra.mxu2 %v807_v1  ;;  %vm231_vm3 = vsmask.f32 3336  ;;  %v808_v60 = vld [vmem:[%s1075_s1 + $0x18] sm:$0xff] }
   0xd   : > { %vm233_vm4 = vsmask.f32 5392  ;;  %vm232_vm5 = vmor %vm230_vm2, %vm231_vm3  ;;  %vm235_vm7 = vsmask.f32 7448  ;;  %347 = vmatpush.bf16.msra.mxu1 %v805_v59  ;;  %441 = vmatpush.bf16.msra.mxu3 %v808_v60  ;;  %vm358_vm9 = vcmask 1040384   ;;  %vm359_vm10 = vcmask 1042434  }
   0xe   : > { %s872_s21 = scalar_lea.vmem %s1074_s0, %s814_s16  ;;  %vm234_vm6 = vmor %vm232_vm5, %vm233_vm4  ;;  %vm307_vm11 = vcmask 130048   ;;  %vm361_vm13 = vcmask 1044484   ;;  %vm363_vm15 = vcmask 1046534   ;;  %v809_v62 = vld [vmem:[%s1075_s1 + $0x20] sm:$0xff]  ;;  %s804_s11 = sshll.u32 %s1083_s13, 3 }
   0xf   : > { %v875_v2 = vld [vmem:[%s872_s21] sm:$0x7]  ;;  %v878_v3 = vld [vmem:[%s872_s21 + $0x4] sm:$0x7]  ;;  %v881_v4 = vld [vmem:[%s872_s21 + $0x8] sm:$0x7]  ;;  %s170_s16 = scalar_lea.vmem %s1077_s3, %s804_s11 }
  0x10   : > { %v884_v5 = vld [vmem:[%s872_s21 + $0xc] sm:$0x7]  ;;  %v200_v6 = vrot.slane %v875_v2, 2  ;;  %v201_v7 = vrot.slane %v878_v3, 2  ;;  %v202_v8 = vrot.slane %v881_v4, 2  ;;  %vm942_vm8 = vmor %vm234_vm6, %vm235_vm7  ;;  %494 = vmatpush.bf16.msrb.mxu0 %v809_v62 }
  0x11   : > { %v203_v9 = vrot.slane %v884_v5, 2  ;;  %vm360_vm12 = vmor %vm358_vm9, %vm359_vm10 }
  0x12   : > { %v892_v10 = vsel %vm204_vm0, %v875_v2, %v200_v6  ;;  %v896_v11 = vsel %vm208_vm1, %v875_v2, %v200_v6  ;;  %v900_v12 = vsel %vm204_vm0, %v878_v3, %v201_v7  ;;  %v904_v13 = vsel %vm208_vm1, %v878_v3, %v201_v7  ;;  %vm362_vm14 = vmor %vm360_vm12, %vm361_vm13 }
  0x13   : > { %v211_v14 = vrot.slane %v896_v11, 2  ;;  %v217_v15 = vrot.slane %v904_v13, 2  ;;  %v910_v16 = vsel %vm204_vm0, %v881_v4, %v202_v8  ;;  %v914_v17 = vsel %vm208_vm1, %v881_v4, %v202_v8  ;;  %vm982_vm2 = vmor %vm362_vm14, %vm363_vm15 }
  0x14   : > { %v223_v18 = vrot.slane %v914_v17, 2  ;;  %v919_v19 = vsel %vm204_vm0, %v884_v5, %v203_v9  ;;  %v923_v20 = vsel %vm208_vm1, %v884_v5, %v203_v9  ;;  %v237_v21 = vshrl.u32 %v892_v10, 16  ;;  %v993_v9 = vld [vmem:[%s872_s21 + $0x10] sm:$0x7] }
  0x15   : > { %v229_v22 = vrot.slane %v923_v20, 2  ;;  %v240_v23 = vshll.u32 %v892_v10, 16  ;;  %v246_v24 = vshll.u32 %v211_v14, 16  ;;  %v250_v25 = vshrl.u32 %v900_v12, 16  ;;  %v811_v20 = vld [vmem:[%s1075_s1 + $0x30] sm:$0xff] }
  0x16   : > { %v239_v26 = vrot.slane %v237_v21, 6  ;;  %v253_v27 = vshll.u32 %v900_v12, 16  ;;  %v259_v28 = vshll.u32 %v217_v15, 16  ;;  %v263_v29 = vshrl.u32 %v910_v16, 16  ;;  %565 = vmatpush.bf16.msrb.mxu2 %v811_v20 }
  0x17   : > { %v242_v30 = vrot.slane %v240_v23, 7  ;;  %v252_v31 = vrot.slane %v250_v25, 6  ;;  %v266_v32 = vshll.u32 %v910_v16, 16  ;;  %v248_v33 = vrot.slane %v246_v24, 7 }
  0x18   : > { %v255_v34 = vrot.slane %v253_v27, 7  ;;  %v265_v35 = vrot.slane %v263_v29, 6  ;;  %v272_v36 = vshll.u32 %v223_v18, 16  ;;  %v276_v39 = vshrl.u32 %v919_v19, 16 }
  0x19   : > { %v243_v37 = vor.u32 %v242_v30, %v239_v26  ;;  %v268_v38 = vrot.slane %v266_v32, 7  ;;  %v279_v40 = vshll.u32 %v919_v19, 16  ;;  %v261_v43 = vrot.slane %v259_v28, 7  ;;  %v177_v28 = vld [vmem:[%s872_s21 + $0x14] sm:$0x7]  ;;  %v812_v32 = vld [vmem:[%s1075_s1 + $0x38] sm:$0xff] }
  0x1a   : > { %v256_v42 = vor.u32 %v255_v34, %v252_v31  ;;  %v274_v44 = vrot.slane %v272_v36, 7  ;;  %v285_v45 = vshll.u32 %v229_v22, 16  ;;  %v278_v48 = vrot.slane %v276_v39, 6  ;;  %618 = vmatpush.bf16.msrb.mxu3 %v812_v32 }
  0x1b   : > { %v244_v46 = vrot.slane %v243_v37, 2  ;;  %v269_v47 = vor.u32 %v268_v38, %v265_v35  ;;  %v281_v49 = vrot.slane %v279_v40, 7  ;;  %v761_v63 = vrot.slane %v892_v10, 9 }
  0x1c   : > { %v257_v50 = vrot.slane %v256_v42, 2  ;;  %v287_v54 = vrot.slane %v285_v45, 7  ;;  %v367_v0 = vrot.slane %v211_v14, 7  ;;  %v371_v6 = vrot.slane %v217_v15, 7 }
  0x1d   : > { %v249_v51 = vsel %vm942_vm8, %v244_v46, %v248_v33  ;;  %v270_v52 = vrot.slane %v269_v47, 2  ;;  %v282_v53 = vor.u32 %v281_v49, %v278_v48  ;;  %v763_v7 = vrot.slane %v910_v16, 9  ;;  %v813_v49 = vld [vmem:[%s1075_s1 + $0x40] sm:$0xff] }
  0x1e   : > { %v952_v55 = vsel %vm942_vm8, %v257_v50, %v261_v43  ;;  %290 = vst [vmem:[#allocation1] ss:$4 sm:$0xff] %v249_v51  ;;  %v375_v8 = vrot.slane %v223_v18, 7  ;;  %v764_v10 = vrot.slane %v919_v19, 9  ;;  %v379_v11 = vrot.slane %v229_v22, 7  ;;  %v810_v19 = vld [vmem:[%s1075_s1 + $0x28] sm:$0xff] }
  0x1f   : > { %v956_v56 = vsel %vm942_vm8, %v270_v52, %v274_v44  ;;  %v283_v57 = vrot.slane %v282_v53, 2  ;;  %293 = vst [vmem:[#allocation1 + $0x1] ss:$4 sm:$0xff] %v952_v55  ;;  %v368_v14 = vsel %vm982_vm2, %v761_v63, %v367_v0  ;;  %v451_v13 = vrot.slane %v993_v9, 2  ;;  %532 = vmatpush.bf16.msrb.mxu1 %v810_v19 }
  0x20   : > { %296 = vst [vmem:[#allocation1 + $0x2] ss:$4 sm:$0xff] %v956_v56  ;;  %v1005_v16 = vsel %vm982_vm2, %v763_v7, %v375_v8  ;;  %v1009_v17 = vsel %vm982_vm2, %v764_v10, %v379_v11  ;;  %v575_v30 = vrot.slane %v177_v28, 2 }
  0x21   : > { %v962_v58 = vsel %vm942_vm8, %v283_v57, %v287_v54  ;;  %v453_v18 = vsel %vm204_vm0, %v993_v9, %v451_v13  ;;  %v454_v23 = vsel %vm208_vm1, %v993_v9, %v451_v13 }
  0x22   : > { %299 = vst [vmem:[#allocation1 + $0x3] ss:$4 sm:$0xff] %v962_v58  ;;  %v457_v21 = vshrl.u32 %v453_v18, 16  ;;  %v460_v22 = vshll.u32 %v453_v18, 16  ;;  %v456_v27 = vrot.slane %v454_v23, 2  ;;  %v577_v33 = vsel %vm204_vm0, %v177_v28, %v575_v30 }
  0x23   : > { %v581_v34 = vshrl.u32 %v577_v33, 16  ;;  %v584_v35 = vshll.u32 %v577_v33, 16  ;;  %v780_v50 = vrot.slane %v453_v18, 9  ;;  %v796_v52 = vrot.slane %v577_v33, 9 }
  0x24   : > { %v459_v24 = vrot.slane %v457_v21, 6  ;;  %v462_v25 = vrot.slane %v460_v22, 7  ;;  %v466_v31 = vshll.u32 %v456_v27, 16  ;;  %v506_v51 = vrot.slane %v456_v27, 7  ;;  %v823_v22 = vld [vmem:[%s1076_s2] ss:$0 sm:$0xff] }
  0x25   : > { %v583_v39 = vrot.slane %v581_v34, 6  ;;  %v586_v40 = vrot.slane %v584_v35, 7  ;;  %vm683_vm0 = vcmask 123904  }
  0x26   : > { %v463_v29 = vor.u32 %v462_v25, %v459_v24  ;;  %v468_v37 = vrot.slane %v466_v31, 7 }
  0x27   : > { %v587_v42 = vor.u32 %v586_v40, %v583_v39 }
  0x28   : > { %v464_v36 = vrot.slane %v463_v29, 2 }
  0x29   : > { %v300_v61 = vld.sshfl [vmem:[#allocation1] sm:$0xff pattern:$0x73625140]  ;;  %v588_v46 = vrot.slane %v587_v42, 2 }
  0x2a   : > { %755 = vmatmul.msk.bf16.vlgmr.msra.gmra.mxu0 %vm307_vm11, %v300_v61  ;;  %324 = vst [vmem:[#allocation1] ss:$4 sm:$0xff] %v875_v2  ;;  %v762_v2 = vrot.slane %v900_v12, 9  ;;  %v469_v45 = vsel %vm942_vm8, %v464_v36, %v468_v37 }
  0x2b   : > { %326 = vst [vmem:[#allocation1 + $0x1] ss:$4 sm:$0xff] %v878_v3  ;;  %656 = vmatpush.bf16.msra.mxu0 %v813_v49 }
  0x2c   : > { %328 = vst [vmem:[#allocation1 + $0x2] ss:$4 sm:$0xff] %v881_v4  ;;  %v372_v12 = vsel %vm982_vm2, %v762_v2, %v371_v6 }
  0x2d   : > { %330 = vst [vmem:[#allocation1 + $0x3] ss:$4 sm:$0xff] %v884_v5 }
  0x34   : > { %v331_v15 = vld.sshfl [vmem:[#allocation1] sm:$0xff pattern:$0x73625140] }
  0x35   : > { %382 = vst [vmem:[#allocation1] ss:$4 sm:$0xff] %v368_v14  ;;  %760 = vmatmul.msk.bf16.vlgmr.msra.gmra.mxu1 %vm307_vm11, %v331_v15 }
  0x36   : > { %385 = vst [vmem:[#allocation1 + $0x1] ss:$4 sm:$0xff] %v372_v12 }
  0x37   : > { %388 = vst [vmem:[#allocation1 + $0x2] ss:$4 sm:$0xff] %v1005_v16 }
  0x38   : > { %391 = vst [vmem:[#allocation1 + $0x3] ss:$4 sm:$0xff] %v1009_v17 }
  0x3f   : > { %v392_v26 = vld.sshfl [vmem:[#allocation1] sm:$0xff pattern:$0x73625140] }
  0x40   : > { %769 = vmatmul.msk.bf16.vlgmr.msra.gmra.mxu2 %vm307_vm11, %v392_v26  ;;  %417 = vst [vmem:[#allocation1] ss:$4 sm:$0xff] %v878_v3  ;;  %v578_v3 = vsel %vm208_vm1, %v177_v28, %v575_v30 }
  0x41   : > { %419 = vst [vmem:[#allocation1 + $0x1] ss:$4 sm:$0xff] %v881_v4  ;;  %v580_v38 = vrot.slane %v578_v3, 2 }
  0x42   : > { %421 = vst [vmem:[#allocation1 + $0x2] ss:$4 sm:$0xff] %v884_v5 }
  0x43   : > { %424 = vst [vmem:[#allocation1 + $0x3] ss:$4 sm:$0xff] %v993_v9  ;;  %v590_v43 = vshll.u32 %v580_v38, 16  ;;  %v630_v53 = vrot.slane %v580_v38, 7 }
  0x45   : > { %v592_v47 = vrot.slane %v590_v43, 7  ;;  %v631_v41 = vsel %vm982_vm2, %v796_v52, %v630_v53 }
  0x47   : > { %v593_v48 = vsel %vm942_vm8, %v588_v46, %v592_v47 }
  0x4a   : > { %v425_v44 = vld.sshfl [vmem:[#allocation1] sm:$0xff pattern:$0x73625140] }
  0x4b   : > { %774 = vmatmul.msk.bf16.vlgmr.msra.gmra.mxu3 %vm307_vm11, %v425_v44  ;;  %470 = vst [vmem:[#allocation1] ss:$4 sm:$0xff] %v952_v55  ;;  %v507_v55 = vsel %vm982_vm2, %v780_v50, %v506_v51 }
  0x4c   : > { %472 = vst [vmem:[#allocation1 + $0x1] ss:$4 sm:$0xff] %v956_v56 }
  0x4d   : > { %474 = vst [vmem:[#allocation1 + $0x2] ss:$4 sm:$0xff] %v962_v58 }
  0x4e   : > { %477 = vst [vmem:[#allocation1 + $0x3] ss:$4 sm:$0xff] %v469_v45 }
  0x55   : > { %v478_v54 = vld.sshfl [vmem:[#allocation1] sm:$0xff pattern:$0x73625140] }
  0x56   : > { %779 = vmatmul.msk.bf16.vlgmr.msrb.gmra.mxu0 %vm307_vm11, %v478_v54  ;;  %508 = vst [vmem:[#allocation1] ss:$4 sm:$0xff] %v372_v12 }
  0x57   : > { %510 = vst [vmem:[#allocation1 + $0x1] ss:$4 sm:$0xff] %v1005_v16 }
  0x58   : > { %512 = vst [vmem:[#allocation1 + $0x2] ss:$4 sm:$0xff] %v1009_v17 }
  0x59   : > { %515 = vst [vmem:[#allocation1 + $0x3] ss:$4 sm:$0xff] %v507_v55 }
  0x60   : > { %v516_v57 = vld.sshfl [vmem:[#allocation1] sm:$0xff pattern:$0x73625140] }
  0x61   : > { %785 = vmatmul.msk.bf16.vlgmr.msrb.gmra.mxu1 %vm307_vm11, %v516_v57  ;;  %541 = vst [vmem:[#allocation1] ss:$4 sm:$0xff] %v881_v4 }
  0x62   : > { %543 = vst [vmem:[#allocation1 + $0x1] ss:$4 sm:$0xff] %v884_v5 }
  0x63   : > { %545 = vst [vmem:[#allocation1 + $0x2] ss:$4 sm:$0xff] %v993_v9 }
  0x64   : > { %548 = vst [vmem:[#allocation1 + $0x3] ss:$4 sm:$0xff] %v177_v28 }
  0x6b   : > { %v549_v59 = vld.sshfl [vmem:[#allocation1] sm:$0xff pattern:$0x73625140] }
  0x6c   : > { %790 = vmatmul.msk.bf16.vlgmr.msrb.gmra.mxu2 %vm307_vm11, %v549_v59  ;;  %594 = vst [vmem:[#allocation1] ss:$4 sm:$0xff] %v956_v56 }
  0x6d   : > { %596 = vst [vmem:[#allocation1 + $0x1] ss:$4 sm:$0xff] %v962_v58 }
  0x6e   : > { %598 = vst [vmem:[#allocation1 + $0x2] ss:$4 sm:$0xff] %v469_v45 }
  0x6f   : > { %601 = vst [vmem:[#allocation1 + $0x3] ss:$4 sm:$0xff] %v593_v48 }
  0x76   : > { %v602_v60 = vld.sshfl [vmem:[#allocation1] sm:$0xff pattern:$0x73625140] }
  0x77   : > { %795 = vmatmul.msk.bf16.vlgmr.msrb.gmra.mxu3 %vm307_vm11, %v602_v60  ;;  %632 = vst [vmem:[#allocation1] ss:$4 sm:$0xff] %v1005_v16 }
  0x78   : > { %634 = vst [vmem:[#allocation1 + $0x1] ss:$4 sm:$0xff] %v1009_v17 }
  0x79   : > { %636 = vst [vmem:[#allocation1 + $0x2] ss:$4 sm:$0xff] %v507_v55 }
  0x7a   : > { %639 = vst [vmem:[#allocation1 + $0x3] ss:$4 sm:$0xff] %v631_v41 }
  0x81   : > { %v640_v4 = vld.sshfl [vmem:[#allocation1] sm:$0xff pattern:$0x73625140] }
  0x82   : > { %801 = vmatmul.msk.bf16.vlgmr.msra.gmra.mxu0 %vm307_vm11, %v640_v4 }
  0xa7   : > { %v319_v5 = vpop.f32.mrf.mxu0 }
  0xaf   : > { %v321_v62 = vpop.f32.mrf.mxu0 }
  0xb2   : > { %v349_v61 = vpop.f32.mrf.mxu1 }
  0xb3   : > { %v350_v63 = vadd.f32 %v349_v61, %v319_v5 }
  0xba   : > { %v351_v0 = vpop.f32.mrf.mxu1 }
  0xbb   : > { %v352_v10 = vadd.f32 %v351_v0, %v321_v62 }
  0xc3   : > { %v410_v56 = vpop.f32.mrf.mxu2 }
  0xc4   : > { %v415_v1 = vadd.f32 %v410_v56, %v350_v63 }
  0xcb   : > { %v412_v6 = vpop.f32.mrf.mxu2 }
  0xcc   : > { %v416_v13 = vadd.f32 %v412_v6, %v352_v10 }
  0xce   : > { %v443_v58 = vpop.f32.mrf.mxu3 }
  0xcf   : > { %v448_v7 = vadd.f32 %v443_v58, %v415_v1 }
  0xd3   : > { %v496_v2 = vpop.f32.mrf.mxu0 }
  0xd4   : > { %v501_v11 = vadd.f32 %v496_v2, %v448_v7 }
  0xd6   : > { %v445_v8 = vpop.f32.mrf.mxu3 }
  0xd7   : > { %v449_v16 = vadd.f32 %v445_v8, %v416_v13 }
  0xdb   : > { %v498_v12 = vpop.f32.mrf.mxu0 }
  0xdc   : > { %v502_v21 = vadd.f32 %v498_v12, %v449_v16 }
  0xde   : > { %v534_v9 = vpop.f32.mrf.mxu1 }
  0xdf   : > { %v539_v15 = vadd.f32 %v534_v9, %v501_v11 }
  0xe6   : > { %v536_v20 = vpop.f32.mrf.mxu1 }
  0xe7   : > { %v540_v25 = vadd.f32 %v536_v20, %v502_v21 }
  0xef   : > { %v567_v14 = vpop.f32.mrf.mxu2 }
  0xf0   : > { %v572_v17 = vadd.f32 %v567_v14, %v539_v15 }
  0xf7   : > { %v569_v23 = vpop.f32.mrf.mxu2 }
  0xf8   : > { %v573_v27 = vadd.f32 %v569_v23, %v540_v25 }
  0xfa   : > { %v620_v18 = vpop.f32.mrf.mxu3 }
  0xfb   : > { %v625_v19 = vadd.f32 %v620_v18, %v572_v17 }
  0xff   : > { %v658_v24 = vpop.f32.mrf.mxu0 }
 0x100   : > { %v663_v26 = vadd.f32 %v658_v24, %v625_v19 }
 0x102   : > { %v669_v28 = vadd.f32 %v823_v22, %v663_v26  ;;  %v622_v29 = vpop.f32.mrf.mxu3 }
 0x103   : > { %v626_v31 = vadd.f32 %v622_v29, %v573_v27 }
 0x104   : > { %v671_v30 = vmax.f32 %v669_v28, 0.0 }
 0x106   : > { %v675_v32 = vrot.slane %v671_v30, 4  ;;  %v679_v33 = vpack.c.bf16 %v671_v30, %v671_v30 }
 0x107   : > { %v660_v34 = vpop.f32.mrf.mxu0 }
 0x108   : > { %v680_v35 = vpack.c.bf16 %v675_v32, %v675_v32  ;;  %684 = vst.msk [vmem:[%s170_s16] sm:$0x3] %vm683_vm0, %v679_v33  ;;  %v664_v36 = vadd.f32 %v660_v34, %v626_v31 }
 0x10a   : > { %685 = vst.msk [vmem:[%s170_s16 + $0x2] sm:$0x3] %vm683_vm0, %v680_v35  ;;  %v670_v3 = vadd.f32 %v823_v22, %v664_v36 }
 0x10c   : > { %v672_v37 = vmax.f32 %v670_v3, 0.0 }
 0x10e   : > { %v676_v38 = vrot.slane %v672_v37, 4  ;;  %v681_v39 = vpack.c.bf16 %v672_v37, %v672_v37 }
 0x110   : > { %v682_v40 = vpack.c.bf16 %v676_v38, %v676_v38  ;;  %686 = vst.msk [vmem:[%s170_s16 + $0x4] sm:$0x3] %vm683_vm0, %v681_v39 }
 0x112   : > { %687 = vst.msk [vmem:[%s170_s16 + $0x6] sm:$0x3] %vm683_vm0, %v682_v40 }
 0x113 PF: > { %s13_s12 = sadd.s32 1, %s830_s12  }
 0x114   : > { %p10_p4 = scmp.ge.s32.totalorder %s13_s12, 4  }
 0x116   :  { %12 = sbr.rel (!%p10_p4) target bundleno = 1 (0x1), region = 89 }

// kernel: homography_model_forward.14
= control target key start
LH: loop header
LB: loop body
LE: loop exit
PB: predicated region body
PF: predicated region fallthrough
CT: control target
= control target key end

     0   :  { %s935_s12 = smov 0   ;;  %s1170_s0 = inlined_call_operand.vmem [shape: bf16[2,6,6,16], index: 0, kind: input, shape index: {}]   ;;  %s1171_s1 = inlined_call_operand.vmem [shape: bf16[144,16], index: 1, kind: input, shape index: {}]   ;;  %s1172_s2 = inlined_call_operand.vmem [shape: f32[1,16], index: 2, kind: input, shape index: {}]   ;;  %s1173_s3 = inlined_call_operand.vmem [shape: bf16[2,2,2,16], index: 3, kind: output, shape index: {}]  }
   0x1 LB: > { %s824_s13 = sadd.s32 4294967295, %s913_s12   ;;  %p828_p0 = scmp.ge.s32.totalorder %s913_s12, 1  ;;  %s913_s12 = sphi %s935_s12, %s13_s12  }
   0x2   : > { %p137_p1 = scmp.lt.s32.totalorder %s913_s12, 3 }
   0x4   : > { %p138_p2 = pnand %p828_p0, %p137_p1 }
   0x5   : > { %p160_p3 = scmp.lt.s32.totalorder (!%p138_p2), %s824_s13, 1 }
   0x6   : > { %141 = sbr.rel (%p138_p2) target bundleno = 307 (0x133), region = 32 }
   0xb   : > { %v889_v0 = vld [vmem:[%s1171_s1 + $0x8] sm:$0xff]  ;;  %s1179_s13 = smov (!%p160_p3, %s824_s13), 1  ;;  %v890_v1 = vld [vmem:[%s1171_s1 + $0x10] sm:$0xff]  ;;  %vm202_vm0 = vcmask 1041408   ;;  %vm206_vm1 = vcmask 1043458   ;;  %v888_v59 = vld [vmem:[%s1171_s1] sm:$0xff] }
   0xc   : > { %315 = vmatpush.bf16.msra.mxu0 %v889_v0  ;;  %s897_s16 = smul.u32 24, %s1179_s13  ;;  %vm228_vm2 = vsmask.f32 1280  ;;  %406 = vmatpush.bf16.msra.mxu2 %v890_v1  ;;  %vm229_vm3 = vsmask.f32 3336  ;;  %v891_v60 = vld [vmem:[%s1171_s1 + $0x18] sm:$0xff] }
   0xd   : > { %vm231_vm4 = vsmask.f32 5392  ;;  %vm230_vm5 = vmor %vm228_vm2, %vm229_vm3  ;;  %vm233_vm7 = vsmask.f32 7448  ;;  %345 = vmatpush.bf16.msra.mxu1 %v888_v59  ;;  %439 = vmatpush.bf16.msra.mxu3 %v891_v60  ;;  %vm356_vm9 = vcmask 1040384   ;;  %vm357_vm10 = vcmask 1042434  }
   0xe   : > { %s955_s21 = scalar_lea.vmem %s1170_s0, %s897_s16  ;;  %vm232_vm6 = vmor %vm230_vm5, %vm231_vm4  ;;  %vm305_vm11 = vcmask 130048   ;;  %vm359_vm13 = vcmask 1044484   ;;  %vm361_vm15 = vcmask 1046534   ;;  %v892_v62 = vld [vmem:[%s1171_s1 + $0x20] sm:$0xff]  ;;  %s830_s11 = sshll.u32 %s1179_s13, 1 }
   0xf   : > { %v958_v2 = vld [vmem:[%s955_s21] sm:$0x7]  ;;  %v961_v3 = vld [vmem:[%s955_s21 + $0x4] sm:$0x7]  ;;  %v964_v4 = vld [vmem:[%s955_s21 + $0x8] sm:$0x7]  ;;  %s168_s16 = scalar_lea.vmem %s1173_s3, %s830_s11 }
  0x10   : > { %v967_v5 = vld [vmem:[%s955_s21 + $0xc] sm:$0x7]  ;;  %v198_v6 = vrot.slane %v958_v2, 2  ;;  %v199_v7 = vrot.slane %v961_v3, 2  ;;  %v200_v8 = vrot.slane %v964_v4, 2  ;;  %vm1025_vm8 = vmor %vm232_vm6, %vm233_vm7  ;;  %492 = vmatpush.bf16.msrb.mxu0 %v892_v62 }
  0x11   : > { %v201_v9 = vrot.slane %v967_v5, 2  ;;  %vm358_vm12 = vmor %vm356_vm9, %vm357_vm10 }
  0x12   : > { %v975_v10 = vsel %vm202_vm0, %v958_v2, %v198_v6  ;;  %v979_v11 = vsel %vm206_vm1, %v958_v2, %v198_v6  ;;  %v983_v12 = vsel %vm202_vm0, %v961_v3, %v199_v7  ;;  %v987_v13 = vsel %vm206_vm1, %v961_v3, %v199_v7  ;;  %vm360_vm14 = vmor %vm358_vm12, %vm359_vm13 }
  0x13   : > { %v209_v14 = vrot.slane %v979_v11, 2  ;;  %v215_v15 = vrot.slane %v987_v13, 2  ;;  %v993_v16 = vsel %vm202_vm0, %v964_v4, %v200_v8  ;;  %v997_v17 = vsel %vm206_vm1, %v964_v4, %v200_v8  ;;  %vm1066_vm2 = vmor %vm360_vm14, %vm361_vm15 }
  0x14   : > { %v221_v18 = vrot.slane %v997_v17, 2  ;;  %v1002_v19 = vsel %vm202_vm0, %v967_v5, %v201_v9  ;;  %v1006_v20 = vsel %vm206_vm1, %v967_v5, %v201_v9  ;;  %v235_v21 = vshrl.u32 %v975_v10, 16  ;;  %v1077_v9 = vld [vmem:[%s955_s21 + $0x10] sm:$0x7] }
  0x15   : > { %v227_v22 = vrot.slane %v1006_v20, 2  ;;  %v238_v23 = vshll.u32 %v975_v10, 16  ;;  %v244_v24 = vshll.u32 %v209_v14, 16  ;;  %v248_v25 = vshrl.u32 %v983_v12, 16  ;;  %v894_v20 = vld [vmem:[%s1171_s1 + $0x30] sm:$0xff] }
  0x16   : > { %v237_v26 = vrot.slane %v235_v21, 6  ;;  %v251_v27 = vshll.u32 %v983_v12, 16  ;;  %v257_v28 = vshll.u32 %v215_v15, 16  ;;  %v261_v29 = vshrl.u32 %v993_v16, 16  ;;  %563 = vmatpush.bf16.msrb.mxu2 %v894_v20 }
  0x17   : > { %v240_v30 = vrot.slane %v238_v23, 7  ;;  %v250_v31 = vrot.slane %v248_v25, 6  ;;  %v264_v32 = vshll.u32 %v993_v16, 16  ;;  %v246_v33 = vrot.slane %v244_v24, 7 }
  0x18   : > { %v253_v34 = vrot.slane %v251_v27, 7  ;;  %v263_v35 = vrot.slane %v261_v29, 6  ;;  %v270_v36 = vshll.u32 %v221_v18, 16  ;;  %v274_v39 = vshrl.u32 %v1002_v19, 16 }
  0x19   : > { %v241_v37 = vor.u32 %v240_v30, %v237_v26  ;;  %v266_v38 = vrot.slane %v264_v32, 7  ;;  %v277_v40 = vshll.u32 %v1002_v19, 16  ;;  %v259_v43 = vrot.slane %v257_v28, 7  ;;  %v175_v28 = vld [vmem:[%s955_s21 + $0x14] sm:$0x7]  ;;  %v895_v32 = vld [vmem:[%s1171_s1 + $0x38] sm:$0xff] }
  0x1a   : > { %v254_v42 = vor.u32 %v253_v34, %v250_v31  ;;  %v272_v44 = vrot.slane %v270_v36, 7  ;;  %v283_v45 = vshll.u32 %v227_v22, 16  ;;  %v276_v48 = vrot.slane %v274_v39, 6  ;;  %616 = vmatpush.bf16.msrb.mxu3 %v895_v32 }
  0x1b   : > { %v242_v46 = vrot.slane %v241_v37, 2  ;;  %v267_v47 = vor.u32 %v266_v38, %v263_v35  ;;  %v279_v49 = vrot.slane %v277_v40, 7  ;;  %v841_v63 = vrot.slane %v975_v10, 9 }
  0x1c   : > { %v255_v50 = vrot.slane %v254_v42, 2  ;;  %v285_v54 = vrot.slane %v283_v45, 7  ;;  %v365_v0 = vrot.slane %v209_v14, 7  ;;  %v369_v6 = vrot.slane %v215_v15, 7 }
  0x1d   : > { %v247_v51 = vsel %vm1025_vm8, %v242_v46, %v246_v33  ;;  %v268_v52 = vrot.slane %v267_v47, 2  ;;  %v280_v53 = vor.u32 %v279_v49, %v276_v48  ;;  %v843_v7 = vrot.slane %v993_v16, 9  ;;  %v896_v49 = vld [vmem:[%s1171_s1 + $0x40] sm:$0xff] }
  0x1e   : > { %v1035_v55 = vsel %vm1025_vm8, %v255_v50, %v259_v43  ;;  %288 = vst [vmem:[#allocation1] ss:$4 sm:$0xff] %v247_v51  ;;  %v373_v8 = vrot.slane %v221_v18, 7  ;;  %v844_v10 = vrot.slane %v1002_v19, 9  ;;  %v377_v11 = vrot.slane %v227_v22, 7  ;;  %v893_v19 = vld [vmem:[%s1171_s1 + $0x28] sm:$0xff] }
  0x1f   : > { %v1039_v56 = vsel %vm1025_vm8, %v268_v52, %v272_v44  ;;  %v281_v57 = vrot.slane %v280_v53, 2  ;;  %291 = vst [vmem:[#allocation1 + $0x1] ss:$4 sm:$0xff] %v1035_v55  ;;  %v366_v14 = vsel %vm1066_vm2, %v841_v63, %v365_v0  ;;  %v449_v13 = vrot.slane %v1077_v9, 2  ;;  %530 = vmatpush.bf16.msrb.mxu1 %v893_v19 }
  0x20   : > { %294 = vst [vmem:[#allocation1 + $0x2] ss:$4 sm:$0xff] %v1039_v56  ;;  %v1089_v16 = vsel %vm1066_vm2, %v843_v7, %v373_v8  ;;  %v1093_v17 = vsel %vm1066_vm2, %v844_v10, %v377_v11  ;;  %v573_v30 = vrot.slane %v175_v28, 2 }
  0x21   : > { %v1045_v58 = vsel %vm1025_vm8, %v281_v57, %v285_v54  ;;  %v451_v18 = vsel %vm202_vm0, %v1077_v9, %v449_v13  ;;  %v452_v23 = vsel %vm206_vm1, %v1077_v9, %v449_v13 }
  0x22   : > { %297 = vst [vmem:[#allocation1 + $0x3] ss:$4 sm:$0xff] %v1045_v58  ;;  %v455_v21 = vshrl.u32 %v451_v18, 16  ;;  %v458_v22 = vshll.u32 %v451_v18, 16  ;;  %v454_v27 = vrot.slane %v452_v23, 2  ;;  %v575_v33 = vsel %vm202_vm0, %v175_v28, %v573_v30 }
  0x23   : > { %v579_v34 = vshrl.u32 %v575_v33, 16  ;;  %v582_v35 = vshll.u32 %v575_v33, 16  ;;  %v860_v50 = vrot.slane %v451_v18, 9  ;;  %v876_v52 = vrot.slane %v575_v33, 9 }
  0x24   : > { %v457_v24 = vrot.slane %v455_v21, 6  ;;  %v460_v25 = vrot.slane %v458_v22, 7  ;;  %v464_v31 = vshll.u32 %v454_v27, 16  ;;  %v504_v51 = vrot.slane %v454_v27, 7  ;;  %v906_v22 = vld [vmem:[%s1172_s2] ss:$0 sm:$0xff] }
  0x25   : > { %v581_v39 = vrot.slane %v579_v34, 6  ;;  %v584_v40 = vrot.slane %v582_v35, 7 }
  0x26   : > { %v461_v29 = vor.u32 %v460_v25, %v457_v24  ;;  %v466_v37 = vrot.slane %v464_v31, 7 }
  0x27   : > { %v585_v42 = vor.u32 %v584_v40, %v581_v39 }
  0x28   : > { %v462_v36 = vrot.slane %v461_v29, 2 }
  0x29   : > { %v298_v61 = vld.sshfl [vmem:[#allocation1] sm:$0xff pattern:$0x73625140]  ;;  %v586_v46 = vrot.slane %v585_v42, 2 }
  0x2a   : > { %835 = vmatmul.msk.bf16.vlgmr.msra.gmra.mxu0 %vm305_vm11, %v298_v61  ;;  %322 = vst [vmem:[#allocation1] ss:$4 sm:$0xff] %v958_v2  ;;  %v842_v2 = vrot.slane %v983_v12, 9  ;;  %v467_v45 = vsel %vm1025_vm8, %v462_v36, %v466_v37 }
  0x2b   : > { %324 = vst [vmem:[#allocation1 + $0x1] ss:$4 sm:$0xff] %v961_v3  ;;  %654 = vmatpush.bf16.msra.mxu0 %v896_v49 }
  0x2c   : > { %326 = vst [vmem:[#allocation1 + $0x2] ss:$4 sm:$0xff] %v964_v4  ;;  %v370_v12 = vsel %vm1066_vm2, %v842_v2, %v369_v6 }
  0x2d   : > { %328 = vst [vmem:[#allocation1 + $0x3] ss:$4 sm:$0xff] %v967_v5 }
  0x34   : > { %v329_v15 = vld.sshfl [vmem:[#allocation1] sm:$0xff pattern:$0x73625140] }
  0x35   : > { %380 = vst [vmem:[#allocation1] ss:$4 sm:$0xff] %v366_v14  ;;  %840 = vmatmul.msk.bf16.vlgmr.msra.gmra.mxu1 %vm305_vm11, %v329_v15 }
  0x36   : > { %383 = vst [vmem:[#allocation1 + $0x1] ss:$4 sm:$0xff] %v370_v12 }
  0x37   : > { %386 = vst [vmem:[#allocation1 + $0x2] ss:$4 sm:$0xff] %v1089_v16 }
  0x38   : > { %389 = vst [vmem:[#allocation1 + $0x3] ss:$4 sm:$0xff] %v1093_v17 }
  0x3f   : > { %v390_v26 = vld.sshfl [vmem:[#allocation1] sm:$0xff pattern:$0x73625140] }
  0x40   : > { %849 = vmatmul.msk.bf16.vlgmr.msra.gmra.mxu2 %vm305_vm11, %v390_v26  ;;  %415 = vst [vmem:[#allocation1] ss:$4 sm:$0xff] %v961_v3  ;;  %v576_v3 = vsel %vm206_vm1, %v175_v28, %v573_v30 }
  0x41   : > { %417 = vst [vmem:[#allocation1 + $0x1] ss:$4 sm:$0xff] %v964_v4  ;;  %v578_v38 = vrot.slane %v576_v3, 2 }
  0x42   : > { %419 = vst [vmem:[#allocation1 + $0x2] ss:$4 sm:$0xff] %v967_v5 }
  0x43   : > { %422 = vst [vmem:[#allocation1 + $0x3] ss:$4 sm:$0xff] %v1077_v9  ;;  %v588_v43 = vshll.u32 %v578_v38, 16  ;;  %v628_v53 = vrot.slane %v578_v38, 7 }
  0x45   : > { %v590_v47 = vrot.slane %v588_v43, 7  ;;  %v629_v41 = vsel %vm1066_vm2, %v876_v52, %v628_v53 }
  0x47   : > { %v591_v48 = vsel %vm1025_vm8, %v586_v46, %v590_v47 }
  0x4a   : > { %v423_v44 = vld.sshfl [vmem:[#allocation1] sm:$0xff pattern:$0x73625140] }
  0x4b   : > { %854 = vmatmul.msk.bf16.vlgmr.msra.gmra.mxu3 %vm305_vm11, %v423_v44  ;;  %468 = vst [vmem:[#allocation1] ss:$4 sm:$0xff] %v1035_v55  ;;  %v505_v55 = vsel %vm1066_vm2, %v860_v50, %v504_v51 }
  0x4c   : > { %470 = vst [vmem:[#allocation1 + $0x1] ss:$4 sm:$0xff] %v1039_v56 }
  0x4d   : > { %472 = vst [vmem:[#allocation1 + $0x2] ss:$4 sm:$0xff] %v1045_v58 }
  0x4e   : > { %475 = vst [vmem:[#allocation1 + $0x3] ss:$4 sm:$0xff] %v467_v45 }
  0x55   : > { %v476_v54 = vld.sshfl [vmem:[#allocation1] sm:$0xff pattern:$0x73625140] }
  0x56   : > { %859 = vmatmul.msk.bf16.vlgmr.msrb.gmra.mxu0 %vm305_vm11, %v476_v54  ;;  %506 = vst [vmem:[#allocation1] ss:$4 sm:$0xff] %v370_v12 }
  0x57   : > { %508 = vst [vmem:[#allocation1 + $0x1] ss:$4 sm:$0xff] %v1089_v16 }
  0x58   : > { %510 = vst [vmem:[#allocation1 + $0x2] ss:$4 sm:$0xff] %v1093_v17 }
  0x59   : > { %513 = vst [vmem:[#allocation1 + $0x3] ss:$4 sm:$0xff] %v505_v55 }
  0x60   : > { %v514_v57 = vld.sshfl [vmem:[#allocation1] sm:$0xff pattern:$0x73625140] }
  0x61   : > { %865 = vmatmul.msk.bf16.vlgmr.msrb.gmra.mxu1 %vm305_vm11, %v514_v57  ;;  %539 = vst [vmem:[#allocation1] ss:$4 sm:$0xff] %v964_v4 }
  0x62   : > { %541 = vst [vmem:[#allocation1 + $0x1] ss:$4 sm:$0xff] %v967_v5 }
  0x63   : > { %543 = vst [vmem:[#allocation1 + $0x2] ss:$4 sm:$0xff] %v1077_v9 }
  0x64   : > { %546 = vst [vmem:[#allocation1 + $0x3] ss:$4 sm:$0xff] %v175_v28 }
  0x6b   : > { %v547_v59 = vld.sshfl [vmem:[#allocation1] sm:$0xff pattern:$0x73625140] }
  0x6c   : > { %870 = vmatmul.msk.bf16.vlgmr.msrb.gmra.mxu2 %vm305_vm11, %v547_v59  ;;  %592 = vst [vmem:[#allocation1] ss:$4 sm:$0xff] %v1039_v56 }
  0x6d   : > { %594 = vst [vmem:[#allocation1 + $0x1] ss:$4 sm:$0xff] %v1045_v58 }
  0x6e   : > { %596 = vst [vmem:[#allocation1 + $0x2] ss:$4 sm:$0xff] %v467_v45 }
  0x6f   : > { %599 = vst [vmem:[#allocation1 + $0x3] ss:$4 sm:$0xff] %v591_v48 }
  0x76   : > { %v600_v60 = vld.sshfl [vmem:[#allocation1] sm:$0xff pattern:$0x73625140] }
  0x77   : > { %875 = vmatmul.msk.bf16.vlgmr.msrb.gmra.mxu3 %vm305_vm11, %v600_v60  ;;  %630 = vst [vmem:[#allocation1] ss:$4 sm:$0xff] %v1089_v16 }
  0x78   : > { %632 = vst [vmem:[#allocation1 + $0x1] ss:$4 sm:$0xff] %v1093_v17 }
  0x79   : > { %634 = vst [vmem:[#allocation1 + $0x2] ss:$4 sm:$0xff] %v505_v55 }
  0x7a   : > { %637 = vst [vmem:[#allocation1 + $0x3] ss:$4 sm:$0xff] %v629_v41 }
  0x81   : > { %v638_v4 = vld.sshfl [vmem:[#allocation1] sm:$0xff pattern:$0x73625140] }
  0x82   : > { %881 = vmatmul.msk.bf16.vlgmr.msra.gmra.mxu0 %vm305_vm11, %v638_v4 }
  0xa7   : > { %v317_v5 = vpop.f32.mrf.mxu0 }
  0xaf   : > { %v319_v62 = vpop.f32.mrf.mxu0 }
  0xb2   : > { %v347_v61 = vpop.f32.mrf.mxu1 }
  0xb3   : > { %v348_v63 = vadd.f32 %v347_v61, %v317_v5 }
  0xba   : > { %v349_v0 = vpop.f32.mrf.mxu1 }
  0xbb   : > { %v350_v10 = vadd.f32 %v349_v0, %v319_v62 }
  0xc3   : > { %v408_v56 = vpop.f32.mrf.mxu2 }
  0xc4   : > { %v413_v1 = vadd.f32 %v408_v56, %v348_v63 }
  0xcb   : > { %v410_v6 = vpop.f32.mrf.mxu2 }
  0xcc   : > { %v414_v13 = vadd.f32 %v410_v6, %v350_v10 }
  0xce   : > { %v441_v58 = vpop.f32.mrf.mxu3 }
  0xcf   : > { %v446_v7 = vadd.f32 %v441_v58, %v413_v1 }
  0xd3   : > { %v494_v2 = vpop.f32.mrf.mxu0 }
  0xd4   : > { %v499_v11 = vadd.f32 %v494_v2, %v446_v7 }
  0xd6   : > { %v443_v8 = vpop.f32.mrf.mxu3 }
  0xd7   : > { %v447_v16 = vadd.f32 %v443_v8, %v414_v13 }
  0xdb   : > { %v496_v12 = vpop.f32.mrf.mxu0 }
  0xdc   : > { %v500_v21 = vadd.f32 %v496_v12, %v447_v16 }
  0xde   : > { %v532_v9 = vpop.f32.mrf.mxu1 }
  0xdf   : > { %v537_v15 = vadd.f32 %v532_v9, %v499_v11 }
  0xe6   : > { %v534_v20 = vpop.f32.mrf.mxu1 }
  0xe7   : > { %v538_v25 = vadd.f32 %v534_v20, %v500_v21 }
  0xef   : > { %v565_v14 = vpop.f32.mrf.mxu2 }
  0xf0   : > { %v570_v17 = vadd.f32 %v565_v14, %v537_v15 }
  0xf7   : > { %v567_v23 = vpop.f32.mrf.mxu2 }
  0xf8   : > { %v571_v27 = vadd.f32 %v567_v23, %v538_v25 }
  0xfa   : > { %v618_v18 = vpop.f32.mrf.mxu3 }
  0xfb   : > { %v623_v19 = vadd.f32 %v618_v18, %v570_v17 }
  0xff   : > { %v656_v24 = vpop.f32.mrf.mxu0 }
 0x100   : > { %v661_v26 = vadd.f32 %v656_v24, %v623_v19 }
 0x102   : > { %v667_v28 = vadd.f32 %v906_v22, %v661_v26  ;;  %v620_v29 = vpop.f32.mrf.mxu3 }
 0x103   : > { %v624_v31 = vadd.f32 %v620_v29, %v571_v27 }
 0x104   : > { %v669_v30 = vmax.f32 %v667_v28, 0.0 }
 0x106   : > { %v673_v32 = vrot.slane %v669_v30, 4 }
 0x107   : > { %v658_v33 = vpop.f32.mrf.mxu0 }
 0x108   : > { %v677_v34 = vmax.f32 %v669_v30, %v673_v32  ;;  %v662_v35 = vadd.f32 %v658_v33, %v624_v31 }
 0x10a   : > { %v681_v36 = vrot.slane %v677_v34, 2  ;;  %v668_v3 = vadd.f32 %v906_v22, %v662_v35 }
 0x10c   : > { %v683_v37 = vsel %vm202_vm0, %v677_v34, %v681_v36  ;;  %v684_v38 = vsel %vm206_vm1, %v677_v34, %v681_v36  ;;  %v670_v39 = vmax.f32 %v668_v3, 0.0 }
 0x10d   : > { %v685_v40 = vrot.slane %v684_v38, 2  ;;  %v882_v42 = vrot.slane %v683_v37, 9 }
 0x10e   : > { %v674_v43 = vrot.slane %v670_v39, 4 }
 0x10f   : > { %v883_v44 = vrot.slane %v685_v40, 9  ;;  %v705_v45 = vmax.f32 %v683_v37, %v882_v42 }
 0x110   : > { %v678_v46 = vmax.f32 %v670_v39, %v674_v43 }
 0x111   : > { %v706_v47 = vmax.f32 %v685_v40, %v883_v44  ;;  %v709_v48 = vpack.c.bf16 %v705_v45, %v705_v45 }
 0x112   : > { %v682_v49 = vrot.slane %v678_v46, 2 }
 0x113   : > { %v710_v50 = vpack.c.bf16 %v706_v47, %v706_v47  ;;  %v717_v51 = vrot.slane %v709_v48, 3 }
 0x114   : > { %v686_v52 = vsel %vm202_vm0, %v678_v46, %v682_v49  ;;  %v687_v53 = vsel %vm206_vm1, %v678_v46, %v682_v49  ;;  %vm752_vm0 = vcmask 1041409   ;;  %vm768_vm1 = vcmask 122880  }
 0x115   : > { %v718_v54 = vrot.slane %v710_v50, 3  ;;  %v724_v55 = vsel %vm356_vm9, %v709_v48, %v717_v51  ;;  %v688_v41 = vrot.slane %v687_v53, 2  ;;  %v884_v57 = vrot.slane %v686_v52, 9 }
 0x116   : > { %734 = vst [vmem:[#allocation1] ss:$4 sm:$0xff] %v724_v55 }
 0x117   : > { %v727_v59 = vsel %vm356_vm9, %v710_v50, %v718_v54  ;;  %v885_v60 = vrot.slane %v688_v41, 9  ;;  %v707_v4 = vmax.f32 %v686_v52, %v884_v57 }
 0x118   : > { %738 = vst [vmem:[#allocation1 + $0x20] ss:$4 sm:$0xff] %v727_v59 }
 0x119   : > { %v708_v5 = vmax.f32 %v688_v41, %v885_v60  ;;  %v711_v61 = vpack.c.bf16 %v707_v4, %v707_v4 }
 0x11b   : > { %v712_v62 = vpack.c.bf16 %v708_v5, %v708_v5  ;;  %v719_v56 = vrot.slane %v711_v61, 3 }
 0x11d   : > { %v720_v63 = vrot.slane %v712_v62, 3  ;;  %v730_v58 = vsel %vm356_vm9, %v711_v61, %v719_v56  ;;  %v735_v0 = vld [vmem:[#allocation1] sm:$0xf] }
 0x11e   : > { %741 = vst [vmem:[#allocation1] ss:$4 sm:$0xff] %v730_v58  ;;  %v747_v7 = vunpack.c.l.b16 %v735_v0 }
 0x11f   : > { %v733_v1 = vsel %vm356_vm9, %v712_v62, %v720_v63  ;;  %v739_v2 = vld [vmem:[#allocation1 + $0x20] sm:$0xf] }
 0x120   : > { %744 = vst [vmem:[#allocation1 + $0x20] ss:$4 sm:$0xff] %v733_v1  ;;  %v748_v6 = vunpack.c.l.b16 %v739_v2 }
 0x122   : > { %v751_v8 = vrot.slane %v748_v6, 7 }
 0x124   : > { %v753_v9 = vsel %vm752_vm0, %v751_v8, %v747_v7 }
 0x125   : > { %v756_v10 = vpack.c.b16 %v753_v9, %v753_v9  ;;  %v742_v11 = vld [vmem:[#allocation1] sm:$0xf] }
 0x126   : > { %v749_v16 = vunpack.c.l.b16 %v742_v11 }
 0x127   : > { %v745_v14 = vld [vmem:[#allocation1 + $0x20] sm:$0xf]  ;;  %v758_v12 = vrot.slane %v756_v10, 3 }
 0x128   : > { %v750_v13 = vunpack.c.l.b16 %v745_v14 }
 0x129   : > { %v762_v15 = vsel %vm356_vm9, %v756_v10, %v758_v12 }
 0x12a   : > { %v754_v17 = vrot.slane %v750_v13, 7  ;;  %769 = vst.msk [vmem:[%s168_s16] sm:$0x1] %vm768_vm1, %v762_v15 }
 0x12c   : > { %v755_v18 = vsel %vm752_vm0, %v754_v17, %v749_v16 }
 0x12d   : > { %v757_v19 = vpack.c.b16 %v755_v18, %v755_v18 }
 0x12f   : > { %v759_v20 = vrot.slane %v757_v19, 3 }
 0x131   : > { %v765_v21 = vsel %vm356_vm9, %v757_v19, %v759_v20 }
 0x132   : > { %770 = vst.msk [vmem:[%s168_s16 + $0x1] sm:$0x1] %vm768_vm1, %v765_v21 }
 0x133 PF: > { %s13_s12 = sadd.s32 1, %s913_s12  }
 0x134   : > { %p10_p4 = scmp.ge.s32.totalorder %s13_s12, 4  }
 0x136   :  { %12 = sbr.rel (!%p10_p4) target bundleno = 1 (0x1), region = 90 }

// kernel: homography_model_forward.16
= control target key start
LH: loop header
LB: loop body
LE: loop exit
PB: predicated region body
PF: predicated region fallthrough
CT: control target
= control target key end

     0   :  { %s854_s12 = smov 0   ;;  %s1021_s0 = inlined_call_operand.vmem [shape: bf16[2,4,4,32], index: 0, kind: input, shape index: {}]   ;;  %s1022_s1 = inlined_call_operand.vmem [shape: bf16[288,32], index: 1, kind: input, shape index: {}]   ;;  %s1023_s2 = inlined_call_operand.vmem [shape: f32[1,32], index: 2, kind: input, shape index: {}]   ;;  %s1024_s3 = inlined_call_operand.vmem [shape: bf16[2,2,2,32], index: 3, kind: output, shape index: {}]  }
   0x1 LB: > { %s703_s13 = sadd.s32 4294967295, %s832_s12   ;;  %p707_p0 = scmp.ge.s32.totalorder %s832_s12, 1  ;;  %s832_s12 = sphi %s854_s12, %s13_s12  }
   0x2   : > { %p137_p1 = scmp.lt.s32.totalorder %s832_s12, 3 }
   0x4   : > { %p138_p2 = pnand %p707_p0, %p137_p1 }
   0x5   : > { %p160_p3 = scmp.lt.s32.totalorder (!%p138_p2), %s703_s13, 1 }
   0x6   : > { %141 = sbr.rel (%p138_p2) target bundleno = 269 (0x10d), region = 32 }
   0xb   : > { %v802_v0 = vld [vmem:[%s1022_s1 + $0x18] sm:$0xff]  ;;  %v800_v1 = vld [vmem:[%s1022_s1 + $0x8] sm:$0xff]  ;;  %v801_v3 = vld [vmem:[%s1022_s1 + $0x10] sm:$0xff]  ;;  %vm218_vm0 = vcmask 1040384   ;;  %s1028_s13 = smov (!%p160_p3, %s703_s13), 1  ;;  %vm222_vm3 = vcmask 1042434  }
   0xc   : > { %v804_v2 = vld [vmem:[%s1022_s1 + $0x28] sm:$0xff]  ;;  %306 = vmatpush.bf16.msra.mxu0 %v802_v0  ;;  %337 = vmatpush.bf16.msra.mxu1 %v800_v1  ;;  %v799_v4 = vld [vmem:[%s1022_s1] sm:$0xff]  ;;  %vm248_vm1 = vsmask.f32 256  ;;  %vm249_vm2 = vsmask.f32 1284 }
   0xd   : > { %374 = vmatpush.bf16.msra.mxu2 %v804_v2  ;;  %v803_v5 = vld [vmem:[%s1022_s1 + $0x20] sm:$0xff]  ;;  %vm250_vm4 = vmor %vm248_vm1, %vm249_vm2  ;;  %vm251_vm5 = vsmask.f32 2312  ;;  %vm253_vm6 = vsmask.f32 3340  ;;  %s798_s26 = sshll.u32 %s1028_s13, 3 }
   0xe   : > { %vm226_vm7 = vcmask 1041408   ;;  %vm228_vm8 = vcmask 1041409   ;;  %vm230_vm9 = vcmask 1043459   ;;  %vm252_vm10 = vmor %vm250_vm4, %vm251_vm5  ;;  %vm255_vm11 = vsmask.f32 4368  ;;  %s886_s29 = scalar_lea.vmem %s1021_s0, %s798_s26  ;;  %v806_v6 = vld [vmem:[%s1022_s1 + $0x38] sm:$0xff] }
   0xf   : > { %vm232_vm12 = vcmask 1042433   ;;  %vm254_vm13 = vmor %vm252_vm10, %vm253_vm6  ;;  %vm257_vm14 = vsmask.f32 5396  ;;  %v170_v7 = vld [vmem:[%s886_s29] sm:$0x3]  ;;  %407 = vmatpush.bf16.msra.mxu3 %v806_v6  ;;  %v805_v48 = vld [vmem:[%s1022_s1 + $0x30] sm:$0xff] }
  0x10   : > { %307 = vmatpush.bf16.msra.mxu0 %v801_v3  ;;  %338 = vmatpush.bf16.msra.mxu1 %v799_v4  ;;  %v893_v8 = vld [vmem:[%s886_s29 + $0x2] sm:$0x3]  ;;  %vm259_vm15 = vsmask.f32 6424  ;;  %v212_v9 = vrot.slane %v170_v7, 1  ;;  %v213_v10 = vrot.slane %v170_v7, 2  ;;  %vm256_vm1 = vmor %vm254_vm13, %vm255_vm11 }
  0x11   : > { %375 = vmatpush.bf16.msra.mxu2 %v803_v5  ;;  %v214_v11 = vrot.slane %v170_v7, 3  ;;  %v215_v12 = vrot.slane %v893_v8, 1  ;;  %v216_v13 = vrot.slane %v893_v8, 2  ;;  %v217_v14 = vrot.slane %v893_v8, 3  ;;  %vm258_vm2 = vmor %vm256_vm1, %vm257_vm14  ;;  %v911_v23 = vld [vmem:[%s886_s29 + $0x6] sm:$0x3] }
  0x12   : > { %vm261_vm4 = vsmask.f32 7452  ;;  %v221_v15 = vsel %vm218_vm0, %v170_v7, %v212_v9  ;;  %v229_v17 = vsel %vm228_vm8, %v170_v7, %v212_v9  ;;  %vm260_vm5 = vmor %vm258_vm2, %vm259_vm15  ;;  %v543_v34 = vrot.slane %v911_v23, 1  ;;  %v950_v53 = vld [vmem:[%s886_s29 + $0x4] sm:$0x3]  ;;  %v808_v54 = vld [vmem:[%s1022_s1 + $0x48] sm:$0xff] }
  0x13   : > { %v225_v16 = vsel %vm222_vm3, %v213_v10, %v214_v11  ;;  %v231_v18 = vsel %vm230_vm9, %v213_v10, %v214_v11  ;;  %v238_v21 = vsel %vm218_vm0, %v893_v8, %v215_v12  ;;  %v241_v22 = vsel %vm222_vm3, %v216_v13, %v217_v14  ;;  %vm919_vm6 = vmor %vm260_vm5, %vm261_vm4  ;;  %408 = vmatpush.bf16.msra.mxu3 %v805_v48  ;;  %v810_v55 = vld [vmem:[%s1022_s1 + $0x58] sm:$0xff]  ;;  %v812_v56 = vld [vmem:[%s1022_s1 + $0x68] sm:$0xff]  ;;  %s710_s4 = sshll.u32 %s1028_s13, 1 }
  0x14   : > { %v227_v19 = vsel %vm226_vm7, %v221_v15, %v225_v16  ;;  %v233_v20 = vsel %vm232_vm12, %v229_v17, %v231_v18  ;;  %v242_v25 = vsel %vm226_vm7, %v238_v21, %v241_v22  ;;  %v243_v26 = vsel %vm228_vm8, %v893_v8, %v215_v12  ;;  %463 = vmatpush.bf16.msrb.mxu0 %v808_v54  ;;  %v807_v58 = vld [vmem:[%s1022_s1 + $0x40] sm:$0xff]  ;;  %v809_v59 = vld [vmem:[%s1022_s1 + $0x50] sm:$0xff]  ;;  %s168_s7 = scalar_lea.vmem %s1024_s3, %s710_s4 }
  0x15   : > { %v235_v24 = vrot.slane %v233_v20, 1  ;;  %v244_v27 = vsel %vm230_vm9, %v216_v13, %v217_v14  ;;  %v263_v30 = vshrl.u32 %v227_v19, 16  ;;  %v271_v33 = vshrl.u32 %v242_v25, 16  ;;  %501 = vmatpush.bf16.msrb.mxu1 %v810_v55  ;;  %534 = vmatpush.bf16.msrb.mxu2 %v812_v56  ;;  %v811_v63 = vld [vmem:[%s1022_s1 + $0x60] sm:$0xff]  ;;  %v814_v14 = vld [vmem:[%s1022_s1 + $0x78] sm:$0xff]  ;;  %v813_v15 = vld [vmem:[%s1022_s1 + $0x70] sm:$0xff] }
  0x16   : > { %v245_v28 = vsel %vm232_vm12, %v243_v26, %v244_v27  ;;  %v544_v35 = vrot.slane %v911_v23, 2  ;;  %v545_v38 = vrot.slane %v911_v23, 3  ;;  %v547_v39 = vsel %vm218_vm0, %v911_v23, %v543_v34  ;;  %v816_v19 = vld [vmem:[%s1022_s1 + $0x88] sm:$0xff]  ;;  %v815_v20 = vld [vmem:[%s1022_s1 + $0x80] sm:$0xff] }
  0x17   : > { %v247_v31 = vrot.slane %v245_v28, 1  ;;  %v268_v32 = vshll.u32 %v235_v24, 16  ;;  %v552_v41 = vsel %vm228_vm8, %v911_v23, %v543_v34  ;;  %vm297_vm10 = vcmask 261120   ;;  %590 = vmatpush.bf16.msrb.mxu3 %v814_v14 }
  0x18   : > { %v550_v42 = vsel %vm222_vm3, %v544_v35, %v545_v38  ;;  %v553_v43 = vsel %vm230_vm9, %v544_v35, %v545_v38  ;;  %v416_v60 = vrot.slane %v950_v53, 1  ;;  %v417_v61 = vrot.slane %v950_v53, 2  ;;  %464 = vmatpush.bf16.msrb.mxu0 %v807_v58 }
  0x19   : > { %v270_v36 = vsel %vm919_vm6, %v263_v30, %v268_v32  ;;  %v276_v37 = vshll.u32 %v247_v31, 16  ;;  %v551_v44 = vsel %vm226_vm7, %v547_v39, %v550_v42  ;;  %v554_v45 = vsel %vm232_vm12, %v552_v41, %v553_v43  ;;  %502 = vmatpush.bf16.msrb.mxu1 %v809_v59  ;;  %535 = vmatpush.bf16.msrb.mxu2 %v811_v63 }
  0x1a   : > { %280 = vst [vmem:[#allocation1] ss:$9 sm:$0xff] %v270_v36  ;;  %v556_v46 = vrot.slane %v554_v45, 1  ;;  %v557_v47 = vshrl.u32 %v551_v44, 16  ;;  %v418_v62 = vrot.slane %v950_v53, 3  ;;  %v425_v1 = vsel %vm228_vm8, %v950_v53, %v416_v60 }
  0x1b   : > { %v278_v40 = vsel %vm919_vm6, %v271_v33, %v276_v37  ;;  %v420_v4 = vsel %vm218_vm0, %v950_v53, %v416_v60  ;;  %591 = vmatpush.bf16.msrb.mxu3 %v813_v15  ;;  %vm647_vm0 = vcmask 253952  }
  0x1c   : > { %283 = vst [vmem:[#allocation1 + $0x1] ss:$9 sm:$0xff] %v278_v40  ;;  %v562_v49 = vshll.u32 %v556_v46, 16  ;;  %v426_v2 = vsel %vm230_vm9, %v417_v61, %v418_v62  ;;  %v423_v5 = vsel %vm222_vm3, %v417_v61, %v418_v62 }
  0x1d   : > { %v427_v3 = vsel %vm232_vm12, %v425_v1, %v426_v2  ;;  %v424_v9 = vsel %vm226_vm7, %v420_v4, %v423_v5 }
  0x1e   : > { %v943_v50 = vsel %vm919_vm6, %v557_v47, %v562_v49  ;;  %v429_v6 = vrot.slane %v427_v3, 1  ;;  %v430_v10 = vshrl.u32 %v424_v9, 16  ;;  %v825_v49 = vld [vmem:[%s1023_s2] ss:$0 sm:$0xff] }
  0x20   : > { %v435_v11 = vshll.u32 %v429_v6, 16 }
  0x22   : > { %v437_v12 = vsel %vm919_vm6, %v430_v10, %v435_v11 }
  0x23   : > { %v284_v51 = vld [vmem:[#allocation1] sm:$0xff] }
  0x24   : > { %721 = vmatmul.msk.bf16.vlgmr.msra.gmra.mxu0 %vm297_vm10, %v284_v51  ;;  %313 = vst [vmem:[#allocation1] ss:$9 sm:$0xff] %v170_v7 }
  0x25   : > { %315 = vst [vmem:[#allocation1 + $0x1] ss:$9 sm:$0xff] %v893_v8  ;;  %628 = vmatpush.bf16.msra.mxu0 %v816_v19 }
  0x26   : > { %347 = vst [vmem:[#allocation1 + $0x10] sm:$0xff] %v893_v8 }
  0x29   : > { %629 = vmatpush.bf16.msra.mxu0 %v815_v20 }
  0x2c   : > { %v316_v52 = vld [vmem:[#allocation1] sm:$0xff] }
  0x2d   : > { %730 = vmatmul.msk.bf16.vlgmr.msra.gmra.mxu1 %vm297_vm10, %v316_v52  ;;  %344 = vst [vmem:[#allocation1] sm:$0xff] %v170_v7  ;;  %v349_v57 = vld [vmem:[#allocation1 + $0x11] ss:$2 sm:$0xff] }
  0x34   : > { %v346_v0 = vld [vmem:[#allocation1 + $0x1] ss:$2 sm:$0xff] }
  0x35   : > { %350 = vst [vmem:[#allocation1] ss:$9 sm:$0xff] %v346_v0 }
  0x36   : > { %352 = vst [vmem:[#allocation1 + $0x1] ss:$9 sm:$0xff] %v349_v57 }
  0x3d   : > { %v353_v7 = vld [vmem:[#allocation1] sm:$0xff] }
  0x3e   : > { %739 = vmatmul.msk.bf16.vlgmr.msra.gmra.mxu2 %vm297_vm10, %v353_v7  ;;  %382 = vst [vmem:[#allocation1] ss:$9 sm:$0xff] %v893_v8 }
  0x3f   : > { %385 = vst [vmem:[#allocation1 + $0x1] ss:$9 sm:$0xff] %v950_v53 }
  0x46   : > { %v386_v13 = vld [vmem:[#allocation1] sm:$0xff] }
  0x47   : > { %748 = vmatmul.msk.bf16.vlgmr.msra.gmra.mxu3 %vm297_vm10, %v386_v13  ;;  %438 = vst [vmem:[#allocation1] ss:$9 sm:$0xff] %v278_v40 }
  0x48   : > { %441 = vst [vmem:[#allocation1 + $0x1] ss:$9 sm:$0xff] %v437_v12 }
  0x49   : > { %474 = vst [vmem:[#allocation1 + $0x10] sm:$0xff] %v950_v53 }
  0x4f   : > { %v442_v16 = vld [vmem:[#allocation1] sm:$0xff] }
  0x50   : > { %758 = vmatmul.msk.bf16.vlgmr.msrb.gmra.mxu0 %vm297_vm10, %v442_v16  ;;  %471 = vst [vmem:[#allocation1] sm:$0xff] %v893_v8  ;;  %v476_v17 = vld [vmem:[#allocation1 + $0x11] ss:$2 sm:$0xff] }
  0x57   : > { %v473_v18 = vld [vmem:[#allocation1 + $0x1] ss:$2 sm:$0xff] }
  0x58   : > { %477 = vst [vmem:[#allocation1] ss:$9 sm:$0xff] %v473_v18 }
  0x59   : > { %479 = vst [vmem:[#allocation1 + $0x1] ss:$9 sm:$0xff] %v476_v17 }
  0x60   : > { %v480_v21 = vld [vmem:[#allocation1] sm:$0xff] }
  0x61   : > { %767 = vmatmul.msk.bf16.vlgmr.msrb.gmra.mxu1 %vm297_vm10, %v480_v21  ;;  %509 = vst [vmem:[#allocation1] ss:$9 sm:$0xff] %v950_v53 }
  0x62   : > { %512 = vst [vmem:[#allocation1 + $0x1] ss:$9 sm:$0xff] %v911_v23 }
  0x69   : > { %v513_v8 = vld [vmem:[#allocation1] sm:$0xff] }
  0x6a   : > { %776 = vmatmul.msk.bf16.vlgmr.msrb.gmra.mxu2 %vm297_vm10, %v513_v8  ;;  %565 = vst [vmem:[#allocation1] ss:$9 sm:$0xff] %v437_v12 }
  0x6b   : > { %568 = vst [vmem:[#allocation1 + $0x1] ss:$9 sm:$0xff] %v943_v50 }
  0x6c   : > { %601 = vst [vmem:[#allocation1 + $0x10] sm:$0xff] %v911_v23 }
  0x72   : > { %v569_v22 = vld [vmem:[#allocation1] sm:$0xff] }
  0x73   : > { %786 = vmatmul.msk.bf16.vlgmr.msrb.gmra.mxu3 %vm297_vm10, %v569_v22  ;;  %598 = vst [vmem:[#allocation1] sm:$0xff] %v950_v53  ;;  %v603_v24 = vld [vmem:[#allocation1 + $0x11] ss:$2 sm:$0xff] }
  0x7a   : > { %v600_v25 = vld [vmem:[#allocation1 + $0x1] ss:$2 sm:$0xff] }
  0x7b   : > { %604 = vst [vmem:[#allocation1] ss:$9 sm:$0xff] %v600_v25 }
  0x7c   : > { %606 = vst [vmem:[#allocation1 + $0x1] ss:$9 sm:$0xff] %v603_v24 }
  0x83   : > { %v607_v26 = vld [vmem:[#allocation1] sm:$0xff] }
  0x84   : > { %795 = vmatmul.msk.bf16.vlgmr.msra.gmra.mxu0 %vm297_vm10, %v607_v26 }
  0xa1   : > { %v309_v27 = vpop.f32.mrf.mxu0 }
  0xa9   : > { %v311_v28 = vpop.f32.mrf.mxu0 }
  0xaa   : > { %v340_v29 = vpop.f32.mrf.mxu1 }
  0xab   : > { %v341_v30 = vadd.f32 %v340_v29, %v309_v27 }
  0xb2   : > { %v342_v31 = vpop.f32.mrf.mxu1 }
  0xc1   : > { %v377_v32 = vpop.f32.mrf.mxu2 }
  0xc2   : > { %v381_v40 = vadd.f32 %v377_v32, %v341_v30 }
  0xc9   : > { %v379_v33 = vpop.f32.mrf.mxu2 }
  0xca   : > { %v410_v23 = vpop.f32.mrf.mxu3 }
  0xcb   : > { %v414_v41 = vadd.f32 %v410_v23, %v381_v40 }
  0xcd   : > { %v466_v34 = vpop.f32.mrf.mxu0 }
  0xce   : > { %v470_v44 = vadd.f32 %v466_v34, %v414_v41 }
  0xd2   : > { %v412_v35 = vpop.f32.mrf.mxu3 }
  0xd5   : > { %v468_v36 = vpop.f32.mrf.mxu0 }
  0xde   : > { %v504_v37 = vpop.f32.mrf.mxu1 }
  0xdf   : > { %v508_v45 = vadd.f32 %v504_v37, %v470_v44 }
  0xe6   : > { %v506_v38 = vpop.f32.mrf.mxu1 }
  0xed   : > { %v537_v39 = vpop.f32.mrf.mxu2 }
  0xee   : > { %v541_v46 = vadd.f32 %v537_v39, %v508_v45 }
  0xf5   : > { %v539_v42 = vpop.f32.mrf.mxu2 }
  0xf6   : > { %v593_v43 = vpop.f32.mrf.mxu3 }
  0xf7   : > { %v597_v48 = vadd.f32 %v593_v43, %v541_v46 }
  0xfe   : > { %v595_v47 = vpop.f32.mrf.mxu3 }
 0x101   : > { %v631_v50 = vpop.f32.mrf.mxu0 }
 0x102   : > { %v635_v51 = vadd.f32 %v631_v50, %v597_v48 }
 0x104   : > { %v640_v52 = vadd.f32 %v825_v49, %v635_v51 }
 0x106   : > { %v641_v53 = vmax.f32 %v640_v52, 0.0 }
 0x108   : > { %v643_v54 = vrot.slane %v641_v53, 2  ;;  %v645_v55 = vpack.c.bf16 %v641_v53, %v641_v53 }
 0x109   : > { %v633_v56 = vpop.f32.mrf.mxu0 }
 0x10a   : > { %v646_v57 = vpack.c.bf16 %v643_v54, %v643_v54  ;;  %648 = vst.msk [vmem:[%s168_s7] sm:$0x1] %vm647_vm0, %v645_v55 }
 0x10c   : > { %649 = vst.msk [vmem:[%s168_s7 + $0x1] sm:$0x1] %vm647_vm0, %v646_v57 }
 0x10d PF: > { %s13_s12 = sadd.s32 1, %s832_s12  }
 0x10e   : > { %p10_p4 = scmp.ge.s32.totalorder %s13_s12, 4  }
 0x110   :  { %12 = sbr.rel (!%p10_p4) target bundleno = 1 (0x1), region = 77 }

// kernel: homography_model_forward.15
= control target key start
LH: loop header
LB: loop body
LE: loop exit
PB: predicated region body
PF: predicated region fallthrough
CT: control target
= control target key end

     0   :  { %s737_s12 = smov 0   ;;  %s860_s0 = inlined_call_operand.vmem [shape: bf16[2,4,4,16], index: 0, kind: input, shape index: {}]   ;;  %s861_s1 = inlined_call_operand.vmem [shape: bf16[144,32], index: 1, kind: input, shape index: {}]   ;;  %s862_s2 = inlined_call_operand.vmem [shape: f32[1,32], index: 2, kind: input, shape index: {}]   ;;  %s863_s3 = inlined_call_operand.vmem [shape: bf16[2,2,2,32], index: 3, kind: output, shape index: {}]  }
   0x1 LB: > { %s631_s13 = sadd.s32 4294967295, %s715_s12   ;;  %p635_p0 = scmp.ge.s32.totalorder %s715_s12, 1  ;;  %s715_s12 = sphi %s737_s12, %s13_s12  }
   0x2   : > { %p137_p1 = scmp.lt.s32.totalorder %s715_s12, 3 }
   0x4   : > { %p138_p2 = pnand %p635_p0, %p137_p1 }
   0x5   : > { %p160_p3 = scmp.lt.s32.totalorder (!%p138_p2), %s631_s13, 1 }
   0x6   : > { %141 = sbr.rel (%p138_p2) target bundleno = 268 (0x10c), region = 32 }
   0xb   : > { %v692_v0 = vld [vmem:[%s861_s1 + $0x8] sm:$0xff]  ;;  %v691_v1 = vld [vmem:[%s861_s1] sm:$0xff]  ;;  %v693_v2 = vld [vmem:[%s861_s1 + $0x10] sm:$0xff]  ;;  %s867_s13 = smov (!%p160_p3, %s631_s13), 1  ;;  %vm230_vm0 = vsmask.f32 256 }
   0xc   : > { %283 = vmatpush.bf16.msra.mxu0 %v692_v0  ;;  %308 = vmatpush.bf16.msra.mxu1 %v691_v1  ;;  %vm231_vm1 = vsmask.f32 1284  ;;  %vm233_vm3 = vsmask.f32 2312  ;;  %vm235_vm4 = vsmask.f32 3340 }
   0xd   : > { %339 = vmatpush.bf16.msra.mxu2 %v693_v2  ;;  %vm232_vm2 = vmor %vm230_vm0, %vm231_vm1  ;;  %s690_s20 = sshll.u32 %s867_s13, 3  ;;  %vm200_vm5 = vcmask 1040384   ;;  %vm204_vm6 = vcmask 1042434   ;;  %vm208_vm7 = vcmask 1041408   ;;  %vm237_vm9 = vsmask.f32 4368 }
   0xe   : > { %vm234_vm8 = vmor %vm232_vm2, %vm233_vm3  ;;  %s760_s23 = scalar_lea.vmem %s860_s0, %s690_s20  ;;  %vm210_vm10 = vcmask 1041409   ;;  %vm212_vm11 = vcmask 1043459   ;;  %vm214_vm12 = vcmask 1042433   ;;  %vm239_vm14 = vsmask.f32 5396  ;;  %v694_v44 = vld [vmem:[%s861_s1 + $0x18] sm:$0xff] }
   0xf   : > { %vm236_vm13 = vmor %vm234_vm8, %vm235_vm4  ;;  %v170_v3 = vld [vmem:[%s760_s23] sm:$0x3]  ;;  %v764_v4 = vld [vmem:[%s760_s23 + $0x2] sm:$0x3]  ;;  %vm241_vm15 = vsmask.f32 6424  ;;  %366 = vmatpush.bf16.msra.mxu3 %v694_v44 }
  0x10   : > { %v194_v5 = vrot.slane %v170_v3, 1  ;;  %v195_v6 = vrot.slane %v170_v3, 2  ;;  %v196_v7 = vrot.slane %v170_v3, 3  ;;  %v197_v8 = vrot.slane %v764_v4, 1  ;;  %vm238_vm0 = vmor %vm236_vm13, %vm237_vm9  ;;  %v779_v19 = vld [vmem:[%s760_s23 + $0x6] sm:$0x3] }
  0x11   : > { %v198_v9 = vrot.slane %v764_v4, 2  ;;  %v199_v10 = vrot.slane %v764_v4, 3  ;;  %vm240_vm1 = vmor %vm238_vm0, %vm239_vm14  ;;  %vm243_vm2 = vsmask.f32 7452  ;;  %v483_v30 = vrot.slane %v779_v19, 1  ;;  %v695_v50 = vld [vmem:[%s861_s1 + $0x20] sm:$0xff] }
  0x12   : > { %v203_v11 = vsel %vm200_vm5, %v170_v3, %v194_v5  ;;  %v207_v12 = vsel %vm204_vm6, %v195_v6, %v196_v7  ;;  %v211_v13 = vsel %vm210_vm10, %v170_v3, %v194_v5  ;;  %v213_v14 = vsel %vm212_vm11, %v195_v6, %v196_v7  ;;  %vm242_vm3 = vmor %vm240_vm1, %vm241_vm15  ;;  %v172_v49 = vld [vmem:[%s760_s23 + $0x4] sm:$0x3]  ;;  %v696_v51 = vld [vmem:[%s861_s1 + $0x28] sm:$0xff]  ;;  %416 = vmatpush.bf16.msrb.mxu0 %v695_v50  ;;  %s638_s11 = sshll.u32 %s867_s13, 1 }
  0x13   : > { %v209_v15 = vsel %vm208_vm7, %v203_v11, %v207_v12  ;;  %v215_v16 = vsel %vm214_vm12, %v211_v13, %v213_v14  ;;  %v220_v17 = vsel %vm200_vm5, %v764_v4, %v197_v8  ;;  %v223_v18 = vsel %vm204_vm6, %v198_v9, %v199_v10  ;;  %vm787_vm4 = vmor %vm242_vm3, %vm243_vm2  ;;  %v697_v52 = vld [vmem:[%s861_s1 + $0x30] sm:$0xff]  ;;  %448 = vmatpush.bf16.msrb.mxu1 %v696_v51  ;;  %v698_v7 = vld [vmem:[%s861_s1 + $0x38] sm:$0xff]  ;;  %s168_s16 = scalar_lea.vmem %s863_s3, %s638_s11 }
  0x14   : > { %v217_v20 = vrot.slane %v215_v16, 1  ;;  %v224_v21 = vsel %vm208_vm7, %v220_v17, %v223_v18  ;;  %v225_v22 = vsel %vm210_vm10, %v764_v4, %v197_v8  ;;  %v226_v23 = vsel %vm212_vm11, %v198_v9, %v199_v10  ;;  %475 = vmatpush.bf16.msrb.mxu2 %v697_v52  ;;  %525 = vmatpush.bf16.msrb.mxu3 %v698_v7  ;;  %v699_v11 = vld [vmem:[%s861_s1 + $0x40] sm:$0xff] }
  0x15   : > { %v227_v24 = vsel %vm214_vm12, %v225_v22, %v226_v23  ;;  %v245_v26 = vshrl.u32 %v209_v15, 16  ;;  %v253_v29 = vshrl.u32 %v224_v21, 16  ;;  %v484_v31 = vrot.slane %v779_v19, 2 }
  0x16   : > { %v229_v27 = vrot.slane %v227_v24, 1  ;;  %v250_v28 = vshll.u32 %v217_v20, 16  ;;  %v485_v34 = vrot.slane %v779_v19, 3  ;;  %v487_v35 = vsel %vm200_vm5, %v779_v19, %v483_v30 }
  0x17   : > { %v492_v37 = vsel %vm210_vm10, %v779_v19, %v483_v30  ;;  %vm273_vm8 = vcmask 130048   ;;  %v374_v54 = vrot.slane %v172_v49, 1  ;;  %v375_v55 = vrot.slane %v172_v49, 2 }
  0x18   : > { %v252_v32 = vsel %vm787_vm4, %v245_v26, %v250_v28  ;;  %v258_v33 = vshll.u32 %v229_v27, 16  ;;  %v490_v38 = vsel %vm204_vm6, %v484_v31, %v485_v34  ;;  %v493_v39 = vsel %vm212_vm11, %v484_v31, %v485_v34 }
  0x19   : > { %262 = vst [vmem:[#allocation1] ss:$9 sm:$0xff] %v252_v32  ;;  %v491_v40 = vsel %vm208_vm7, %v487_v35, %v490_v38  ;;  %v494_v41 = vsel %vm214_vm12, %v492_v37, %v493_v39  ;;  %v376_v56 = vrot.slane %v172_v49, 3  ;;  %v383_v58 = vsel %vm210_vm10, %v172_v49, %v374_v54 }
  0x1a   : > { %v260_v36 = vsel %vm787_vm4, %v253_v29, %v258_v33  ;;  %v496_v42 = vrot.slane %v494_v41, 1  ;;  %v497_v43 = vshrl.u32 %v491_v40, 16  ;;  %v378_v61 = vsel %vm200_vm5, %v172_v49, %v374_v54  ;;  %v708_v40 = vld [vmem:[%s862_s2] ss:$0 sm:$0xff] }
  0x1b   : > { %265 = vst [vmem:[#allocation1 + $0x1] ss:$9 sm:$0xff] %v260_v36  ;;  %v384_v59 = vsel %vm212_vm11, %v375_v55, %v376_v56  ;;  %v381_v62 = vsel %vm204_vm6, %v375_v55, %v376_v56  ;;  %vm575_vm5 = vcmask 253952  }
  0x1c   : > { %v502_v45 = vshll.u32 %v496_v42, 16  ;;  %v385_v60 = vsel %vm214_vm12, %v383_v58, %v384_v59  ;;  %v382_v1 = vsel %vm208_vm7, %v378_v61, %v381_v62 }
  0x1d   : > { %v387_v63 = vrot.slane %v385_v60, 1  ;;  %v388_v2 = vshrl.u32 %v382_v1, 16 }
  0x1e   : > { %v504_v46 = vsel %vm787_vm4, %v497_v43, %v502_v45 }
  0x22   : > { %v266_v47 = vld [vmem:[#allocation1] sm:$0xff] }
  0x23   : > { %645 = vmatmul.msk.bf16.vlgmr.msra.gmra.mxu0 %vm273_vm8, %v266_v47  ;;  %289 = vst [vmem:[#allocation1] ss:$9 sm:$0xff] %v170_v3 }
  0x24   : > { %291 = vst [vmem:[#allocation1 + $0x1] ss:$9 sm:$0xff] %v764_v4  ;;  %557 = vmatpush.bf16.msra.mxu0 %v699_v11 }
  0x25   : > { %317 = vst [vmem:[#allocation1 + $0x10] sm:$0xff] %v764_v4 }
  0x2b   : > { %v292_v48 = vld [vmem:[#allocation1] sm:$0xff] }
  0x2c   : > { %650 = vmatmul.msk.bf16.vlgmr.msra.gmra.mxu1 %vm273_vm8, %v292_v48  ;;  %314 = vst [vmem:[#allocation1] sm:$0xff] %v170_v3  ;;  %v319_v53 = vld [vmem:[#allocation1 + $0x11] ss:$2 sm:$0xff]  ;;  %v393_v3 = vshll.u32 %v387_v63, 16 }
  0x2e   : > { %v395_v5 = vsel %vm787_vm4, %v388_v2, %v393_v3 }
  0x33   : > { %v316_v57 = vld [vmem:[#allocation1 + $0x1] ss:$2 sm:$0xff] }
  0x34   : > { %320 = vst [vmem:[#allocation1] ss:$9 sm:$0xff] %v316_v57 }
  0x35   : > { %322 = vst [vmem:[#allocation1 + $0x1] ss:$9 sm:$0xff] %v319_v53 }
  0x3c   : > { %v323_v0 = vld [vmem:[#allocation1] sm:$0xff] }
  0x3d   : > { %655 = vmatmul.msk.bf16.vlgmr.msra.gmra.mxu2 %vm273_vm8, %v323_v0  ;;  %346 = vst [vmem:[#allocation1] ss:$9 sm:$0xff] %v764_v4 }
  0x3e   : > { %349 = vst [vmem:[#allocation1 + $0x1] ss:$9 sm:$0xff] %v172_v49 }
  0x45   : > { %v350_v6 = vld [vmem:[#allocation1] sm:$0xff] }
  0x46   : > { %660 = vmatmul.msk.bf16.vlgmr.msra.gmra.mxu3 %vm273_vm8, %v350_v6  ;;  %396 = vst [vmem:[#allocation1] ss:$9 sm:$0xff] %v260_v36 }
  0x47   : > { %399 = vst [vmem:[#allocation1 + $0x1] ss:$9 sm:$0xff] %v395_v5 }
  0x48   : > { %426 = vst [vmem:[#allocation1 + $0x10] sm:$0xff] %v172_v49 }
  0x4e   : > { %v400_v8 = vld [vmem:[#allocation1] sm:$0xff] }
  0x4f   : > { %666 = vmatmul.msk.bf16.vlgmr.msrb.gmra.mxu0 %vm273_vm8, %v400_v8  ;;  %423 = vst [vmem:[#allocation1] sm:$0xff] %v764_v4  ;;  %v428_v9 = vld [vmem:[#allocation1 + $0x11] ss:$2 sm:$0xff] }
  0x56   : > { %v425_v10 = vld [vmem:[#allocation1 + $0x1] ss:$2 sm:$0xff] }
  0x57   : > { %429 = vst [vmem:[#allocation1] ss:$9 sm:$0xff] %v425_v10 }
  0x58   : > { %431 = vst [vmem:[#allocation1 + $0x1] ss:$9 sm:$0xff] %v428_v9 }
  0x5f   : > { %v432_v12 = vld [vmem:[#allocation1] sm:$0xff] }
  0x60   : > { %671 = vmatmul.msk.bf16.vlgmr.msrb.gmra.mxu1 %vm273_vm8, %v432_v12  ;;  %455 = vst [vmem:[#allocation1] ss:$9 sm:$0xff] %v172_v49 }
  0x61   : > { %458 = vst [vmem:[#allocation1 + $0x1] ss:$9 sm:$0xff] %v779_v19 }
  0x68   : > { %v459_v13 = vld [vmem:[#allocation1] sm:$0xff] }
  0x69   : > { %676 = vmatmul.msk.bf16.vlgmr.msrb.gmra.mxu2 %vm273_vm8, %v459_v13  ;;  %505 = vst [vmem:[#allocation1] ss:$9 sm:$0xff] %v395_v5 }
  0x6a   : > { %508 = vst [vmem:[#allocation1 + $0x1] ss:$9 sm:$0xff] %v504_v46 }
  0x6b   : > { %535 = vst [vmem:[#allocation1 + $0x10] sm:$0xff] %v779_v19 }
  0x71   : > { %v509_v4 = vld [vmem:[#allocation1] sm:$0xff] }
  0x72   : > { %682 = vmatmul.msk.bf16.vlgmr.msrb.gmra.mxu3 %vm273_vm8, %v509_v4  ;;  %532 = vst [vmem:[#allocation1] sm:$0xff] %v172_v49  ;;  %v537_v14 = vld [vmem:[#allocation1 + $0x11] ss:$2 sm:$0xff] }
  0x79   : > { %v534_v15 = vld [vmem:[#allocation1 + $0x1] ss:$2 sm:$0xff] }
  0x7a   : > { %538 = vst [vmem:[#allocation1] ss:$9 sm:$0xff] %v534_v15 }
  0x7b   : > { %540 = vst [vmem:[#allocation1 + $0x1] ss:$9 sm:$0xff] %v537_v14 }
  0x82   : > { %v541_v16 = vld [vmem:[#allocation1] sm:$0xff] }
  0x83   : > { %687 = vmatmul.msk.bf16.vlgmr.msra.gmra.mxu0 %vm273_vm8, %v541_v16 }
  0xa0   : > { %v285_v17 = vpop.f32.mrf.mxu0 }
  0xa8   : > { %v287_v18 = vpop.f32.mrf.mxu0 }
  0xa9   : > { %v310_v20 = vpop.f32.mrf.mxu1 }
  0xaa   : > { %v311_v21 = vadd.f32 %v310_v20, %v285_v17 }
  0xb1   : > { %v312_v22 = vpop.f32.mrf.mxu1 }
  0xc0   : > { %v341_v23 = vpop.f32.mrf.mxu2 }
  0xc1   : > { %v345_v31 = vadd.f32 %v341_v23, %v311_v21 }
  0xc8   : > { %v343_v24 = vpop.f32.mrf.mxu2 }
  0xc9   : > { %v368_v25 = vpop.f32.mrf.mxu3 }
  0xca   : > { %v372_v32 = vadd.f32 %v368_v25, %v345_v31 }
  0xcc   : > { %v418_v19 = vpop.f32.mrf.mxu0 }
  0xcd   : > { %v422_v35 = vadd.f32 %v418_v19, %v372_v32 }
  0xd1   : > { %v370_v26 = vpop.f32.mrf.mxu3 }
  0xd4   : > { %v420_v27 = vpop.f32.mrf.mxu0 }
  0xdd   : > { %v450_v28 = vpop.f32.mrf.mxu1 }
  0xde   : > { %v454_v36 = vadd.f32 %v450_v28, %v422_v35 }
  0xe5   : > { %v452_v29 = vpop.f32.mrf.mxu1 }
  0xec   : > { %v477_v30 = vpop.f32.mrf.mxu2 }
  0xed   : > { %v481_v37 = vadd.f32 %v477_v30, %v454_v36 }
  0xf4   : > { %v479_v33 = vpop.f32.mrf.mxu2 }
  0xf5   : > { %v527_v34 = vpop.f32.mrf.mxu3 }
  0xf6   : > { %v531_v39 = vadd.f32 %v527_v34, %v481_v37 }
  0xfd   : > { %v529_v38 = vpop.f32.mrf.mxu3 }
 0x100   : > { %v559_v41 = vpop.f32.mrf.mxu0 }
 0x101   : > { %v563_v42 = vadd.f32 %v559_v41, %v531_v39 }
 0x103   : > { %v568_v43 = vadd.f32 %v708_v40, %v563_v42 }
 0x105   : > { %v569_v44 = vmax.f32 %v568_v43, 0.0 }
 0x107   : > { %v571_v45 = vrot.slane %v569_v44, 2  ;;  %v573_v46 = vpack.c.bf16 %v569_v44, %v569_v44 }
 0x108   : > { %v561_v47 = vpop.f32.mrf.mxu0 }
 0x109   : > { %v574_v48 = vpack.c.bf16 %v571_v45, %v571_v45  ;;  %576 = vst.msk [vmem:[%s168_s16] sm:$0x1] %vm575_vm5, %v573_v46 }
 0x10b   : > { %577 = vst.msk [vmem:[%s168_s16 + $0x1] sm:$0x1] %vm575_vm5, %v574_v48 }
 0x10c PF: > { %s13_s12 = sadd.s32 1, %s715_s12  }
 0x10d   : > { %p10_p4 = scmp.ge.s32.totalorder %s13_s12, 4  }
 0x10f   :  { %12 = sbr.rel (!%p10_p4) target bundleno = 1 (0x1), region = 77 }

// kernel: homography_model_forward.17
= control target key start
LH: loop header
LB: loop body
LE: loop exit
PB: predicated region body
PF: predicated region fallthrough
CT: control target
= control target key end

     0   :  { %vm141_vm0 = vcmask 523264   ;;  %vm158_vm1 = vcmask 64512   ;;  %s305_s1 = inlined_call_operand.vmem [shape: bf16[128,64], index: 1, kind: input, shape index: {}]   ;;  %s306_s3 = inlined_call_operand.vmem [shape: bf16[64,8], index: 3, kind: input, shape index: {}]   ;;  %s307_s2 = inlined_call_operand.vmem [shape: f32[1,64], index: 2, kind: input, shape index: {}]   ;;  %s308_s0 = inlined_call_operand.vmem [shape: bf16[8,128], index: 0, kind: input, shape index: {}]   ;;  %s309_s4 = inlined_call_operand.vmem [shape: f32[1,8], index: 4, kind: input, shape index: {}]   ;;  %s310_s5 = inlined_call_operand.vmem [shape: f32[8,8], index: 5, kind: output, shape index: {}]  }
   0x1   :  { %v220_v0 = vld [vmem:[%s305_s1 + $0x38] sm:$0xff]  ;;  %v219_v1 = vld [vmem:[%s305_s1 + $0x30] sm:$0xff]  ;;  %v218_v4 = vld [vmem:[%s305_s1 + $0x28] sm:$0xff] }
   0x2   :  { %90 = vmatpush.bf16.msra.mxu0 %v220_v0  ;;  %v224_v2 = vld [vmem:[%s306_s3 + $0x18] sm:$0xff]  ;;  %v223_v3 = vld [vmem:[%s306_s3 + $0x10] sm:$0xff]  ;;  %v217_v5 = vld [vmem:[%s305_s1 + $0x20] sm:$0xff] }
   0x3   :  { %149 = vmatpush.bf16.msra.mxu1 %v224_v2  ;;  %v216_v6 = vld [vmem:[%s305_s1 + $0x18] sm:$0xff]  ;;  %v215_v7 = vld [vmem:[%s305_s1 + $0x10] sm:$0xff]  ;;  %v214_v8 = vld [vmem:[%s305_s1 + $0x8] sm:$0xff] }
   0x4   :  { %v213_v9 = vld [vmem:[%s305_s1] sm:$0xff]  ;;  %v222_v11 = vld [vmem:[%s306_s3 + $0x8] sm:$0xff] }
   0x5   :  { %v21_v10 = vld [vmem:[%s308_s0] sm:$0xf] }
   0x6   :  { %91 = vmatpush.bf16.msra.mxu0 %v219_v1  ;;  %v221_v12 = vld [vmem:[%s306_s3] sm:$0xff] }
   0x7   :  { %150 = vmatpush.bf16.msra.mxu1 %v223_v3  ;;  %v225_v13 = vld [vmem:[%s307_s2] ss:$0 sm:$0xff] }
   0x8   :  { %v226_v19 = vld [vmem:[%s309_s4] ss:$0 sm:$0xff] }
   0xa   :  { %92 = vmatpush.bf16.msra.mxu0 %v218_v4 }
   0xb   :  { %151 = vmatpush.bf16.msra.mxu1 %v222_v11 }
   0xe   :  { %93 = vmatpush.bf16.msra.mxu0 %v217_v5 }
   0xf   :  { %152 = vmatpush.bf16.msra.mxu1 %v221_v12 }
  0x12   :  { %94 = vmatpush.bf16.msra.mxu0 %v216_v6 }
  0x16   :  { %95 = vmatpush.bf16.msra.mxu0 %v215_v7 }
  0x1a   :  { %96 = vmatpush.bf16.msra.mxu0 %v214_v8 }
  0x1e   :  { %97 = vmatpush.bf16.msra.mxu0 %v213_v9 }
  0x21   :  { %98 = vmatmul.bf16.vlgmr.msra.gmra.mxu0 %v21_v10 }
  0x9e   :  { %v99_v14 = vpop.f32.mrf.mxu0 }
  0x9f   :  { %v100_v15 = vadd.f32 %v225_v13, %v99_v14 }
  0xa1   :  { %v103_v16 = vmax.f32 %v100_v15, 0.0 }
  0xa3   :  { %v104_v17 = vpack.c.bf16 %v103_v16, %v103_v16 }
  0xa5   :  { %212 = vmatmul.msk.bf16.vlgmr.msra.gmra.mxu1 %vm141_vm0, %v104_v17 }
  0xa6   :  { %v101_v18 = vpop.f32.mrf.mxu0 }
 0x122   :  { %v154_v20 = vpop.f32.mrf.mxu1 }
 0x123   :  { %v155_v21 = vadd.f32 %v226_v19, %v154_v20 }
 0x125   :  { %159 = vst.msk [vmem:[%s310_s5] sm:$0xff] %vm158_vm1, %v155_v21 }
 0x12a   :  { %v156_v22 = vpop.f32.mrf.mxu1 }

</bundles_post_ra>
